<compile_context>
chip_gen: v7x
topology: tpu7x:2x2x1
jax: 0.10.0
libtpu: 0.0.40
codegen_flags: <defaults>
</compile_context>

<pallas_src>
import functools

import jax
import jax.numpy as jnp
from jax.experimental import pallas as pl
from jax.experimental.pallas import tpu as pltpu

FACE_PTS = 33
HAND_PTS = 42
FACE_PAD = 40      # 33 -> next multiple of 8 (sublane tile)
HAND_PAD = 48      # 42 -> next multiple of 8
FEAT_DIM = 3
HID1 = 64
HID2 = 128
OUT_DIM = 128
MAX_BLOCK_B = 128  # batch tile; sized for v7x's 64 MiB VMEM


def _round_up(x, m):
    return (x + m - 1) // m * m


def _pfe_kernel(xf_ref, xh_ref,
                w1f_ref, b1f_ref, w2f_ref, b2f_ref,
                w1h_ref, b1h_ref, w2h_ref, b2h_ref,
                wfc_f_ref, wfc_h_ref, bfc_ref,
                out_ref):
    """One batch tile: two point-wise conv branches + fused FC."""
    tb = out_ref.shape[0]

    def branch(x_ref, l_pad, w1_ref, b1_ref, w2_ref, b2_ref):
        # (TB, Lp, 3) -> (TB*Lp, 3); Lp is a multiple of 8 so this is aligned.
        x = x_ref[...].reshape(tb * l_pad, FEAT_DIM)
        w1 = w1_ref[...]                                  # (3, 64) f32
        # Conv1d(3->64, k=1): K=3 is far too small for the MXU -> 3 VPU FMAs.
        h = (x[:, 0:1] * w1[0:1, :]
             + x[:, 1:2] * w1[1:2, :]
             + x[:, 2:3] * w1[2:3, :]
             + b1_ref[...])
        h = jnp.maximum(h, 0.0)                           # f32 elementwise (v5e-safe)
        # Conv1d(64->128, k=1): bf16 MXU matmul, f32 accumulate, f32 bias/ReLU.
        h = jnp.dot(h.astype(jnp.bfloat16), w2_ref[...],
                    preferred_element_type=jnp.float32) + b2_ref[...]
        h = jnp.maximum(h, 0.0)                           # (TB*Lp, 128) f32
        # (8,128)-tile-aligned flatten; padded point rows hit zero FC-weight rows.
        return h.astype(jnp.bfloat16).reshape(tb, l_pad * HID2)

    hf = branch(xf_ref, FACE_PAD, w1f_ref, b1f_ref, w2f_ref, b2f_ref)
    hh = branch(xh_ref, HAND_PAD, w1h_ref, b1h_ref, w2h_ref, b2h_ref)

    # FC over the concatenated (point-major) features, bf16 in / f32 accumulate.
    out = (jnp.dot(hf, wfc_f_ref[...], preferred_element_type=jnp.float32)
           + jnp.dot(hh, wfc_h_ref[...], preferred_element_type=jnp.float32)
           + bfc_ref[...])
    out_ref[...] = out


def prepare_params(params):
    """One-time reformat of PyTorch-layout parameters (hoisted out of the call path)."""
    (w1f, b1f, w2f, b2f, w1h, b1h, w2h, b2h, wfc, bfc) = params

    def fc_block(w_block, n_pts, n_pad):
        # PyTorch flattens the (B, C, L) conv output channel-major: col = c*L + l.
        # Reorder to point-major (l, c), zero-pad points to n_pad, -> (n_pad*C, OUT) bf16.
        w = w_block.reshape(OUT_DIM, HID2, n_pts).transpose(2, 1, 0)   # (L, C, OUT)
        w = jnp.pad(w, ((0, n_pad - n_pts), (0, 0), (0, 0)))
        return w.reshape(n_pad * HID2, OUT_DIM).astype(jnp.bfloat16)

    return dict(
        w1f=w1f.T.astype(jnp.float32), b1f=b1f[None, :].astype(jnp.float32),
        w2f=w2f.T.astype(jnp.bfloat16), b2f=b2f[None, :].astype(jnp.float32),
        w1h=w1h.T.astype(jnp.float32), b1h=b1h[None, :].astype(jnp.float32),
        w2h=w2h.T.astype(jnp.bfloat16), b2h=b2h[None, :].astype(jnp.float32),
        wfc_f=fc_block(wfc[:, :HID2 * FACE_PTS], FACE_PTS, FACE_PAD),
        wfc_h=fc_block(wfc[:, HID2 * FACE_PTS:], HAND_PTS, HAND_PAD),
        bfc=bfc[None, :].astype(jnp.float32),
    )


@jax.jit
def point_feature_extractor(face_points, hand_points, prepared):
    """face_points: (B, 33, 3), hand_points: (B, 42, 3) -> (B, 128)."""
    B = face_points.shape[0]
    tb = min(MAX_BLOCK_B, _round_up(B, 8))
    b_pad = _round_up(B, tb)
    grid = (b_pad // tb,)

    # Zero-pad points (33->40, 42->48) and batch (B->b_pad). Padded point rows are
    # cancelled by the zero rows of the prepared FC weight; padded batch rows are
    # sliced off below.
    xf = jnp.pad(face_points.astype(jnp.float32),
                 ((0, b_pad - B), (0, FACE_PAD - FACE_PTS), (0, 0)))
    xh = jnp.pad(hand_points.astype(jnp.float32),
                 ((0, b_pad - B), (0, HAND_PAD - HAND_PTS), (0, 0)))

    p = prepared
    weight_args = (p["w1f"], p["b1f"], p["w2f"], p["b2f"],
                   p["w1h"], p["b1h"], p["w2h"], p["b2h"],
                   p["wfc_f"], p["wfc_h"], p["bfc"])

    def const_spec(arr):
        nd = arr.ndim
        return pl.BlockSpec(arr.shape, lambda i, _nd=nd: (0,) * _nd)

    out = pl.pallas_call(
        _pfe_kernel,
        out_shape=jax.ShapeDtypeStruct((b_pad, OUT_DIM), jnp.float32),
        grid=grid,
        in_specs=[pl.BlockSpec((tb, FACE_PAD, FEAT_DIM), lambda i: (i, 0, 0)),
                  pl.BlockSpec((tb, HAND_PAD, FEAT_DIM), lambda i: (i, 0, 0)),
                  *[const_spec(a) for a in weight_args]],
        out_specs=pl.BlockSpec((tb, OUT_DIM), lambda i: (i, 0)),
        compiler_params=pltpu.CompilerParams(
            dimension_semantics=("parallel",),
            vmem_limit_bytes=48 * 1024 * 1024),
    )(xf, xh, *weight_args)
    return out[:B]


def _init_params(key):
    """Deterministic synthetic parameters matching the PyTorch module shapes."""
    ks = jax.random.split(key, 10)

    def u(k, shape, scale):
        return jax.random.uniform(k, shape, jnp.float32, -1.0, 1.0) * scale

    w1f = u(ks[0], (HID1, FEAT_DIM), 0.5)          # Conv1d(3,64,1).weight (k squeezed)
    b1f = u(ks[1], (HID1,), 0.1)
    w2f = u(ks[2], (HID2, HID1), 0.1)              # Conv1d(64,128,1).weight
    b2f = u(ks[3], (HID2,), 0.1)
    w1h = u(ks[4], (HID1, FEAT_DIM), 0.5)
    b1h = u(ks[5], (HID1,), 0.1)
    w2h = u(ks[6], (HID2, HID1), 0.1)
    b2h = u(ks[7], (HID2,), 0.1)
    wfc = u(ks[8], (OUT_DIM, (FACE_PTS + HAND_PTS) * HID2), 0.02)   # Linear(9600,128)
    bfc = u(ks[9], (OUT_DIM,), 0.1)
    return (w1f, b1f, w2f, b2f, w1h, b1h, w2h, b2h, wfc, bfc)


def _reference(face_points, hand_points, params):
    """Pure-JAX f32 mirror of the PyTorch forward (NCL conv + channel-major flatten)."""
    (w1f, b1f, w2f, b2f, w1h, b1h, w2h, b2h, wfc, bfc) = params

    def branch(x, w1, b1, w2, b2):
        h = jnp.einsum('blc,oc->blo', x, w1) + b1
        h = jnp.maximum(h, 0.0)
        h = jnp.einsum('blc,oc->blo', h, w2) + b2
        h = jnp.maximum(h, 0.0)                    # (B, L, 128)
        # PyTorch view of (B, C, L): channel-major flatten.
        return jnp.transpose(h, (0, 2, 1)).reshape(x.shape[0], -1)

    ff = branch(face_points, w1f, b1f, w2f, b2f)
    hh = branch(hand_points, w1h, b1h, w2h, b2h)
    comb = jnp.concatenate([ff, hh], axis=1)       # (B, 9600)
    return comb @ wfc.T + bfc


if __name__ == "__main__":
    key = jax.random.PRNGKey(0)
    k_face, k_hand, k_params = jax.random.split(key, 3)

    B = 2
    face_points = jax.random.normal(k_face, (B, FACE_PTS, FEAT_DIM), jnp.float32)
    hand_points = jax.random.normal(k_hand, (B, HAND_PTS, FEAT_DIM), jnp.float32)
    params = _init_params(k_params)

    # One-time parameter re-layout (kept OUT of the per-call path).
    prepared = jax.tree_util.tree_map(lambda a: a.block_until_ready(),
                                      prepare_params(params))

    out = point_feature_extractor(face_points, hand_points, prepared)
    out = jax.block_until_ready(out)

    ref = _reference(face_points, hand_points, params)
    assert out.shape == (B, OUT_DIM), out.shape
    max_err = float(jnp.max(jnp.abs(out - ref)))
    assert jnp.allclose(out, ref, rtol=5e-2, atol=5e-2), max_err  # bf16 matmuls

    print("KERNEL_OK")
</pallas_src>

<mosaic_0001>
module attributes {stable_mosaic.version = 11 : i64} {
  func.func @_pfe_kernel(%arg0: i32, %arg1: memref<8x40x3xf32, #tpu.memory_space<vmem>>, %arg2: memref<8x48x3xf32, #tpu.memory_space<vmem>>, %arg3: memref<3x64xf32, #tpu.memory_space<vmem>>, %arg4: memref<1x64xf32, #tpu.memory_space<vmem>>, %arg5: memref<64x128xbf16, #tpu.memory_space<vmem>>, %arg6: memref<1x128xf32, #tpu.memory_space<vmem>>, %arg7: memref<3x64xf32, #tpu.memory_space<vmem>>, %arg8: memref<1x64xf32, #tpu.memory_space<vmem>>, %arg9: memref<64x128xbf16, #tpu.memory_space<vmem>>, %arg10: memref<1x128xf32, #tpu.memory_space<vmem>>, %arg11: memref<5120x128xbf16, #tpu.memory_space<vmem>>, %arg12: memref<6144x128xbf16, #tpu.memory_space<vmem>>, %arg13: memref<1x128xf32, #tpu.memory_space<vmem>>, %arg14: memref<8x128xf32, #tpu.memory_space<vmem>>) attributes {dimension_semantics = [#tpu.dimension_semantics<parallel>], iteration_bounds = array<i64: 1>, scalar_prefetch = 0 : i64, scratch_operands = 0 : i64, tpu.core_type = #tpu.core_type<tc>, window_params = [{transform_indices = @transform_0, window_bounds = array<i64: 8, 40, 3>}, {transform_indices = @transform_1, window_bounds = array<i64: 8, 48, 3>}, {pipeline_mode = #tpu.pipeline_mode<synchronous>, transform_indices = @transform_2, window_bounds = array<i64: 3, 64>}, {pipeline_mode = #tpu.pipeline_mode<synchronous>, transform_indices = @transform_3, window_bounds = array<i64: 1, 64>}, {pipeline_mode = #tpu.pipeline_mode<synchronous>, transform_indices = @transform_4, window_bounds = array<i64: 64, 128>}, {pipeline_mode = #tpu.pipeline_mode<synchronous>, transform_indices = @transform_5, window_bounds = array<i64: 1, 128>}, {pipeline_mode = #tpu.pipeline_mode<synchronous>, transform_indices = @transform_6, window_bounds = array<i64: 3, 64>}, {pipeline_mode = #tpu.pipeline_mode<synchronous>, transform_indices = @transform_7, window_bounds = array<i64: 1, 64>}, {pipeline_mode = #tpu.pipeline_mode<synchronous>, transform_indices = @transform_8, window_bounds = array<i64: 64, 128>}, {pipeline_mode = #tpu.pipeline_mode<synchronous>, transform_indices = @transform_9, window_bounds = array<i64: 1, 128>}, {pipeline_mode = #tpu.pipeline_mode<synchronous>, transform_indices = @transform_10, window_bounds = array<i64: 5120, 128>}, {pipeline_mode = #tpu.pipeline_mode<synchronous>, transform_indices = @transform_11, window_bounds = array<i64: 6144, 128>}, {pipeline_mode = #tpu.pipeline_mode<synchronous>, transform_indices = @transform_12, window_bounds = array<i64: 1, 128>}, {transform_indices = @transform_13, window_bounds = array<i64: 8, 128>}]} {
    %c0 = arith.constant 0 : index
    %c0_0 = arith.constant 0 : index
    %c0_1 = arith.constant 0 : index
    %0 = vector.load %arg1[%c0, %c0_0, %c0_1] : memref<8x40x3xf32, #tpu.memory_space<vmem>>, vector<8x40x3xf32>
    %1 = vector.shape_cast %0 : vector<8x40x3xf32> to vector<320x3xf32>
    %c0_2 = arith.constant 0 : index
    %c0_3 = arith.constant 0 : index
    %2 = vector.load %arg3[%c0_2, %c0_3] : memref<3x64xf32, #tpu.memory_space<vmem>>, vector<3x64xf32>
    %3 = vector.extract_strided_slice %1 {offsets = [0, 0], sizes = [320, 1], strides = [1, 1]} : vector<320x3xf32> to vector<320x1xf32>
    %4 = vector.extract_strided_slice %2 {offsets = [0, 0], sizes = [1, 64], strides = [1, 1]} : vector<3x64xf32> to vector<1x64xf32>
    %5 = vector.broadcast %3 : vector<320x1xf32> to vector<320x64xf32>
    %6 = vector.broadcast %4 : vector<1x64xf32> to vector<320x64xf32>
    %7 = arith.mulf %5, %6 : vector<320x64xf32>
    %8 = vector.extract_strided_slice %1 {offsets = [0, 1], sizes = [320, 1], strides = [1, 1]} : vector<320x3xf32> to vector<320x1xf32>
    %9 = vector.extract_strided_slice %2 {offsets = [1, 0], sizes = [1, 64], strides = [1, 1]} : vector<3x64xf32> to vector<1x64xf32>
    %10 = vector.broadcast %8 : vector<320x1xf32> to vector<320x64xf32>
    %11 = vector.broadcast %9 : vector<1x64xf32> to vector<320x64xf32>
    %12 = arith.mulf %10, %11 : vector<320x64xf32>
    %13 = arith.addf %7, %12 : vector<320x64xf32>
    %14 = vector.extract_strided_slice %1 {offsets = [0, 2], sizes = [320, 1], strides = [1, 1]} : vector<320x3xf32> to vector<320x1xf32>
    %15 = vector.extract_strided_slice %2 {offsets = [2, 0], sizes = [1, 64], strides = [1, 1]} : vector<3x64xf32> to vector<1x64xf32>
    %16 = vector.broadcast %14 : vector<320x1xf32> to vector<320x64xf32>
    %17 = vector.broadcast %15 : vector<1x64xf32> to vector<320x64xf32>
    %18 = arith.mulf %16, %17 : vector<320x64xf32>
    %19 = arith.addf %13, %18 : vector<320x64xf32>
    %c0_4 = arith.constant 0 : index
    %c0_5 = arith.constant 0 : index
    %20 = vector.load %arg4[%c0_4, %c0_5] : memref<1x64xf32, #tpu.memory_space<vmem>>, vector<1x64xf32>
    %21 = vector.broadcast %20 : vector<1x64xf32> to vector<320x64xf32>
    %22 = arith.addf %19, %21 : vector<320x64xf32>
    %cst = arith.constant 0.000000e+00 : f32
    %23 = vector.broadcast %cst : f32 to vector<320x64xf32>
    %24 = arith.maximumf %22, %23 : vector<320x64xf32>
    %25 = arith.truncf %24 : vector<320x64xf32> to vector<320x64xbf16>
    %c0_6 = arith.constant 0 : index
    %c0_7 = arith.constant 0 : index
    %26 = vector.load %arg5[%c0_6, %c0_7] : memref<64x128xbf16, #tpu.memory_space<vmem>>, vector<64x128xbf16>
    %cst_8 = arith.constant dense<0.000000e+00> : vector<320x128xf32>
    %27 = tpu.matmul %25, %26, %cst_8 {dimension_numbers = #tpu.dot_dimension_numbers<[1], [0], [0], [1], [0, 0, 1, 1], [], []>} : vector<320x64xbf16>, vector<64x128xbf16>, vector<320x128xf32> -> vector<320x128xf32>
    %c0_9 = arith.constant 0 : index
    %c0_10 = arith.constant 0 : index
    %28 = vector.load %arg6[%c0_9, %c0_10] : memref<1x128xf32, #tpu.memory_space<vmem>>, vector<1x128xf32>
    %29 = vector.broadcast %28 : vector<1x128xf32> to vector<320x128xf32>
    %30 = arith.addf %27, %29 : vector<320x128xf32>
    %cst_11 = arith.constant 0.000000e+00 : f32
    %31 = vector.broadcast %cst_11 : f32 to vector<320x128xf32>
    %32 = arith.maximumf %30, %31 : vector<320x128xf32>
    %33 = arith.truncf %32 : vector<320x128xf32> to vector<320x128xbf16>
    %34 = vector.shape_cast %33 : vector<320x128xbf16> to vector<8x5120xbf16>
    %c0_12 = arith.constant 0 : index
    %c0_13 = arith.constant 0 : index
    %c0_14 = arith.constant 0 : index
    %35 = vector.load %arg2[%c0_12, %c0_13, %c0_14] : memref<8x48x3xf32, #tpu.memory_space<vmem>>, vector<8x48x3xf32>
    %36 = vector.shape_cast %35 : vector<8x48x3xf32> to vector<384x3xf32>
    %c0_15 = arith.constant 0 : index
    %c0_16 = arith.constant 0 : index
    %37 = vector.load %arg7[%c0_15, %c0_16] : memref<3x64xf32, #tpu.memory_space<vmem>>, vector<3x64xf32>
    %38 = vector.extract_strided_slice %36 {offsets = [0, 0], sizes = [384, 1], strides = [1, 1]} : vector<384x3xf32> to vector<384x1xf32>
    %39 = vector.extract_strided_slice %37 {offsets = [0, 0], sizes = [1, 64], strides = [1, 1]} : vector<3x64xf32> to vector<1x64xf32>
    %40 = vector.broadcast %38 : vector<384x1xf32> to vector<384x64xf32>
    %41 = vector.broadcast %39 : vector<1x64xf32> to vector<384x64xf32>
    %42 = arith.mulf %40, %41 : vector<384x64xf32>
    %43 = vector.extract_strided_slice %36 {offsets = [0, 1], sizes = [384, 1], strides = [1, 1]} : vector<384x3xf32> to vector<384x1xf32>
    %44 = vector.extract_strided_slice %37 {offsets = [1, 0], sizes = [1, 64], strides = [1, 1]} : vector<3x64xf32> to vector<1x64xf32>
    %45 = vector.broadcast %43 : vector<384x1xf32> to vector<384x64xf32>
    %46 = vector.broadcast %44 : vector<1x64xf32> to vector<384x64xf32>
    %47 = arith.mulf %45, %46 : vector<384x64xf32>
    %48 = arith.addf %42, %47 : vector<384x64xf32>
    %49 = vector.extract_strided_slice %36 {offsets = [0, 2], sizes = [384, 1], strides = [1, 1]} : vector<384x3xf32> to vector<384x1xf32>
    %50 = vector.extract_strided_slice %37 {offsets = [2, 0], sizes = [1, 64], strides = [1, 1]} : vector<3x64xf32> to vector<1x64xf32>
    %51 = vector.broadcast %49 : vector<384x1xf32> to vector<384x64xf32>
    %52 = vector.broadcast %50 : vector<1x64xf32> to vector<384x64xf32>
    %53 = arith.mulf %51, %52 : vector<384x64xf32>
    %54 = arith.addf %48, %53 : vector<384x64xf32>
    %c0_17 = arith.constant 0 : index
    %c0_18 = arith.constant 0 : index
    %55 = vector.load %arg8[%c0_17, %c0_18] : memref<1x64xf32, #tpu.memory_space<vmem>>, vector<1x64xf32>
    %56 = vector.broadcast %55 : vector<1x64xf32> to vector<384x64xf32>
    %57 = arith.addf %54, %56 : vector<384x64xf32>
    %cst_19 = arith.constant 0.000000e+00 : f32
    %58 = vector.broadcast %cst_19 : f32 to vector<384x64xf32>
    %59 = arith.maximumf %57, %58 : vector<384x64xf32>
    %60 = arith.truncf %59 : vector<384x64xf32> to vector<384x64xbf16>
    %c0_20 = arith.constant 0 : index
    %c0_21 = arith.constant 0 : index
    %61 = vector.load %arg9[%c0_20, %c0_21] : memref<64x128xbf16, #tpu.memory_space<vmem>>, vector<64x128xbf16>
    %cst_22 = arith.constant dense<0.000000e+00> : vector<384x128xf32>
    %62 = tpu.matmul %60, %61, %cst_22 {dimension_numbers = #tpu.dot_dimension_numbers<[1], [0], [0], [1], [0, 0, 1, 1], [], []>} : vector<384x64xbf16>, vector<64x128xbf16>, vector<384x128xf32> -> vector<384x128xf32>
    %c0_23 = arith.constant 0 : index
    %c0_24 = arith.constant 0 : index
    %63 = vector.load %arg10[%c0_23, %c0_24] : memref<1x128xf32, #tpu.memory_space<vmem>>, vector<1x128xf32>
    %64 = vector.broadcast %63 : vector<1x128xf32> to vector<384x128xf32>
    %65 = arith.addf %62, %64 : vector<384x128xf32>
    %cst_25 = arith.constant 0.000000e+00 : f32
    %66 = vector.broadcast %cst_25 : f32 to vector<384x128xf32>
    %67 = arith.maximumf %65, %66 : vector<384x128xf32>
    %68 = arith.truncf %67 : vector<384x128xf32> to vector<384x128xbf16>
    %69 = vector.shape_cast %68 : vector<384x128xbf16> to vector<8x6144xbf16>
    %c0_26 = arith.constant 0 : index
    %c0_27 = arith.constant 0 : index
    %70 = vector.load %arg11[%c0_26, %c0_27] : memref<5120x128xbf16, #tpu.memory_space<vmem>>, vector<5120x128xbf16>
    %cst_28 = arith.constant dense<0.000000e+00> : vector<8x128xf32>
    %71 = tpu.matmul %34, %70, %cst_28 {dimension_numbers = #tpu.dot_dimension_numbers<[1], [0], [0], [1], [0, 0, 1, 1], [], []>} : vector<8x5120xbf16>, vector<5120x128xbf16>, vector<8x128xf32> -> vector<8x128xf32>
    %c0_29 = arith.constant 0 : index
    %c0_30 = arith.constant 0 : index
    %72 = vector.load %arg12[%c0_29, %c0_30] : memref<6144x128xbf16, #tpu.memory_space<vmem>>, vector<6144x128xbf16>
    %cst_31 = arith.constant dense<0.000000e+00> : vector<8x128xf32>
    %73 = tpu.matmul %69, %72, %cst_31 {dimension_numbers = #tpu.dot_dimension_numbers<[1], [0], [0], [1], [0, 0, 1, 1], [], []>} : vector<8x6144xbf16>, vector<6144x128xbf16>, vector<8x128xf32> -> vector<8x128xf32>
    %74 = arith.addf %71, %73 : vector<8x128xf32>
    %c0_32 = arith.constant 0 : index
    %c0_33 = arith.constant 0 : index
    %75 = vector.load %arg13[%c0_32, %c0_33] : memref<1x128xf32, #tpu.memory_space<vmem>>, vector<1x128xf32>
    %76 = vector.broadcast %75 : vector<1x128xf32> to vector<8x128xf32>
    %77 = arith.addf %74, %76 : vector<8x128xf32>
    %c0_34 = arith.constant 0 : index
    %c0_35 = arith.constant 0 : index
    %78 = vector.load %arg14[%c0_34, %c0_35] : memref<8x128xf32, #tpu.memory_space<vmem>>, vector<8x128xf32>
    tpu.vector_store %arg14[%c0_34, %c0_35], %77 {strides = array<i32>} : memref<8x128xf32, #tpu.memory_space<vmem>>, vector<8x128xf32>,
    return
  }
  func.func @transform_0(%arg0: i32) -> (i32, i32, i32) {
    %c0_i32 = arith.constant 0 : i32
    %c0_i32_0 = arith.constant 0 : i32
    %c0_i32_1 = arith.constant 0 : i32
    return %arg0, %c0_i32, %c0_i32_0 : i32, i32, i32
  }
  func.func @transform_1(%arg0: i32) -> (i32, i32, i32) {
    %c0_i32 = arith.constant 0 : i32
    %c0_i32_0 = arith.constant 0 : i32
    %c0_i32_1 = arith.constant 0 : i32
    return %arg0, %c0_i32, %c0_i32_0 : i32, i32, i32
  }
  func.func @transform_2(%arg0: i32) -> (i32, i32) {
    %c0_i32 = arith.constant 0 : i32
    %c0_i32_0 = arith.constant 0 : i32
    %c0_i32_1 = arith.constant 0 : i32
    return %c0_i32, %c0_i32_0 : i32, i32
  }
  func.func @transform_3(%arg0: i32) -> (i32, i32) {
    %c0_i32 = arith.constant 0 : i32
    %c0_i32_0 = arith.constant 0 : i32
    %c0_i32_1 = arith.constant 0 : i32
    return %c0_i32, %c0_i32_0 : i32, i32
  }
  func.func @transform_4(%arg0: i32) -> (i32, i32) {
    %c0_i32 = arith.constant 0 : i32
    %c0_i32_0 = arith.constant 0 : i32
    %c0_i32_1 = arith.constant 0 : i32
    return %c0_i32, %c0_i32_0 : i32, i32
  }
  func.func @transform_5(%arg0: i32) -> (i32, i32) {
    %c0_i32 = arith.constant 0 : i32
    %c0_i32_0 = arith.constant 0 : i32
    %c0_i32_1 = arith.constant 0 : i32
    return %c0_i32, %c0_i32_0 : i32, i32
  }
  func.func @transform_6(%arg0: i32) -> (i32, i32) {
    %c0_i32 = arith.constant 0 : i32
    %c0_i32_0 = arith.constant 0 : i32
    %c0_i32_1 = arith.constant 0 : i32
    return %c0_i32, %c0_i32_0 : i32, i32
  }
  func.func @transform_7(%arg0: i32) -> (i32, i32) {
    %c0_i32 = arith.constant 0 : i32
    %c0_i32_0 = arith.constant 0 : i32
    %c0_i32_1 = arith.constant 0 : i32
    return %c0_i32, %c0_i32_0 : i32, i32
  }
  func.func @transform_8(%arg0: i32) -> (i32, i32) {
    %c0_i32 = arith.constant 0 : i32
    %c0_i32_0 = arith.constant 0 : i32
    %c0_i32_1 = arith.constant 0 : i32
    return %c0_i32, %c0_i32_0 : i32, i32
  }
  func.func @transform_9(%arg0: i32) -> (i32, i32) {
    %c0_i32 = arith.constant 0 : i32
    %c0_i32_0 = arith.constant 0 : i32
    %c0_i32_1 = arith.constant 0 : i32
    return %c0_i32, %c0_i32_0 : i32, i32
  }
  func.func @transform_10(%arg0: i32) -> (i32, i32) {
    %c0_i32 = arith.constant 0 : i32
    %c0_i32_0 = arith.constant 0 : i32
    %c0_i32_1 = arith.constant 0 : i32
    return %c0_i32, %c0_i32_0 : i32, i32
  }
  func.func @transform_11(%arg0: i32) -> (i32, i32) {
    %c0_i32 = arith.constant 0 : i32
    %c0_i32_0 = arith.constant 0 : i32
    %c0_i32_1 = arith.constant 0 : i32
    return %c0_i32, %c0_i32_0 : i32, i32
  }
  func.func @transform_12(%arg0: i32) -> (i32, i32) {
    %c0_i32 = arith.constant 0 : i32
    %c0_i32_0 = arith.constant 0 : i32
    %c0_i32_1 = arith.constant 0 : i32
    return %c0_i32, %c0_i32_0 : i32, i32
  }
  func.func @transform_13(%arg0: i32) -> (i32, i32) {
    %c0_i32 = arith.constant 0 : i32
    %c0_i32_0 = arith.constant 0 : i32
    return %arg0, %c0_i32 : i32, i32
  }
}

</mosaic_0001>

<bundles_post_ra>
// kernel: point_feature_extractor.1
= control target key start
LH: loop header
LB: loop body
LE: loop exit
PB: predicated region body
PF: predicated region fallthrough
CT: control target
= control target key end

     0   :  { %18 = vsyncpa [#allocation3], 0  ;;  %s18762_s0 = inlined_call_operand.vmem [shape: f32[8,40,3], index: 0, kind: input, shape index: {}]   ;;  %s18763_s1 = inlined_call_operand.vmem [shape: f32[8,48,3], index: 1, kind: input, shape index: {}]   ;;  %s18764_s2 = inlined_call_operand.hbm [shape: f32[3,64], index: 2, kind: input, shape index: {}]   ;;  %s18765_s3 = inlined_call_operand.hbm [shape: f32[1,64], index: 3, kind: input, shape index: {}]   ;;  %s18766_s4 = inlined_call_operand.hbm [shape: bf16[64,128], index: 4, kind: input, shape index: {}]   ;;  %s18767_s5 = inlined_call_operand.hbm [shape: f32[1,128], index: 5, kind: input, shape index: {}]   ;;  %s18768_s6 = inlined_call_operand.hbm [shape: f32[3,64], index: 6, kind: input, shape index: {}]   ;;  %s18769_s7 = inlined_call_operand.hbm [shape: f32[1,64], index: 7, kind: input, shape index: {}]   ;;  %s18770_s8 = inlined_call_operand.hbm [shape: bf16[64,128], index: 8, kind: input, shape index: {}]   ;;  %s18771_s9 = inlined_call_operand.hbm [shape: f32[1,128], index: 9, kind: input, shape index: {}]   ;;  %s18772_s10 = inlined_call_operand.hbm [shape: bf16[5120,128], index: 10, kind: input, shape index: {}]   ;;  %s18773_s11 = inlined_call_operand.hbm [shape: bf16[6144,128], index: 11, kind: input, shape index: {}]   ;;  %s18774_s12 = inlined_call_operand.hbm [shape: f32[1,128], index: 12, kind: input, shape index: {}]   ;;  %s18775_s13 = inlined_call_operand.vmem [shape: f32[8,128], index: 13, kind: output, shape index: {}]  }
   0x1   :  { %19 = vsyncpa [#allocation5], 0 }
   0x2   :  { %20 = vsyncpa [#allocation8], 0 }
   0x3   :  { %21 = vsyncpa [#allocation11], 0 }
   0x4   :  { %22 = vsyncpa [#allocation14], 0 }
   0x5   :  { %23 = vsyncpa [#allocation17], 0  ;;  %s14852_s25 = smov [#allocation4]   ;;  %s14853_s27 = smov [#allocation7]  }
   0x6   :  { %s44_s26 = sshll.u32 %s14852_s25, 4  ;;  %s66_s28 = sshll.u32 %s14853_s27, 4  ;;  %s45_s26 = int_to_ptr.vmem [resolvable:$true] %s44_s26  ;;  %s67_s28 = int_to_ptr.vmem [resolvable:$true] %s66_s28 }
   0x7   :  { %s14598_s14 = scalar_lea.hbm %s18765_s3, 16 }
   0x8   :  { %p14599_p0 = scmp.ne.s32.totalorder %s18765_s3, %s14598_s14  ;;  %p14602_p1 = scmp.lt.u32.totalorder %s14598_s14, %s18765_s3 }
   0xa   :  { %p14604_p2 = pnand %p14602_p1, %p14599_p0 }
   0xc   :  { %14607 = shalt.err (!%p14604_p2)
}
   0xd   :  { %s14608_s19 = scalar_lea.vmem %s45_s26, 16  ;;  %s14612_s20 = scalar_lea.vmem %s45_s26, 32 }
   0xe   :  { %p14609_p3 = scmp.ne.s32.totalorder %s45_s26, %s14608_s19  ;;  %p14613_p4 = scmp.lt.s32.totalorder %s45_s26, %s45_s26 }
   0xf   :  { %p14614_p5 = scmp.lt.s32.totalorder %s14612_s20, %s14608_s19 }
  0x11   :  { %p14615_p6 = por %p14614_p5, %p14613_p4 }
  0x13   :  { %p14616_p7 = pnand %p14615_p6, %p14609_p3 }
  0x15   :  { %14619 = shalt.err (!%p14616_p7)
}
  0x16   :  { %47 = dma.hbm_to_vmem [thread:$0]  %s18765_s3, 16, %s45_s26, [#allocation5]  }
  0x17   :  { %s14620_s25 = scalar_lea.hbm %s18767_s5, 16 }
  0x18   :  { %p14621_p8 = scmp.ne.s32.totalorder %s18767_s5, %s14620_s25  ;;  %p14624_p9 = scmp.lt.u32.totalorder %s14620_s25, %s18767_s5 }
  0x1a   :  { %p14626_p10 = pnand %p14624_p9, %p14621_p8 }
  0x1c   :  { %14629 = shalt.err (!%p14626_p10)
}
  0x1d   :  { %s14630_s15 = scalar_lea.vmem %s67_s28, 16  ;;  %s14634_s16 = scalar_lea.vmem %s67_s28, 32 }
  0x1e   :  { %p14631_p11 = scmp.ne.s32.totalorder %s67_s28, %s14630_s15  ;;  %p14635_p12 = scmp.lt.s32.totalorder %s67_s28, %s67_s28 }
  0x1f   :  { %p14636_p13 = scmp.lt.s32.totalorder %s14634_s16, %s14630_s15 }
  0x21   :  { %p14637_p0 = por %p14636_p13, %p14635_p12 }
  0x23   :  { %p14638_p1 = pnand %p14637_p0, %p14631_p11 }
  0x25   :  { %14641 = shalt.err (!%p14638_p1)
}
  0x26   :  { %69 = dma.hbm_to_vmem [thread:$0]  %s18767_s5, 16, %s67_s28, [#allocation8]  }
  0x27   :  { %s14854_s17 = smov [#allocation10]   ;;  %s14855_s19 = smov [#allocation13]  }
  0x28   :  { %s86_s18 = sshll.u32 %s14854_s17, 4  ;;  %s108_s20 = sshll.u32 %s14855_s19, 4  ;;  %s87_s18 = int_to_ptr.vmem [resolvable:$true] %s86_s18  ;;  %s109_s20 = int_to_ptr.vmem [resolvable:$true] %s108_s20 }
  0x29   :  { %s14642_s23 = scalar_lea.hbm %s18769_s7, 16 }
  0x2a   :  { %p14643_p2 = scmp.ne.s32.totalorder %s18769_s7, %s14642_s23  ;;  %p14646_p3 = scmp.lt.u32.totalorder %s14642_s23, %s18769_s7 }
  0x2c   :  { %p14648_p4 = pnand %p14646_p3, %p14643_p2 }
  0x2e   :  { %14651 = shalt.err (!%p14648_p4)
}
  0x2f   :  { %s14652_s5 = scalar_lea.vmem %s87_s18, 16  ;;  %s14656_s28 = scalar_lea.vmem %s87_s18, 32 }
  0x30   :  { %p14653_p5 = scmp.ne.s32.totalorder %s87_s18, %s14652_s5  ;;  %p14657_p6 = scmp.lt.s32.totalorder %s87_s18, %s87_s18 }
  0x31   :  { %p14658_p7 = scmp.lt.s32.totalorder %s14656_s28, %s14652_s5 }
  0x33   :  { %p14659_p8 = por %p14658_p7, %p14657_p6 }
  0x35   :  { %p14660_p9 = pnand %p14659_p8, %p14653_p5 }
  0x37   :  { %14663 = shalt.err (!%p14660_p9)
}
  0x38   :  { %89 = dma.hbm_to_vmem [thread:$0]  %s18769_s7, 16, %s87_s18, [#allocation11]  }
  0x39   :  { %s14664_s3 = scalar_lea.hbm %s18771_s9, 16 }
  0x3a   :  { %p14665_p10 = scmp.ne.s32.totalorder %s18771_s9, %s14664_s3  ;;  %p14668_p11 = scmp.lt.u32.totalorder %s14664_s3, %s18771_s9 }
  0x3c   :  { %p14670_p12 = pnand %p14668_p11, %p14665_p10 }
  0x3e   :  { %14673 = shalt.err (!%p14670_p12)
}
  0x3f   :  { %s14674_s22 = scalar_lea.vmem %s109_s20, 16  ;;  %s14678_s23 = scalar_lea.vmem %s109_s20, 32 }
  0x40   :  { %p14675_p13 = scmp.ne.s32.totalorder %s109_s20, %s14674_s22  ;;  %p14679_p0 = scmp.lt.s32.totalorder %s109_s20, %s109_s20 }
  0x41   :  { %p14680_p1 = scmp.lt.s32.totalorder %s14678_s23, %s14674_s22 }
  0x43   :  { %p14681_p2 = por %p14680_p1, %p14679_p0 }
  0x45   :  { %p14682_p3 = pnand %p14681_p2, %p14675_p13 }
  0x47   :  { %14685 = shalt.err (!%p14682_p3)
}
  0x48   :  { %111 = dma.hbm_to_vmem [thread:$0]  %s18771_s9, 16, %s109_s20, [#allocation14]  }
  0x49   :  { %s14856_s24 = smov [#allocation16]   ;;  %s14857_s27 = smov [#allocation2]  }
  0x4a   :  { %s129_s25 = sshll.u32 %s14856_s24, 4  ;;  %s34_s29 = sshll.u32 %s14857_s27, 4  ;;  %s130_s25 = int_to_ptr.vmem [resolvable:$true] %s129_s25  ;;  %s35_s29 = int_to_ptr.vmem [resolvable:$true] %s34_s29 }
  0x4b   :  { %s14686_s30 = scalar_lea.hbm %s18773_s11, 49152 }
  0x4c   :  { %p14687_p4 = scmp.ne.s32.totalorder %s18773_s11, %s14686_s30  ;;  %p14690_p5 = scmp.lt.u32.totalorder %s14686_s30, %s18773_s11 }
  0x4e   :  { %p14692_p6 = pnand %p14690_p5, %p14687_p4 }
  0x50   :  { %14695 = shalt.err (!%p14692_p6)
}
  0x51   :  { %s14696_s9 = scalar_lea.vmem %s130_s25, 49152  ;;  %p14701_p8 = scmp.lt.s32.totalorder %s130_s25, %s130_s25 }
  0x52   :  { %p14697_p7 = scmp.ne.s32.totalorder %s130_s25, %s14696_s9  ;;  %p14702_p9 = scmp.lt.s32.totalorder %s14696_s9, %s14696_s9 }
  0x54   :  { %p14703_p10 = por %p14702_p9, %p14701_p8 }
  0x56   :  { %p14704_p11 = pnand %p14703_p10, %p14697_p7 }
  0x58   :  { %14707 = shalt.err (!%p14704_p11)
}
  0x59   :  { %s14858_s20 = smov 64   ;;  %s14859_s26 = smov 4  }
  0x5a   :  { %135 = dma.hbm_to_vmem [thread:$0]  %s18773_s11, 49152, %s130_s25, [#allocation17], %s14858_s20, %s14858_s20, %s14859_s26  }
  0x5b   :  { %s14708_s23 = scalar_lea.hbm %s18764_s2, 64 }
  0x5c   :  { %p14709_p12 = scmp.ne.s32.totalorder %s18764_s2, %s14708_s23  ;;  %p14712_p13 = scmp.lt.u32.totalorder %s14708_s23, %s18764_s2 }
  0x5e   :  { %p14714_p0 = pnand %p14712_p13, %p14709_p12 }
  0x60   :  { %14717 = shalt.err (!%p14714_p0)
}
  0x61   :  { %s14718_s5 = scalar_lea.vmem %s35_s29, 64  ;;  %p14723_p2 = scmp.lt.s32.totalorder %s35_s29, %s35_s29 }
  0x62   :  { %p14719_p1 = scmp.ne.s32.totalorder %s35_s29, %s14718_s5  ;;  %p14724_p3 = scmp.lt.s32.totalorder %s14718_s5, %s14718_s5 }
  0x64   :  { %p14725_p4 = por %p14724_p3, %p14723_p2 }
  0x66   :  { %p14726_p5 = pnand %p14725_p4, %p14719_p1 }
  0x68   :  { %14729 = shalt.err (!%p14726_p5)
}
  0x69   :  { %37 = dma.hbm_to_vmem [thread:$0]  %s18764_s2, 64, %s35_s29, [#allocation3]  }
  0x6a   :  { %s14860_s28 = smov [#allocation6]   ;;  %s14861_s14 = smov [#allocation9]  }
  0x6b   :  { %s53_s30 = sshll.u32 %s14860_s28, 4  ;;  %s76_s15 = sshll.u32 %s14861_s14, 4  ;;  %s54_s30 = int_to_ptr.vmem [resolvable:$true] %s53_s30  ;;  %s77_s15 = int_to_ptr.vmem [resolvable:$true] %s76_s15 }
  0x6c   :  { %s14730_s9 = scalar_lea.hbm %s18766_s4, 512 }
  0x6d   :  { %p14731_p6 = scmp.ne.s32.totalorder %s18766_s4, %s14730_s9  ;;  %p14734_p7 = scmp.lt.u32.totalorder %s14730_s9, %s18766_s4 }
  0x6f   :  { %p14736_p8 = pnand %p14734_p7, %p14731_p6 }
  0x71   :  { %14739 = shalt.err (!%p14736_p8)
}
  0x72   :  { %s14740_s2 = scalar_lea.vmem %s54_s30, 512  ;;  %p14745_p10 = scmp.lt.s32.totalorder %s54_s30, %s54_s30 }
  0x73   :  { %p14741_p9 = scmp.ne.s32.totalorder %s54_s30, %s14740_s2  ;;  %p14746_p11 = scmp.lt.s32.totalorder %s14740_s2, %s14740_s2 }
  0x75   :  { %p14747_p12 = por %p14746_p11, %p14745_p10 }
  0x77   :  { %p14748_p13 = pnand %p14747_p12, %p14741_p9 }
  0x79   :  { %14751 = shalt.err (!%p14748_p13)
}
  0x7a   :  { %59 = dma.hbm_to_vmem [thread:$0]  %s18766_s4, 512, %s54_s30, [#allocation5], %s14858_s20, %s14858_s20, %s14859_s26  }
  0x7b   :  { %s14752_s24 = scalar_lea.hbm %s18768_s6, 64 }
  0x7c   :  { %p14753_p0 = scmp.ne.s32.totalorder %s18768_s6, %s14752_s24  ;;  %p14756_p1 = scmp.lt.u32.totalorder %s14752_s24, %s18768_s6 }
  0x7e   :  { %p14758_p2 = pnand %p14756_p1, %p14753_p0 }
  0x80   :  { %14761 = shalt.err (!%p14758_p2)
}
  0x81   :  { %s14762_s28 = scalar_lea.vmem %s77_s15, 64  ;;  %p14767_p4 = scmp.lt.s32.totalorder %s77_s15, %s77_s15 }
  0x82   :  { %p14763_p3 = scmp.ne.s32.totalorder %s77_s15, %s14762_s28  ;;  %p14768_p5 = scmp.lt.s32.totalorder %s14762_s28, %s14762_s28 }
  0x84   :  { %p14769_p6 = por %p14768_p5, %p14767_p4 }
  0x86   :  { %p14770_p7 = pnand %p14769_p6, %p14763_p3 }
  0x88   :  { %14773 = shalt.err (!%p14770_p7)
}
  0x89   :  { %79 = dma.hbm_to_vmem [thread:$0]  %s18768_s6, 64, %s77_s15, [#allocation8]  }
  0x8a   :  { %s14862_s14 = smov [#allocation12]   ;;  %s14863_s3 = smov [#allocation15]  }
  0x8b   :  { %s95_s16 = sshll.u32 %s14862_s14, 4  ;;  %s117_s9 = sshll.u32 %s14863_s3, 4  ;;  %s96_s16 = int_to_ptr.vmem [resolvable:$true] %s95_s16  ;;  %s15041_s9 = int_to_ptr.vmem [resolvable:$true] %s117_s9 }
  0x8c   :  { %s14774_s21 = scalar_lea.hbm %s18770_s8, 512 }
  0x8d   :  { %p14775_p8 = scmp.ne.s32.totalorder %s18770_s8, %s14774_s21  ;;  %p14778_p9 = scmp.lt.u32.totalorder %s14774_s21, %s18770_s8 }
  0x8f   :  { %p14780_p10 = pnand %p14778_p9, %p14775_p8 }
  0x91   :  { %14783 = shalt.err (!%p14780_p10)
}
  0x92   :  { %s14784_s6 = scalar_lea.vmem %s96_s16, 512  ;;  %p14789_p12 = scmp.lt.s32.totalorder %s96_s16, %s96_s16 }
  0x93   :  { %p14785_p11 = scmp.ne.s32.totalorder %s96_s16, %s14784_s6  ;;  %p14790_p13 = scmp.lt.s32.totalorder %s14784_s6, %s14784_s6 }
  0x95   :  { %p14791_p0 = por %p14790_p13, %p14789_p12 }
  0x97   :  { %p14792_p1 = pnand %p14791_p0, %p14785_p11 }
  0x99   :  { %14795 = shalt.err (!%p14792_p1)
}
  0x9a   :  { %101 = dma.hbm_to_vmem [thread:$0]  %s18770_s8, 512, %s96_s16, [#allocation11], %s14858_s20, %s14858_s20, %s14859_s26  }
  0x9b   :  { %s14796_s27 = scalar_lea.hbm %s18772_s10, 40960 }
  0x9c   :  { %p14797_p2 = scmp.ne.s32.totalorder %s18772_s10, %s14796_s27  ;;  %p14800_p3 = scmp.lt.u32.totalorder %s14796_s27, %s18772_s10 }
  0x9e   :  { %p14802_p4 = pnand %p14800_p3, %p14797_p2 }
  0xa0   :  { %14805 = shalt.err (!%p14802_p4)
}
  0xa1   :  { %s14806_s4 = scalar_lea.vmem %s15041_s9, 40960  ;;  %p14811_p6 = scmp.lt.s32.totalorder %s15041_s9, %s15041_s9 }
  0xa2   :  { %p14807_p5 = scmp.ne.s32.totalorder %s15041_s9, %s14806_s4  ;;  %p14812_p7 = scmp.lt.s32.totalorder %s14806_s4, %s14806_s4 }
  0xa4   :  { %p14813_p8 = por %p14812_p7, %p14811_p6 }
  0xa6   :  { %p14814_p9 = pnand %p14813_p8, %p14807_p5 }
  0xa8   :  { %14817 = shalt.err (!%p14814_p9)
}
  0xa9   :  { %123 = dma.hbm_to_vmem [thread:$0]  %s18772_s10, 40960, %s15041_s9, [#allocation14], %s14858_s20, %s14858_s20, %s14859_s26  }
  0xaa   :  { %s14864_s14 = smov [#allocation18]   ;;  %s14818_s19 = scalar_lea.hbm %s18774_s12, 16 }
  0xab   :  { %s142_s16 = sshll.u32 %s14864_s14, 4  ;;  %p14819_p10 = scmp.ne.s32.totalorder %s18774_s12, %s14818_s19  ;;  %s143_s16 = int_to_ptr.vmem [resolvable:$true] %s142_s16 }
  0xac   :  { %p14822_p11 = scmp.lt.u32.totalorder %s14818_s19, %s18774_s12 }
  0xae   :  { %p14824_p12 = pnand %p14822_p11, %p14819_p10 }
  0xb0   :  { %14827 = shalt.err (!%p14824_p12)
}
  0xb1   :  { %s14828_s23 = scalar_lea.vmem %s143_s16, 16  ;;  %s14832_s10 = scalar_lea.vmem %s143_s16, 32 }
  0xb2   :  { %p14829_p13 = scmp.ne.s32.totalorder %s143_s16, %s14828_s23  ;;  %p14833_p0 = scmp.lt.s32.totalorder %s143_s16, %s143_s16 }
  0xb3   :  { %p14834_p1 = scmp.lt.s32.totalorder %s14832_s10, %s14828_s23 }
  0xb5   :  { %p14835_p2 = por %p14834_p1, %p14833_p0 }
  0xb7   :  { %p14836_p3 = pnand %p14835_p2, %p14829_p13 }
  0xb9   :  { %14839 = shalt.err (!%p14836_p3)
}
  0xba   :  { %145 = dma.hbm_to_vmem [thread:$0]  %s18774_s12, 16, %s143_s16, [#allocation17]  }
  0xbb   :  { %14840 = dma.done.wait [#allocation3], 64  }
  0xbc   :  { %14841 = vsyncadd [#allocation3], 4294967232 }
  0xbd   :  { %14842 = dma.done.wait [#allocation5], 528  }
  0xbe   :  { %14843 = vsyncadd [#allocation5], 4294966768 }
  0xbf   :  { %14844 = dma.done.wait [#allocation8], 80  }
  0xc0   :  { %14845 = vsyncadd [#allocation8], 4294967216 }
  0xc1   :  { %14846 = dma.done.wait [#allocation11], 528  }
  0xc2   :  { %14847 = vsyncadd [#allocation11], 4294966768 }
  0xc3   :  { %14848 = dma.done.wait [#allocation14], 40976  }
  0xc4   :  { %14849 = vsyncadd [#allocation14], 4294926320 }
  0xc5   :  { %14850 = dma.done.wait [#allocation17], 49168  }
  0xc6   :  { %14851 = vsyncadd [#allocation17], 4294918128  ;;  %v18779_v0 = vmov 1   ;;  %v15095_v1 = vld [vmem:[%s18763_s1 + $0x10] sm:$0xff]  ;;  %v15100_v2 = vld [vmem:[%s18763_s1] sm:$0xff]  ;;  %v18783_v7 = vmov 0  }
  0xc7   :  { %13712 = vset.pattern.permute.xlu0 %v18779_v0  ;;  %13710 = vset.pattern.permute.xlu1 %v18779_v0  ;;  %v2366_v3 = vld [vmem:[%s18763_s1 + $0x28] sm:$0xff]  ;;  %v2367_v5 = vld [vmem:[%s18763_s1 + $0x30] sm:$0xff]  ;;  %v2364_v6 = vld [vmem:[%s18763_s1 + $0x18] sm:$0xff]  ;;  %v18781_v11 = vmov 2   ;;  %vm1099_vm0 = vcmask 523264  }
  0xc8   :  { %2711 = vperm.xlu0 %13712, %v15095_v1   ;;  %2703 = vperm.xlu1 %13710, %v15100_v2   ;;  %v15110_v4 = vld [vmem:[%s18763_s1 + $0x8] sm:$0xff]  ;;  %v15123_v8 = vld [vmem:[%s18763_s1 + $0x50] sm:$0xff]  ;;  %v15163_v16 = vld [vmem:[%s18763_s1 + $0x20] sm:$0xff]  ;;  %vm1413_vm1 = vsmask.f32 256 }
  0xc9   :  { %v15128_v9 = vld [vmem:[%s18763_s1 + $0x68] sm:$0xff]  ;;  %v15135_v10 = vld [vmem:[%s18763_s1 + $0x70] sm:$0xff]  ;;  %v2368_v19 = vld [vmem:[%s18763_s1 + $0x38] sm:$0xff]  ;;  %vm1419_vm2 = vsmask.f32 770 }
  0xca   :  { %v15144_v12 = vld [vmem:[%s18763_s1 + $0x90] sm:$0xff]  ;;  %v2382_v13 = vld [vmem:[%s18763_s1 + $0xa8] sm:$0xff]  ;;  %v15191_v21 = vld [vmem:[%s18763_s1 + $0x60] sm:$0xff]  ;;  %vm1422_vm3 = vsmask.f32 1284 }
  0xcb   :  { %v2383_v14 = vld [vmem:[%s18763_s1 + $0xb0] sm:$0xff]  ;;  %v2390_v17 = vld [vmem:[%s18763_s1 + $0xe8] sm:$0xff]  ;;  %v2369_v22 = vld [vmem:[%s18763_s1 + $0x40] sm:$0xff]  ;;  %vm1428_vm4 = vsmask.f32 1798 }
  0xcc   :  { %2723 = vperm.xlu0 %13712, %v2366_v3   ;;  %2707 = vperm.xlu1 %13710, %v15110_v4   ;;  %v15158_v15 = vld [vmem:[%s18763_s1 + $0xd0] sm:$0xff]  ;;  %v15186_v20 = vld [vmem:[%s18763_s1 + $0x48] sm:$0xff]  ;;  %v2376_v23 = vld [vmem:[%s18763_s1 + $0x78] sm:$0xff]  ;;  %vm1431_vm5 = vsmask.f32 2312 }
  0xcd   :  { %v2391_v18 = vld [vmem:[%s18763_s1 + $0xf0] sm:$0xff]  ;;  %v15205_v24 = vld [vmem:[%s18763_s1 + $0x88] sm:$0xff]  ;;  %v15211_v25 = vld [vmem:[%s18763_s1 + $0xa0] sm:$0xff]  ;;  %vm1437_vm6 = vsmask.f32 2826 }
  0xce   :  { %v2372_v26 = vld [vmem:[%s18763_s1 + $0x58] sm:$0xff]  ;;  %v15228_v28 = vld [vmem:[%s18763_s1 + $0xc8] sm:$0xff]  ;;  %v15235_v29 = vld [vmem:[%s18763_s1 + $0xe0] sm:$0xff]  ;;  %vm1440_vm7 = vsmask.f32 3340 }
  0xcf   :  { %v15221_v27 = vld [vmem:[%s18763_s1 + $0xb8] sm:$0xff]  ;;  %v15246_v31 = vld [vmem:[%s18763_s1 + $0x108] sm:$0xff]  ;;  %v15252_v32 = vld [vmem:[%s18763_s1 + $0x120] sm:$0xff]  ;;  %vm1446_vm8 = vsmask.f32 3854 }
  0xd0   :  { %2727 = vperm.xlu0 %13712, %v2367_v5   ;;  %13711 = vset.pattern.permute.xlu1 %v18783_v7  ;;  %v2392_v30 = vld [vmem:[%s18763_s1 + $0xf8] sm:$0xff]  ;;  %v13829_v34 = vld [vmem:[#allocation12] sm:$0xff]   ;;  %v13832_v37 = vld [vmem:[#allocation12 + $0x18] sm:$0xff]  }
  0xd1   :  { %2427 = vperm.xlu1 %13711, %v2364_v6   ;;  %v2400_v33 = vld [vmem:[%s18763_s1 + $0x138] sm:$0xff]  ;;  %13637 = vmatprep.subr.bf16.mxu1 %v13829_v34  ;;  %v2377_v40 = vld [vmem:[%s18763_s1 + $0x80] sm:$0xff]  ;;  %v2395_v57 = vld [vmem:[%s18763_s1 + $0x110] sm:$0xff] }
  0xd2   :  { %13638 = vmatpush3.bf16.msra.mxu1 %v13829_v34  ;;  %v13830_v35 = vld [vmem:[#allocation12 + $0x8] sm:$0xff]   ;;  %v13831_v36 = vld [vmem:[#allocation12 + $0x10] sm:$0xff]   ;;  %v2402_v63 = vld [vmem:[%s18763_s1 + $0x148] sm:$0xff] }
  0xd3   :  { %13639 = vmatprep.subr.bf16.mxu1 %v13830_v35  ;;  %v2380_v48 = vld [vmem:[%s18763_s1 + $0x98] sm:$0xff]  ;;  %v14541_v58 = vld [vmem:[%s18763_s1 + $0x90] sm:$0xff] }
  0xd4   :  { %2743 = vperm.xlu0 %13712, %v15123_v8  }
  0xd5   :  { %13713 = vset.pattern.permute.xlu1 %v18779_v0 }
  0xd6   :  { %2715 = vperm.xlu1 %13713, %v2364_v6   ;;  %13640 = vmatpush3.bf16.msra.mxu1 %v13830_v35 }
  0xd7   :  { %13641 = vmatprep.subr.bf16.mxu1 %v13831_v36 }
  0xd8   :  { %2755 = vperm.xlu0 %13712, %v15128_v9  }
  0xda   :  { %13714 = vset.pattern.permute.xlu1 %v18781_v11  ;;  %13642 = vmatpush3.bf16.msra.mxu1 %v13831_v36  ;;  %v14544_v36 = vld [vmem:[%s18763_s1 + $0xc8] sm:$0xff] }
  0xdb   :  { %2995 = vperm.xlu1 %13714, %v15100_v2   ;;  %13643 = vmatprep.subr.bf16.mxu1 %v13832_v37 }
  0xdc   :  { %2759 = vperm.xlu0 %13712, %v15135_v10  }
  0xde   :  { %13644 = vmatpush3.bf16.msra.mxu1 %v13832_v37  ;;  %v2388_v37 = vld [vmem:[%s18763_s1 + $0xd8] sm:$0xff] }
  0xdf   :  { %3003 = vperm.xlu1 %13714, %v15095_v1  }
  0xe0   :  { %2775 = vperm.xlu0 %13712, %v15144_v12  }
  0xe3   :  { %3007 = vperm.xlu1 %13714, %v2364_v6  }
  0xe4   :  { %2787 = vperm.xlu0 %13712, %v2382_v13  }
  0xe7   :  { %13715 = vset.pattern.permute.xlu1 %v18783_v7 }
  0xe8   :  { %2791 = vperm.xlu0 %13712, %v2383_v14   ;;  %2437 = vperm.xlu1 %13715, %v2366_v3   ;;  %v2399_v14 = vld [vmem:[%s18763_s1 + $0x130] sm:$0xff] }
  0xec   :  { %2807 = vperm.xlu0 %13712, %v15158_v15   ;;  %13716 = vset.pattern.permute.xlu1 %v18779_v0 }
  0xed   :  { %2719 = vperm.xlu1 %13716, %v15163_v16  }
  0xf0   :  { %2819 = vperm.xlu0 %13712, %v2390_v17  }
  0xf1   :  { %13717 = vset.pattern.permute.xlu1 %v18783_v7 }
  0xf2   :  { %2442 = vperm.xlu1 %13717, %v2367_v5  }
  0xf4   :  { %2823 = vperm.xlu0 %13712, %v2391_v18  }
  0xf6   :  { %2447 = vperm.xlu1 %13717, %v2368_v19  }
  0xf8   :  { %13748 = vset.pattern.permute.xlu0 %v18781_v11 }
  0xf9   :  { %2999 = vperm.xlu0 %13748, %v15110_v4  }
  0xfa   :  { %13718 = vset.pattern.permute.xlu1 %v18779_v0 }
  0xfb   :  { %2731 = vperm.xlu1 %13718, %v2368_v19  }
  0xfd   :  { %3011 = vperm.xlu0 %13748, %v15163_v16  }
  0xff   :  { %13719 = vset.pattern.permute.xlu1 %v18781_v11 }
 0x100   :  { %3015 = vperm.xlu1 %13719, %v2366_v3  }
 0x101   :  { %3023 = vperm.xlu0 %13748, %v2368_v19  }
 0x104   :  { %3019 = vperm.xlu1 %13719, %v2367_v5  }
 0x105   :  { %3031 = vperm.xlu0 %13748, %v15186_v20  }
 0x108   :  { %13720 = vset.pattern.permute.xlu1 %v18783_v7 }
 0x109   :  { %3043 = vperm.xlu0 %13748, %v15191_v21   ;;  %2452 = vperm.xlu1 %13720, %v2369_v22  }
 0x10d   :  { %3055 = vperm.xlu0 %13748, %v2376_v23   ;;  %13721 = vset.pattern.permute.xlu1 %v18779_v0 }
 0x10e   :  { %2735 = vperm.xlu1 %13721, %v2369_v22  }
 0x111   :  { %3063 = vperm.xlu0 %13748, %v15205_v24  }
 0x112   :  { %2739 = vperm.xlu1 %13721, %v15186_v20  }
 0x115   :  { %3075 = vperm.xlu0 %13748, %v15211_v25  }
 0x116   :  { %13722 = vset.pattern.permute.xlu1 %v18783_v7 }
 0x117   :  { %2467 = vperm.xlu1 %13722, %v2372_v26  }
 0x119   :  { %3087 = vperm.xlu0 %13748, %v15221_v27  }
 0x11b   :  { %13723 = vset.pattern.permute.xlu1 %v18779_v0 }
 0x11c   :  { %2747 = vperm.xlu1 %13723, %v2372_v26  }
 0x11d   :  { %3095 = vperm.xlu0 %13748, %v15228_v28  }
 0x120   :  { %13724 = vset.pattern.permute.xlu1 %v18781_v11 }
 0x121   :  { %3107 = vperm.xlu0 %13748, %v15235_v29   ;;  %3027 = vperm.xlu1 %13724, %v2369_v22   ;;  %v2385_v22 = vld [vmem:[%s18763_s1 + $0xc0] sm:$0xff] }
 0x125   :  { %3119 = vperm.xlu0 %13748, %v2392_v30   ;;  %3035 = vperm.xlu1 %13724, %v15123_v8  }
 0x129   :  { %3127 = vperm.xlu0 %13748, %v15246_v31   ;;  %3039 = vperm.xlu1 %13724, %v2372_v26  }
 0x12d   :  { %3139 = vperm.xlu0 %13748, %v15252_v32   ;;  %13725 = vset.pattern.permute.xlu1 %v18783_v7 }
 0x12e   :  { %2477 = vperm.xlu1 %13725, %v15128_v9  }
 0x131   :  { %3151 = vperm.xlu0 %13748, %v2400_v33  }
 0x132   :  { %13726 = vset.pattern.permute.xlu1 %v18779_v0 }
 0x133   :  { %2751 = vperm.xlu1 %13726, %v15191_v21  }
 0x135   :  { %13761 = vset.pattern.permute.xlu0 %v18783_v7 }
 0x136   :  { %2412 = vperm.xlu0 %13761, %v15100_v2   ;;  %v14542_v2 = vld [vmem:[%s18763_s1 + $0xa8] sm:$0xff] }
 0x137   :  { %13727 = vset.pattern.permute.xlu1 %v18783_v7 }
 0x138   :  { %2482 = vperm.xlu1 %13727, %v15135_v10  }
 0x13a   :  { %2417 = vperm.xlu0 %13761, %v15110_v4   ;;  %v2403_v4 = vld [vmem:[%s18763_s1 + $0x150] sm:$0xff] }
 0x13c   :  { %2487 = vperm.xlu1 %13727, %v2376_v23  }
 0x13e   :  { %2422 = vperm.xlu0 %13761, %v15095_v1  }
 0x140   :  { %13728 = vset.pattern.permute.xlu1 %v18779_v0 }
 0x141   :  { %2763 = vperm.xlu1 %13728, %v2376_v23  }
 0x142   :  { %2432 = vperm.xlu0 %13761, %v15163_v16  }
 0x145   :  { %13729 = vset.pattern.permute.xlu1 %v18781_v11 }
 0x146   :  { %2457 = vperm.xlu0 %13761, %v15186_v20   ;;  %3047 = vperm.xlu1 %13729, %v15128_v9   ;;  %v14543_v9 = vld [vmem:[%s18763_s1 + $0xb0] sm:$0xff] }
 0x147   :  { %v15274_v38 = vpop.permute.xlu1 %2703  ;;  %v15276_v39 = vpop.permute.xlu0 %2711 }
 0x14a   :  { %2462 = vperm.xlu0 %13761, %v15123_v8   ;;  %3051 = vperm.xlu1 %13729, %v15135_v10   ;;  %v2398_v10 = vld [vmem:[%s18763_s1 + $0x128] sm:$0xff] }
 0x14b   :  { %v15283_v41 = vpop.permute.xlu1 %2707  ;;  %v15285_v42 = vpop.permute.xlu0 %2723 }
 0x14e   :  { %2472 = vperm.xlu0 %13761, %v15191_v21   ;;  %13730 = vset.pattern.permute.xlu1 %v18783_v7 }
 0x14f   :  { %2492 = vperm.xlu1 %13730, %v2377_v40   ;;  %v15289_v43 = vpop.permute.xlu0 %2727 }
 0x150   :  { %v15291_v44 = vpop.permute.xlu1 %2427 }
 0x152   :  { %2497 = vperm.xlu0 %13761, %v15205_v24  }
 0x153   :  { %13731 = vset.pattern.permute.xlu1 %v18779_v0  ;;  %v15295_v45 = vpop.permute.xlu0 %2743 }
 0x154   :  { %2767 = vperm.xlu1 %13731, %v2377_v40  }
 0x155   :  { %v15297_v46 = vpop.permute.xlu1 %2715 }
 0x156   :  { %2502 = vperm.xlu0 %13761, %v15144_v12  }
 0x157   :  { %v15300_v47 = vpop.permute.xlu0 %2755 }
 0x158   :  { %2771 = vperm.xlu1 %13731, %v15205_v24   ;;  %v421_v24 = vlaneseq }
 0x15a   :  { %v15306_v49 = vpop.permute.xlu1 %2995  ;;  %2512 = vperm.xlu0 %13761, %v15211_v25  }
 0x15b   :  { %v15309_v50 = vpop.permute.xlu0 %2759 }
 0x15c   :  { %13732 = vset.pattern.permute.xlu1 %v18783_v7 }
 0x15d   :  { %2507 = vperm.xlu1 %13732, %v2380_v48  }
 0x15e   :  { %v15312_v51 = vpop.permute.xlu1 %3003  ;;  %2537 = vperm.xlu0 %13761, %v15228_v28  }
 0x15f   :  { %v15315_v52 = vpop.permute.xlu0 %2775 }
 0x161   :  { %13733 = vset.pattern.permute.xlu1 %v18779_v0 }
 0x162   :  { %2779 = vperm.xlu1 %13733, %v2380_v48   ;;  %v15318_v53 = vpop.permute.xlu1 %3007  ;;  %2542 = vperm.xlu0 %13761, %v15158_v15  }
 0x163   :  { %v15321_v54 = vpop.permute.xlu0 %2787 }
 0x166   :  { %13734 = vset.pattern.permute.xlu1 %v18781_v11  ;;  %2552 = vperm.xlu0 %13761, %v15235_v29   ;;  %v2407_v29 = vld [vmem:[%s18763_s1 + $0x170] sm:$0xff] }
 0x167   :  { %3059 = vperm.xlu1 %13734, %v2377_v40   ;;  %v15325_v55 = vpop.permute.xlu1 %2437  ;;  %v15327_v56 = vpop.permute.xlu0 %2791  ;;  %v185_v40 = vld [vmem:[%s18762_s0 + $0x28] sm:$0xff] }
 0x16a   :  { %2577 = vperm.xlu0 %13761, %v15246_v31  }
 0x16b   :  { %3067 = vperm.xlu1 %13734, %v14541_v58   ;;  %v15336_v59 = vpop.permute.xlu0 %2807  ;;  %v2409_v58 = vld [vmem:[#allocation9] sm:$0x7] }
 0x16c   :  { %v15338_v60 = vpop.permute.xlu1 %2719 }
 0x16e   :  { %2582 = vperm.xlu0 %13761, %v2395_v57  }
 0x16f   :  { %3071 = vperm.xlu1 %13734, %v2380_v48   ;;  %v15340_v61 = vpop.permute.xlu0 %2819 }
 0x171   :  { %v15342_v62 = vpop.permute.xlu1 %2442 }
 0x172   :  { %2592 = vperm.xlu0 %13761, %v15252_v32   ;;  %v182_v32 = vld [vmem:[%s18762_s0 + $0x10] sm:$0xff] }
 0x173   :  { %13735 = vset.pattern.permute.xlu1 %v18783_v7  ;;  %v15349_v1 = vpop.permute.xlu0 %2823 }
 0x174   :  { %2517 = vperm.xlu1 %13735, %v14542_v2  }
 0x175   :  { %v15354_v3 = vpop.permute.xlu1 %2447 }
 0x176   :  { %2617 = vperm.xlu0 %13761, %v2402_v63  }
 0x178   :  { %v15359_v5 = vpop.permute.xlu0 %2999  ;;  %13736 = vset.pattern.permute.xlu1 %v18779_v0 }
 0x179   :  { %2783 = vperm.xlu1 %13736, %v15211_v25   ;;  %v2406_v25 = vld [vmem:[%s18763_s1 + $0x168] sm:$0xff] }
 0x17a   :  { %v15363_v6 = vpop.permute.xlu1 %2731  ;;  %2622 = vperm.xlu0 %13761, %v2403_v4  }
 0x17c   :  { %v15365_v8 = vpop.permute.xlu0 %3011 }
 0x17d   :  { %13737 = vset.pattern.permute.xlu1 %v18783_v7 }
 0x17e   :  { %2522 = vperm.xlu1 %13737, %v14543_v9   ;;  %13764 = vset.pattern.permute.xlu0 %v18779_v0 }
 0x17f   :  { %v15375_v12 = vpop.permute.xlu1 %3015  ;;  %2839 = vperm.xlu0 %13764, %v2395_v57  }
 0x180   :  { %v15377_v13 = vpop.permute.xlu0 %3023 }
 0x182   :  { %2527 = vperm.xlu1 %13737, %v15221_v27  }
 0x183   :  { %v15383_v15 = vpop.permute.xlu1 %3019  ;;  %2851 = vperm.xlu0 %13764, %v2398_v10  }
 0x184   :  { %v15385_v16 = vpop.permute.xlu0 %3031 }
 0x186   :  { %13738 = vset.pattern.permute.xlu1 %v18779_v0 }
 0x187   :  { %2795 = vperm.xlu1 %13738, %v15221_v27   ;;  %2855 = vperm.xlu0 %13764, %v2399_v14   ;;  %v15413_v27 = vshrl.u32 %v421_v24, 7  ;;  %v190_v24 = vld [vmem:[%s18762_s0 + $0x50] sm:$0xff] }
 0x188   :  { %v15389_v17 = vpop.permute.xlu1 %2452  ;;  %v15391_v18 = vpop.permute.xlu0 %3043 }
 0x189   :  { %18833 = vst [vmem:[#allocation25_spill] sm:$0xff] %v15413_v27  ;;  %v18778_v31 = vsub.s32 1, %v15413_v27  ;;  %v18777_v35 = vsub.s32 0, %v15413_v27 }
 0x18b   :  { %13739 = vset.pattern.permute.xlu1 %v18781_v11  ;;  %2871 = vperm.xlu0 %13764, %v2403_v4   ;;  %v15456_v10 = vrot.slane %v2409_v58, %v18778_v31  ;;  %v15460_v14 = vrot.slane %v2409_v58, %v18777_v35 }
 0x18c   :  { %3079 = vperm.xlu1 %13739, %v14542_v2   ;;  %v15394_v19 = vpop.permute.xlu0 %3055  ;;  %v186_v2 = vld [vmem:[%s18762_s0 + $0x30] sm:$0xff] }
 0x18d   :  { %v15396_v20 = vpop.permute.xlu1 %2735  ;;  %v2659_v35 = vmul.f32 %v15460_v14, %v15325_v55  ;;  %v2905_v55 = vmul.f32 %v15456_v10, %v15363_v6  ;;  %v15518_v6 = vld [vmem:[%s18763_s1 + $0x160] sm:$0xff] }
 0x18f   :  { %13768 = vset.pattern.permute.xlu0 %v18781_v11 }
 0x190   :  { %3083 = vperm.xlu1 %13739, %v14543_v9   ;;  %v15399_v21 = vpop.permute.xlu0 %3063  ;;  %3159 = vperm.xlu0 %13768, %v2402_v63   ;;  %v18776_v63 = vsub.s32 2, %v15413_v27 }
 0x191   :  { %v15404_v23 = vpop.permute.xlu1 %2739 }
 0x194   :  { %13740 = vset.pattern.permute.xlu1 %v18783_v7  ;;  %v15410_v26 = vpop.permute.xlu0 %3075  ;;  %13771 = vset.pattern.permute.xlu0 %v18779_v0 }
 0x195   :  { %2532 = vperm.xlu1 %13740, %v2385_v22   ;;  %2883 = vperm.xlu0 %13771, %v2406_v25   ;;  %v2901_v25 = vmul.f32 %v15456_v10, %v15297_v46  ;;  %v193_v46 = vld [vmem:[%s18762_s0 + $0x68] sm:$0xff] }
 0x196   :  { %v15415_v28 = vpop.permute.xlu1 %2467 }
 0x198   :  { %v15420_v30 = vpop.permute.xlu0 %3087 }
 0x199   :  { %13741 = vset.pattern.permute.xlu1 %v18779_v0  ;;  %2887 = vperm.xlu0 %13771, %v2407_v29   ;;  %v15470_v29 = vrot.slane %v2409_v58, %v18776_v63  ;;  %v2903_v58 = vmul.f32 %v15456_v10, %v15285_v42  ;;  %v194_v42 = vld [vmem:[%s18762_s0 + $0x70] sm:$0xff] }
 0x19a   :  { %2799 = vperm.xlu1 %13741, %v2385_v22  }
 0x19b   :  { %v15427_v33 = vpop.permute.xlu1 %2747  ;;  %v3195_v31 = vmul.f32 %v15470_v29, %v15375_v12 }
 0x19c   :  { %v15429_v34 = vpop.permute.xlu0 %3095 }
 0x19d   :  { %474 = vperm.xlu0 %13771, %v182_v32  }
 0x19e   :  { %2803 = vperm.xlu1 %13741, %v14544_v36  }
 0x1a0   :  { %v15441_v48 = vpop.permute.xlu1 %3027  ;;  %v15443_v57 = vpop.permute.xlu0 %3107 }
 0x1a1   :  { %486 = vperm.xlu0 %13771, %v185_v40   ;;  %v2657_v40 = vmul.f32 %v15460_v14, %v15291_v44 }
 0x1a2   :  { %13742 = vset.pattern.permute.xlu1 %v18783_v7 }
 0x1a3   :  { %2547 = vperm.xlu1 %13742, %v2388_v37   ;;  %v2949_v63 = vadd.f32 %v2901_v25, %v2657_v40  ;;  %v15497_v25 = vld [vmem:[#allocation10] ss:$0 sm:$0xff]  ;;  %v2951_v40 = vadd.f32 %v2903_v58, %v2659_v35  ;;  %v3197_v35 = vmul.f32 %v15470_v29, %v15377_v13 }
 0x1a4   :  { %v15450_v4 = vpop.permute.xlu1 %3035  ;;  %v15452_v9 = vpop.permute.xlu0 %3119 }
 0x1a5   :  { %490 = vperm.xlu0 %13771, %v186_v2   ;;  %v3193_v2 = vmul.f32 %v15470_v29, %v15318_v53 }
 0x1a7   :  { %13743 = vset.pattern.permute.xlu1 %v18779_v0  ;;  %v3241_v53 = vadd.f32 %v3193_v2, %v2949_v63  ;;  %v2661_v63 = vmul.f32 %v15460_v14, %v15354_v3  ;;  %v3243_v2 = vadd.f32 %v3195_v31, %v2951_v40 }
 0x1a8   :  { %2811 = vperm.xlu1 %13743, %v2388_v37   ;;  %v15472_v32 = vpop.permute.xlu1 %3039  ;;  %v15474_v36 = vpop.permute.xlu0 %3127 }
 0x1a9   :  { %506 = vperm.xlu0 %13771, %v190_v24   ;;  %v15507_v12 = vadd.f32 %v15497_v25, %v3241_v53  ;;  %v2953_v58 = vadd.f32 %v2905_v55, %v2661_v63  ;;  %v15525_v31 = vadd.f32 %v15497_v25, %v3243_v2  ;;  %v2408_v55 = vld [vmem:[%s18763_s1 + $0x178] sm:$0xff]  ;;  %v3190_v63 = vmul.f32 %v15470_v29, %v15306_v49 }
 0x1ab   :  { %v3245_v13 = vadd.f32 %v3197_v35, %v2953_v58  ;;  %v2899_v35 = vmul.f32 %v15456_v10, %v15283_v41  ;;  %v3191_v58 = vmul.f32 %v15470_v29, %v15359_v5  ;;  %v15555_v41 = vld [vmem:[%s18763_s1 + $0xe8] sm:$0xff] }
 0x1ac   :  { %13744 = vset.pattern.permute.xlu1 %v18781_v11  ;;  %v15488_v24 = vpop.permute.xlu0 %3139  ;;  %v15561_v5 = vld [vmem:[%s18762_s0 + $0x8] sm:$0xff] }
 0x1ad   :  { %3091 = vperm.xlu1 %13744, %v2385_v22   ;;  %v15490_v44 = vpop.permute.xlu1 %2477  ;;  %518 = vperm.xlu0 %13771, %v193_v46   ;;  %v14545_v22 = vld [vmem:[%s18763_s1 + $0xd0] sm:$0xff] }
 0x1b0   :  { %v15501_v0 = vpop.permute.xlu0 %3151 }
 0x1b1   :  { %3099 = vperm.xlu1 %13744, %v14545_v22   ;;  %522 = vperm.xlu0 %13771, %v194_v42   ;;  %v2898_v42 = vmul.f32 %v15456_v10, %v15274_v38  ;;  %v2904_v38 = vmul.f32 %v15456_v10, %v15289_v43 }
 0x1b2   :  { %v15513_v46 = vpop.permute.xlu1 %2751 }
 0x1b5   :  { %v2413_v53 = vpop.permute.xlu0 %2412  ;;  %3103 = vperm.xlu1 %13744, %v2388_v37   ;;  %13793 = vset.pattern.permute.xlu0 %v18781_v11  ;;  %v2660_v37 = vmul.f32 %v15460_v14, %v15342_v62  ;;  %v15549_v62 = vadd.f32 %v15497_v25, %v3245_v13 }
 0x1b6   :  { %v2654_v40 = vmul.f32 %v15460_v14, %v2413_v53  ;;  %3171 = vperm.xlu0 %13793, %v15518_v6   ;;  %v3196_v53 = vmul.f32 %v15470_v29, %v15383_v15 }
 0x1b7   :  { %v15536_v22 = vpop.permute.xlu1 %2482  ;;  %v2952_v15 = vadd.f32 %v2904_v38, %v2660_v37 }
 0x1b8   :  { %v2946_v2 = vadd.f32 %v2898_v42, %v2654_v40  ;;  %v2906_v42 = vmul.f32 %v15456_v10, %v15396_v20  ;;  %v18834_v20 = vmov 1  }
 0x1b9   :  { %v2418_v11 = vpop.permute.xlu0 %2417  ;;  %13745 = vset.pattern.permute.xlu1 %v18783_v7 }
 0x1ba   :  { %v3238_v3 = vadd.f32 %v3190_v63, %v2946_v2  ;;  %v2655_v49 = vmul.f32 %v15460_v14, %v2418_v11  ;;  %2557 = vperm.xlu1 %13745, %v15555_v41   ;;  %3183 = vperm.xlu0 %13793, %v2408_v55   ;;  %v2900_v11 = vmul.f32 %v15456_v10, %v15276_v39  ;;  %v15579_v39 = vld [vmem:[%s18762_s0 + $0x20] sm:$0xff] }
 0x1bb   :  { %v2488_v13 = vpop.permute.xlu1 %2487  ;;  %v3244_v63 = vadd.f32 %v3196_v53, %v2952_v15  ;;  %v2662_v2 = vmul.f32 %v15460_v14, %v15389_v17  ;;  %v3198_v55 = vmul.f32 %v15470_v29, %v15441_v48  ;;  %v2911_v17 = vmul.f32 %v15456_v10, %v15300_v47 }
 0x1bc   :  { %v2947_v40 = vadd.f32 %v2899_v35, %v2655_v49  ;;  %v3293_v27 = vadd.f32 %v15497_v25, %v3238_v3  ;;  %v3192_v48 = vmul.f32 %v15470_v29, %v15312_v51  ;;  %v2902_v3 = vmul.f32 %v15456_v10, %v15338_v60  ;;  %v187_v60 = vld [vmem:[%s18762_s0 + $0x38] sm:$0xff] }
 0x1bd   :  { %v2423_v43 = vpop.permute.xlu0 %2422  ;;  %v2954_v35 = vadd.f32 %v2906_v42, %v2662_v2  ;;  %v3194_v53 = vmul.f32 %v15470_v29, %v15365_v8  ;;  %v15594_v47 = vadd.f32 %v15497_v25, %v3244_v63  ;;  %v3199_v51 = vmul.f32 %v15470_v29, %v15385_v16 }
 0x1be   :  { %v3239_v38 = vadd.f32 %v3191_v58, %v2947_v40  ;;  %v2656_v37 = vmul.f32 %v15460_v14, %v2423_v43  ;;  %13746 = vset.pattern.permute.xlu1 %v18834_v20  ;;  %714 = vperm.xlu0 %13793, %v15561_v5   ;;  %v14547_v58 = vld [vmem:[%s18763_s1 + $0xe0] sm:$0xff]  ;;  %v3205_v63 = vmul.f32 %v15470_v29, %v15394_v19  ;;  %v15618_v19 = vld [vmem:[%s18763_s1 + $0xf0] sm:$0xff] }
 0x1bf   :  { %2815 = vperm.xlu1 %13746, %v14547_v58   ;;  %v3246_v42 = vadd.f32 %v3198_v55, %v2954_v35  ;;  %v2909_v16 = vmul.f32 %v15456_v10, %v15427_v33  ;;  %v2667_v55 = vmul.f32 %v15460_v14, %v15490_v44  ;;  %v18835_v35 = vmov 0  }
 0x1c0   :  { %v2948_v43 = vadd.f32 %v2900_v11, %v2656_v37  ;;  %v2764_v49 = vpop.permute.xlu1 %2763  ;;  %v3294_v15 = vadd.f32 %v15497_v25, %v3239_v38  ;;  %v3341_v11 = vmax.f32 %v3293_v27, 0.0  ;;  %v2669_v38 = vmul.f32 %v15460_v14, %v2488_v13 }
 0x1c1   :  { %v2913_v40 = vmul.f32 %v15456_v10, %v2764_v49  ;;  %v2433_v2 = vpop.permute.xlu0 %2432  ;;  %v2665_v44 = vmul.f32 %v15460_v14, %v15415_v28  ;;  %v3301_v13 = vadd.f32 %v15497_v25, %v3246_v42  ;;  %v3201_v49 = vmul.f32 %v15470_v29, %v15472_v32  ;;  %v15632_v28 = vld [vmem:[%s18762_s0 + $0x48] sm:$0xff] }
 0x1c2   :  { %v3240_v58 = vadd.f32 %v3192_v48, %v2948_v43  ;;  %v2658_v8 = vmul.f32 %v15460_v14, %v2433_v2  ;;  %v3342_v37 = vmax.f32 %v3294_v15, 0.0  ;;  %726 = vperm.xlu0 %13793, %v15579_v39   ;;  %v2907_v48 = vmul.f32 %v15456_v10, %v15404_v23 }
 0x1c3   :  { %13747 = vset.pattern.permute.xlu1 %v18835_v35  ;;  %v2961_v23 = vadd.f32 %v2913_v40, %v2669_v38  ;;  %v2908_v32 = vmul.f32 %v15456_v10, %v15295_v45  ;;  %v2912_v42 = vmul.f32 %v15456_v10, %v15309_v50  ;;  %v2957_v40 = vadd.f32 %v2909_v16, %v2665_v44 }
 0x1c4   :  { %v3295_v27 = vadd.f32 %v15497_v25, %v3240_v58  ;;  %v2950_v43 = vadd.f32 %v2902_v3, %v2658_v8  ;;  %2562 = vperm.xlu1 %13747, %v15618_v19   ;;  %v3389_v33 = vpack.c.bf16 %v3342_v37, %v3341_v11  ;;  %v2668_v11 = vmul.f32 %v15460_v14, %v15536_v22  ;;  %v15650_v22 = vld [vmem:[%s18762_s0 + $0x60] sm:$0xff] }
 0x1c5   :  { %v2458_v15 = vpop.permute.xlu0 %2457  ;;  %v3048_v2 = vpop.permute.xlu1 %3047  ;;  %v3347_v45 = vmax.f32 %v15594_v47, 0.0  ;;  %v3253_v50 = vadd.f32 %v3205_v63, %v2961_v23 }
 0x1c6   :  { %v3343_v3 = vmax.f32 %v3295_v27, 0.0  ;;  %v3242_v58 = vadd.f32 %v3194_v53, %v2950_v43  ;;  %v2663_v8 = vmul.f32 %v15460_v14, %v2458_v15  ;;  %v3203_v7 = vmul.f32 %v15470_v29, %v3048_v2  ;;  %13645 = vmatprep.mubr.msk.bf16.mxu1 %vm1099_vm0, %v3389_v33  ;;  %738 = vperm.xlu0 %13793, %v187_v60   ;;  %v14549_v60 = vld [vmem:[%s18763_s1 + $0xf8] sm:$0xff] }
 0x1c7   :  { %v2959_v53 = vadd.f32 %v2911_v17, %v2667_v55  ;;  %v18836_v27 = vmax.f32 %v15507_v12, 0.0  ;;  %v3249_v33 = vadd.f32 %v3201_v49, %v2957_v40  ;;  %v3202_v12 = vmul.f32 %v15470_v29, %v15391_v18 }
 0x1c8   :  { %v3297_v37 = vadd.f32 %v15497_v25, %v3242_v58  ;;  %v2955_v38 = vadd.f32 %v2907_v48, %v2663_v8  ;;  %2567 = vperm.xlu1 %13747, %v14549_v60   ;;  %v3349_v48 = vmax.f32 %v3301_v13, 0.0  ;;  %v2960_v63 = vadd.f32 %v2912_v42, %v2668_v11 }
 0x1c9   :  { %v3390_v43 = vpack.c.bf16 %v18836_v27, %v3343_v3  ;;  %v3251_v16 = vadd.f32 %v3203_v7, %v2959_v53  ;;  %v2463_v17 = vpop.permute.xlu0 %2462  ;;  %v3052_v55 = vpop.permute.xlu1 %3051  ;;  %v3200_v7 = vmul.f32 %v15470_v29, %v15450_v4  ;;  %v3304_v3 = vadd.f32 %v15497_v25, %v3249_v33 }
 0x1ca   :  { %v3345_v44 = vmax.f32 %v3297_v37, 0.0  ;;  %v3247_v15 = vadd.f32 %v3199_v51, %v2955_v38  ;;  %v2664_v2 = vmul.f32 %v15460_v14, %v2463_v17  ;;  %746 = vperm.xlu0 %13793, %v15632_v28   ;;  %v3204_v47 = vmul.f32 %v15470_v29, %v3052_v55 }
 0x1cb   :  { %13646 = vmatmul.mubr.msk.bf16.vlgmr.msra.gmra.mrb[0].mxu1 %vm1099_vm0, %v3390_v43  ;;  %v18837_v51 = vmax.f32 %v15525_v31, 0.0  ;;  %v2910_v58 = vmul.f32 %v15456_v10, %v15513_v46  ;;  %v3308_v18 = vadd.f32 %v15497_v25, %v3253_v50  ;;  %v3306_v4 = vadd.f32 %v15497_v25, %v3251_v16  ;;  %v195_v46 = vld [vmem:[%s18762_s0 + $0x78] sm:$0xff] }
 0x1cc   :  { %v3302_v49 = vadd.f32 %v15497_v25, %v3247_v15  ;;  %v2956_v13 = vadd.f32 %v2908_v32, %v2664_v2  ;;  %13749 = vset.pattern.permute.xlu1 %v18834_v20  ;;  %v3252_v53 = vadd.f32 %v3204_v47, %v2960_v63  ;;  %v18838_v38 = vmax.f32 %v15549_v62, 0.0  ;;  %v15685_v15 = vld [vmem:[%s18762_s0 + $0x88] sm:$0xff] }
 0x1cd   :  { %v3391_v23 = vpack.c.bf16 %v18837_v51, %v3345_v44  ;;  %v2473_v8 = vpop.permute.xlu0 %2472  ;;  %2827 = vperm.xlu1 %13749, %v14549_v60   ;;  %v3352_v43 = vmax.f32 %v3304_v3, 0.0  ;;  %v3356_v33 = vmax.f32 %v3308_v18, 0.0  ;;  %v18839_v50 = vmov 2  }
 0x1ce   :  { %v3350_v42 = vmax.f32 %v3302_v49, 0.0  ;;  %v3248_v40 = vadd.f32 %v3200_v7, %v2956_v13  ;;  %v2666_v32 = vmul.f32 %v15460_v14, %v2473_v8  ;;  %v2493_v31 = vpop.permute.xlu1 %2492  ;;  %758 = vperm.xlu0 %13793, %v15650_v22   ;;  %v3392_v60 = vpack.c.bf16 %v18838_v38, %v3347_v45  ;;  %v200_v7 = vld [vmem:[%s18762_s0 + $0xa0] sm:$0xff] }
 0x1cf   :  { %13649 = vmatprep.mubr.msk.bf16.mxu1 %vm1099_vm0, %v3391_v23  ;;  %v3354_v16 = vmax.f32 %v3306_v4, 0.0  ;;  %v3307_v55 = vadd.f32 %v15497_v25, %v3252_v53  ;;  %v3207_v18 = vmul.f32 %v15470_v29, %v15399_v21  ;;  %v208_v53 = vld [vmem:[%s18762_s0 + $0xe0] sm:$0xff]  ;;  %v2396_v21 = vld [vmem:[%s18763_s1 + $0x118] sm:$0xff] }
 0x1d0   :  { %v3303_v11 = vadd.f32 %v15497_v25, %v3248_v40  ;;  %v2958_v37 = vadd.f32 %v2910_v58, %v2666_v32  ;;  %v3393_v27 = vpack.c.bf16 %v3350_v42, %v3349_v48  ;;  %v205_v58 = vld [vmem:[%s18762_s0 + $0xc8] sm:$0xff] }
 0x1d1   :  { %13750 = vset.pattern.permute.xlu1 %v18839_v50  ;;  %v3355_v48 = vmax.f32 %v3307_v55, 0.0  ;;  %v2498_v49 = vpop.permute.xlu0 %2497  ;;  %v14550_v32 = vld [vmem:[%s18763_s1 + $0x108] sm:$0xff] }
 0x1d2   :  { %v3351_v17 = vmax.f32 %v3303_v11, 0.0  ;;  %v3250_v44 = vadd.f32 %v3202_v12, %v2958_v37  ;;  %3111 = vperm.xlu1 %13750, %v15555_v41   ;;  %770 = vperm.xlu0 %13793, %v195_v46   ;;  %v15693_v41 = vld [vmem:[%s18763_s1 + $0x100] sm:$0xff]  ;;  %v2671_v51 = vmul.f32 %v15460_v14, %v2498_v49  ;;  %v2916_v46 = vmul.f32 %v15456_v10, %v15315_v52 }
 0x1d3   :  { %13650 = vmatmul.mubr.msk.bf16.gmra.mrb[4].mxu1 %vm1099_vm0, %v3392_v60  ;;  %v2768_v62 = vpop.permute.xlu1 %2767  ;;  %v3396_v3 = vpack.c.bf16 %v3356_v33, %v3355_v48  ;;  %v2670_v11 = vmul.f32 %v15460_v14, %v2493_v31  ;;  %v211_v33 = vld [vmem:[%s18762_s0 + $0xf8] sm:$0xff] }
 0x1d4   :  { %13653 = vmatprep.mubr.msk.bf16.mxu1 %vm1099_vm0, %v3393_v27  ;;  %v3305_v45 = vadd.f32 %v15497_v25, %v3250_v44  ;;  %v3394_v47 = vpack.c.bf16 %v3352_v43, %v3351_v17  ;;  %v2914_v40 = vmul.f32 %v15456_v10, %v2768_v62 }
 0x1d5   :  { %v2503_v42 = vpop.permute.xlu0 %2502 }
 0x1d6   :  { %v3353_v2 = vmax.f32 %v3305_v45, 0.0  ;;  %3115 = vperm.xlu1 %13750, %v15618_v19   ;;  %778 = vperm.xlu0 %13793, %v15685_v15   ;;  %v203_v19 = vld [vmem:[%s18762_s0 + $0xb8] sm:$0xff]  ;;  %v2672_v38 = vmul.f32 %v15460_v14, %v2503_v42  ;;  %v2962_v27 = vadd.f32 %v2914_v40, %v2670_v11  ;;  %v213_v45 = vld [vmem:[%s18762_s0 + $0x108] sm:$0xff]  ;;  %v14552_v40 = vld [vmem:[%s18762_s0 + $0x10] sm:$0xff] }
 0x1d7   :  { %v2772_v12 = vpop.permute.xlu1 %2771  ;;  %v14554_v11 = vld [vmem:[%s18763_s1 + $0x120] sm:$0xff] }
 0x1d8   :  { %v3395_v63 = vpack.c.bf16 %v3354_v16, %v3353_v2  ;;  %v2915_v23 = vmul.f32 %v15456_v10, %v2772_v12  ;;  %v2964_v52 = vadd.f32 %v2916_v46, %v2672_v38 }
 0x1da   :  { %13751 = vset.pattern.permute.xlu1 %v18835_v35  ;;  %790 = vperm.xlu0 %13793, %v200_v7   ;;  %v2963_v4 = vadd.f32 %v2915_v23, %v2671_v51 }
 0x1db   :  { %13654 = vmatmul.mubr.msk.bf16.gmra.mrb[8].mxu1 %vm1099_vm0, %v3394_v47  ;;  %2572 = vperm.xlu1 %13751, %v15693_v41  }
 0x1dc   :  { %13657 = vmatprep.mubr.msk.bf16.mxu1 %vm1099_vm0, %v3395_v63  ;;  %v2508_v13 = vpop.permute.xlu1 %2507  ;;  %v3255_v37 = vadd.f32 %v3207_v18, %v2963_v4  ;;  %v14551_v4 = vld [vmem:[%s18763_s1 + $0x110] sm:$0xff] }
 0x1dd   :  { %v2673_v2 = vmul.f32 %v15460_v14, %v2508_v13 }
 0x1de   :  { %802 = vperm.xlu0 %13793, %v203_v19   ;;  %v3310_v16 = vadd.f32 %v15497_v25, %v3255_v37  ;;  %v3210_v37 = vmul.f32 %v15470_v29, %v15410_v26  ;;  %v3213_v26 = vmul.f32 %v15470_v29, %v15420_v30  ;;  %v15801_v30 = vld [vmem:[#allocation10] ss:$0 sm:$0xff] }
 0x1df   :  { %13752 = vset.pattern.permute.xlu1 %v18834_v20 }
 0x1e0   :  { %2831 = vperm.xlu1 %13752, %v15693_v41   ;;  %v3358_v48 = vmax.f32 %v3310_v16, 0.0 }
 0x1e1   :  { %v2780_v8 = vpop.permute.xlu1 %2779 }
 0x1e2   :  { %810 = vperm.xlu0 %13793, %v205_v58   ;;  %v2917_v55 = vmul.f32 %v15456_v10, %v2780_v8 }
 0x1e3   :  { %13658 = vmatmul.mubr.msk.bf16.gmra.mrb[12].mxu1 %vm1099_vm0, %v3396_v3 }
 0x1e4   :  { %2835 = vperm.xlu1 %13752, %v14550_v32   ;;  %v2965_v63 = vadd.f32 %v2917_v55, %v2673_v2 }
 0x1e6   :  { %v3060_v60 = vpop.permute.xlu1 %3059  ;;  %822 = vperm.xlu0 %13793, %v208_v53   ;;  %v14553_v53 = vld [vmem:[%s18763_s1 + $0x128] sm:$0xff] }
 0x1e7   :  { %v3206_v43 = vmul.f32 %v15470_v29, %v3060_v60 }
 0x1e8   :  { %13753 = vset.pattern.permute.xlu1 %v18835_v35 }
 0x1e9   :  { %v3254_v17 = vadd.f32 %v3206_v43, %v2962_v27  ;;  %2587 = vperm.xlu1 %13753, %v2396_v21   ;;  %v2919_v43 = vmul.f32 %v15456_v10, %v15321_v54  ;;  %v14556_v54 = vld [vmem:[%s18763_s1 + $0x130] sm:$0xff] }
 0x1ea   :  { %v3068_v31 = vpop.permute.xlu1 %3067  ;;  %834 = vperm.xlu0 %13793, %v211_v33  }
 0x1eb   :  { %v3309_v44 = vadd.f32 %v15497_v25, %v3254_v17  ;;  %v3208_v62 = vmul.f32 %v15470_v29, %v3068_v31 }
 0x1ed   :  { %v3357_v12 = vmax.f32 %v3309_v44, 0.0  ;;  %v3256_v7 = vadd.f32 %v3208_v62, %v2964_v52  ;;  %13754 = vset.pattern.permute.xlu1 %v18834_v20  ;;  %v2920_v44 = vmul.f32 %v15456_v10, %v15327_v56 }
 0x1ee   :  { %2843 = vperm.xlu1 %13754, %v2396_v21   ;;  %v3072_v47 = vpop.permute.xlu1 %3071  ;;  %842 = vperm.xlu0 %13793, %v213_v45  }
 0x1ef   :  { %v3209_v49 = vmul.f32 %v15470_v29, %v3072_v47  ;;  %v3397_v19 = vpack.c.bf16 %v3358_v48, %v3357_v12  ;;  %v3311_v51 = vadd.f32 %v15497_v25, %v3256_v7  ;;  %v14558_v47 = vld [vmem:[%s18763_s1 + $0x138] sm:$0xff] }
 0x1f1   :  { %v3257_v23 = vadd.f32 %v3209_v49, %v2965_v63  ;;  %13661 = vmatprep.mubr.msk.bf16.mxu1 %vm1099_vm0, %v3397_v19  ;;  %v3359_v58 = vmax.f32 %v3311_v51, 0.0 }
 0x1f2   :  { %13755 = vset.pattern.permute.xlu1 %v18839_v50  ;;  %13821 = vset.pattern.permute.xlu0 %v18835_v35 }
 0x1f3   :  { %v3312_v13 = vadd.f32 %v15497_v25, %v3257_v23  ;;  %3123 = vperm.xlu1 %13755, %v15693_v41   ;;  %v2518_v3 = vpop.permute.xlu1 %2517  ;;  %2632 = vperm.xlu0 %13821, %v15518_v6   ;;  %v2513_v25 = vpop.permute.xlu0 %2512 }
 0x1f4   :  { %v2675_v33 = vmul.f32 %v15460_v14, %v2518_v3 }
 0x1f5   :  { %v3360_v18 = vmax.f32 %v3312_v13, 0.0 }
 0x1f6   :  { %v2967_v62 = vadd.f32 %v2919_v43, %v2675_v33 }
 0x1f7   :  { %3131 = vperm.xlu1 %13755, %v14551_v4   ;;  %v3398_v8 = vpack.c.bf16 %v3360_v18, %v3359_v58  ;;  %228 = vperm.xlu0 %13821, %v15561_v5   ;;  %v15761_v6 = vpop.permute.xlu0 %2537  ;;  %v2674_v5 = vmul.f32 %v15460_v14, %v2513_v25 }
 0x1f8   :  { %v2784_v42 = vpop.permute.xlu1 %2783 }
 0x1f9   :  { %13662 = vmatmul.mubr.msk.bf16.gmra.mrb[16].mxu1 %vm1099_vm0, %v3398_v8 }
 0x1fb   :  { %3135 = vperm.xlu1 %13755, %v2396_v21   ;;  %233 = vperm.xlu0 %13821, %v14552_v40   ;;  %v2918_v21 = vmul.f32 %v15456_v10, %v2784_v42  ;;  %v15769_v46 = vpop.permute.xlu0 %2542 }
 0x1fd   :  { %v2523_v41 = vpop.permute.xlu1 %2522  ;;  %v2966_v38 = vadd.f32 %v2918_v21, %v2674_v5  ;;  %v2401_v5 = vld [vmem:[%s18763_s1 + $0x140] sm:$0xff] }
 0x1fe   :  { %v2676_v45 = vmul.f32 %v15460_v14, %v2523_v41 }
 0x1ff   :  { %13756 = vset.pattern.permute.xlu1 %v18835_v35  ;;  %243 = vperm.xlu0 %13821, %v15579_v39   ;;  %v15779_v27 = vpop.permute.xlu0 %2552  ;;  %v3258_v17 = vadd.f32 %v3210_v37, %v2966_v38  ;;  %v3215_v38 = vmul.f32 %v15470_v29, %v15429_v34 }
 0x200   :  { %2597 = vperm.xlu1 %13756, %v14553_v53   ;;  %v2968_v56 = vadd.f32 %v2920_v44, %v2676_v45 }
 0x201   :  { %v2528_v32 = vpop.permute.xlu1 %2527  ;;  %v3313_v2 = vadd.f32 %v15801_v30, %v3258_v17  ;;  %v2680_v17 = vmul.f32 %v15460_v14, %v15769_v46 }
 0x202   :  { %v2677_v16 = vmul.f32 %v15460_v14, %v2528_v32 }
 0x203   :  { %268 = vperm.xlu0 %13821, %v15632_v28   ;;  %v14555_v28 = vld [vmem:[%s18762_s0 + $0x50] sm:$0xff]  ;;  %v15794_v55 = vpop.permute.xlu0 %2577 }
 0x204   :  { %13757 = vset.pattern.permute.xlu1 %v18834_v20 }
 0x205   :  { %2847 = vperm.xlu1 %13757, %v14554_v11   ;;  %v2679_v11 = vmul.f32 %v15460_v14, %v15761_v6  ;;  %v14559_v6 = vld [vmem:[%s18763_s1 + $0x148] sm:$0xff] }
 0x206   :  { %v2796_v39 = vpop.permute.xlu1 %2795 }
 0x207   :  { %v2921_v60 = vmul.f32 %v15456_v10, %v2796_v39  ;;  %273 = vperm.xlu0 %13821, %v14555_v28   ;;  %v15809_v51 = vpop.permute.xlu0 %2582  ;;  %v2924_v28 = vmul.f32 %v15456_v10, %v15336_v59 }
 0x209   :  { %13758 = vset.pattern.permute.xlu1 %v18835_v35  ;;  %v2969_v52 = vadd.f32 %v2921_v60, %v2677_v16  ;;  %v2404_v16 = vld [vmem:[%s18763_s1 + $0x158] sm:$0xff]  ;;  %v2972_v45 = vadd.f32 %v2924_v28, %v2680_v17 }
 0x20a   :  { %2602 = vperm.xlu1 %13758, %v14556_v54  }
 0x20b   :  { %v3080_v31 = vpop.permute.xlu1 %3079  ;;  %283 = vperm.xlu0 %13821, %v15650_v22   ;;  %v3261_v12 = vadd.f32 %v3213_v26, %v2969_v52  ;;  %v3361_v22 = vmax.f32 %v3313_v2, 0.0  ;;  %v15817_v25 = vpop.permute.xlu0 %2592 }
 0x20c   :  { %v3211_v48 = vmul.f32 %v15470_v29, %v3080_v31 }
 0x20d   :  { %v3316_v23 = vadd.f32 %v15801_v30, %v3261_v12 }
 0x20e   :  { %v3259_v7 = vadd.f32 %v3211_v48, %v2967_v62  ;;  %2607 = vperm.xlu1 %13758, %v14558_v47  }
 0x20f   :  { %v3084_v63 = vpop.permute.xlu1 %3083  ;;  %308 = vperm.xlu0 %13821, %v15685_v15   ;;  %v3364_v8 = vmax.f32 %v3316_v23, 0.0  ;;  %v15820_v32 = vpop.permute.xlu0 %2617 }
 0x210   :  { %v3314_v49 = vadd.f32 %v15801_v30, %v3259_v7  ;;  %v3212_v19 = vmul.f32 %v15470_v29, %v3084_v63 }
 0x212   :  { %v3362_v13 = vmax.f32 %v3314_v49, 0.0  ;;  %v3260_v3 = vadd.f32 %v3212_v19, %v2968_v56  ;;  %13759 = vset.pattern.permute.xlu1 %v18834_v20 }
 0x213   :  { %2859 = vperm.xlu1 %13759, %v14558_v47   ;;  %v15829_v37 = vpop.permute.xlu0 %2622 }
 0x214   :  { %v3315_v58 = vadd.f32 %v15801_v30, %v3260_v3  ;;  %v2533_v18 = vpop.permute.xlu1 %2532  ;;  %v3399_v4 = vpack.c.bf16 %v3362_v13, %v3361_v22 }
 0x215   :  { %v2678_v34 = vmul.f32 %v15460_v14, %v2533_v18 }
 0x216   :  { %v3363_v42 = vmax.f32 %v3315_v58, 0.0  ;;  %13665 = vmatprep.mubr.msk.bf16.mxu1 %vm1099_vm0, %v3399_v4 }
 0x217   :  { %13760 = vset.pattern.permute.xlu1 %v18839_v50  ;;  %v15835_v33 = vpop.permute.xlu0 %2839 }
 0x218   :  { %3143 = vperm.xlu1 %13760, %v14553_v53   ;;  %v3400_v15 = vpack.c.bf16 %v3364_v8, %v3363_v42 }
 0x219   :  { %v2800_v41 = vpop.permute.xlu1 %2799 }
 0x21a   :  { %13666 = vmatmul.mubr.msk.bf16.gmra.mrb[20].mxu1 %vm1099_vm0, %v3400_v15  ;;  %v2922_v43 = vmul.f32 %v15456_v10, %v2800_v41  ;;  %v14560_v41 = vld [vmem:[%s18763_s1 + $0x150] sm:$0xff] }
 0x21b   :  { %v15851_v48 = vpop.permute.xlu0 %2851 }
 0x21c   :  { %3147 = vperm.xlu1 %13760, %v14556_v54   ;;  %v2970_v54 = vadd.f32 %v2922_v43, %v2678_v34 }
 0x21d   :  { %v2804_v40 = vpop.permute.xlu1 %2803 }
 0x21e   :  { %v2923_v53 = vmul.f32 %v15456_v10, %v2804_v40 }
 0x21f   :  { %v15859_v13 = vpop.permute.xlu0 %2855 }
 0x220   :  { %13762 = vset.pattern.permute.xlu1 %v18835_v35  ;;  %v2971_v39 = vadd.f32 %v2923_v53, %v2679_v11 }
 0x221   :  { %2612 = vperm.xlu1 %13762, %v2401_v5  }
 0x222   :  { %v2548_v21 = vpop.permute.xlu1 %2547  ;;  %v3263_v26 = vadd.f32 %v3215_v38, %v2971_v39 }
 0x223   :  { %v2681_v47 = vmul.f32 %v15460_v14, %v2548_v21  ;;  %v15865_v15 = vpop.permute.xlu0 %2871 }
 0x224   :  { %v3318_v44 = vadd.f32 %v15801_v30, %v3263_v26 }
 0x225   :  { %13763 = vset.pattern.permute.xlu1 %v18834_v20 }
 0x226   :  { %2863 = vperm.xlu1 %13763, %v2401_v5   ;;  %v3366_v7 = vmax.f32 %v3318_v44, 0.0 }
 0x227   :  { %v2812_v60 = vpop.permute.xlu1 %2811  ;;  %v15871_v11 = vpop.permute.xlu0 %3159 }
 0x228   :  { %v2925_v2 = vmul.f32 %v15456_v10, %v2812_v60  ;;  %v2682_v60 = vmul.f32 %v15460_v14, %v15779_v27  ;;  %v2927_v27 = vmul.f32 %v15456_v10, %v15340_v61  ;;  %v2928_v61 = vmul.f32 %v15456_v10, %v15349_v1 }
 0x22a   :  { %2867 = vperm.xlu1 %13763, %v14559_v6   ;;  %v2973_v19 = vadd.f32 %v2925_v2, %v2681_v47  ;;  %v14562_v6 = vld [vmem:[%s18763_s1 + $0x160] sm:$0xff] }
 0x22b   :  { %v15877_v39 = vpop.permute.xlu0 %2883 }
 0x22c   :  { %v3092_v52 = vpop.permute.xlu1 %3091 }
 0x22d   :  { %v3214_v31 = vmul.f32 %v15470_v29, %v3092_v52 }
 0x22e   :  { %13765 = vset.pattern.permute.xlu1 %v18835_v35 }
 0x22f   :  { %v3262_v62 = vadd.f32 %v3214_v31, %v2970_v54  ;;  %2627 = vperm.xlu1 %13765, %v2404_v16   ;;  %v15889_v17 = vpop.permute.xlu0 %2887  ;;  %v3221_v31 = vmul.f32 %v15470_v29, %v15452_v9 }
 0x230   :  { %v3100_v59 = vpop.permute.xlu1 %3099 }
 0x231   :  { %v3317_v12 = vadd.f32 %v15801_v30, %v3262_v62  ;;  %v3216_v46 = vmul.f32 %v15470_v29, %v3100_v59  ;;  %v14563_v62 = vld [vmem:[%s18763_s1 + $0x170] sm:$0xff] }
 0x233   :  { %v3365_v63 = vmax.f32 %v3317_v12, 0.0  ;;  %v3264_v56 = vadd.f32 %v3216_v46, %v2972_v45  ;;  %13766 = vset.pattern.permute.xlu1 %v18834_v20  ;;  %v15905_v46 = vpop.permute.xlu0 %474 }
 0x234   :  { %2875 = vperm.xlu1 %13766, %v2404_v16   ;;  %v3104_v49 = vpop.permute.xlu1 %3103 }
 0x235   :  { %v3217_v22 = vmul.f32 %v15470_v29, %v3104_v49  ;;  %v3401_v23 = vpack.c.bf16 %v3366_v7, %v3365_v63  ;;  %v3319_v3 = vadd.f32 %v15801_v30, %v3264_v56  ;;  %v14564_v63 = vld [vmem:[%s18763_s1 + $0x178] sm:$0xff] }
 0x237   :  { %v3265_v58 = vadd.f32 %v3217_v22, %v2973_v19  ;;  %13669 = vmatprep.mubr.msk.bf16.mxu1 %vm1099_vm0, %v3401_v23  ;;  %v3367_v8 = vmax.f32 %v3319_v3, 0.0 }
 0x238   :  { %13767 = vset.pattern.permute.xlu1 %v18839_v50 }
 0x239   :  { %v3320_v18 = vadd.f32 %v15801_v30, %v3265_v58  ;;  %3155 = vperm.xlu1 %13767, %v2401_v5   ;;  %v2558_v4 = vpop.permute.xlu1 %2557  ;;  %v14561_v5 = vld [vmem:[%s18763_s1 + $0x168] sm:$0xff] }
 0x23a   :  { %v2683_v52 = vmul.f32 %v15460_v14, %v2558_v4 }
 0x23b   :  { %v3368_v42 = vmax.f32 %v3320_v18, 0.0  ;;  %v15915_v18 = vpop.permute.xlu0 %486 }
 0x23c   :  { %v2975_v59 = vadd.f32 %v2927_v27, %v2683_v52  ;;  %v3223_v27 = vmul.f32 %v15470_v29, %v15474_v36  ;;  %v2932_v36 = vmul.f32 %v15456_v10, %v15835_v33 }
 0x23d   :  { %3163 = vperm.xlu1 %13767, %v14560_v41   ;;  %v3402_v40 = vpack.c.bf16 %v3368_v42, %v3367_v8 }
 0x23e   :  { %v2816_v21 = vpop.permute.xlu1 %2815 }
 0x23f   :  { %13670 = vmatmul.mubr.msk.bf16.gmra.mrb[24].mxu1 %vm1099_vm0, %v3402_v40  ;;  %v2926_v43 = vmul.f32 %v15456_v10, %v2816_v21 }
 0x241   :  { %3167 = vperm.xlu1 %13767, %v2404_v16   ;;  %v3218_v16 = vmul.f32 %v15470_v29, %v15443_v57  ;;  %v2974_v28 = vadd.f32 %v2926_v43, %v2682_v60  ;;  %v15926_v60 = vld [vmem:[%s18762_s0] sm:$0xff] }
 0x243   :  { %v2563_v53 = vpop.permute.xlu1 %2562  ;;  %v3266_v44 = vadd.f32 %v3218_v16, %v2974_v28  ;;  %v2687_v16 = vmul.f32 %v15460_v14, %v15794_v55 }
 0x244   :  { %v2684_v2 = vmul.f32 %v15460_v14, %v2563_v53 }
 0x245   :  { %13769 = vset.pattern.permute.xlu1 %v18835_v35  ;;  %v3321_v9 = vadd.f32 %v15801_v30, %v3266_v44  ;;  %v183_v44 = vld [vmem:[%s18762_s0 + $0x18] sm:$0xff] }
 0x246   :  { %2637 = vperm.xlu1 %13769, %v14561_v5   ;;  %v2976_v49 = vadd.f32 %v2928_v61, %v2684_v2 }
 0x247   :  { %v2568_v38 = vpop.permute.xlu1 %2567  ;;  %v3369_v22 = vmax.f32 %v3321_v9, 0.0 }
 0x248   :  { %v2685_v54 = vmul.f32 %v15460_v14, %v2568_v38  ;;  %v15920_v38 = vpop.permute.xlu0 %490 }
 0x24a   :  { %13770 = vset.pattern.permute.xlu1 %v18834_v20 }
 0x24b   :  { %2879 = vperm.xlu1 %13770, %v14562_v6  }
 0x24c   :  { %v2828_v34 = vpop.permute.xlu1 %2827  ;;  %v15928_v6 = vpop.permute.xlu0 %506 }
 0x24d   :  { %v2929_v26 = vmul.f32 %v15456_v10, %v2828_v34 }
 0x24f   :  { %13772 = vset.pattern.permute.xlu1 %v18835_v35  ;;  %v2977_v57 = vadd.f32 %v2929_v26, %v2685_v54  ;;  %v15942_v26 = vld [vmem:[%s18762_s0 + $0x90] sm:$0xff] }
 0x250   :  { %2642 = vperm.xlu1 %13772, %v14563_v62   ;;  %v15936_v34 = vpop.permute.xlu0 %518  ;;  %313 = vperm.xlu0 %13821, %v15942_v26  }
 0x251   :  { %v3112_v45 = vpop.permute.xlu1 %3111  ;;  %v3269_v7 = vadd.f32 %v3221_v31, %v2977_v57  ;;  %v14565_v31 = vld [vmem:[%s18762_s0 + $0x8] sm:$0xff]  ;;  %v2688_v57 = vmul.f32 %v15460_v14, %v15809_v51 }
 0x252   :  { %v3219_v12 = vmul.f32 %v15470_v29, %v3112_v45 }
 0x253   :  { %v3324_v23 = vadd.f32 %v15801_v30, %v3269_v7  ;;  %v2980_v51 = vadd.f32 %v2932_v36, %v2688_v57 }
 0x254   :  { %v3267_v47 = vadd.f32 %v3219_v12, %v2975_v59  ;;  %2647 = vperm.xlu1 %13772, %v14564_v63   ;;  %v15959_v61 = vpop.permute.xlu0 %522  ;;  %v14566_v59 = vld [vmem:[%s18762_s0 + $0xa0] sm:$0xff] }
 0x255   :  { %v3116_v56 = vpop.permute.xlu1 %3115  ;;  %v3372_v41 = vmax.f32 %v3324_v23, 0.0  ;;  %323 = vperm.xlu0 %13821, %v14566_v59   ;;  %v216_v59 = vld [vmem:[%s18762_s0 + $0x120] sm:$0xff] }
 0x256   :  { %v3322_v1 = vadd.f32 %v15801_v30, %v3267_v47  ;;  %v3220_v19 = vmul.f32 %v15470_v29, %v3116_v56  ;;  %v14567_v47 = vld [vmem:[%s18762_s0 + $0xc8] sm:$0xff] }
 0x258   :  { %v3370_v3 = vmax.f32 %v3322_v1, 0.0  ;;  %v3268_v58 = vadd.f32 %v3220_v19, %v2976_v49  ;;  %13773 = vset.pattern.permute.xlu1 %v18834_v20  ;;  %v15973_v19 = vpop.permute.xlu0 %3171 }
 0x259   :  { %2891 = vperm.xlu1 %13773, %v14564_v63   ;;  %348 = vperm.xlu0 %13821, %v14567_v47   ;;  %v13836_v47 = vld [vmem:[#allocation6 + $0x18] sm:$0xff]  }
 0x25a   :  { %v3323_v4 = vadd.f32 %v15801_v30, %v3268_v58  ;;  %v2573_v8 = vpop.permute.xlu1 %2572  ;;  %v3403_v42 = vpack.c.bf16 %v3370_v3, %v3369_v22  ;;  %v15978_v22 = vld [vmem:[%s18762_s0 + $0xd0] sm:$0xff] }
 0x25c   :  { %v3371_v40 = vmax.f32 %v3323_v4, 0.0  ;;  %13673 = vmatprep.mubr.msk.bf16.mxu1 %vm1099_vm0, %v3403_v42 }
 0x25d   :  { %13774 = vset.pattern.permute.xlu1 %v18839_v50  ;;  %353 = vperm.xlu0 %13821, %v15978_v22  }
 0x25e   :  { %3175 = vperm.xlu1 %13774, %v14561_v5   ;;  %v3404_v21 = vpack.c.bf16 %v3372_v41, %v3371_v40  ;;  %v15984_v40 = vld [vmem:[#allocation10] ss:$0 sm:$0xff] }
 0x25f   :  { %v2832_v53 = vpop.permute.xlu1 %2831 }
 0x260   :  { %13674 = vmatmul.mubr.msk.bf16.gmra.mrb[28].mxu1 %vm1099_vm0, %v3404_v21  ;;  %v2930_v55 = vmul.f32 %v15456_v10, %v2832_v53 }
 0x262   :  { %3179 = vperm.xlu1 %13774, %v14563_v62   ;;  %v2686_v62 = vmul.f32 %v15460_v14, %v2573_v8 }
 0x263   :  { %v2836_v43 = vpop.permute.xlu1 %2835 }
 0x264   :  { %v2931_v28 = vmul.f32 %v15456_v10, %v2836_v43  ;;  %v2978_v12 = vadd.f32 %v2930_v55, %v2686_v62  ;;  %v15988_v43 = vpop.permute.xlu0 %3183  ;;  %v14570_v55 = vld [vmem:[%s18762_s0 + $0x108] sm:$0xff] }
 0x266   :  { %13775 = vset.pattern.permute.xlu1 %v18835_v35  ;;  %v2979_v52 = vadd.f32 %v2931_v28, %v2687_v16 }
 0x267   :  { %223 = vperm.xlu1 %13775, %v15926_v60  }
 0x268   :  { %v2588_v5 = vpop.permute.xlu1 %2587  ;;  %v3271_v45 = vadd.f32 %v3223_v27, %v2979_v52  ;;  %v13833_v27 = vld [vmem:[#allocation6] sm:$0xff]   ;;  %v16002_v36 = vpop.permute.xlu0 %714 }
 0x269   :  { %v2689_v3 = vmul.f32 %v15460_v14, %v2588_v5  ;;  %v14569_v5 = vld [vmem:[%s18762_s0 + $0xe0] sm:$0xff]  ;;  %13589 = vmatprep.subr.bf16.mxu0 %v13833_v27 }
 0x26a   :  { %v3326_v7 = vadd.f32 %v15801_v30, %v3271_v45  ;;  %363 = vperm.xlu0 %13821, %v14569_v5   ;;  %13590 = vmatpush3.bf16.msra.mxu0 %v13833_v27  ;;  %v13834_v45 = vld [vmem:[#allocation6 + $0x8] sm:$0xff]  }
 0x26b   :  { %13776 = vset.pattern.permute.xlu1 %v18834_v20  ;;  %13591 = vmatprep.subr.bf16.mxu0 %v13834_v45 }
 0x26c   :  { %466 = vperm.xlu1 %13776, %v15926_v60   ;;  %v3374_v23 = vmax.f32 %v3326_v7, 0.0 }
 0x26d   :  { %v2844_v54 = vpop.permute.xlu1 %2843 }
 0x26e   :  { %v2933_v56 = vmul.f32 %v15456_v10, %v2844_v54  ;;  %388 = vperm.xlu0 %13821, %v14570_v55   ;;  %13592 = vmatpush3.bf16.msra.mxu0 %v13834_v45 }
 0x270   :  { %470 = vperm.xlu1 %13776, %v14565_v31   ;;  %v14571_v31 = vld [vmem:[%s18762_s0 + $0x10] sm:$0xff] }
 0x272   :  { %v3124_v2 = vpop.permute.xlu1 %3123 }
 0x273   :  { %v3222_v9 = vmul.f32 %v15470_v29, %v3124_v2  ;;  %v13835_v2 = vld [vmem:[#allocation6 + $0x10] sm:$0xff]  }
 0x274   :  { %13777 = vset.pattern.permute.xlu1 %v18835_v35  ;;  %13593 = vmatprep.subr.bf16.mxu0 %v13835_v2 }
 0x275   :  { %v3270_v33 = vadd.f32 %v3222_v9, %v2978_v12  ;;  %238 = vperm.xlu1 %13777, %v183_v44   ;;  %v16014_v9 = vpop.permute.xlu0 %726  ;;  %13594 = vmatpush3.bf16.msra.mxu0 %v13835_v2 }
 0x276   :  { %v3132_v63 = vpop.permute.xlu1 %3131  ;;  %13595 = vmatprep.subr.bf16.mxu0 %v13836_v47 }
 0x277   :  { %v3325_v49 = vadd.f32 %v15801_v30, %v3270_v33  ;;  %v3224_v1 = vmul.f32 %v15470_v29, %v3132_v63  ;;  %v2981_v30 = vadd.f32 %v2933_v56, %v2689_v3  ;;  %v3226_v56 = vmul.f32 %v15470_v29, %v15488_v24 }
 0x279   :  { %v3373_v58 = vmax.f32 %v3325_v49, 0.0  ;;  %v3272_v4 = vadd.f32 %v3224_v1, %v2980_v51  ;;  %13778 = vset.pattern.permute.xlu1 %v18834_v20  ;;  %v16020_v51 = vld [vmem:[%s18762_s0 + $0x28] sm:$0xff]  ;;  %v16028_v63 = vpop.permute.xlu0 %738  ;;  %13596 = vmatpush3.bf16.msra.mxu0 %v13836_v47 }
 0x27a   :  { %v3136_v8 = vpop.permute.xlu1 %3135  ;;  %478 = vperm.xlu1 %13778, %v183_v44  }
 0x27b   :  { %v3225_v42 = vmul.f32 %v15470_v29, %v3136_v8  ;;  %v3405_v41 = vpack.c.bf16 %v3374_v23, %v3373_v58  ;;  %v3327_v21 = vadd.f32 %v15984_v40, %v3272_v4  ;;  %v3229_v8 = vmul.f32 %v15470_v29, %v15501_v0  ;;  %v16057_v0 = vld [vmem:[%s18762_s0 + $0xa8] sm:$0xff] }
 0x27d   :  { %v3273_v53 = vadd.f32 %v3225_v42, %v2981_v30  ;;  %13677 = vmatprep.mubr.msk.bf16.mxu1 %vm1099_vm0, %v3405_v41  ;;  %v3375_v52 = vmax.f32 %v3327_v21, 0.0  ;;  %v16042_v24 = vpop.permute.xlu0 %746  ;;  %v14574_v42 = vld [vmem:[%s18762_s0 + $0x30] sm:$0xff] }
 0x27e   :  { %13779 = vset.pattern.permute.xlu1 %v18839_v50 }
 0x27f   :  { %v3328_v16 = vadd.f32 %v15984_v40, %v3273_v53  ;;  %v2598_v28 = vpop.permute.xlu1 %2597  ;;  %710 = vperm.xlu1 %13779, %v15926_v60   ;;  %v16007_v60 = vld [vmem:[%s18762_s0 + $0x110] sm:$0xff] }
 0x280   :  { %393 = vperm.xlu0 %13821, %v16007_v60   ;;  %v2691_v3 = vmul.f32 %v15460_v14, %v2598_v28 }
 0x281   :  { %v3376_v54 = vmax.f32 %v3328_v16, 0.0 }
 0x283   :  { %718 = vperm.xlu1 %13779, %v14571_v31   ;;  %v3406_v57 = vpack.c.bf16 %v3376_v54, %v3375_v52  ;;  %v14575_v52 = vld [vmem:[%s18762_s0 + $0x38] sm:$0xff]  ;;  %v16063_v54 = vpop.permute.xlu0 %758 }
 0x284   :  { %v2848_v62 = vpop.permute.xlu1 %2847  ;;  %403 = vperm.xlu0 %13821, %v216_v59  }
 0x285   :  { %13678 = vmatmul.mubr.msk.bf16.gmra.mrb[32].mxu1 %vm1099_vm0, %v3406_v57  ;;  %v2934_v7 = vmul.f32 %v15456_v10, %v2848_v62 }
 0x287   :  { %722 = vperm.xlu1 %13779, %v183_v44   ;;  %v2690_v44 = vmul.f32 %v15460_v14, %v15817_v25  ;;  %v14573_v25 = vld [vmem:[%s18762_s0 + $0x20] sm:$0xff] }
 0x288   :  { %13822 = vset.pattern.permute.xlu0 %v18834_v20 }
 0x289   :  { %v2603_v12 = vpop.permute.xlu1 %2602  ;;  %538 = vperm.xlu0 %13822, %v15942_v26   ;;  %v2982_v49 = vadd.f32 %v2934_v7, %v2690_v44  ;;  %v2935_v26 = vmul.f32 %v15456_v10, %v15851_v48  ;;  %v2936_v48 = vmul.f32 %v15456_v10, %v15859_v13  ;;  %v16068_v44 = vld [vmem:[#allocation13] ss:$0 sm:$0xff] }
 0x28a   :  { %v2692_v53 = vmul.f32 %v15460_v14, %v2603_v12 }
 0x28b   :  { %13780 = vset.pattern.permute.xlu1 %v18835_v35  ;;  %v3274_v4 = vadd.f32 %v3226_v56, %v2982_v49  ;;  %v2983_v21 = vadd.f32 %v2935_v26, %v2691_v3 }
 0x28c   :  { %248 = vperm.xlu1 %13780, %v16020_v51   ;;  %v2984_v55 = vadd.f32 %v2936_v48, %v2692_v53 }
 0x28d   :  { %v2608_v33 = vpop.permute.xlu1 %2607  ;;  %v3329_v16 = vadd.f32 %v15984_v40, %v3274_v4  ;;  %550 = vperm.xlu0 %13822, %v16057_v0  }
 0x28e   :  { %v2693_v58 = vmul.f32 %v15460_v14, %v2608_v33 }
 0x28f   :  { %v3377_v62 = vmax.f32 %v3329_v16, 0.0 }
 0x290   :  { %13781 = vset.pattern.permute.xlu1 %v18834_v20 }
 0x291   :  { %482 = vperm.xlu1 %13781, %v14573_v25  }
 0x292   :  { %v2860_v1 = vpop.permute.xlu1 %2859 }
 0x293   :  { %v2937_v23 = vmul.f32 %v15456_v10, %v2860_v1  ;;  %v16074_v1 = vpop.permute.xlu0 %770 }
 0x295   :  { %13782 = vset.pattern.permute.xlu1 %v18835_v35  ;;  %v2985_v30 = vadd.f32 %v2937_v23, %v2693_v58  ;;  %v16082_v58 = vld [vmem:[%s18762_s0 + $0xb0] sm:$0xff] }
 0x296   :  { %253 = vperm.xlu1 %13782, %v14574_v42   ;;  %554 = vperm.xlu0 %13822, %v16082_v58  }
 0x297   :  { %v3144_v41 = vpop.permute.xlu1 %3143  ;;  %v3277_v28 = vadd.f32 %v3229_v8, %v2985_v30  ;;  %v16089_v16 = vpop.permute.xlu0 %778 }
 0x298   :  { %v3227_v5 = vmul.f32 %v15470_v29, %v3144_v41 }
 0x299   :  { %v3332_v59 = vadd.f32 %v15984_v40, %v3277_v28 }
 0x29a   :  { %v3275_v27 = vadd.f32 %v3227_v5, %v2983_v21  ;;  %258 = vperm.xlu1 %13782, %v14575_v52   ;;  %570 = vperm.xlu0 %13822, %v15978_v22  }
 0x29b   :  { %v3148_v13 = vpop.permute.xlu1 %3147  ;;  %v3380_v23 = vmax.f32 %v3332_v59, 0.0  ;;  %v16106_v22 = vpop.permute.xlu0 %790 }
 0x29c   :  { %v3330_v31 = vadd.f32 %v15984_v40, %v3275_v27  ;;  %v3228_v57 = vmul.f32 %v15470_v29, %v3148_v13  ;;  %v16096_v13 = vld [vmem:[%s18762_s0 + $0x40] sm:$0xff] }
 0x29e   :  { %v13647_v45 = vpop.f32.mrb[0].mxu1  ;;  %v3378_v2 = vmax.f32 %v3330_v31, 0.0  ;;  %v3276_v12 = vadd.f32 %v3228_v57, %v2984_v55  ;;  %13783 = vset.pattern.permute.xlu1 %v18834_v20 }
 0x29f   :  { %v3558_v7 = vpop.f32.mrb[1].mxu1  ;;  %494 = vperm.xlu1 %13783, %v14575_v52  }
 0x2a0   :  { %v13648_v33 = vpop.f32.mrb[2].mxu1  ;;  %v3331_v47 = vadd.f32 %v15984_v40, %v3276_v12  ;;  %v16072_v49 = vpop.permute.xlu1 %2612  ;;  %v3407_v25 = vpack.c.bf16 %v3378_v2, %v3377_v62  ;;  %v3559_v3 = vadd.f32 %v16068_v44, %v3558_v7  ;;  %v2695_v12 = vmul.f32 %v15460_v14, %v15820_v32 }
 0x2a1   :  { %v3561_v56 = vpop.f32.mrb[3].mxu1 }
 0x2a2   :  { %v3379_v26 = vmax.f32 %v3331_v47, 0.0  ;;  %13681 = vmatprep.mubr.msk.bf16.mxu1 %vm1099_vm0, %v3407_v25  ;;  %v3562_v41 = vadd.f32 %v16068_v44, %v3561_v56  ;;  %v3749_v53 = vmax.f32 %v3559_v3, 0.0 }
 0x2a3   :  { %13784 = vset.pattern.permute.xlu1 %v18839_v50 }
 0x2a4   :  { %730 = vperm.xlu1 %13784, %v16020_v51   ;;  %v3408_v4 = vpack.c.bf16 %v3380_v23, %v3379_v26  ;;  %v3750_v55 = vmax.f32 %v3562_v41, 0.0  ;;  %v3570_v23 = vadd.f32 %v13648_v33, %v16068_v44 }
 0x2a5   :  { %v2864_v30 = vpop.permute.xlu1 %2863 }
 0x2a6   :  { %v13651_v8 = vpop.f32.mrb[4].mxu1  ;;  %13682 = vmatmul.mubr.msk.bf16.gmra.mrb[36].mxu1 %vm1099_vm0, %v3408_v4 }
 0x2a7   :  { %v3583_v48 = vadd.f32 %v13651_v8, %v16068_v44  ;;  %v3574_v21 = vpop.f32.mrb[5].mxu1 }
 0x2a8   :  { %v13652_v5 = vpop.f32.mrb[6].mxu1  ;;  %734 = vperm.xlu1 %13784, %v14574_v42   ;;  %v3575_v62 = vadd.f32 %v16068_v44, %v3574_v21  ;;  %v3567_v42 = vadd.f32 %v13647_v45, %v16068_v44 }
 0x2a9   :  { %v3755_v28 = vmax.f32 %v3583_v48, 0.0  ;;  %v3586_v27 = vadd.f32 %v13652_v5, %v16068_v44  ;;  %v3577_v51 = vpop.f32.mrb[7].mxu1  ;;  %v2868_v52 = vpop.permute.xlu1 %2867  ;;  %v3231_v5 = vmul.f32 %v15470_v29, %v15871_v11 }
 0x2aa   :  { %v3578_v7 = vadd.f32 %v16068_v44, %v3577_v51  ;;  %v3753_v26 = vmax.f32 %v3575_v62, 0.0  ;;  %v2939_v3 = vmul.f32 %v15456_v10, %v2868_v52  ;;  %v3751_v21 = vmax.f32 %v3567_v42, 0.0  ;;  %v16125_v42 = vpop.permute.xlu0 %802 }
 0x2ab   :  { %v16098_v31 = vpack.i.bf16 %v3755_v28, %v3749_v53  ;;  %v3756_v57 = vmax.f32 %v3586_v27, 0.0  ;;  %v3752_v51 = vmax.f32 %v3570_v23, 0.0  ;;  %v14576_v23 = vld [vmem:[%s18762_s0 + $0x48] sm:$0xff] }
 0x2ac   :  { %13785 = vset.pattern.permute.xlu1 %v18835_v35  ;;  %v3754_v33 = vmax.f32 %v3578_v7, 0.0  ;;  %v2987_v52 = vadd.f32 %v2939_v3, %v2695_v12  ;;  %v2696_v12 = vmul.f32 %v15460_v14, %v15829_v37  ;;  %v2694_v3 = vmul.f32 %v15460_v14, %v16072_v49 }
 0x2ad   :  { %v16101_v59 = vpack.i.bf16 %v3756_v57, %v3750_v55  ;;  %263 = vperm.xlu1 %13785, %v16096_v13  }
 0x2ae   :  { %v13655_v2 = vpop.f32.mrb[8].mxu1  ;;  %v2628_v25 = vpop.permute.xlu1 %2627 }
 0x2af   :  { %v3599_v47 = vadd.f32 %v13655_v2, %v16068_v44  ;;  %v3590_v56 = vpop.f32.mrb[9].mxu1 }
 0x2b0   :  { %v3591_v45 = vadd.f32 %v16068_v44, %v3590_v56  ;;  %v13656_v4 = vpop.f32.mrb[10].mxu1 }
 0x2b1   :  { %v3759_v8 = vmax.f32 %v3599_v47, 0.0  ;;  %v3602_v41 = vadd.f32 %v13656_v4, %v16068_v44  ;;  %v3593_v48 = vpop.f32.mrb[11].mxu1  ;;  %13786 = vset.pattern.permute.xlu1 %v18834_v20  ;;  %v2938_v47 = vmul.f32 %v15456_v10, %v2864_v30  ;;  %v3279_v30 = vadd.f32 %v3231_v5, %v2987_v52 }
 0x2b2   :  { %v3757_v32 = vmax.f32 %v3591_v45, 0.0  ;;  %v3594_v53 = vadd.f32 %v16068_v44, %v3593_v48  ;;  %498 = vperm.xlu1 %13786, %v16096_v13   ;;  %v2697_v52 = vmul.f32 %v15460_v14, %v2628_v25 }
 0x2b3   :  { %v16120_v28 = vpack.i.bf16 %v3759_v8, %v3753_v26  ;;  %v3760_v27 = vmax.f32 %v3602_v41, 0.0  ;;  %v2876_v62 = vpop.permute.xlu1 %2875  ;;  %v2940_v26 = vmul.f32 %v15456_v10, %v15865_v15  ;;  %v191_v41 = vld [vmem:[%s18762_s0 + $0x58] sm:$0xff]  ;;  %v2986_v48 = vadd.f32 %v2938_v47, %v2694_v3 }
 0x2b4   :  { %v16123_v55 = vpack.i.bf16 %v3757_v32, %v3751_v21  ;;  %v3758_v57 = vmax.f32 %v3594_v53, 0.0  ;;  %v16149_v32 = vpop.permute.xlu0 %810  ;;  %v3334_v15 = vadd.f32 %v15984_v40, %v3279_v30  ;;  %v2941_v5 = vmul.f32 %v15456_v10, %v2876_v62 }
 0x2b5   :  { %v16127_v2 = vpack.i.bf16 %v3760_v27, %v3754_v33  ;;  %v2988_v37 = vadd.f32 %v2940_v26, %v2696_v12 }
 0x2b6   :  { %v16130_v56 = vpack.i.bf16 %v3758_v57, %v3752_v51  ;;  %v16132_v11 = vpop.f32.mrb[12].mxu1  ;;  %502 = vperm.xlu1 %13786, %v14576_v23   ;;  %v3382_v51 = vmax.f32 %v3334_v15, 0.0  ;;  %v2989_v26 = vadd.f32 %v2941_v5, %v2697_v52 }
 0x2b7   :  { %v3606_v7 = vpop.f32.mrb[13].mxu1 }
 0x2b8   :  { %v16143_v45 = vpop.f32.mrb[14].mxu1  ;;  %v3156_v8 = vpop.permute.xlu1 %3155 }
 0x2b9   :  { %v3609_v4 = vpop.f32.mrb[15].mxu1  ;;  %v3230_v21 = vmul.f32 %v15470_v29, %v3156_v8  ;;  %v16157_v23 = vpop.permute.xlu0 %822 }
 0x2ba   :  { %13787 = vset.pattern.permute.xlu1 %v18835_v35  ;;  %18840 = vst [vmem:[#allocation26_spill] sm:$0xff] %v16157_v23 }
 0x2bb   :  { %v3278_v49 = vadd.f32 %v3230_v21, %v2986_v48  ;;  %278 = vperm.xlu1 %13787, %v191_v41  }
 0x2bc   :  { %v3164_v53 = vpop.permute.xlu1 %3163 }
 0x2bd   :  { %v3333_v33 = vadd.f32 %v15984_v40, %v3278_v49  ;;  %v3232_v27 = vmul.f32 %v15470_v29, %v3164_v53  ;;  %v16165_v48 = vpop.permute.xlu0 %834  ;;  %v3607_v49 = vadd.f32 %v16068_v44, %v3606_v7  ;;  %v14577_v53 = vld [vmem:[%s18762_s0 + $0x50] sm:$0xff] }
 0x2be   :  { %18841 = vst [vmem:[#allocation27_spill] sm:$0xff] %v16165_v48 }
 0x2bf   :  { %v3381_v57 = vmax.f32 %v3333_v33, 0.0  ;;  %v3280_v47 = vadd.f32 %v3232_v27, %v2988_v37  ;;  %13788 = vset.pattern.permute.xlu1 %v18834_v20  ;;  %v3761_v52 = vmax.f32 %v3607_v49, 0.0 }
 0x2c0   :  { %v3168_v12 = vpop.permute.xlu1 %3167  ;;  %510 = vperm.xlu1 %13788, %v191_v41  }
 0x2c1   :  { %v3233_v3 = vmul.f32 %v15470_v29, %v3168_v12  ;;  %v3409_v30 = vpack.c.bf16 %v3382_v51, %v3381_v57  ;;  %v3335_v62 = vadd.f32 %v15984_v40, %v3280_v47  ;;  %v16172_v27 = vpop.permute.xlu0 %842  ;;  %v3610_v57 = vadd.f32 %v16068_v44, %v3609_v4  ;;  %v16182_v12 = vld [vmem:[%s18762_s0 + $0xe8] sm:$0xff] }
 0x2c2   :  { %18842 = vst [vmem:[#allocation28_spill] sm:$0xff] %v16172_v27  ;;  %582 = vperm.xlu0 %13822, %v16182_v12  }
 0x2c3   :  { %v3281_v8 = vadd.f32 %v3233_v3, %v2989_v26  ;;  %13685 = vmatprep.mubr.msk.bf16.mxu1 %vm1099_vm0, %v3409_v30  ;;  %v3383_v37 = vmax.f32 %v3335_v62, 0.0  ;;  %v3762_v4 = vmax.f32 %v3610_v57, 0.0 }
 0x2c4   :  { %13789 = vset.pattern.permute.xlu1 %v18839_v50 }
 0x2c5   :  { %v3336_v25 = vadd.f32 %v15984_v40, %v3281_v8  ;;  %v2638_v21 = vpop.permute.xlu1 %2637  ;;  %742 = vperm.xlu1 %13789, %v16096_v13   ;;  %v2633_v8 = vpop.permute.xlu0 %2632 }
 0x2c6   :  { %v2698_v57 = vmul.f32 %v15460_v14, %v2633_v8 }
 0x2c7   :  { %v3384_v15 = vmax.f32 %v3336_v25, 0.0 }
 0x2c9   :  { %750 = vperm.xlu1 %13789, %v14577_v53   ;;  %v3410_v5 = vpack.c.bf16 %v3384_v15, %v3383_v37  ;;  %v16197_v15 = vld [vmem:[%s18762_s0 + $0xf0] sm:$0xff] }
 0x2ca   :  { %v2880_v33 = vpop.permute.xlu1 %2879  ;;  %586 = vperm.xlu0 %13822, %v16197_v15  }
 0x2cb   :  { %13686 = vmatmul.mubr.msk.bf16.gmra.mrb[40].mxu1 %vm1099_vm0, %v3410_v5 }
 0x2cc   :  { %v13663_v51 = vpop.f32.mrb[16].mxu1 }
 0x2cd   :  { %v3631_v13 = vadd.f32 %v13663_v51, %v16068_v44  ;;  %v16177_v47 = vpop.f32.mrb[17].mxu1  ;;  %754 = vperm.xlu1 %13789, %v191_v41   ;;  %v14578_v41 = vld [vmem:[%s18762_s0 + $0x68] sm:$0xff] }
 0x2ce   :  { %v13664_v7 = vpop.f32.mrb[18].mxu1  ;;  %602 = vperm.xlu0 %13822, %v16007_v60  }
 0x2cf   :  { %v3767_v26 = vmax.f32 %v3631_v13, 0.0  ;;  %v3634_v3 = vadd.f32 %v13664_v7, %v16068_v44  ;;  %v16185_v30 = vpop.f32.mrb[19].mxu1  ;;  %v2643_v62 = vpop.permute.xlu1 %2642  ;;  %v2699_v7 = vmul.f32 %v15460_v14, %v2638_v21 }
 0x2d0   :  { %v2700_v21 = vmul.f32 %v15460_v14, %v2643_v62 }
 0x2d1   :  { %v16188_v25 = vpack.i.bf16 %v3767_v26, %v3761_v52  ;;  %v3768_v37 = vmax.f32 %v3634_v3, 0.0  ;;  %13790 = vset.pattern.permute.xlu1 %v18835_v35  ;;  %v2942_v52 = vmul.f32 %v15456_v10, %v2880_v33  ;;  %v14579_v26 = vld [vmem:[%s18762_s0 + $0x60] sm:$0xff]  ;;  %v3234_v33 = vmul.f32 %v15470_v29, %v15973_v19  ;;  %v14580_v19 = vld [vmem:[%s18762_s0 + $0x70] sm:$0xff] }
 0x2d2   :  { %288 = vperm.xlu1 %13790, %v14578_v41  }
 0x2d3   :  { %v16203_v5 = vpack.i.bf16 %v3768_v37, %v3762_v4  ;;  %v2648_v51 = vpop.permute.xlu1 %2647  ;;  %v2990_v3 = vadd.f32 %v2942_v52, %v2698_v57  ;;  %v2943_v37 = vmul.f32 %v15456_v10, %v15877_v39  ;;  %v2944_v39 = vmul.f32 %v15456_v10, %v15889_v17 }
 0x2d4   :  { %v2701_v13 = vmul.f32 %v15460_v14, %v2648_v51 }
 0x2d5   :  { %v3282_v60 = vadd.f32 %v3234_v33, %v2990_v3  ;;  %v2991_v57 = vadd.f32 %v2943_v37, %v2699_v7  ;;  %v2992_v3 = vadd.f32 %v2944_v39, %v2700_v21  ;;  %v3626_v21 = vadd.f32 %v16068_v44, %v16185_v30  ;;  %v16262_v30 = vld [vmem:[%s18762_s0 + $0x80] sm:$0xff] }
 0x2d6   :  { %13791 = vset.pattern.permute.xlu1 %v18834_v20 }
 0x2d7   :  { %514 = vperm.xlu1 %13791, %v14579_v26   ;;  %v3237_v26 = vmul.f32 %v15470_v29, %v15988_v43 }
 0x2d8   :  { %v2892_v4 = vpop.permute.xlu1 %2891 }
 0x2d9   :  { %v2945_v8 = vmul.f32 %v15456_v10, %v2892_v4  ;;  %v3337_v4 = vadd.f32 %v15984_v40, %v3282_v60 }
 0x2db   :  { %13792 = vset.pattern.permute.xlu1 %v18835_v35  ;;  %v2993_v53 = vadd.f32 %v2945_v8, %v2701_v13  ;;  %v14581_v13 = vld [vmem:[%s18762_s0 + $0x78] sm:$0xff]  ;;  %v3385_v17 = vmax.f32 %v3337_v4, 0.0 }
 0x2dc   :  { %293 = vperm.xlu1 %13792, %v14580_v19  }
 0x2dd   :  { %v3176_v52 = vpop.permute.xlu1 %3175  ;;  %v3285_v49 = vadd.f32 %v3237_v26, %v2993_v53 }
 0x2de   :  { %v3235_v51 = vmul.f32 %v15470_v29, %v3176_v52 }
 0x2df   :  { %v3340_v14 = vadd.f32 %v15984_v40, %v3285_v49  ;;  %v3623_v49 = vadd.f32 %v16068_v44, %v16177_v47 }
 0x2e0   :  { %v3283_v43 = vadd.f32 %v3235_v51, %v2991_v57  ;;  %298 = vperm.xlu1 %13792, %v14581_v13  }
 0x2e1   :  { %v3180_v33 = vpop.permute.xlu1 %3179  ;;  %v3388_v60 = vmax.f32 %v3340_v14, 0.0 }
 0x2e2   :  { %v3338_v8 = vadd.f32 %v15984_v40, %v3283_v43  ;;  %v3236_v10 = vmul.f32 %v15470_v29, %v3180_v33  ;;  %v220_v43 = vld [vmem:[#allocation2] sm:$0x7] }
 0x2e4   :  { %v3386_v62 = vmax.f32 %v3338_v8, 0.0  ;;  %v3284_v7 = vadd.f32 %v3236_v10, %v2992_v3  ;;  %13794 = vset.pattern.permute.xlu1 %v18834_v20  ;;  %v3765_v3 = vmax.f32 %v3623_v49, 0.0 }
 0x2e5   :  { %526 = vperm.xlu1 %13794, %v14581_v13  }
 0x2e6   :  { %v3339_v53 = vadd.f32 %v15984_v40, %v3284_v7  ;;  %v16243_v37 = vpop.permute.xlu1 %223  ;;  %v3411_v26 = vpack.c.bf16 %v3386_v62, %v3385_v17  ;;  %v3615_v40 = vadd.f32 %v16132_v11, %v16068_v44  ;;  %v18843_v17 = vld [vmem:[#allocation25_spill] sm:$0xff]  ;;  %v229_v7 = vpop.permute.xlu0 %228 }
 0x2e8   :  { %v3387_v52 = vmax.f32 %v3339_v53, 0.0  ;;  %13689 = vmatprep.mubr.msk.bf16.mxu1 %vm1099_vm0, %v3411_v26  ;;  %v3763_v62 = vmax.f32 %v3615_v40, 0.0  ;;  %v3766_v26 = vmax.f32 %v3626_v21, 0.0 }
 0x2e9   :  { %13795 = vset.pattern.permute.xlu1 %v18839_v50 }
 0x2ea   :  { %762 = vperm.xlu1 %13795, %v14578_v41   ;;  %v3412_v29 = vpack.c.bf16 %v3388_v60, %v3387_v52  ;;  %v3618_v41 = vadd.f32 %v16143_v45, %v16068_v44  ;;  %v18845_v60 = vsub.s32 0, %v18843_v17 }
 0x2eb   :  { %v467_v39 = vpop.permute.xlu1 %466 }
 0x2ec   :  { %13690 = vmatmul.mubr.msk.bf16.gmra.mrb[44].mxu1 %vm1099_vm0, %v3412_v29  ;;  %v16271_v52 = vrot.slane %v220_v43, %v18845_v60  ;;  %v234_v60 = vpop.permute.xlu0 %233 }
 0x2ed   :  { %v13667_v57 = vpop.f32.mrb[20].mxu1 }
 0x2ee   :  { %v3647_v51 = vadd.f32 %v13667_v57, %v16068_v44  ;;  %v3638_v4 = vpop.f32.mrb[21].mxu1  ;;  %766 = vperm.xlu1 %13795, %v14580_v19   ;;  %v18844_v19 = vsub.s32 1, %v18843_v17  ;;  %v18846_v57 = vsub.s32 2, %v18843_v17 }
 0x2ef   :  { %v3639_v13 = vadd.f32 %v16068_v44, %v3638_v4  ;;  %v13668_v47 = vpop.f32.mrb[22].mxu1  ;;  %v471_v33 = vpop.permute.xlu1 %470  ;;  %v3764_v4 = vmax.f32 %v3618_v41, 0.0 }
 0x2f0   :  { %v3771_v8 = vmax.f32 %v3647_v51, 0.0  ;;  %v3650_v11 = vadd.f32 %v13668_v47, %v16068_v44  ;;  %v3641_v10 = vpop.f32.mrb[23].mxu1  ;;  %v16266_v14 = vrot.slane %v220_v43, %v18844_v19  ;;  %v16278_v51 = vrot.slane %v220_v43, %v18846_v57  ;;  %v14582_v57 = vld [vmem:[%s18762_s0 + $0x88] sm:$0xff] }
 0x2f1   :  { %v3769_v45 = vmax.f32 %v3639_v13, 0.0  ;;  %v3642_v53 = vadd.f32 %v16068_v44, %v3641_v10  ;;  %v13848_v44 = vld [vmem:[#allocation16 + $0xa8] sm:$0xff]  }
 0x2f2   :  { %v16273_v29 = vpack.i.bf16 %v3771_v8, %v3765_v3  ;;  %v3772_v49 = vmax.f32 %v3650_v11, 0.0  ;;  %13796 = vset.pattern.permute.xlu1 %v18835_v35  ;;  %v426_v3 = vmul.f32 %v16271_v52, %v229_v7  ;;  %v630_v11 = vmul.f32 %v16266_v14, %v471_v33 }
 0x2f3   :  { %v16280_v40 = vpack.i.bf16 %v3769_v45, %v3763_v62  ;;  %v3770_v13 = vmax.f32 %v3642_v53, 0.0  ;;  %303 = vperm.xlu1 %13796, %v16262_v30   ;;  %v874_v33 = vmul.f32 %v16278_v51, %v16002_v36  ;;  %v427_v45 = vmul.f32 %v16271_v52, %v234_v60 }
 0x2f4   :  { %v16287_v47 = vpack.i.bf16 %v3772_v49, %v3766_v26  ;;  %v239_v8 = vpop.permute.xlu1 %238  ;;  %v670_v53 = vadd.f32 %v630_v11, %v426_v3  ;;  %v629_v49 = vmul.f32 %v16266_v14, %v467_v39  ;;  %v199_v3 = vld [vmem:[%s18762_s0 + $0x98] sm:$0xff]  ;;  %v16321_v39 = vld [vmem:[#allocation4] ss:$0 sm:$0xff] }
 0x2f5   :  { %v16295_v10 = vpack.i.bf16 %v3770_v13, %v3764_v4  ;;  %v631_v4 = vmul.f32 %v16266_v14, %v15905_v46  ;;  %v425_v13 = vmul.f32 %v16271_v52, %v16243_v37  ;;  %v428_v41 = vmul.f32 %v16271_v52, %v239_v8 }
 0x2f6   :  { %v914_v7 = vadd.f32 %v874_v33, %v670_v53 }
 0x2f7   :  { %13797 = vset.pattern.permute.xlu1 %v18834_v20  ;;  %v669_v11 = vadd.f32 %v629_v49, %v425_v13  ;;  %v671_v46 = vadd.f32 %v631_v4, %v427_v45 }
 0x2f8   :  { %530 = vperm.xlu1 %13797, %v16262_v30   ;;  %v961_v37 = vadd.f32 %v16321_v39, %v914_v7 }
 0x2f9   :  { %v479_v26 = vpop.permute.xlu1 %478 }
 0x2fa   :  { %v632_v53 = vmul.f32 %v16266_v14, %v479_v26  ;;  %v1001_v13 = vmax.f32 %v961_v37, 0.0  ;;  %v13837_v37 = vld [vmem:[#allocation16 + $0xc0] sm:$0xff]  }
 0x2fb   :  { %12643 = vmatprep.subr.bf16.mxu1 %v13837_v37  ;;  %v877_v37 = vmul.f32 %v16278_v51, %v16014_v9 }
 0x2fc   :  { %534 = vperm.xlu1 %13797, %v14582_v57   ;;  %v672_v45 = vadd.f32 %v632_v53, %v428_v41  ;;  %v14583_v41 = vld [vmem:[%s18762_s0 + $0x90] sm:$0xff] }
 0x2fe   :  { %v711_v36 = vpop.permute.xlu1 %710 }
 0x2ff   :  { %v873_v62 = vmul.f32 %v16278_v51, %v711_v36 }
 0x300   :  { %13798 = vset.pattern.permute.xlu1 %v18835_v35 }
 0x301   :  { %v913_v57 = vadd.f32 %v873_v62, %v669_v11  ;;  %318 = vperm.xlu1 %13798, %v199_v3  }
 0x302   :  { %v719_v33 = vpop.permute.xlu1 %718 }
 0x303   :  { %v875_v60 = vmul.f32 %v16278_v51, %v719_v33  ;;  %v960_v19 = vadd.f32 %v16321_v39, %v913_v57  ;;  %v13838_v33 = vld [vmem:[#allocation16 + $0x80] sm:$0xff]  }
 0x304   :  { %12644 = vmatpush3.bf16.msra.mxu1 %v13838_v33 }
 0x305   :  { %v915_v43 = vadd.f32 %v875_v60, %v671_v46  ;;  %13799 = vset.pattern.permute.xlu1 %v18834_v20  ;;  %v1000_v49 = vmax.f32 %v960_v19, 0.0 }
 0x306   :  { %542 = vperm.xlu1 %13799, %v199_v3   ;;  %v723_v62 = vpop.permute.xlu1 %722 }
 0x307   :  { %v876_v4 = vmul.f32 %v16278_v51, %v723_v62  ;;  %v1040_v7 = vpack.c.bf16 %v1001_v13, %v1000_v49  ;;  %v962_v36 = vadd.f32 %v16321_v39, %v915_v43  ;;  %v13839_v49 = vld [vmem:[#allocation16 + $0xc8] sm:$0xff]  }
 0x308   :  { %v13840_v62 = vld [vmem:[#allocation16 + $0x88] sm:$0xff]   ;;  %12645 = vmatprep.subr.bf16.mxu1 %v13839_v49 }
 0x309   :  { %v916_v26 = vadd.f32 %v876_v4, %v672_v45  ;;  %13597 = vmatprep.mubr.msk.bf16.mxu0 %vm1099_vm0, %v1040_v7  ;;  %v1002_v19 = vmax.f32 %v962_v36, 0.0  ;;  %12646 = vmatpush3.bf16.msra.mxu1 %v13840_v62  ;;  %v244_v7 = vpop.permute.xlu0 %243  ;;  %v13841_v36 = vld [vmem:[#allocation16 + $0xd0] sm:$0xff]  }
 0x30a   :  { %13800 = vset.pattern.permute.xlu1 %v18839_v50  ;;  %12647 = vmatprep.subr.bf16.mxu1 %v13841_v36  ;;  %v634_v36 = vmul.f32 %v16266_v14, %v15915_v18  ;;  %v635_v18 = vmul.f32 %v16266_v14, %v15920_v38 }
 0x30b   :  { %v963_v8 = vadd.f32 %v16321_v39, %v916_v26  ;;  %774 = vperm.xlu1 %13800, %v16262_v30   ;;  %v249_v11 = vpop.permute.xlu1 %248  ;;  %v16348_v30 = vld [vmem:[%s18762_s0 + $0x128] sm:$0xff]  ;;  %v13842_v26 = vld [vmem:[#allocation16 + $0x90] sm:$0xff]  }
 0x30c   :  { %614 = vperm.xlu0 %13822, %v16348_v30  }
 0x30d   :  { %v1003_v57 = vmax.f32 %v963_v8, 0.0  ;;  %12648 = vmatpush3.bf16.msra.mxu1 %v13842_v26  ;;  %v430_v26 = vmul.f32 %v16271_v52, %v249_v11 }
 0x30f   :  { %782 = vperm.xlu1 %13800, %v14583_v41   ;;  %v1041_v46 = vpack.c.bf16 %v1003_v57, %v1002_v19  ;;  %v429_v19 = vmul.f32 %v16271_v52, %v244_v7  ;;  %v13843_v41 = vld [vmem:[#allocation16 + $0xd8] sm:$0xff]   ;;  %v13845_v7 = vld [vmem:[#allocation16 + $0xe0] sm:$0xff]   ;;  %v674_v11 = vadd.f32 %v634_v36, %v430_v26  ;;  %v13850_v26 = vld [vmem:[#allocation16 + $0xb0] sm:$0xff]  }
 0x310   :  { %v483_v43 = vpop.permute.xlu1 %482  ;;  %12649 = vmatprep.subr.bf16.mxu1 %v13843_v41 }
 0x311   :  { %13598 = vmatmul.mubr.msk.bf16.vlgmr.msra.gmra.mrb[0].mxu0 %vm1099_vm0, %v1041_v46  ;;  %v633_v57 = vmul.f32 %v16266_v14, %v483_v43  ;;  %v13844_v46 = vld [vmem:[#allocation16 + $0x98] sm:$0xff]   ;;  %v16375_v43 = vld [vmem:[%s18762_s0 + $0x120] sm:$0xff] }
 0x312   :  { %v16341_v53 = vpop.f32.mrb[24].mxu1  ;;  %12650 = vmatpush3.bf16.msra.mxu1 %v13844_v46 }
 0x313   :  { %v16343_v60 = vpop.f32.mrb[25].mxu1  ;;  %786 = vperm.xlu1 %13800, %v199_v3   ;;  %v16359_v3 = vld [vmem:[%s18762_s0 + $0x130] sm:$0xff]  ;;  %v673_v33 = vadd.f32 %v633_v57, %v429_v19  ;;  %12651 = vmatprep.subr.bf16.mxu1 %v13845_v7  ;;  %v880_v57 = vmul.f32 %v16278_v51, %v16028_v63 }
 0x314   :  { %v16350_v13 = vpop.f32.mrb[26].mxu1  ;;  %618 = vperm.xlu0 %13822, %v16359_v3   ;;  %v13846_v19 = vld [vmem:[#allocation16 + $0xa0] sm:$0xff]  }
 0x315   :  { %v16353_v45 = vpop.f32.mrb[27].mxu1  ;;  %v254_v4 = vpop.permute.xlu1 %253  ;;  %v917_v41 = vadd.f32 %v877_v37, %v673_v33  ;;  %v14586_v33 = vld [vmem:[%s18762_s0 + $0xb8] sm:$0xff] }
 0x316   :  { %12652 = vmatpush3.bf16.msra.mxu1 %v13846_v19 }
 0x317   :  { %13801 = vset.pattern.permute.xlu1 %v18835_v35  ;;  %v964_v7 = vadd.f32 %v16321_v39, %v917_v41 }
 0x318   :  { %328 = vperm.xlu1 %13801, %v16057_v0   ;;  %13827 = vset.pattern.permute.xlu0 %v18839_v50  ;;  %v14584_v0 = vld [vmem:[%s18762_s0 + $0xa0] sm:$0xff] }
 0x319   :  { %v259_v8 = vpop.permute.xlu1 %258  ;;  %854 = vperm.xlu0 %13827, %v16375_v43   ;;  %v1004_v19 = vmax.f32 %v964_v7, 0.0  ;;  %v13853_v7 = vld [vmem:[#allocation16 + $0x1c0] sm:$0xff]  }
 0x31a   :  { %v432_v9 = vmul.f32 %v16271_v52, %v259_v8  ;;  %v431_v8 = vmul.f32 %v16271_v52, %v254_v4 }
 0x31c   :  { %13802 = vset.pattern.permute.xlu1 %v18834_v20  ;;  %v675_v38 = vadd.f32 %v635_v18, %v431_v8  ;;  %v13852_v18 = vld [vmem:[#allocation16 + $0xb8] sm:$0xff]  }
 0x31d   :  { %546 = vperm.xlu1 %13802, %v14584_v0  }
 0x31e   :  { %v495_v49 = vpop.permute.xlu1 %494 }
 0x31f   :  { %v636_v62 = vmul.f32 %v16266_v14, %v495_v49  ;;  %v13847_v49 = vld [vmem:[#allocation16 + $0xe8] sm:$0xff]  }
 0x320   :  { %12653 = vmatprep.subr.bf16.mxu1 %v13847_v49 }
 0x321   :  { %13803 = vset.pattern.permute.xlu1 %v18835_v35  ;;  %v676_v46 = vadd.f32 %v636_v62, %v432_v9  ;;  %12654 = vmatpush3.bf16.msra.mxu1 %v13848_v44  ;;  %v13849_v9 = vld [vmem:[#allocation16 + $0xf0] sm:$0xff]  }
 0x322   :  { %333 = vperm.xlu1 %13803, %v16082_v58   ;;  %12655 = vmatprep.subr.bf16.mxu1 %v13849_v9 }
 0x323   :  { %v731_v0 = vpop.permute.xlu1 %730  ;;  %v920_v63 = vadd.f32 %v880_v57, %v676_v46  ;;  %v13851_v46 = vld [vmem:[#allocation16 + $0xf8] sm:$0xff]  }
 0x324   :  { %v878_v21 = vmul.f32 %v16278_v51, %v731_v0 }
 0x325   :  { %v967_v41 = vadd.f32 %v16321_v39, %v920_v63  ;;  %12656 = vmatpush3.bf16.msra.mxu1 %v13850_v26  ;;  %v14587_v63 = vld [vmem:[%s18762_s0 + $0xa8] sm:$0xff] }
 0x326   :  { %v918_v37 = vadd.f32 %v878_v21, %v674_v11  ;;  %338 = vperm.xlu1 %13803, %v14586_v33   ;;  %12657 = vmatprep.subr.bf16.mxu1 %v13851_v46 }
 0x327   :  { %v735_v62 = vpop.permute.xlu1 %734  ;;  %v1007_v11 = vmax.f32 %v967_v41, 0.0 }
 0x328   :  { %v965_v36 = vadd.f32 %v16321_v39, %v918_v37  ;;  %v879_v4 = vmul.f32 %v16278_v51, %v735_v62  ;;  %v16405_v62 = vld [vmem:[#allocation13] ss:$0 sm:$0xff] }
 0x329   :  { %12658 = vmatpush3.bf16.msra.mxu1 %v13852_v18  ;;  %v3655_v9 = vadd.f32 %v16405_v62, %v16343_v60 }
 0x32a   :  { %v1005_v57 = vmax.f32 %v965_v36, 0.0  ;;  %v919_v21 = vadd.f32 %v879_v4, %v675_v38  ;;  %13804 = vset.pattern.permute.xlu1 %v18834_v20  ;;  %12687 = vmatprep.subr.bf16.mxu1 %v13853_v7  ;;  %v16413_v36 = vld [vmem:[%s18762_s0 + $0x138] sm:$0xff]  ;;  %v3658_v4 = vadd.f32 %v16405_v62, %v16353_v45  ;;  %v204_v45 = vld [vmem:[%s18762_s0 + $0xc0] sm:$0xff] }
 0x32b   :  { %558 = vperm.xlu1 %13804, %v14586_v33   ;;  %866 = vperm.xlu0 %13827, %v16413_v36  }
 0x32c   :  { %v966_v44 = vadd.f32 %v16321_v39, %v919_v21  ;;  %v264_v0 = vpop.permute.xlu1 %263  ;;  %v1042_v49 = vpack.c.bf16 %v1005_v57, %v1004_v19  ;;  %v3773_v57 = vmax.f32 %v3655_v9, 0.0  ;;  %v882_v9 = vmul.f32 %v16278_v51, %v16042_v24  ;;  %v207_v24 = vld [vmem:[%s18762_s0 + $0xd8] sm:$0xff] }
 0x32e   :  { %v1006_v8 = vmax.f32 %v966_v44, 0.0  ;;  %13601 = vmatprep.mubr.msk.bf16.mxu0 %vm1099_vm0, %v1042_v49  ;;  %v3774_v49 = vmax.f32 %v3658_v4, 0.0 }
 0x32f   :  { %13805 = vset.pattern.permute.xlu1 %v18839_v50 }
 0x330   :  { %794 = vperm.xlu1 %13805, %v14587_v63   ;;  %v1043_v37 = vpack.c.bf16 %v1007_v11, %v1006_v8  ;;  %v269_v8 = vpop.permute.xlu0 %268 }
 0x331   :  { %v499_v33 = vpop.permute.xlu1 %498  ;;  %v434_v63 = vmul.f32 %v16271_v52, %v269_v8 }
 0x332   :  { %13602 = vmatmul.mubr.msk.bf16.gmra.mrb[4].mxu0 %vm1099_vm0, %v1043_v37 }
 0x333   :  { %v13675_v38 = vpop.f32.mrb[28].mxu1 }
 0x334   :  { %v3679_v26 = vadd.f32 %v16405_v62, %v13675_v38  ;;  %v16418_v19 = vpop.f32.mrb[29].mxu1  ;;  %798 = vperm.xlu1 %13805, %v16082_v58  }
 0x335   :  { %v13676_v60 = vpop.f32.mrb[30].mxu1  ;;  %v503_v41 = vpop.permute.xlu1 %502 }
 0x336   :  { %v3779_v21 = vmax.f32 %v3679_v26, 0.0  ;;  %v3682_v46 = vadd.f32 %v16405_v62, %v13676_v60  ;;  %v16423_v44 = vpop.f32.mrb[31].mxu1  ;;  %v638_v37 = vmul.f32 %v16266_v14, %v503_v41  ;;  %v274_v26 = vpop.permute.xlu0 %273  ;;  %v637_v60 = vmul.f32 %v16266_v14, %v499_v33 }
 0x337   :  { %v433_v41 = vmul.f32 %v16271_v52, %v264_v0 }
 0x338   :  { %v16428_v18 = vpack.i.bf16 %v3779_v21, %v3773_v57  ;;  %v3780_v11 = vmax.f32 %v3682_v46, 0.0  ;;  %13806 = vset.pattern.permute.xlu1 %v18835_v35  ;;  %v678_v38 = vadd.f32 %v638_v37, %v434_v63  ;;  %v14589_v57 = vld [vmem:[%s18762_s0 + $0xc8] sm:$0xff]  ;;  %v639_v21 = vmul.f32 %v16266_v14, %v15928_v6 }
 0x339   :  { %343 = vperm.xlu1 %13806, %v204_v45   ;;  %v677_v8 = vadd.f32 %v637_v60, %v433_v41 }
 0x33a   :  { %v16431_v58 = vpack.i.bf16 %v3780_v11, %v3774_v49  ;;  %v279_v7 = vpop.permute.xlu1 %278  ;;  %v922_v46 = vadd.f32 %v882_v9, %v678_v38  ;;  %v435_v49 = vmul.f32 %v16271_v52, %v274_v26 }
 0x33b   :  { %v436_v27 = vmul.f32 %v16271_v52, %v279_v7 }
 0x33c   :  { %v969_v63 = vadd.f32 %v16321_v39, %v922_v46  ;;  %v284_v46 = vpop.permute.xlu0 %283 }
 0x33d   :  { %13807 = vset.pattern.permute.xlu1 %v18834_v20 }
 0x33e   :  { %562 = vperm.xlu1 %13807, %v204_v45   ;;  %v1009_v26 = vmax.f32 %v969_v63, 0.0 }
 0x33f   :  { %v511_v4 = vpop.permute.xlu1 %510 }
 0x340   :  { %v640_v0 = vmul.f32 %v16266_v14, %v511_v4  ;;  %v16461_v63 = vpop.permute.xlu0 %308 }
 0x342   :  { %566 = vperm.xlu1 %13807, %v14589_v57   ;;  %v679_v57 = vadd.f32 %v639_v21, %v435_v49 }
 0x344   :  { %v743_v11 = vpop.permute.xlu1 %742 }
 0x345   :  { %v881_v33 = vmul.f32 %v16278_v51, %v743_v11 }
 0x346   :  { %13808 = vset.pattern.permute.xlu1 %v18835_v35 }
 0x347   :  { %v921_v37 = vadd.f32 %v881_v33, %v677_v8  ;;  %358 = vperm.xlu1 %13808, %v207_v24   ;;  %v680_v8 = vadd.f32 %v640_v0, %v436_v27  ;;  %v14590_v27 = vld [vmem:[%s18762_s0 + $0xd0] sm:$0xff] }
 0x348   :  { %v751_v6 = vpop.permute.xlu1 %750 }
 0x349   :  { %v968_v9 = vadd.f32 %v16321_v39, %v921_v37  ;;  %v883_v38 = vmul.f32 %v16278_v51, %v751_v6 }
 0x34b   :  { %v1008_v60 = vmax.f32 %v968_v9, 0.0  ;;  %v923_v41 = vadd.f32 %v883_v38, %v679_v57  ;;  %13809 = vset.pattern.permute.xlu1 %v18834_v20  ;;  %v16467_v38 = vpop.permute.xlu0 %313 }
 0x34c   :  { %574 = vperm.xlu1 %13809, %v207_v24   ;;  %v755_v11 = vpop.permute.xlu1 %754 }
 0x34d   :  { %v884_v21 = vmul.f32 %v16278_v51, %v755_v11  ;;  %v1044_v49 = vpack.c.bf16 %v1009_v26, %v1008_v60  ;;  %v970_v4 = vadd.f32 %v16321_v39, %v923_v41  ;;  %v3671_v26 = vadd.f32 %v16405_v62, %v16418_v19 }
 0x34e   :  { %v3674_v41 = vadd.f32 %v16405_v62, %v16423_v44 }
 0x34f   :  { %v924_v33 = vadd.f32 %v884_v21, %v680_v8  ;;  %13605 = vmatprep.mubr.msk.bf16.mxu0 %vm1099_vm0, %v1044_v49  ;;  %v1010_v57 = vmax.f32 %v970_v4, 0.0  ;;  %v3666_v21 = vadd.f32 %v16405_v62, %v16350_v13  ;;  %v3777_v19 = vmax.f32 %v3671_v26, 0.0 }
 0x350   :  { %13810 = vset.pattern.permute.xlu1 %v18839_v50 }
 0x351   :  { %v971_v7 = vadd.f32 %v16321_v39, %v924_v33  ;;  %806 = vperm.xlu1 %13810, %v204_v45   ;;  %v289_v37 = vpop.permute.xlu1 %288  ;;  %v3663_v45 = vadd.f32 %v16405_v62, %v16341_v53  ;;  %v3776_v13 = vmax.f32 %v3666_v21, 0.0  ;;  %v14591_v21 = vld [vmem:[%s18762_s0 + $0xe0] sm:$0xff] }
 0x353   :  { %v1011_v6 = vmax.f32 %v971_v7, 0.0 }
 0x355   :  { %814 = vperm.xlu1 %13810, %v14590_v27   ;;  %v1045_v0 = vpack.c.bf16 %v1011_v6, %v1010_v57  ;;  %v3775_v6 = vmax.f32 %v3663_v45, 0.0 }
 0x356   :  { %v515_v9 = vpop.permute.xlu1 %514 }
 0x357   :  { %13606 = vmatmul.mubr.msk.bf16.gmra.mrb[8].mxu0 %vm1099_vm0, %v1045_v0  ;;  %v16482_v0 = vpop.permute.xlu0 %323 }
 0x358   :  { %v13679_v60 = vpop.f32.mrb[32].mxu1 }
 0x359   :  { %v3695_v11 = vadd.f32 %v16405_v62, %v13679_v60  ;;  %v3686_v8 = vpop.f32.mrb[33].mxu1  ;;  %818 = vperm.xlu1 %13810, %v207_v24   ;;  %v3778_v60 = vmax.f32 %v3674_v41, 0.0 }
 0x35a   :  { %v3687_v49 = vadd.f32 %v16405_v62, %v3686_v8  ;;  %v13680_v4 = vpop.f32.mrb[34].mxu1 }
 0x35b   :  { %v3783_v33 = vmax.f32 %v3695_v11, 0.0  ;;  %v3698_v7 = vadd.f32 %v16405_v62, %v13680_v4  ;;  %v3689_v57 = vpop.f32.mrb[35].mxu1  ;;  %v294_v53 = vpop.permute.xlu1 %293  ;;  %v641_v4 = vmul.f32 %v16266_v14, %v515_v9  ;;  %v642_v9 = vmul.f32 %v16266_v14, %v15936_v34 }
 0x35c   :  { %v3781_v27 = vmax.f32 %v3687_v49, 0.0  ;;  %v3690_v44 = vadd.f32 %v16405_v62, %v3689_v57  ;;  %v437_v49 = vmul.f32 %v16271_v52, %v284_v46  ;;  %v16497_v41 = vpop.permute.xlu0 %348 }
 0x35d   :  { %v16484_v24 = vpack.i.bf16 %v3783_v33, %v3777_v19  ;;  %v3784_v48 = vmax.f32 %v3698_v7, 0.0  ;;  %13811 = vset.pattern.permute.xlu1 %v18835_v35  ;;  %v438_v7 = vmul.f32 %v16271_v52, %v289_v37  ;;  %v439_v37 = vmul.f32 %v16271_v52, %v294_v53 }
 0x35e   :  { %v16487_v8 = vpack.i.bf16 %v3781_v27, %v3775_v6  ;;  %v3782_v26 = vmax.f32 %v3690_v44, 0.0  ;;  %368 = vperm.xlu1 %13811, %v16182_v12   ;;  %v681_v19 = vadd.f32 %v641_v4, %v437_v49  ;;  %v888_v27 = vmul.f32 %v16278_v51, %v16074_v1  ;;  %v14592_v1 = vld [vmem:[%s18762_s0 + $0xf8] sm:$0xff] }
 0x35f   :  { %v16490_v11 = vpack.i.bf16 %v3784_v48, %v3778_v60  ;;  %v299_v45 = vpop.permute.xlu1 %298  ;;  %v885_v48 = vmul.f32 %v16278_v51, %v16063_v54  ;;  %v682_v34 = vadd.f32 %v642_v9, %v438_v7 }
 0x360   :  { %v16494_v57 = vpack.i.bf16 %v3782_v26, %v3776_v13  ;;  %v440_v6 = vmul.f32 %v16271_v52, %v299_v45  ;;  %v16513_v54 = vpop.permute.xlu0 %353  ;;  %v643_v26 = vmul.f32 %v16266_v14, %v15959_v61 }
 0x361   :  { %v925_v44 = vadd.f32 %v885_v48, %v681_v19 }
 0x362   :  { %13812 = vset.pattern.permute.xlu1 %v18834_v20  ;;  %v683_v19 = vadd.f32 %v643_v26, %v439_v37 }
 0x363   :  { %578 = vperm.xlu1 %13812, %v14591_v21   ;;  %v972_v49 = vadd.f32 %v16321_v39, %v925_v44 }
 0x364   :  { %v527_v33 = vpop.permute.xlu1 %526 }
 0x365   :  { %v644_v46 = vmul.f32 %v16266_v14, %v527_v33  ;;  %v1012_v53 = vmax.f32 %v972_v49, 0.0 }
 0x367   :  { %13813 = vset.pattern.permute.xlu1 %v18835_v35  ;;  %v684_v60 = vadd.f32 %v644_v46, %v440_v6  ;;  %v16525_v46 = vpop.permute.xlu0 %363 }
 0x368   :  { %373 = vperm.xlu1 %13813, %v16197_v15  }
 0x369   :  { %v763_v13 = vpop.permute.xlu1 %762  ;;  %v928_v4 = vadd.f32 %v888_v27, %v684_v60 }
 0x36a   :  { %v886_v45 = vmul.f32 %v16278_v51, %v763_v13 }
 0x36b   :  { %v975_v9 = vadd.f32 %v16321_v39, %v928_v4 }
 0x36c   :  { %v926_v21 = vadd.f32 %v886_v45, %v682_v34  ;;  %378 = vperm.xlu1 %13813, %v14592_v1   ;;  %v16531_v34 = vpop.permute.xlu0 %388 }
 0x36d   :  { %v767_v48 = vpop.permute.xlu1 %766  ;;  %v1015_v13 = vmax.f32 %v975_v9, 0.0  ;;  %18847 = vst [vmem:[#allocation25_spill] sm:$0xff] %v16531_v34  ;;  %v13895_v9 = vld [vmem:[#allocation16 + $0x40] sm:$0xff]  }
 0x36e   :  { %v973_v33 = vadd.f32 %v16321_v39, %v926_v21  ;;  %v887_v61 = vmul.f32 %v16278_v51, %v767_v48  ;;  %12621 = vmatprep.subr.bf16.mxu0 %v13895_v9 }
 0x370   :  { %v1013_v7 = vmax.f32 %v973_v33, 0.0  ;;  %v927_v6 = vadd.f32 %v887_v61, %v683_v19  ;;  %13814 = vset.pattern.permute.xlu1 %v18834_v20  ;;  %v16541_v21 = vpop.permute.xlu0 %393 }
 0x371   :  { %590 = vperm.xlu1 %13814, %v14592_v1   ;;  %18848 = vst [vmem:[#allocation29_spill] sm:$0xff] %v16541_v21  ;;  %v13903_v21 = vld [vmem:[#allocation16 + $0x8] sm:$0xff]  }
 0x372   :  { %v1046_v27 = vpack.c.bf16 %v1013_v7, %v1012_v53  ;;  %v974_v44 = vadd.f32 %v16321_v39, %v927_v6  ;;  %v304_v60 = vpop.permute.xlu1 %303  ;;  %v13896_v7 = vld [vmem:[#allocation16] sm:$0xff]   ;;  %v890_v6 = vmul.f32 %v16278_v51, %v16089_v16 }
 0x373   :  { %12622 = vmatpush3.bf16.msra.mxu0 %v13896_v7 }
 0x374   :  { %v1014_v26 = vmax.f32 %v974_v44, 0.0  ;;  %13609 = vmatprep.mubr.msk.bf16.mxu0 %vm1099_vm0, %v1046_v27  ;;  %v16551_v61 = vpop.permute.xlu0 %403 }
 0x375   :  { %13815 = vset.pattern.permute.xlu1 %v18839_v50  ;;  %18849 = vst [vmem:[#allocation30_spill] sm:$0xff] %v16551_v61 }
 0x376   :  { %v1047_v37 = vpack.c.bf16 %v1015_v13, %v1014_v26  ;;  %826 = vperm.xlu1 %13815, %v16182_v12   ;;  %v212_v12 = vld [vmem:[%s18762_s0 + $0x100] sm:$0xff] }
 0x377   :  { %v531_v45 = vpop.permute.xlu1 %530 }
 0x378   :  { %13610 = vmatmul.mubr.msk.bf16.gmra.mrb[12].mxu0 %vm1099_vm0, %v1047_v37  ;;  %v539_v13 = vpop.permute.xlu0 %538  ;;  %v645_v26 = vmul.f32 %v16266_v14, %v531_v45  ;;  %v443_v37 = vmul.f32 %v16271_v52, %v16467_v38 }
 0x379   :  { %v16536_v49 = vpop.f32.mrb[36].mxu1  ;;  %v647_v61 = vmul.f32 %v16266_v14, %v539_v13  ;;  %v13901_v13 = vld [vmem:[#allocation16 + $0x48] sm:$0xff]  }
 0x37a   :  { %v16538_v4 = vpop.f32.mrb[37].mxu1  ;;  %830 = vperm.xlu1 %13815, %v16197_v15   ;;  %v442_v15 = vmul.f32 %v16271_v52, %v16461_v63  ;;  %v14593_v63 = vld [vmem:[%s18762_s0 + $0x108] sm:$0xff]  ;;  %12623 = vmatprep.subr.bf16.mxu0 %v13901_v13 }
 0x37b   :  { %v16543_v1 = vpop.f32.mrb[38].mxu1  ;;  %v535_v48 = vpop.permute.xlu1 %534  ;;  %v687_v34 = vadd.f32 %v647_v61, %v443_v37  ;;  %12624 = vmatpush3.bf16.msra.mxu0 %v13903_v21 }
 0x37c   :  { %v16545_v19 = vpop.f32.mrb[39].mxu1  ;;  %v646_v53 = vmul.f32 %v16266_v14, %v535_v48  ;;  %v441_v48 = vmul.f32 %v16271_v52, %v304_v60 }
 0x37e   :  { %13816 = vset.pattern.permute.xlu1 %v18835_v35  ;;  %v686_v27 = vadd.f32 %v646_v53, %v442_v15  ;;  %v215_v15 = vld [vmem:[%s18762_s0 + $0x118] sm:$0xff]  ;;  %v685_v53 = vadd.f32 %v645_v26, %v441_v48 }
 0x37f   :  { %383 = vperm.xlu1 %13816, %v212_v12  }
 0x380   :  { %v319_v33 = vpop.permute.xlu1 %318  ;;  %v930_v9 = vadd.f32 %v890_v6, %v686_v27 }
 0x381   :  { %v444_v26 = vmul.f32 %v16271_v52, %v319_v33  ;;  %v13909_v33 = vld [vmem:[#allocation16 + $0x50] sm:$0xff]  }
 0x382   :  { %v977_v7 = vadd.f32 %v16321_v39, %v930_v9  ;;  %12625 = vmatprep.subr.bf16.mxu0 %v13909_v33 }
 0x383   :  { %13817 = vset.pattern.permute.xlu1 %v18834_v20 }
 0x384   :  { %594 = vperm.xlu1 %13817, %v212_v12   ;;  %v1017_v23 = vmax.f32 %v977_v7, 0.0  ;;  %v13910_v7 = vld [vmem:[#allocation16 + $0x10] sm:$0xff]  }
 0x385   :  { %v543_v44 = vpop.permute.xlu1 %542  ;;  %12626 = vmatpush3.bf16.msra.mxu0 %v13910_v7 }
 0x386   :  { %v648_v60 = vmul.f32 %v16266_v14, %v543_v44 }
 0x388   :  { %598 = vperm.xlu1 %13817, %v14593_v63   ;;  %v688_v61 = vadd.f32 %v648_v60, %v444_v26  ;;  %v3703_v26 = vadd.f32 %v16405_v62, %v16538_v4 }
 0x38a   :  { %v775_v16 = vpop.permute.xlu1 %774 }
 0x38b   :  { %v889_v45 = vmul.f32 %v16278_v51, %v775_v16 }
 0x38c   :  { %13818 = vset.pattern.permute.xlu1 %v18835_v35 }
 0x38d   :  { %v929_v63 = vadd.f32 %v889_v45, %v685_v53  ;;  %398 = vperm.xlu1 %13818, %v215_v15  }
 0x38e   :  { %v783_v38 = vpop.permute.xlu1 %782 }
 0x38f   :  { %v976_v6 = vadd.f32 %v16321_v39, %v929_v63  ;;  %v891_v27 = vmul.f32 %v16278_v51, %v783_v38 }
 0x391   :  { %v1016_v48 = vmax.f32 %v976_v6, 0.0  ;;  %v931_v16 = vadd.f32 %v891_v27, %v687_v34  ;;  %13819 = vset.pattern.permute.xlu1 %v18834_v20  ;;  %v14594_v27 = vld [vmem:[%s18762_s0 + $0x110] sm:$0xff] }
 0x392   :  { %606 = vperm.xlu1 %13819, %v215_v15   ;;  %v787_v9 = vpop.permute.xlu1 %786 }
 0x393   :  { %v1048_v37 = vpack.c.bf16 %v1017_v23, %v1016_v48  ;;  %v892_v44 = vmul.f32 %v16278_v51, %v787_v9  ;;  %v978_v53 = vadd.f32 %v16321_v39, %v931_v16  ;;  %v14868_v23 = vmov 1966171168  }
 0x394   :  { %v5330_v6 = vunpack.c.l.s4 %v14868_v23  ;;  %v3706_v16 = vadd.f32 %v16405_v62, %v16545_v19 }
 0x395   :  { %v932_v45 = vadd.f32 %v892_v44, %v688_v61  ;;  %13613 = vmatprep.mubr.msk.bf16.mxu0 %vm1099_vm0, %v1048_v37  ;;  %v1018_v38 = vmax.f32 %v978_v53, 0.0  ;;  %v3785_v44 = vmax.f32 %v3703_v26, 0.0  ;;  %v18851_v26 = vcombine.high %v16098_v31, %v16188_v25 }
 0x396   :  { %13820 = vset.pattern.permute.xlu1 %v18839_v50 }
 0x397   :  { %v979_v34 = vadd.f32 %v16321_v39, %v932_v45  ;;  %838 = vperm.xlu1 %13820, %v212_v12   ;;  %v329_v63 = vpop.permute.xlu1 %328  ;;  %v5331_v12 = vunpack.c.0.s8 %v5330_v6 }
 0x399   :  { %v1019_v60 = vmax.f32 %v979_v34, 0.0  ;;  %v16600_v7 = vsub.s32 %v5331_v12, %v18843_v17  ;;  %v3786_v34 = vmax.f32 %v3706_v16, 0.0 }
 0x39b   :  { %v1049_v21 = vpack.c.bf16 %v1019_v60, %v1018_v38  ;;  %846 = vperm.xlu1 %13820, %v14594_v27   ;;  %v18850_v27 = vcombine.low %v16098_v31, %v16188_v25  ;;  %v16614_v12 = vrot.slane %v18851_v26, %v16600_v7  ;;  %v893_v31 = vmul.f32 %v16278_v51, %v16106_v22 }
 0x39c   :  { %v547_v13 = vpop.permute.xlu1 %546  ;;  %v18852_v25 = vcombine.low %v16101_v59, %v16203_v5 }
 0x39d   :  { %13614 = vmatmul.mubr.msk.bf16.gmra.mrb[16].mxu0 %vm1099_vm0, %v1049_v21  ;;  %v5335_v17 = vrot.slane %v18850_v27, %v16600_v7  ;;  %v649_v16 = vmul.f32 %v16266_v14, %v547_v13  ;;  %v18853_v13 = vcombine.high %v16101_v59, %v16203_v5  ;;  %v446_v59 = vmul.f32 %v16271_v52, %v329_v63  ;;  %v13923_v63 = vld [vmem:[#allocation16 + $0x60] sm:$0xff]  }
 0x39e   :  { %v13687_v48 = vpop.f32.mrb[40].mxu1 }
 0x39f   :  { %v3727_v9 = vadd.f32 %v16405_v62, %v13687_v48  ;;  %v16592_v61 = vpop.f32.mrb[41].mxu1  ;;  %850 = vperm.xlu1 %13820, %v215_v15   ;;  %v551_v15 = vpop.permute.xlu0 %550  ;;  %v445_v48 = vmul.f32 %v16271_v52, %v16482_v0  ;;  %v16631_v0 = vrot.slane %v18852_v25, %v16600_v7 }
 0x3a0   :  { %v13688_v37 = vpop.f32.mrb[42].mxu1 }
 0x3a1   :  { %v3791_v53 = vmax.f32 %v3727_v9, 0.0  ;;  %v3730_v45 = vadd.f32 %v16405_v62, %v13688_v37  ;;  %v16595_v33 = vpop.f32.mrb[43].mxu1  ;;  %v16597_v4 = vpop.permute.xlu1 %333  ;;  %v689_v5 = vadd.f32 %v649_v16, %v445_v48 }
 0x3a3   :  { %v11858_v38 = vpack.i.bf16 %v3791_v53, %v3785_v44  ;;  %v3792_v19 = vmax.f32 %v3730_v45, 0.0  ;;  %13823 = vset.pattern.permute.xlu1 %v18835_v35  ;;  %v13915_v53 = vld [vmem:[#allocation16 + $0x58] sm:$0xff]   ;;  %v555_v48 = vpop.permute.xlu0 %554  ;;  %v933_v25 = vadd.f32 %v893_v31, %v689_v5 }
 0x3a4   :  { %408 = vperm.xlu1 %13823, %v16348_v30   ;;  %v13917_v45 = vld [vmem:[#allocation16 + $0x18] sm:$0xff]   ;;  %12627 = vmatprep.subr.bf16.mxu0 %v13915_v53 }
 0x3a5   :  { %v5327_v60 = vcombine.low %v16428_v18, %v11858_v38  ;;  %v5328_v23 = vcombine.high %v16428_v18, %v11858_v38  ;;  %v11859_v6 = vpack.i.bf16 %v3792_v19, %v3786_v34  ;;  %v339_v21 = vpop.permute.xlu1 %338  ;;  %v16637_v34 = vrot.slane %v18853_v13, %v16600_v7  ;;  %12628 = vmatpush3.bf16.msra.mxu0 %v13917_v45 }
 0x3a6   :  { %v650_v38 = vmul.f32 %v16266_v14, %v551_v15  ;;  %12629 = vmatprep.subr.bf16.mxu0 %v13923_v63  ;;  %v447_v45 = vmul.f32 %v16271_v52, %v16597_v4  ;;  %v13857_v4 = vld [vmem:[#allocation16 + $0x1d0] sm:$0xff]  }
 0x3a7   :  { %v5349_v18 = vrot.slane %v5327_v60, %v16600_v7  ;;  %v16621_v9 = vrot.slane %v5328_v23, %v16600_v7  ;;  %v5395_v37 = vcombine.low %v16431_v58, %v11859_v6  ;;  %v5396_v44 = vcombine.high %v16431_v58, %v11859_v6 }
 0x3a8   :  { %13824 = vset.pattern.permute.xlu1 %v18834_v20 }
 0x3a9   :  { %v5357_v58 = vcombine.low %v5335_v17, %v5349_v18  ;;  %v5359_v22 = vcombine.low %v16614_v12, %v16621_v9  ;;  %v16644_v19 = vrot.slane %v5395_v37, %v16600_v7  ;;  %v16647_v60 = vrot.slane %v5396_v44, %v16600_v7  ;;  %610 = vperm.xlu1 %13824, %v16375_v43  }
 0x3aa   :  { %v559_v23 = vpop.permute.xlu1 %558  ;;  %v5358_v6 = vcombine.high %v5335_v17, %v5349_v18  ;;  %v5360_v15 = vcombine.high %v16614_v12, %v16621_v9  ;;  %v448_v17 = vmul.f32 %v16271_v52, %v339_v21  ;;  %v690_v37 = vadd.f32 %v650_v38, %v446_v59  ;;  %v13929_v59 = vld [vmem:[#allocation16 + $0x68] sm:$0xff]  }
 0x3ab   :  { %v16654_v27 = vrot.slane %v5357_v58, %v16600_v7  ;;  %v652_v43 = vmul.f32 %v16266_v14, %v559_v23  ;;  %v5426_v44 = vcombine.high %v16631_v0, %v16644_v19  ;;  %v13854_v58 = vld [vmem:[#allocation16 + $0x180] sm:$0xff]   ;;  %v896_v23 = vmul.f32 %v16278_v51, %v16125_v42 }
 0x3ac   :  { %v16663_v16 = vrot.slane %v5358_v6, %v16600_v7  ;;  %v16666_v18 = vrot.slane %v5360_v15, %v16600_v7  ;;  %v651_v6 = vmul.f32 %v16266_v14, %v555_v48  ;;  %v13855_v15 = vld [vmem:[#allocation16 + $0x1c8] sm:$0xff]  }
 0x3ad   :  { %18854 = vst [vmem:[#allocation31_spill] sm:$0xff] %v16654_v27  ;;  %13825 = vset.pattern.permute.xlu1 %v18835_v35  ;;  %v5389_v53 = vcombine.high %v16654_v27, %v16654_v27  ;;  %v692_v13 = vadd.f32 %v652_v43, %v448_v17  ;;  %v13924_v43 = vld [vmem:[#allocation16 + $0x20] sm:$0xff]   ;;  %v980_v17 = vadd.f32 %v16321_v39, %v933_v25  ;;  %v13856_v48 = vld [vmem:[#allocation16 + $0x188] sm:$0xff]  }
 0x3ae   :  { %18855 = vst [vmem:[#allocation32_spill] sm:$0xff] %v16663_v16  ;;  %18856 = vst [vmem:[#allocation33_spill] sm:$0xff] %v16666_v18  ;;  %413 = vperm.xlu1 %13825, %v16359_v3   ;;  %v5391_v21 = vcombine.high %v16663_v16, %v16663_v16  ;;  %v5392_v5 = vcombine.high %v16666_v18, %v16666_v18  ;;  %v691_v63 = vadd.f32 %v651_v6, %v447_v45  ;;  %v13902_v18 = vld [vmem:[#allocation16 + $0x3f8] sm:$0xff]  }
 0x3af   :  { %v795_v35 = vpop.permute.xlu1 %794  ;;  %v936_v42 = vadd.f32 %v896_v23, %v692_v13  ;;  %12630 = vmatpush3.bf16.msra.mxu0 %v13924_v43  ;;  %v1020_v25 = vmax.f32 %v980_v17, 0.0  ;;  %v13858_v23 = vld [vmem:[#allocation16 + $0x190] sm:$0xff]   ;;  %v13860_v43 = vld [vmem:[#allocation16 + $0x198] sm:$0xff]   ;;  %v13861_v17 = vld [vmem:[#allocation16 + $0x1e0] sm:$0xff]  }
 0x3b0   :  { %8157 = vmatprep.mubr.bf16.mxu1 %v5391_v21  ;;  %v894_v31 = vmul.f32 %v16278_v51, %v795_v35  ;;  %12631 = vmatprep.subr.bf16.mxu0 %v13929_v59 }
 0x3b1   :  { %8158 = vmatmul.mubr.bf16.vlgmr.msra.gmra.mrb[48].mxu1 %v5389_v53  ;;  %v13931_v53 = vld [vmem:[#allocation16 + $0x28] sm:$0xff]  }
 0x3b2   :  { %v934_v26 = vadd.f32 %v894_v31, %v690_v37  ;;  %12688 = vmatpush3.bf16.msra.mxu1 %v13854_v58  ;;  %8237 = vmatprep.mubr.bf16.mxu1 %v5392_v5  ;;  %v983_v37 = vadd.f32 %v16321_v39, %v936_v42 }
 0x3b3   :  { %418 = vperm.xlu1 %13825, %v16413_v36   ;;  %12689 = vmatprep.subr.bf16.mxu1 %v13855_v15  ;;  %v799_v38 = vpop.permute.xlu1 %798  ;;  %v13859_v15 = vld [vmem:[#allocation16 + $0x1d8] sm:$0xff]  }
 0x3b4   :  { %v981_v21 = vadd.f32 %v16321_v39, %v934_v26  ;;  %v895_v35 = vmul.f32 %v16278_v51, %v799_v38  ;;  %12632 = vmatpush3.bf16.msra.mxu0 %v13931_v53  ;;  %v1023_v6 = vmax.f32 %v983_v37, 0.0  ;;  %v18857_v38 = vcombine.low %v16120_v28, %v16273_v29 }
 0x3b5   :  { %v18863_v37 = vcombine.low %v16127_v2, %v16287_v47 }
 0x3b6   :  { %v1021_v13 = vmax.f32 %v981_v21, 0.0  ;;  %v935_v58 = vadd.f32 %v895_v35, %v691_v63  ;;  %12690 = vmatpush3.bf16.msra.mxu1 %v13856_v48  ;;  %v898_v48 = vmul.f32 %v16278_v51, %v16149_v32  ;;  %v13863_v63 = vld [vmem:[#allocation16 + $0x1e8] sm:$0xff]   ;;  %v18861_v32 = vcombine.low %v16123_v55, %v16280_v40 }
 0x3b7   :  { %13826 = vset.pattern.permute.xlu1 %v18834_v20  ;;  %12691 = vmatprep.subr.bf16.mxu1 %v13857_v4  ;;  %v16710_v4 = vrot.slane %v18857_v38, %v16600_v7  ;;  %v450_v35 = vmul.f32 %v16271_v52, %v16497_v41  ;;  %v3714_v41 = vadd.f32 %v16405_v62, %v16543_v1 }
 0x3b8   :  { %v1050_v31 = vpack.c.bf16 %v1021_v13, %v1020_v25  ;;  %v982_v45 = vadd.f32 %v16321_v39, %v935_v58  ;;  %622 = vperm.xlu1 %13826, %v16413_v36   ;;  %v16694_v26 = vpop.permute.xlu1 %343  ;;  %v3719_v39 = vadd.f32 %v16405_v62, %v16592_v61  ;;  %v13862_v36 = vld [vmem:[#allocation16 + $0x1a0] sm:$0xff]   ;;  %v3711_v61 = vadd.f32 %v16405_v62, %v16536_v49 }
 0x3b9   :  { %18858 = vst [vmem:[#allocation34_spill] sm:$0xff] %v16710_v4  ;;  %v16724_v21 = vrot.slane %v18861_v32, %v16600_v7  ;;  %v18862_v49 = vcombine.high %v16123_v55, %v16280_v40  ;;  %v16741_v13 = vrot.slane %v18863_v37, %v16600_v7  ;;  %v13866_v37 = vld [vmem:[#allocation16 + $0x1b0] sm:$0xff]  }
 0x3ba   :  { %v1022_v5 = vmax.f32 %v982_v45, 0.0  ;;  %12692 = vmatpush3.bf16.msra.mxu1 %v13858_v23  ;;  %13617 = vmatprep.mubr.msk.bf16.mxu0 %vm1099_vm0, %v1050_v31 }
 0x3bb   :  { %12693 = vmatprep.subr.bf16.mxu1 %v13859_v15  ;;  %v16735_v25 = vrot.slane %v18862_v49, %v16600_v7  ;;  %18864 = vst [vmem:[#allocation36_spill] sm:$0xff] %v16741_v13  ;;  %v3789_v15 = vmax.f32 %v3719_v39, 0.0  ;;  %v13893_v13 = vld [vmem:[#allocation16 + $0x3e0] sm:$0xff]  }
 0x3bc   :  { %v1051_v42 = vpack.c.bf16 %v1023_v6, %v1022_v5  ;;  %13828 = vset.pattern.permute.xlu1 %v18839_v50  ;;  %v18859_v50 = vcombine.high %v16120_v28, %v16273_v29  ;;  %v3722_v28 = vadd.f32 %v16405_v62, %v16595_v33  ;;  %v13864_v6 = vld [vmem:[#allocation16 + $0x1a8] sm:$0xff]   ;;  %v18865_v5 = vcombine.high %v16127_v2, %v16287_v47 }
 0x3bd   :  { %858 = vperm.xlu1 %13828, %v16348_v30   ;;  %v16699_v20 = vpop.permute.xlu1 %562 }
 0x3be   :  { %12694 = vmatpush3.bf16.msra.mxu1 %v13860_v43  ;;  %13618 = vmatmul.mubr.msk.bf16.gmra.mrb[20].mxu0 %vm1099_vm0, %v1051_v42  ;;  %v16716_v30 = vrot.slane %v18859_v50, %v16600_v7  ;;  %v16753_v1 = vrot.slane %v18865_v5, %v16600_v7  ;;  %v3787_v43 = vmax.f32 %v3711_v61, 0.0  ;;  %v13865_v42 = vld [vmem:[#allocation16 + $0x1f0] sm:$0xff]   ;;  %v3790_v39 = vmax.f32 %v3722_v28, 0.0  ;;  %v13945_v5 = vld [vmem:[#allocation16 + $0x38] sm:$0xff]  }
 0x3bf   :  { %v13691_v59 = vpop.f32.mrb[44].mxu1  ;;  %12695 = vmatprep.subr.bf16.mxu1 %v13861_v17  ;;  %v13938_v61 = vld [vmem:[#allocation16 + $0x30] sm:$0xff]  }
 0x3c0   :  { %18860 = vst [vmem:[#allocation35_spill] sm:$0xff] %v16716_v30  ;;  %v3743_v29 = vadd.f32 %v16405_v62, %v13691_v59  ;;  %v3734_v53 = vpop.f32.mrb[45].mxu1  ;;  %18866 = vst [vmem:[#allocation37_spill] sm:$0xff] %v16753_v1  ;;  %v18867_v59 = vcombine.low %v16130_v56, %v16295_v10 }
 0x3c1   :  { %v3735_v33 = vadd.f32 %v16405_v62, %v3734_v53  ;;  %862 = vperm.xlu1 %13828, %v16359_v3   ;;  %v13692_v58 = vpop.f32.mrb[46].mxu1  ;;  %v567_v23 = vpop.permute.xlu1 %566  ;;  %v13937_v53 = vld [vmem:[#allocation16 + $0x70] sm:$0xff]  }
 0x3c2   :  { %v3795_v31 = vmax.f32 %v3743_v29, 0.0  ;;  %12696 = vmatpush3.bf16.msra.mxu1 %v13862_v36  ;;  %v3746_v55 = vadd.f32 %v16405_v62, %v13692_v58  ;;  %v654_v40 = vmul.f32 %v16266_v14, %v567_v23  ;;  %v3737_v45 = vpop.f32.mrb[47].mxu1  ;;  %v16760_v32 = vrot.slane %v18867_v59, %v16600_v7  ;;  %12633 = vmatprep.subr.bf16.mxu0 %v13937_v53 }
 0x3c3   :  { %v3793_v17 = vmax.f32 %v3735_v33, 0.0  ;;  %v3738_v3 = vadd.f32 %v16405_v62, %v3737_v45  ;;  %12697 = vmatprep.subr.bf16.mxu1 %v13863_v63  ;;  %v3788_v29 = vmax.f32 %v3714_v41, 0.0  ;;  %v18869_v33 = vcombine.high %v16130_v56, %v16295_v10  ;;  %12634 = vmatpush3.bf16.msra.mxu0 %v13938_v61 }
 0x3c4   :  { %v11862_v36 = vpack.i.bf16 %v3795_v31, %v3789_v15  ;;  %v3796_v38 = vmax.f32 %v3746_v55, 0.0  ;;  %v694_v50 = vadd.f32 %v654_v40, %v450_v35  ;;  %18868 = vst [vmem:[#allocation38_spill] sm:$0xff] %v16760_v32  ;;  %v16795_v45 = vrot.slane %v5359_v22, %v16600_v7 }
 0x3c5   :  { %v11860_v2 = vpack.i.bf16 %v3793_v17, %v3787_v43  ;;  %v3794_v47 = vmax.f32 %v3738_v3, 0.0  ;;  %v16772_v41 = vrot.slane %v18869_v33, %v16600_v7 }
 0x3c6   :  { %v5599_v49 = vcombine.low %v16484_v24, %v11862_v36  ;;  %v5600_v62 = vcombine.high %v16484_v24, %v11862_v36  ;;  %v11863_v63 = vpack.i.bf16 %v3796_v38, %v3790_v39  ;;  %v16764_v28 = vadd.f32 %v898_v48, %v694_v50  ;;  %12698 = vmatpush3.bf16.msra.mxu1 %v13864_v6  ;;  %v16766_v35 = vpop.permute.xlu1 %358  ;;  %v13867_v24 = vld [vmem:[#allocation16 + $0x1f8] sm:$0xff]   ;;  %v13869_v36 = vld [vmem:[#allocation16 + $0x2c0] sm:$0xff]  }
 0x3c7   :  { %18870 = vst [vmem:[#allocation39_spill] sm:$0xff] %v16772_v41  ;;  %v5463_v58 = vcombine.low %v16487_v8, %v11860_v2  ;;  %v5464_v23 = vcombine.high %v16487_v8, %v11860_v2  ;;  %v11861_v15 = vpack.i.bf16 %v3794_v47, %v3788_v29  ;;  %12699 = vmatprep.subr.bf16.mxu1 %v13865_v42  ;;  %18873 = vst [vmem:[#allocation42_spill] sm:$0xff] %v16795_v45  ;;  %v13943_v6 = vld [vmem:[#allocation16 + $0x78] sm:$0xff]   ;;  %v571_v47 = vpop.permute.xlu0 %570 }
 0x3c8   :  { %v16777_v48 = vrot.slane %v5599_v49, %v16600_v7  ;;  %v16780_v31 = vrot.slane %v5600_v62, %v16600_v7  ;;  %v5667_v55 = vcombine.low %v16490_v11, %v11863_v63  ;;  %v5668_v40 = vcombine.high %v16490_v11, %v11863_v63  ;;  %v13868_v42 = vld [vmem:[#allocation16 + $0x1b8] sm:$0xff]   ;;  %12635 = vmatprep.subr.bf16.mxu0 %v13943_v6  ;;  %v13872_v6 = vld [vmem:[#allocation16 + $0x288] sm:$0xff]  }
 0x3c9   :  { %v16785_v56 = vrot.slane %v5463_v58, %v16600_v7  ;;  %v16788_v10 = vrot.slane %v5464_v23, %v16600_v7  ;;  %v5531_v8 = vcombine.low %v16494_v57, %v11861_v15  ;;  %v5532_v22 = vcombine.high %v16494_v57, %v11861_v15  ;;  %12636 = vmatpush3.bf16.msra.mxu0 %v13945_v5  ;;  %v16852_v5 = vld [vmem:[#allocation4] ss:$0 sm:$0xff]  ;;  %v13876_v38 = vld [vmem:[#allocation16 + $0x298] sm:$0xff]  }
 0x3ca   :  { %18871 = vst [vmem:[#allocation40_spill] sm:$0xff] %v16777_v48  ;;  %18872 = vst [vmem:[#allocation41_spill] sm:$0xff] %v16780_v31  ;;  %v16802_v17 = vrot.slane %v5667_v55, %v16600_v7  ;;  %v16805_v3 = vrot.slane %v5668_v40, %v16600_v7  ;;  %12700 = vmatpush3.bf16.msra.mxu1 %v13866_v37  ;;  %v16823_v29 = vrot.slane %v5426_v44, %v16600_v7 }
 0x3cb   :  { %12701 = vmatprep.subr.bf16.mxu1 %v13867_v24  ;;  %v575_v39 = vpop.permute.xlu1 %574  ;;  %v16817_v59 = vrot.slane %v5531_v8, %v16600_v7  ;;  %v653_v57 = vmul.f32 %v16266_v14, %v16699_v20  ;;  %v16828_v2 = vrot.slane %v5532_v22, %v16600_v7  ;;  %v451_v49 = vmul.f32 %v16271_v52, %v16513_v54  ;;  %v13870_v20 = vld [vmem:[#allocation16 + $0x280] sm:$0xff]   ;;  %v13871_v54 = vld [vmem:[#allocation16 + $0x2c8] sm:$0xff]  }
 0x3cc   :  { %18874 = vst [vmem:[#allocation43_spill] sm:$0xff] %v16802_v17  ;;  %18875 = vst [vmem:[#allocation44_spill] sm:$0xff] %v16805_v3  ;;  %v655_v62 = vmul.f32 %v16266_v14, %v571_v47  ;;  %v449_v37 = vmul.f32 %v16271_v52, %v16694_v26  ;;  %v5390_v58 = vcombine.high %v16795_v45, %v16795_v45  ;;  %v13951_v26 = vld [vmem:[#allocation16 + $0x140] sm:$0xff]  }
 0x3cd   :  { %18876 = vst [vmem:[#allocation45_spill] sm:$0xff] %v16817_v59  ;;  %18877 = vst [vmem:[#allocation46_spill] sm:$0xff] %v16823_v29  ;;  %v5459_v23 = vcombine.high %v16823_v29, %v16823_v29  ;;  %12665 = vmatprep.subr.bf16.mxu0 %v13951_v26 }
 0x3ce   :  { %18878 = vst [vmem:[#allocation47_spill] sm:$0xff] %v16828_v2  ;;  %12702 = vmatpush3.bf16.msra.mxu1 %v13868_v42  ;;  %v693_v55 = vadd.f32 %v653_v57, %v449_v37  ;;  %v695_v8 = vadd.f32 %v655_v62, %v451_v49  ;;  %v985_v42 = vadd.f32 %v16852_v5, %v16764_v28  ;;  %v18889_v2 = vld [vmem:[#allocation29_spill] sm:$0xff] }
 0x3cf   :  { %12731 = vmatprep.subr.bf16.mxu1 %v13869_v36  ;;  %v13873_v36 = vld [vmem:[#allocation16 + $0x2d0] sm:$0xff]   ;;  %v656_v49 = vmul.f32 %v16266_v14, %v575_v39 }
 0x3d0   :  { %v807_v15 = vpop.permute.xlu1 %806 }
 0x3d1   :  { %8238 = vmatmul.mubr.bf16.vlgmr.msra.gmra.mrb[52].mxu1 %v5390_v58  ;;  %v897_v40 = vmul.f32 %v16278_v51, %v807_v15  ;;  %v13874_v58 = vld [vmem:[#allocation16 + $0x290] sm:$0xff]  }
 0x3d2   :  { %12732 = vmatpush3.bf16.msra.mxu1 %v13870_v20  ;;  %8317 = vmatprep.mubr.bf16.mxu1 %v5459_v23  ;;  %v452_v23 = vmul.f32 %v16271_v52, %v16766_v35  ;;  %v13877_v35 = vld [vmem:[#allocation16 + $0x2e0] sm:$0xff]  }
 0x3d3   :  { %v937_v22 = vadd.f32 %v897_v40, %v693_v55  ;;  %12733 = vmatprep.subr.bf16.mxu1 %v13871_v54  ;;  %v1025_v54 = vmax.f32 %v985_v42, 0.0  ;;  %v13875_v40 = vld [vmem:[#allocation16 + $0x2d8] sm:$0xff]  }
 0x3d4   :  { %v815_v47 = vpop.permute.xlu1 %814 }
 0x3d5   :  { %v984_v62 = vadd.f32 %v16852_v5, %v937_v22  ;;  %v899_v20 = vmul.f32 %v16278_v51, %v815_v47  ;;  %v696_v22 = vadd.f32 %v656_v49, %v452_v23  ;;  %v13879_v49 = vld [vmem:[#allocation16 + $0x2e8] sm:$0xff]   ;;  %v16873_v23 = vld [vmem:[#allocation7] ss:$0 sm:$0xff] }
 0x3d6   :  { %12734 = vmatpush3.bf16.msra.mxu1 %v13872_v6 }
 0x3d7   :  { %v1024_v15 = vmax.f32 %v984_v62, 0.0  ;;  %v939_v55 = vadd.f32 %v899_v20, %v695_v8  ;;  %12735 = vmatprep.subr.bf16.mxu1 %v13873_v36  ;;  %v13878_v62 = vld [vmem:[#allocation16 + $0x2a0] sm:$0xff]  }
 0x3d8   :  { %v819_v26 = vpop.permute.xlu1 %818 }
 0x3d9   :  { %v1052_v50 = vpack.c.bf16 %v1025_v54, %v1024_v15  ;;  %v900_v47 = vmul.f32 %v16278_v51, %v819_v26  ;;  %v986_v6 = vadd.f32 %v16852_v5, %v939_v55  ;;  %v13880_v15 = vld [vmem:[#allocation16 + $0x2a8] sm:$0xff]  }
 0x3da   :  { %12736 = vmatpush3.bf16.msra.mxu1 %v13874_v58  ;;  %v18879_v26 = vld [vmem:[#allocation26_spill] sm:$0xff] }
 0x3db   :  { %v940_v42 = vadd.f32 %v900_v47, %v696_v22  ;;  %13621 = vmatprep.mubr.msk.bf16.mxu0 %vm1099_vm0, %v1052_v50  ;;  %12737 = vmatprep.subr.bf16.mxu1 %v13875_v40  ;;  %v1026_v20 = vmax.f32 %v986_v6, 0.0  ;;  %v453_v50 = vmul.f32 %v16271_v52, %v16525_v46  ;;  %v901_v22 = vmul.f32 %v16278_v51, %v18879_v26  ;;  %v583_v47 = vpop.permute.xlu0 %582  ;;  %v13882_v46 = vld [vmem:[#allocation16 + $0x2b0] sm:$0xff]  }
 0x3dd   :  { %v987_v8 = vadd.f32 %v16852_v5, %v940_v42  ;;  %v369_v36 = vpop.permute.xlu1 %368 }
 0x3de   :  { %12738 = vmatpush3.bf16.msra.mxu1 %v13876_v38  ;;  %v13881_v38 = vld [vmem:[#allocation16 + $0x2f0] sm:$0xff]  }
 0x3df   :  { %v1027_v39 = vmax.f32 %v987_v8, 0.0  ;;  %12739 = vmatprep.subr.bf16.mxu1 %v13877_v35 }
 0x3e1   :  { %v1053_v54 = vpack.c.bf16 %v1027_v39, %v1026_v20 }
 0x3e2   :  { %12740 = vmatpush3.bf16.msra.mxu1 %v13878_v62  ;;  %v579_v58 = vpop.permute.xlu1 %578 }
 0x3e3   :  { %v657_v55 = vmul.f32 %v16266_v14, %v579_v58  ;;  %13622 = vmatmul.mubr.msk.bf16.gmra.mrb[24].mxu0 %vm1099_vm0, %v1053_v54  ;;  %12741 = vmatprep.subr.bf16.mxu1 %v13879_v49  ;;  %v13883_v58 = vld [vmem:[#allocation16 + $0x2f8] sm:$0xff]  }
 0x3e4   :  { %v13599_v40 = vpop.f32.mrb[0].mxu0 }
 0x3e5   :  { %v697_v39 = vadd.f32 %v657_v55, %v453_v50  ;;  %v1203_v6 = vadd.f32 %v13599_v40, %v16873_v23  ;;  %v1194_v42 = vpop.f32.mrb[1].mxu0  ;;  %v18880_v50 = vcombine.low %v16631_v0, %v16644_v19  ;;  %v13885_v19 = vld [vmem:[#allocation16 + $0x3c0] sm:$0xff]  }
 0x3e6   :  { %12742 = vmatpush3.bf16.msra.mxu1 %v13880_v15  ;;  %v1195_v35 = vadd.f32 %v16873_v23, %v1194_v42  ;;  %v13600_v8 = vpop.f32.mrb[2].mxu0  ;;  %v658_v42 = vmul.f32 %v16266_v14, %v583_v47 }
 0x3e7   :  { %v941_v62 = vadd.f32 %v901_v22, %v697_v39  ;;  %v1206_v20 = vadd.f32 %v13600_v8, %v16873_v23  ;;  %v1197_v54 = vpop.f32.mrb[3].mxu0  ;;  %12743 = vmatprep.subr.bf16.mxu1 %v13881_v38  ;;  %v374_v49 = vpop.permute.xlu1 %373  ;;  %v1355_v26 = vmax.f32 %v1203_v6, 0.0  ;;  %v16889_v15 = vrot.slane %v18880_v50, %v16600_v7  ;;  %v13884_v22 = vld [vmem:[#allocation16 + $0x2b8] sm:$0xff]  }
 0x3e8   :  { %v1198_v28 = vadd.f32 %v16873_v23, %v1197_v54  ;;  %v1353_v55 = vmax.f32 %v1195_v35, 0.0  ;;  %v18882_v38 = vcombine.high %v16637_v34, %v16647_v60  ;;  %v587_v6 = vpop.permute.xlu0 %586  ;;  %v454_v8 = vmul.f32 %v16271_v52, %v369_v36  ;;  %v18884_v35 = vld [vmem:[#allocation27_spill] sm:$0xff] }
 0x3e9   :  { %v1356_v43 = vmax.f32 %v1206_v20, 0.0  ;;  %18881 = vst [vmem:[#allocation26_spill] sm:$0xff] %v16889_v15  ;;  %v5457_v50 = vcombine.high %v16889_v15, %v16889_v15 }
 0x3ea   :  { %v1354_v40 = vmax.f32 %v1198_v28, 0.0  ;;  %12744 = vmatpush3.bf16.msra.mxu1 %v13882_v46  ;;  %v16895_v39 = vrot.slane %v18882_v38, %v16600_v7  ;;  %v904_v28 = vmul.f32 %v16278_v51, %v18884_v35  ;;  %v659_v46 = vmul.f32 %v16266_v14, %v587_v6  ;;  %v13887_v6 = vld [vmem:[#allocation16 + $0x3c8] sm:$0xff]  }
 0x3eb   :  { %v16899_v20 = vpack.c.bf16 %v1356_v43, %v1355_v26  ;;  %12745 = vmatprep.subr.bf16.mxu1 %v13883_v58  ;;  %v379_v0 = vpop.permute.xlu1 %378  ;;  %v455_v43 = vmul.f32 %v16271_v52, %v374_v49  ;;  %v13886_v58 = vld [vmem:[#allocation16 + $0x380] sm:$0xff]  }
 0x3ec   :  { %18883 = vst [vmem:[#allocation48_spill] sm:$0xff] %v16895_v39  ;;  %v16904_v54 = vpack.c.bf16 %v1354_v40, %v1353_v55  ;;  %v5460_v26 = vcombine.high %v16895_v39, %v16895_v39  ;;  %v698_v40 = vadd.f32 %v658_v42, %v454_v8  ;;  %v456_v57 = vmul.f32 %v16271_v52, %v379_v0  ;;  %v13888_v0 = vld [vmem:[#allocation16 + $0x388] sm:$0xff]  }
 0x3ed   :  { %v1844_v47 = vrot.slane %v16899_v20, 1  ;;  %v1938_v36 = vrot.slane %v16899_v20, 3  ;;  %v2032_v33 = vrot.slane %v16899_v20, 5  ;;  %v2126_v24 = vrot.slane %v16899_v20, 7 }
 0x3ee   :  { %12746 = vmatpush3.bf16.msra.mxu1 %v13884_v22  ;;  %v1656_v38 = vrot.slane %v16904_v54, 5  ;;  %v1750_v55 = vrot.slane %v16904_v54, 7  ;;  %v1449_v22 = vshrl.u32 %v16904_v54, 16  ;;  %v699_v63 = vadd.f32 %v659_v46, %v455_v43 }
 0x3ef   :  { %12775 = vmatprep.subr.bf16.mxu1 %v13885_v19  ;;  %v1872_v35 = vshrl.u32 %v1844_v47, 16  ;;  %v16916_v37 = vsel %vm1413_vm1, %v1844_v47, 0  ;;  %v1966_v11 = vshrl.u32 %v1938_v36, 16  ;;  %v16927_v47 = vadd.f32 %v16852_v5, %v941_v62 }
 0x3f0   :  { %v591_v49 = vpop.permute.xlu1 %590  ;;  %v1684_v42 = vshrl.u32 %v1656_v38, 16  ;;  %v16924_v8 = vsel %vm1413_vm1, %v1656_v38, 0  ;;  %v1778_v19 = vshrl.u32 %v1750_v55, 16  ;;  %v16930_v9 = vsel %vm1413_vm1, %v1750_v55, 0 }
 0x3f1   :  { %8318 = vmatmul.mubr.bf16.vlgmr.msra.gmra.mrb[56].mxu1 %v5457_v50  ;;  %v660_v44 = vmul.f32 %v16266_v14, %v591_v49  ;;  %v16933_v61 = vsel %vm1413_vm1, %v1872_v35, 0  ;;  %v13889_v49 = vld [vmem:[#allocation16 + $0x3d0] sm:$0xff]   ;;  %v16942_v62 = vsel %vm1413_vm1, %v1966_v11, 0  ;;  %v16945_v46 = vsel %vm1413_vm1, %v1449_v22, 0 }
 0x3f2   :  { %12776 = vmatpush3.bf16.msra.mxu1 %v13886_v58  ;;  %8397 = vmatprep.mubr.bf16.mxu1 %v5460_v26  ;;  %v16936_v38 = vsel %vm1413_vm1, %v1684_v42, 0  ;;  %v16939_v12 = vsel %vm1413_vm1, %v1778_v19, 0  ;;  %v16948_v43 = vsel %vm1413_vm1, %v1938_v36, 0  ;;  %v2060_v58 = vshrl.u32 %v2032_v33, 16  ;;  %v13890_v22 = vld [vmem:[#allocation16 + $0x390] sm:$0xff]  }
 0x3f3   :  { %v700_v50 = vadd.f32 %v660_v44, %v456_v57  ;;  %12777 = vmatprep.subr.bf16.mxu1 %v13887_v6  ;;  %v16952_v44 = vsel %vm1413_vm1, %v16904_v54, 0  ;;  %v1515_v55 = vrot.slane %v16904_v54, 2  ;;  %v16956_v6 = vsel %vm1413_vm1, %v2032_v33, 0 }
 0x3f4   :  { %v2154_v11 = vshrl.u32 %v2126_v24, 16  ;;  %v16960_v36 = vsel %vm1413_vm1, %v2060_v58, 0  ;;  %v1609_v42 = vrot.slane %v16904_v54, 4  ;;  %v16964_v19 = vsel %vm1413_vm1, %v2126_v24, 0 }
 0x3f5   :  { %v944_v57 = vadd.f32 %v904_v28, %v700_v50  ;;  %v827_v26 = vpop.permute.xlu1 %826  ;;  %v1028_v28 = vmax.f32 %v16927_v47, 0.0  ;;  %v13891_v50 = vld [vmem:[#allocation16 + $0x3d8] sm:$0xff]   ;;  %v1543_v53 = vshrl.u32 %v1515_v55, 16  ;;  %v1703_v1 = vrot.slane %v16904_v54, 6 }
 0x3f6   :  { %12778 = vmatpush3.bf16.msra.mxu1 %v13888_v0  ;;  %v902_v35 = vmul.f32 %v16278_v51, %v827_v26  ;;  %v16968_v33 = vsel %vm1413_vm1, %v2154_v11, 0  ;;  %v16971_v0 = vsel %vm1413_vm1, %v1515_v55, 0  ;;  %v1637_v3 = vshrl.u32 %v1609_v42, 16 }
 0x3f7   :  { %12779 = vmatprep.subr.bf16.mxu1 %v13889_v49  ;;  %v16974_v58 = vsel %vm1413_vm1, %v1609_v42, 0  ;;  %v991_v24 = vadd.f32 %v16852_v5, %v944_v57  ;;  %v16979_v47 = vsel %vm1413_vm1, %v1543_v53, 0  ;;  %v1825_v49 = vshrl.u32 %v16899_v20, 16 }
 0x3f8   :  { %v942_v26 = vadd.f32 %v902_v35, %v698_v40  ;;  %v16984_v11 = vsel %vm1413_vm1, %v16899_v20, 0  ;;  %v13892_v35 = vld [vmem:[#allocation16 + $0x398] sm:$0xff]   ;;  %v16989_v42 = vsel %vm1413_vm1, %v1637_v3, 0  ;;  %v1731_v57 = vshrl.u32 %v1703_v1, 16 }
 0x3f9   :  { %v831_v17 = vpop.permute.xlu1 %830  ;;  %v16992_v53 = vsel %vm1413_vm1, %v1703_v1, 0  ;;  %v16995_v31 = vsel %vm1413_vm1, %v1825_v49, 0  ;;  %v1891_v30 = vrot.slane %v16899_v20, 2  ;;  %v2079_v3 = vrot.slane %v16899_v20, 6 }
 0x3fa   :  { %v989_v40 = vadd.f32 %v16852_v5, %v942_v26  ;;  %12780 = vmatpush3.bf16.msra.mxu1 %v13890_v22  ;;  %v903_v55 = vmul.f32 %v16278_v51, %v831_v17  ;;  %v1985_v26 = vrot.slane %v16899_v20, 4  ;;  %v17000_v17 = vsel %vm1413_vm1, %v1731_v57, 0  ;;  %v13897_v20 = vld [vmem:[#allocation16 + $0x3e8] sm:$0xff]  }
 0x3fb   :  { %12781 = vmatprep.subr.bf16.mxu1 %v13891_v50  ;;  %v1919_v15 = vshrl.u32 %v1891_v30, 16  ;;  %v17004_v50 = vsel %vm1413_vm1, %v1891_v30, 0 }
 0x3fc   :  { %v1029_v22 = vmax.f32 %v989_v40, 0.0  ;;  %v943_v39 = vadd.f32 %v903_v55, %v699_v63  ;;  %v2013_v1 = vshrl.u32 %v1985_v26, 16  ;;  %v17007_v48 = vsel %vm1413_vm1, %v1985_v26, 0  ;;  %v13894_v40 = vld [vmem:[#allocation16 + $0x3a0] sm:$0xff]  }
 0x3fd   :  { %18885 = vst [vmem:[#allocation27_spill] sm:$0xff] %v17007_v48  ;;  %v2107_v63 = vshrl.u32 %v2079_v3, 16  ;;  %v17011_v55 = vsel %vm1413_vm1, %v2079_v3, 0  ;;  %v17014_v57 = vsel %vm1413_vm1, %v1919_v15, 0  ;;  %v1031_v26 = vmax.f32 %v991_v24, 0.0  ;;  %v13899_v3 = vld [vmem:[#allocation16 + $0x3f0] sm:$0xff]  }
 0x3fe   :  { %v1054_v49 = vpack.c.bf16 %v1029_v22, %v1028_v28  ;;  %v990_v4 = vadd.f32 %v16852_v5, %v943_v39  ;;  %12782 = vmatpush3.bf16.msra.mxu1 %v13892_v35  ;;  %v384_v29 = vpop.permute.xlu1 %383  ;;  %18886 = vst [vmem:[#allocation49_spill] sm:$0xff] %v17011_v55  ;;  %v17017_v30 = vsel %vm1413_vm1, %v2013_v1, 0  ;;  %v603_v28 = vpop.permute.xlu0 %602  ;;  %v13898_v22 = vld [vmem:[#allocation16 + $0x3a8] sm:$0xff]   ;;  %v459_v15 = vmul.f32 %v16271_v52, %v18889_v2  ;;  %v13904_v48 = vld [vmem:[#allocation16 + $0x3b8] sm:$0xff]  }
 0x3ff   :  { %12783 = vmatprep.subr.bf16.mxu1 %v13893_v13  ;;  %18887 = vst [vmem:[#allocation50_spill] sm:$0xff] %v17017_v30  ;;  %v17021_v39 = vsel %vm1413_vm1, %v2107_v63, 0  ;;  %v663_v1 = vmul.f32 %v16266_v14, %v603_v28  ;;  %v1468_v24 = vrot.slane %v16904_v54, 1  ;;  %v13900_v63 = vld [vmem:[#allocation16 + $0x3b0] sm:$0xff]  }
 0x400   :  { %v1030_v45 = vmax.f32 %v990_v4, 0.0  ;;  %13625 = vmatprep.mubr.msk.bf16.mxu0 %vm1099_vm0, %v1054_v49  ;;  %18888 = vst [vmem:[#allocation51_spill] sm:$0xff] %v17021_v39  ;;  %v1562_v49 = vrot.slane %v16904_v54, 3  ;;  %v18893_v54 = vcombine.high %v16724_v21, %v16785_v56 }
 0x402   :  { %v1055_v35 = vpack.c.bf16 %v1031_v26, %v1030_v45  ;;  %12784 = vmatpush3.bf16.msra.mxu1 %v13894_v40 }
 0x403   :  { %12785 = vmatprep.subr.bf16.mxu1 %v13897_v20  ;;  %v595_v13 = vpop.permute.xlu1 %594  ;;  %v18890_v20 = vld [vmem:[#allocation28_spill] sm:$0xff] }
 0x404   :  { %13626 = vmatmul.mubr.msk.bf16.gmra.mrb[28].mxu0 %vm1099_vm0, %v1055_v35  ;;  %v906_v26 = vmul.f32 %v16278_v51, %v18890_v20  ;;  %v18891_v35 = vcombine.low %v16637_v34, %v16647_v60  ;;  %v1496_v60 = vshrl.u32 %v1468_v24, 16  ;;  %v661_v16 = vmul.f32 %v16266_v14, %v595_v13 }
 0x405   :  { %v13603_v4 = vpop.f32.mrb[4].mxu0 }
 0x406   :  { %12786 = vmatpush3.bf16.msra.mxu1 %v13898_v22  ;;  %v1219_v45 = vadd.f32 %v13603_v4, %v16873_v23  ;;  %v1210_v40 = vpop.f32.mrb[5].mxu0  ;;  %v17037_v27 = vrot.slane %v18891_v35, %v16600_v7  ;;  %v17043_v22 = vrot.slane %v18893_v54, %v16600_v7  ;;  %v18895_v4 = vld [vmem:[#allocation25_spill] sm:$0xff]  ;;  %v1590_v35 = vshrl.u32 %v1562_v49, 16 }
 0x407   :  { %v1211_v41 = vadd.f32 %v16873_v23, %v1210_v40  ;;  %v13604_v2 = vpop.f32.mrb[6].mxu0  ;;  %12787 = vmatprep.subr.bf16.mxu1 %v13899_v3  ;;  %v599_v28 = vpop.permute.xlu1 %598  ;;  %v458_v20 = vmul.f32 %v16271_v52, %v18895_v4  ;;  %v17047_v40 = vadd.f32 %v663_v1, %v459_v15 }
 0x408   :  { %18892 = vst [vmem:[#allocation29_spill] sm:$0xff] %v17037_v27  ;;  %18894 = vst [vmem:[#allocation28_spill] sm:$0xff] %v17043_v22  ;;  %v1222_v3 = vadd.f32 %v13604_v2, %v16873_v23  ;;  %v662_v59 = vmul.f32 %v16266_v14, %v599_v28  ;;  %v1213_v32 = vpop.f32.mrb[7].mxu0  ;;  %v1359_v55 = vmax.f32 %v1219_v45, 0.0  ;;  %v5458_v1 = vcombine.high %v17037_v27, %v17037_v27  ;;  %v13905_v2 = vld [vmem:[#allocation16 + $0x4c0] sm:$0xff]  }
 0x409   :  { %v1214_v34 = vadd.f32 %v16873_v23, %v1213_v32  ;;  %v1357_v4 = vmax.f32 %v1211_v41, 0.0  ;;  %v5527_v32 = vcombine.high %v17043_v22, %v17043_v22  ;;  %v457_v28 = vmul.f32 %v16271_v52, %v384_v29 }
 0x40a   :  { %v1360_v54 = vmax.f32 %v1222_v3, 0.0  ;;  %v702_v39 = vadd.f32 %v662_v59, %v458_v20  ;;  %12788 = vmatpush3.bf16.msra.mxu1 %v13900_v63  ;;  %v1469_v59 = vsel %vm1413_vm1, %v1468_v24, 0  ;;  %v1498_v41 = vsel %vm1413_vm1, %v1496_v60, 0  ;;  %v13907_v24 = vld [vmem:[#allocation16 + $0x4c8] sm:$0xff]  }
 0x40b   :  { %v1358_v15 = vmax.f32 %v1214_v34, 0.0  ;;  %12789 = vmatprep.subr.bf16.mxu1 %v13902_v18  ;;  %v1592_v18 = vsel %vm1413_vm1, %v1590_v35, 0  ;;  %v1563_v20 = vsel %vm1413_vm1, %v1562_v49, 0  ;;  %v701_v3 = vadd.f32 %v661_v16, %v457_v28  ;;  %v13906_v34 = vld [vmem:[#allocation16 + $0x480] sm:$0xff]  }
 0x40c   :  { %v17058_v30 = vpack.c.bf16 %v1360_v54, %v1359_v55  ;;  %v946_v13 = vadd.f32 %v906_v26, %v702_v39  ;;  %v399_v45 = vpop.permute.xlu1 %398 }
 0x40d   :  { %v17061_v63 = vpack.c.bf16 %v1358_v15, %v1357_v4 }
 0x40e   :  { %12790 = vmatpush3.bf16.msra.mxu1 %v13904_v48  ;;  %v1658_v22 = vrot.slane %v17058_v30, 1  ;;  %v1752_v29 = vrot.slane %v17058_v30, 3  ;;  %v1846_v55 = vrot.slane %v17058_v30, 5  ;;  %v17070_v39 = vadd.f32 %v16852_v5, %v946_v13 }
 0x40f   :  { %12819 = vmatprep.subr.bf16.mxu1 %v13905_v2  ;;  %v1470_v26 = vrot.slane %v17061_v63, 5  ;;  %v1564_v60 = vrot.slane %v17061_v63, 7  ;;  %v1940_v49 = vrot.slane %v17058_v30, 7  ;;  %v1415_v54 = vrot.slane %v17061_v63, 4 }
 0x410   :  { %v17077_v16 = vsel %vm1419_vm2, %v1658_v22, %v16936_v38  ;;  %v1660_v48 = vshll.u32 %v1658_v22, 16  ;;  %v17081_v35 = vsel %vm1419_vm2, %v1752_v29, %v16939_v12  ;;  %v17091_v38 = vmul.f32 %v16271_v52, %v399_v45  ;;  %v13908_v22 = vld [vmem:[#allocation16 + $0x488] sm:$0xff]  }
 0x411   :  { %8398 = vmatmul.mubr.bf16.vlgmr.msra.gmra.mrb[60].mxu1 %v5458_v1  ;;  %v607_v4 = vpop.permute.xlu1 %606  ;;  %v17085_v15 = vsel %vm1419_vm2, %v1470_v26, %v1498_v41  ;;  %v1472_v2 = vshll.u32 %v1470_v26, 16  ;;  %v17088_v28 = vsel %vm1419_vm2, %v1564_v60, %v1592_v18  ;;  %v1566_v13 = vshll.u32 %v1564_v60, 16  ;;  %v13911_v26 = vld [vmem:[#allocation16 + $0x4d0] sm:$0xff]  }
 0x412   :  { %12820 = vmatpush3.bf16.msra.mxu1 %v13906_v34  ;;  %8477 = vmatprep.mubr.bf16.mxu1 %v5527_v32  ;;  %v17095_v12 = vsel %vm1419_vm2, %v1660_v48, %v16924_v8  ;;  %v1754_v1 = vshll.u32 %v1752_v29, 16  ;;  %v17099_v41 = vsel %vm1419_vm2, %v1846_v55, %v16933_v61  ;;  %v1848_v34 = vshll.u32 %v1846_v55, 16 }
 0x413   :  { %12821 = vmatprep.subr.bf16.mxu1 %v13907_v24  ;;  %v17102_v18 = vsel %vm1419_vm2, %v1472_v2, %v1469_v59  ;;  %v17105_v45 = vsel %vm1419_vm2, %v1566_v13, %v1563_v20  ;;  %v17109_v32 = vsel %vm1419_vm2, %v1940_v49, %v16942_v62  ;;  %v1033_v8 = vmax.f32 %v17070_v39, 0.0  ;;  %v13912_v39 = vld [vmem:[#allocation16 + $0x490] sm:$0xff]  }
 0x414   :  { %18896 = vst [vmem:[#allocation25_spill] sm:$0xff] %v17109_v32  ;;  %v17114_v29 = vsel %vm1419_vm2, %v1754_v1, %v16930_v9  ;;  %v17118_v61 = vsel %vm1419_vm2, %v1415_v54, %v16945_v46  ;;  %v1942_v59 = vshll.u32 %v1940_v49, 16  ;;  %v17122_v20 = vsel %vm1419_vm2, %v1848_v34, %v16916_v37 }
 0x415   :  { %v1417_v55 = vshll.u32 %v1415_v54, 16  ;;  %v1517_v24 = vrot.slane %v17061_v63, 6  ;;  %v17128_v62 = vsel %vm1419_vm2, %v17058_v30, %v16989_v42  ;;  %v2220_v60 = vrot.slane %v17061_v63, 1  ;;  %v13913_v54 = vld [vmem:[#allocation16 + $0x4d8] sm:$0xff]  }
 0x416   :  { %12822 = vmatpush3.bf16.msra.mxu1 %v13908_v22  ;;  %v839_v9 = vpop.permute.xlu1 %838  ;;  %v17132_v46 = vsel %vm1419_vm2, %v1942_v59, %v16948_v43  ;;  %v1612_v37 = vshll.u32 %v17058_v30, 16  ;;  %v1705_v49 = vrot.slane %v17058_v30, 2 }
 0x417   :  { %v905_v48 = vmul.f32 %v16278_v51, %v839_v9  ;;  %12823 = vmatprep.subr.bf16.mxu1 %v13911_v26  ;;  %v17140_v42 = vsel %vm1419_vm2, %v1417_v55, %v16952_v44  ;;  %v17144_v2 = vsel %vm1419_vm2, %v1517_v24, %v16979_v47  ;;  %v1519_v43 = vshll.u32 %v1517_v24, 16  ;;  %v13914_v24 = vld [vmem:[#allocation16 + $0x498] sm:$0xff]  }
 0x418   :  { %v2248_v13 = vshrl.u32 %v2220_v60, 16  ;;  %v17148_v22 = vsel %vm1419_vm2, %v1612_v37, %v16974_v58  ;;  %v17152_v1 = vsel %vm1419_vm2, %v1705_v49, %v17000_v17  ;;  %v17155_v26 = vsel %vm1413_vm1, %v2220_v60, 0  ;;  %v13916_v37 = vld [vmem:[#allocation16 + $0x4e0] sm:$0xff]  }
 0x419   :  { %v945_v34 = vadd.f32 %v905_v48, %v701_v3  ;;  %v17159_v44 = vsel %vm1419_vm2, %v1519_v43, %v16971_v0  ;;  %v2314_v47 = vrot.slane %v17061_v63, 3  ;;  %v1707_v59 = vshll.u32 %v1705_v49, 16 }
 0x41a   :  { %v664_v55 = vmul.f32 %v16266_v14, %v607_v4  ;;  %12824 = vmatpush3.bf16.msra.mxu1 %v13912_v39  ;;  %v847_v58 = vpop.permute.xlu1 %846  ;;  %v17164_v9 = vsel %vm1413_vm1, %v2248_v13, 0  ;;  %v1798_v17 = vrot.slane %v17058_v30, 4  ;;  %v1893_v60 = vrot.slane %v17058_v30, 6  ;;  %v17185_v13 = vpop.permute.xlu0 %614 }
 0x41b   :  { %v992_v3 = vadd.f32 %v16852_v5, %v945_v34  ;;  %v907_v0 = vmul.f32 %v16278_v51, %v847_v58  ;;  %12825 = vmatprep.subr.bf16.mxu1 %v13913_v54  ;;  %v2342_v48 = vshrl.u32 %v2314_v47, 16  ;;  %v17172_v4 = vsel %vm1419_vm2, %v1707_v59, %v16992_v53  ;;  %v13918_v58 = vld [vmem:[#allocation16 + $0x4a0] sm:$0xff]  }
 0x41c   :  { %v17176_v39 = vsel %vm1419_vm2, %v1798_v17, %v16995_v31  ;;  %v17179_v49 = vsel %vm1413_vm1, %v2314_v47, 0  ;;  %v1800_v43 = vshll.u32 %v1798_v17, 16  ;;  %v17183_v30 = vsel %vm1419_vm2, %v1893_v60, %v17014_v57 }
 0x41d   :  { %18897 = vst [vmem:[#allocation52_spill] sm:$0xff] %v17176_v39  ;;  %18898 = vst [vmem:[#allocation53_spill] sm:$0xff] %v17183_v30  ;;  %v1032_v54 = vmax.f32 %v992_v3, 0.0  ;;  %v947_v34 = vadd.f32 %v907_v0, %v17047_v40  ;;  %v17189_v53 = vsel %vm1413_vm1, %v2342_v48, 0  ;;  %v1895_v59 = vshll.u32 %v1893_v60, 16 }
 0x41e   :  { %12826 = vmatpush3.bf16.msra.mxu1 %v13914_v24  ;;  %v851_v31 = vpop.permute.xlu1 %850  ;;  %v17193_v47 = vsel %vm1419_vm2, %v1800_v43, %v16984_v11  ;;  %v2201_v17 = vshrl.u32 %v17061_v63, 16  ;;  %v17198_v57 = vsel %vm1413_vm1, %v17061_v63, 0  ;;  %v2267_v3 = vrot.slane %v17061_v63, 2  ;;  %v13919_v24 = vld [vmem:[#allocation16 + $0x4e8] sm:$0xff]  }
 0x41f   :  { %18899 = vst [vmem:[#allocation54_spill] sm:$0xff] %v17193_v47  ;;  %v704_v40 = vadd.f32 %v664_v55, %v17091_v38  ;;  %v1056_v0 = vpack.c.bf16 %v1033_v8, %v1032_v54  ;;  %v908_v60 = vmul.f32 %v16278_v51, %v851_v31  ;;  %12827 = vmatprep.subr.bf16.mxu1 %v13916_v37  ;;  %v13920_v38 = vld [vmem:[#allocation16 + $0x4a8] sm:$0xff]   ;;  %v619_v55 = vpop.permute.xlu0 %618  ;;  %v13921_v54 = vld [vmem:[#allocation16 + $0x4f0] sm:$0xff]  }
 0x420   :  { %v17205_v48 = vsel %vm1419_vm2, %v1895_v59, %v17004_v50  ;;  %v17208_v11 = vsel %vm1413_vm1, %v2201_v17, 0  ;;  %v2295_v43 = vshrl.u32 %v2267_v3, 16  ;;  %v17211_v27 = vsel %vm1413_vm1, %v2267_v3, 0  ;;  %v13922_v17 = vld [vmem:[#allocation16 + $0x4b0] sm:$0xff]  }
 0x421   :  { %18900 = vst [vmem:[#allocation55_spill] sm:$0xff] %v17205_v48  ;;  %v994_v63 = vadd.f32 %v16852_v5, %v947_v34  ;;  %v948_v30 = vadd.f32 %v908_v60, %v704_v40  ;;  %13629 = vmatprep.mubr.msk.bf16.mxu0 %vm1099_vm0, %v1056_v0  ;;  %v13925_v40 = vld [vmem:[#allocation16 + $0x4f8] sm:$0xff]  }
 0x422   :  { %12828 = vmatpush3.bf16.msra.mxu1 %v13918_v58  ;;  %v17216_v8 = vsel %vm1413_vm1, %v2295_v43, 0  ;;  %v18901_v58 = vld [vmem:[#allocation30_spill] sm:$0xff] }
 0x423   :  { %v995_v50 = vadd.f32 %v16852_v5, %v948_v30  ;;  %12829 = vmatprep.subr.bf16.mxu1 %v13919_v24  ;;  %v409_v37 = vpop.permute.xlu1 %408  ;;  %v1034_v59 = vmax.f32 %v994_v63, 0.0  ;;  %v855_v34 = vpop.permute.xlu0 %854  ;;  %v461_v60 = vmul.f32 %v16271_v52, %v18901_v58  ;;  %v13926_v63 = vld [vmem:[#allocation16 + $0x4b8] sm:$0xff]   ;;  %v13927_v58 = vld [vmem:[#allocation16 + $0x5c0] sm:$0xff]  }
 0x424   :  { %v909_v30 = vmul.f32 %v16278_v51, %v855_v34 }
 0x425   :  { %v1035_v31 = vmax.f32 %v995_v50, 0.0 }
 0x426   :  { %12830 = vmatpush3.bf16.msra.mxu1 %v13920_v38 }
 0x427   :  { %v1057_v3 = vpack.c.bf16 %v1035_v31, %v1034_v59  ;;  %12831 = vmatprep.subr.bf16.mxu1 %v13921_v54  ;;  %v18902_v54 = vcombine.low %v16724_v21, %v16785_v56  ;;  %v13928_v56 = vld [vmem:[#allocation16 + $0x580] sm:$0xff]  }
 0x428   :  { %v611_v0 = vpop.permute.xlu1 %610 }
 0x429   :  { %v665_v43 = vmul.f32 %v16266_v14, %v611_v0  ;;  %13630 = vmatmul.mubr.msk.bf16.gmra.mrb[32].mxu0 %vm1099_vm0, %v1057_v3  ;;  %v17229_v31 = vrot.slane %v18902_v54, %v16600_v7  ;;  %v867_v54 = vpop.permute.xlu0 %866 }
 0x42a   :  { %12832 = vmatpush3.bf16.msra.mxu1 %v13922_v17  ;;  %v13607_v24 = vpop.f32.mrb[8].mxu0  ;;  %v18904_v17 = vcombine.high %v16735_v25, %v16788_v10 }
 0x42b   :  { %v705_v50 = vadd.f32 %v665_v43, %v461_v60  ;;  %v1235_v38 = vadd.f32 %v13607_v24, %v16873_v23  ;;  %v1226_v59 = vpop.f32.mrb[9].mxu0  ;;  %12833 = vmatprep.subr.bf16.mxu1 %v13925_v40  ;;  %18903 = vst [vmem:[#allocation30_spill] sm:$0xff] %v17229_v31  ;;  %v462_v60 = vmul.f32 %v16271_v52, %v409_v37  ;;  %v13930_v37 = vld [vmem:[#allocation16 + $0x5c8] sm:$0xff]  }
 0x42c   :  { %v1227_v0 = vadd.f32 %v16873_v23, %v1226_v59  ;;  %v13608_v3 = vpop.f32.mrb[10].mxu0  ;;  %v17236_v34 = vrot.slane %v18904_v17, %v16600_v7  ;;  %v666_v59 = vmul.f32 %v16266_v14, %v17185_v13  ;;  %v5525_v17 = vcombine.high %v17229_v31, %v17229_v31  ;;  %v13990_v31 = vld [vmem:[#allocation16 + $0x790] sm:$0xff]  }
 0x42d   :  { %v1238_v40 = vadd.f32 %v13608_v3, %v16873_v23  ;;  %v1229_v43 = vpop.f32.mrb[11].mxu0  ;;  %v414_v24 = vpop.permute.xlu1 %413  ;;  %v949_v39 = vadd.f32 %v909_v30, %v705_v50  ;;  %v1363_v48 = vmax.f32 %v1235_v38, 0.0  ;;  %v17253_v13 = vmul.f32 %v16278_v51, %v867_v54 }
 0x42e   :  { %18905 = vst [vmem:[#allocation56_spill] sm:$0xff] %v17236_v34  ;;  %12834 = vmatpush3.bf16.msra.mxu1 %v13926_v63  ;;  %v1230_v21 = vadd.f32 %v16873_v23, %v1229_v43  ;;  %v1361_v32 = vmax.f32 %v1227_v0, 0.0  ;;  %v5528_v30 = vcombine.high %v17236_v34, %v17236_v34  ;;  %v667_v63 = vmul.f32 %v16266_v14, %v619_v55 }
 0x42f   :  { %v1364_v47 = vmax.f32 %v1238_v40, 0.0  ;;  %12863 = vmatprep.subr.bf16.mxu1 %v13927_v58  ;;  %v17248_v50 = vadd.f32 %v666_v59, %v462_v60  ;;  %v17256_v38 = vadd.f32 %v16852_v5, %v949_v39  ;;  %v463_v0 = vmul.f32 %v16271_v52, %v414_v24 }
 0x430   :  { %v1362_v3 = vmax.f32 %v1230_v21, 0.0  ;;  %v13932_v21 = vld [vmem:[#allocation16 + $0x588] sm:$0xff]  }
 0x431   :  { %v17250_v43 = vpack.c.bf16 %v1364_v47, %v1363_v48  ;;  %8478 = vmatmul.mubr.bf16.vlgmr.msra.gmra.mrb[64].mxu1 %v5525_v17  ;;  %v13933_v47 = vld [vmem:[#allocation16 + $0x5d0] sm:$0xff]  }
 0x432   :  { %v17258_v58 = vpack.c.bf16 %v1362_v3, %v1361_v32  ;;  %12864 = vmatpush3.bf16.msra.mxu1 %v13928_v56  ;;  %8557 = vmatprep.mubr.bf16.mxu1 %v5528_v30  ;;  %v419_v40 = vpop.permute.xlu1 %418 }
 0x433   :  { %v464_v55 = vmul.f32 %v16271_v52, %v419_v40  ;;  %12865 = vmatprep.subr.bf16.mxu1 %v13930_v37  ;;  %v1501_v48 = vshrl.u32 %v17250_v43, 16  ;;  %v17266_v60 = vsel %vm1422_vm3, %v17250_v43, %v17102_v18  ;;  %v1569_v32 = vrot.slane %v17250_v43, 2  ;;  %v13934_v37 = vld [vmem:[#allocation16 + $0x590] sm:$0xff]  }
 0x434   :  { %v1663_v39 = vrot.slane %v17250_v43, 4  ;;  %v1757_v24 = vrot.slane %v17250_v43, 6  ;;  %v1421_v56 = vrot.slane %v17250_v43, 7  ;;  %v2034_v54 = vrot.slane %v17258_v58, 1 }
 0x435   :  { %v17275_v52 = vsel %vm1422_vm3, %v1501_v48, %v17085_v15  ;;  %v1595_v59 = vshrl.u32 %v1569_v32, 16  ;;  %v17279_v17 = vsel %vm1422_vm3, %v1569_v32, %v17105_v45  ;;  %v1522_v18 = vrot.slane %v17250_v43, 1  ;;  %v13935_v48 = vld [vmem:[#allocation16 + $0x5d8] sm:$0xff]  }
 0x436   :  { %12866 = vmatpush3.bf16.msra.mxu1 %v13932_v21  ;;  %v1689_v3 = vshrl.u32 %v1663_v39, 16  ;;  %v17284_v30 = vsel %vm1422_vm3, %v1663_v39, %v17095_v12  ;;  %v1783_v40 = vshrl.u32 %v1757_v24, 16  ;;  %v17288_v34 = vsel %vm1422_vm3, %v1757_v24, %v17114_v29 }
 0x437   :  { %v623_v15 = vpop.permute.xlu1 %622  ;;  %12867 = vmatprep.subr.bf16.mxu1 %v13933_v47  ;;  %v17292_v45 = vsel %vm1422_vm3, %v1595_v59, %v17088_v28  ;;  %v1454_v32 = vshrl.u32 %v1421_v56, 16  ;;  %v17296_v21 = vsel %vm1419_vm2, %v2034_v54, %v16960_v36  ;;  %v17300_v12 = vsel %vm1422_vm3, %v1421_v56, %v17140_v42 }
 0x438   :  { %v668_v39 = vmul.f32 %v16266_v14, %v623_v15  ;;  %v17305_v29 = vsel %vm1422_vm3, %v1689_v3, %v17077_v16  ;;  %v17309_v47 = vsel %vm1422_vm3, %v1783_v40, %v17081_v35  ;;  %v1548_v28 = vshrl.u32 %v1522_v18, 16  ;;  %v13936_v16 = vld [vmem:[#allocation16 + $0x598] sm:$0xff]  }
 0x439   :  { %v17313_v24 = vsel %vm1422_vm3, %v1454_v32, %v17118_v61  ;;  %v2036_v36 = vshll.u32 %v2034_v54, 16  ;;  %v2128_v59 = vrot.slane %v17258_v58, 3  ;;  %v17318_v42 = vsel %vm1422_vm3, %v1522_v18, %v17159_v44  ;;  %v13939_v61 = vld [vmem:[#allocation16 + $0x5e0] sm:$0xff]  }
 0x43a   :  { %v708_v14 = vadd.f32 %v668_v39, %v464_v55  ;;  %12868 = vmatpush3.bf16.msra.mxu1 %v13934_v37  ;;  %v17322_v56 = vsel %vm1422_vm3, %v1548_v28, %v17144_v2  ;;  %v1615_v35 = vrot.slane %v17250_v43, 3  ;;  %v2222_v3 = vrot.slane %v17258_v58, 5 }
 0x43b   :  { %12869 = vmatprep.subr.bf16.mxu1 %v13935_v48  ;;  %v17328_v54 = vsel %vm1419_vm2, %v2036_v36, %v16956_v6  ;;  %v17332_v44 = vsel %vm1419_vm2, %v2128_v59, %v16968_v33  ;;  %v2130_v55 = vshll.u32 %v2128_v59, 16  ;;  %v1710_v18 = vrot.slane %v17250_v43, 5  ;;  %v13940_v43 = vld [vmem:[#allocation16 + $0x5a0] sm:$0xff]  }
 0x43c   :  { %v707_v37 = vadd.f32 %v667_v63, %v463_v0  ;;  %v859_v2 = vpop.permute.xlu1 %858  ;;  %v1642_v40 = vshrl.u32 %v1615_v35, 16  ;;  %v17337_v15 = vsel %vm1419_vm2, %v2222_v3, %v17164_v9  ;;  %v17341_v48 = vsel %vm1422_vm3, %v1615_v35, %v17148_v22 }
 0x43d   :  { %v910_v6 = vmul.f32 %v16278_v51, %v859_v2  ;;  %v17346_v33 = vsel %vm1419_vm2, %v2130_v55, %v16964_v19  ;;  %v1736_v32 = vshrl.u32 %v1710_v18, 16  ;;  %v2224_v39 = vshll.u32 %v2222_v3, 16  ;;  %v13941_v19 = vld [vmem:[#allocation16 + $0x5e8] sm:$0xff]  }
 0x43e   :  { %v952_v63 = vadd.f32 %v17253_v13, %v708_v14  ;;  %12870 = vmatpush3.bf16.msra.mxu1 %v13936_v16  ;;  %v17351_v9 = vsel %vm1422_vm3, %v1642_v40, %v17128_v62  ;;  %v2316_v0 = vrot.slane %v17258_v58, 7  ;;  %v17356_v22 = vsel %vm1422_vm3, %v1710_v18, %v17172_v4  ;;  %v18906_v62 = vld [vmem:[#allocation50_spill] sm:$0xff] }
 0x43f   :  { %v950_v28 = vadd.f32 %v910_v6, %v17248_v50  ;;  %12871 = vmatprep.subr.bf16.mxu1 %v13939_v61  ;;  %v17361_v36 = vsel %vm1422_vm3, %v1736_v32, %v17152_v1  ;;  %v17365_v13 = vsel %vm1419_vm2, %v2224_v39, %v17155_v26  ;;  %v17370_v59 = vsel %vm1419_vm2, %v17258_v58, %v18906_v62  ;;  %v13944_v32 = vld [vmem:[#allocation16 + $0x5f0] sm:$0xff]  }
 0x440   :  { %v1036_v4 = vmax.f32 %v17256_v38, 0.0  ;;  %v863_v14 = vpop.permute.xlu1 %862  ;;  %v17375_v50 = vsel %vm1419_vm2, %v2316_v0, %v17189_v53  ;;  %v2318_v16 = vshll.u32 %v2316_v0, 16  ;;  %v1988_v1 = vshll.u32 %v17258_v58, 16  ;;  %v13942_v38 = vld [vmem:[#allocation16 + $0x5a8] sm:$0xff]   ;;  %v18907_v53 = vld [vmem:[#allocation27_spill] sm:$0xff] }
 0x441   :  { %v997_v35 = vadd.f32 %v16852_v5, %v950_v28  ;;  %v911_v26 = vmul.f32 %v16278_v51, %v863_v14  ;;  %v2081_v3 = vrot.slane %v17258_v58, 2  ;;  %v2174_v61 = vrot.slane %v17258_v58, 4  ;;  %v18908_v39 = vld [vmem:[#allocation51_spill] sm:$0xff] }
 0x442   :  { %v999_v55 = vadd.f32 %v16852_v5, %v952_v63  ;;  %12872 = vmatpush3.bf16.msra.mxu1 %v13940_v43  ;;  %v17385_v18 = vsel %vm1419_vm2, %v2318_v16, %v17179_v49  ;;  %v17389_v2 = vsel %vm1419_vm2, %v1988_v1, %v18907_v53  ;;  %v2269_v40 = vrot.slane %v17258_v58, 6  ;;  %v13946_v16 = vld [vmem:[#allocation16 + $0x5b0] sm:$0xff]  }
 0x443   :  { %v1037_v6 = vmax.f32 %v997_v35, 0.0  ;;  %v951_v51 = vadd.f32 %v911_v26, %v707_v37  ;;  %12873 = vmatprep.subr.bf16.mxu1 %v13941_v19  ;;  %v17394_v0 = vsel %vm1419_vm2, %v2081_v3, %v18908_v39  ;;  %v2083_v63 = vshll.u32 %v2081_v3, 16  ;;  %v18909_v19 = vld [vmem:[#allocation49_spill] sm:$0xff]  ;;  %v13948_v26 = vld [vmem:[#allocation16 + $0x5b8] sm:$0xff]  }
 0x444   :  { %v17398_v43 = vsel %vm1419_vm2, %v2174_v61, %v17208_v11  ;;  %v2176_v49 = vshll.u32 %v2174_v61, 16  ;;  %v17402_v28 = vsel %vm1419_vm2, %v2269_v40, %v17216_v8  ;;  %v2271_v62 = vshll.u32 %v2269_v40, 16  ;;  %v18913_v40 = vld [vmem:[#allocation38_spill] sm:$0xff] }
 0x445   :  { %v1058_v58 = vpack.c.bf16 %v1037_v6, %v1036_v4  ;;  %v998_v37 = vadd.f32 %v16852_v5, %v951_v51  ;;  %v17407_v14 = vsel %vm1419_vm2, %v2083_v63, %v18909_v19  ;;  %v1039_v8 = vmax.f32 %v999_v55, 0.0  ;;  %v13947_v5 = vld [vmem:[#allocation16 + $0x5f8] sm:$0xff]   ;;  %v18914_v6 = vld [vmem:[#allocation45_spill] sm:$0xff] }
 0x446   :  { %12874 = vmatpush3.bf16.msra.mxu1 %v13942_v38  ;;  %v17411_v1 = vsel %vm1419_vm2, %v2176_v49, %v17198_v57  ;;  %v17415_v11 = vsel %vm1419_vm2, %v2271_v62, %v17211_v27  ;;  %v18910_v57 = vcombine.low %v16735_v25, %v16788_v10  ;;  %v13949_v27 = vld [vmem:[#allocation16 + $0x6c0] sm:$0xff]   ;;  %v18915_v51 = vcombine.high %v18913_v40, %v18914_v6 }
 0x447   :  { %v1038_v35 = vmax.f32 %v998_v37, 0.0  ;;  %13633 = vmatprep.mubr.msk.bf16.mxu0 %vm1099_vm0, %v1058_v58  ;;  %12875 = vmatprep.subr.bf16.mxu1 %v13944_v32  ;;  %v18912_v38 = vld [vmem:[#allocation32_spill] sm:$0xff]  ;;  %v13953_v37 = vld [vmem:[#allocation16 + $0x6c8] sm:$0xff]  }
 0x448   :  { %v17423_v61 = vrot.slane %v18910_v57, %v16600_v7  ;;  %v17431_v32 = vrot.slane %v18915_v51, %v16600_v7  ;;  %v13950_v49 = vld [vmem:[#allocation16 + $0x680] sm:$0xff]  }
 0x449   :  { %v1059_v4 = vpack.c.bf16 %v1039_v8, %v1038_v35  ;;  %v13952_v35 = vld [vmem:[#allocation16 + $0x100] sm:$0xff]  }
 0x44a   :  { %12876 = vmatpush3.bf16.msra.mxu1 %v13946_v16  ;;  %18911 = vst [vmem:[#allocation50_spill] sm:$0xff] %v17423_v61  ;;  %18916 = vst [vmem:[#allocation27_spill] sm:$0xff] %v17431_v32  ;;  %v5526_v58 = vcombine.high %v17423_v61, %v17423_v61  ;;  %v5595_v8 = vcombine.high %v17431_v32, %v17431_v32 }
 0x44b   :  { %13634 = vmatmul.mubr.msk.bf16.gmra.mrb[36].mxu0 %vm1099_vm0, %v1059_v4  ;;  %v13611_v3 = vpop.f32.mrb[12].mxu0  ;;  %12877 = vmatprep.subr.bf16.mxu1 %v13947_v5 }
 0x44c   :  { %v1251_v55 = vadd.f32 %v13611_v3, %v16873_v23  ;;  %8117 = vmatprep.mubr.bf16.mxu0 %v18912_v38  ;;  %v1242_v53 = vpop.f32.mrb[13].mxu0  ;;  %v18917_v38 = vld [vmem:[#allocation31_spill] sm:$0xff] }
 0x44d   :  { %v1243_v39 = vadd.f32 %v16873_v23, %v1242_v53  ;;  %v13612_v63 = vpop.f32.mrb[14].mxu0  ;;  %v13956_v53 = vld [vmem:[#allocation16 + $0x108] sm:$0xff]  }
 0x44e   :  { %12878 = vmatpush3.bf16.msra.mxu1 %v13948_v26  ;;  %v1254_v25 = vadd.f32 %v13612_v63, %v16873_v23  ;;  %v1245_v10 = vpop.f32.mrb[15].mxu0  ;;  %v1367_v19 = vmax.f32 %v1251_v55, 0.0  ;;  %v13955_v26 = vld [vmem:[#allocation16 + $0x148] sm:$0xff]  }
 0x44f   :  { %v1246_v62 = vadd.f32 %v16873_v23, %v1245_v10  ;;  %12907 = vmatprep.subr.bf16.mxu1 %v13949_v27  ;;  %v1365_v5 = vmax.f32 %v1243_v39, 0.0  ;;  %v13954_v23 = vld [vmem:[#allocation16 + $0x688] sm:$0xff]   ;;  %v13957_v27 = vld [vmem:[#allocation16 + $0x6d0] sm:$0xff]  }
 0x450   :  { %v1368_v16 = vmax.f32 %v1254_v25, 0.0  ;;  %v18918_v55 = vld [vmem:[#allocation33_spill] sm:$0xff]  ;;  %v13959_v10 = vld [vmem:[#allocation16 + $0x150] sm:$0xff]  }
 0x451   :  { %v1366_v4 = vmax.f32 %v1246_v62, 0.0  ;;  %8558 = vmatmul.mubr.bf16.vlgmr.msra.gmra.mrb[68].mxu1 %v5526_v58 }
 0x452   :  { %v17440_v3 = vpack.c.bf16 %v1368_v16, %v1367_v19  ;;  %12908 = vmatpush3.bf16.msra.mxu1 %v13950_v49  ;;  %8637 = vmatprep.mubr.bf16.mxu1 %v5595_v8  ;;  %v13958_v19 = vld [vmem:[#allocation16 + $0x690] sm:$0xff]  }
 0x453   :  { %v17442_v57 = vpack.c.bf16 %v1366_v4, %v1365_v5  ;;  %8118 = vmatmul.mubr.bf16.vlgmr.msra.gmra.mrb[40].mxu0 %v18917_v38  ;;  %12909 = vmatprep.subr.bf16.mxu1 %v13953_v37  ;;  %v13961_v4 = vld [vmem:[#allocation16 + $0x6d8] sm:$0xff]   ;;  %v13960_v38 = vld [vmem:[#allocation16 + $0x110] sm:$0xff]  }
 0x454   :  { %12666 = vmatpush3.bf16.msra.mxu0 %v13952_v35  ;;  %8197 = vmatprep.mubr.bf16.mxu0 %v18918_v55  ;;  %v1476_v51 = vrot.slane %v17440_v3, 4  ;;  %v1571_v39 = vrot.slane %v17440_v3, 6  ;;  %v1424_v63 = vrot.slane %v17440_v3, 3  ;;  %v1524_v25 = vrot.slane %v17440_v3, 5 }
 0x455   :  { %12667 = vmatprep.subr.bf16.mxu0 %v13955_v26  ;;  %v1877_v49 = vshrl.u32 %v17442_v57, 16  ;;  %v17454_v62 = vsel %vm1422_vm3, %v17442_v57, %v17122_v20  ;;  %v1945_v58 = vrot.slane %v17442_v57, 2  ;;  %v2039_v37 = vrot.slane %v17442_v57, 4 }
 0x456   :  { %12910 = vmatpush3.bf16.msra.mxu1 %v13954_v23  ;;  %v17460_v16 = vsel %vm1428_vm4, %v1476_v51, %v17275_v52  ;;  %v1478_v8 = vshll.u32 %v1476_v51, 16  ;;  %v17464_v35 = vsel %vm1428_vm4, %v1571_v39, %v17292_v45  ;;  %v1573_v5 = vshll.u32 %v1571_v39, 16  ;;  %v13963_v51 = vld [vmem:[#allocation16 + $0x158] sm:$0xff]  }
 0x457   :  { %12911 = vmatprep.subr.bf16.mxu1 %v13957_v27  ;;  %v17468_v20 = vsel %vm1422_vm3, %v1877_v49, %v17099_v41  ;;  %v1971_v26 = vshrl.u32 %v1945_v58, 16  ;;  %v17472_v23 = vsel %vm1428_vm4, %v1424_v63, %v17313_v24  ;;  %v17476_v52 = vsel %vm1422_vm3, %v1945_v58, %v17132_v46  ;;  %v18919_v24 = vld [vmem:[#allocation25_spill] sm:$0xff] }
 0x458   :  { %12668 = vmatpush3.bf16.msra.mxu0 %v13956_v53  ;;  %v17480_v45 = vsel %vm1428_vm4, %v1478_v8, %v17266_v60  ;;  %v17484_v27 = vsel %vm1428_vm4, %v1573_v5, %v17279_v17  ;;  %v2065_v41 = vshrl.u32 %v2039_v37, 16  ;;  %v1426_v55 = vshll.u32 %v1424_v63, 16  ;;  %v13962_v17 = vld [vmem:[#allocation16 + $0x698] sm:$0xff]   ;;  %v13965_v58 = vld [vmem:[#allocation16 + $0x6e0] sm:$0xff]  }
 0x459   :  { %12669 = vmatprep.subr.bf16.mxu0 %v13959_v10  ;;  %v17488_v39 = vsel %vm1422_vm3, %v1971_v26, %v18919_v24  ;;  %v17492_v46 = vsel %vm1428_vm4, %v1524_v25, %v17322_v56  ;;  %v17496_v60 = vsel %vm1422_vm3, %v2039_v37, %v17328_v54  ;;  %v2133_v53 = vrot.slane %v17442_v57, 6 }
 0x45a   :  { %12912 = vmatpush3.bf16.msra.mxu1 %v13958_v19  ;;  %v17501_v63 = vsel %vm1422_vm3, %v2065_v41, %v17296_v21  ;;  %v17505_v10 = vsel %vm1428_vm4, %v1426_v55, %v17300_v12  ;;  %v1526_v49 = vshll.u32 %v1524_v25, 16  ;;  %v2253_v56 = vshrl.u32 %v17440_v3, 16  ;;  %v13964_v12 = vld [vmem:[#allocation16 + $0x118] sm:$0xff]   ;;  %v18920_v55 = vld [vmem:[#allocation54_spill] sm:$0xff] }
 0x45b   :  { %12913 = vmatprep.subr.bf16.mxu1 %v13961_v4  ;;  %v2159_v8 = vshrl.u32 %v2133_v53, 16  ;;  %v17510_v54 = vsel %vm1422_vm3, %v2133_v53, %v17346_v33  ;;  %v17515_v37 = vsel %vm1422_vm3, %v17440_v3, %v17365_v13  ;;  %v2321_v21 = vrot.slane %v17440_v3, 2  ;;  %v13967_v4 = vld [vmem:[#allocation16 + $0x160] sm:$0xff]   ;;  %v18921_v53 = vld [vmem:[#allocation55_spill] sm:$0xff] }
 0x45c   :  { %12670 = vmatpush3.bf16.msra.mxu0 %v13960_v38  ;;  %v17520_v25 = vsel %vm1428_vm4, %v1526_v49, %v17318_v42  ;;  %v17524_v19 = vsel %vm1422_vm3, %v2253_v56, %v17337_v15  ;;  %v1803_v33 = vrot.slane %v17442_v57, 7  ;;  %v1898_v5 = vrot.slane %v17442_v57, 1  ;;  %v13966_v15 = vld [vmem:[#allocation16 + $0x6a0] sm:$0xff]  }
 0x45d   :  { %12671 = vmatprep.subr.bf16.mxu0 %v13963_v51  ;;  %v17530_v13 = vsel %vm1422_vm3, %v2159_v8, %v17332_v44  ;;  %v2347_v26 = vshrl.u32 %v2321_v21, 16  ;;  %v17534_v38 = vsel %vm1422_vm3, %v2321_v21, %v17385_v18  ;;  %v1991_v42 = vrot.slane %v17442_v57, 3  ;;  %v13969_v44 = vld [vmem:[#allocation16 + $0x6e8] sm:$0xff]   ;;  %v13968_v21 = vld [vmem:[#allocation16 + $0x120] sm:$0xff]  }
 0x45e   :  { %12914 = vmatpush3.bf16.msra.mxu1 %v13962_v17  ;;  %v1830_v41 = vshrl.u32 %v1803_v33, 16  ;;  %v17539_v24 = vsel %vm1422_vm3, %v1803_v33, %v18920_v55  ;;  %v1924_v51 = vshrl.u32 %v1898_v5, 16  ;;  %v17543_v49 = vsel %vm1422_vm3, %v1898_v5, %v18921_v53  ;;  %v18922_v33 = vld [vmem:[#allocation52_spill] sm:$0xff]  ;;  %v18923_v5 = vld [vmem:[#allocation53_spill] sm:$0xff] }
 0x45f   :  { %12915 = vmatprep.subr.bf16.mxu1 %v13965_v58  ;;  %v17547_v18 = vsel %vm1422_vm3, %v2347_v26, %v17375_v50  ;;  %v2018_v56 = vshrl.u32 %v1991_v42, 16  ;;  %v17551_v17 = vsel %vm1422_vm3, %v1991_v42, %v17389_v2  ;;  %v2086_v8 = vrot.slane %v17442_v57, 5  ;;  %v13971_v53 = vld [vmem:[#allocation16 + $0x168] sm:$0xff]  }
 0x460   :  { %12672 = vmatpush3.bf16.msra.mxu0 %v13964_v12  ;;  %v17556_v55 = vsel %vm1422_vm3, %v1830_v41, %v18922_v33  ;;  %v17560_v58 = vsel %vm1422_vm3, %v1924_v51, %v18923_v5  ;;  %v2179_v50 = vrot.slane %v17440_v3, 7  ;;  %v2274_v26 = vrot.slane %v17440_v3, 1  ;;  %v13970_v42 = vld [vmem:[#allocation16 + $0x6a8] sm:$0xff]  }
 0x461   :  { %12673 = vmatprep.subr.bf16.mxu0 %v13967_v4  ;;  %v17566_v2 = vsel %vm1422_vm3, %v2018_v56, %v17370_v59  ;;  %v2112_v57 = vshrl.u32 %v2086_v8, 16  ;;  %v17570_v12 = vsel %vm1422_vm3, %v2086_v8, %v17407_v14  ;;  %v13973_v59 = vld [vmem:[#allocation16 + $0x6f0] sm:$0xff]   ;;  %v13972_v14 = vld [vmem:[#allocation16 + $0x128] sm:$0xff]  }
 0x462   :  { %12916 = vmatpush3.bf16.msra.mxu1 %v13966_v15  ;;  %v2206_v41 = vshrl.u32 %v2179_v50, 16  ;;  %v17574_v51 = vsel %vm1422_vm3, %v2179_v50, %v17411_v1  ;;  %v2300_v33 = vshrl.u32 %v2274_v26, 16  ;;  %v17578_v3 = vsel %vm1422_vm3, %v2274_v26, %v17415_v11  ;;  %v13975_v56 = vld [vmem:[#allocation16 + $0x170] sm:$0xff]   ;;  %v13980_v50 = vld [vmem:[#allocation16 + $0x138] sm:$0xff]  }
 0x463   :  { %12917 = vmatprep.subr.bf16.mxu1 %v13969_v44  ;;  %v17582_v4 = vsel %vm1422_vm3, %v2112_v57, %v17394_v0  ;;  %v13974_v11 = vld [vmem:[#allocation16 + $0x6b0] sm:$0xff]   ;;  %v13977_v44 = vld [vmem:[#allocation16 + $0x6f8] sm:$0xff]  }
 0x464   :  { %12674 = vmatpush3.bf16.msra.mxu0 %v13968_v21  ;;  %v17586_v15 = vsel %vm1422_vm3, %v2206_v41, %v17398_v43  ;;  %v17590_v1 = vsel %vm1422_vm3, %v2300_v33, %v17402_v28  ;;  %v13976_v8 = vld [vmem:[#allocation16 + $0x130] sm:$0xff]   ;;  %v13979_v0 = vld [vmem:[#allocation16 + $0x178] sm:$0xff]   ;;  %v18924_v43 = vcombine.low %v18913_v40, %v18914_v6  ;;  %v13981_v28 = vld [vmem:[#allocation16 + $0x7c0] sm:$0xff]  }
 0x465   :  { %12675 = vmatprep.subr.bf16.mxu0 %v13971_v53  ;;  %v13978_v21 = vld [vmem:[#allocation16 + $0x6b8] sm:$0xff]   ;;  %v13983_v41 = vld [vmem:[#allocation16 + $0x240] sm:$0xff]   ;;  %v13985_v40 = vld [vmem:[#allocation16 + $0x7c8] sm:$0xff]  }
 0x466   :  { %12918 = vmatpush3.bf16.msra.mxu1 %v13970_v42  ;;  %v17596_v5 = vrot.slane %v18924_v43, %v16600_v7  ;;  %v18926_v26 = vld [vmem:[#allocation39_spill] sm:$0xff]  ;;  %v13982_v33 = vld [vmem:[#allocation16 + $0x780] sm:$0xff]  }
 0x467   :  { %12919 = vmatprep.subr.bf16.mxu1 %v13973_v59  ;;  %v18927_v53 = vld [vmem:[#allocation47_spill] sm:$0xff] }
 0x468   :  { %12676 = vmatpush3.bf16.msra.mxu0 %v13972_v14  ;;  %18925 = vst [vmem:[#allocation51_spill] sm:$0xff] %v17596_v5  ;;  %v18928_v57 = vcombine.high %v18926_v26, %v18927_v53  ;;  %v5593_v59 = vcombine.high %v17596_v5, %v17596_v5  ;;  %v18931_v5 = vld [vmem:[#allocation46_spill] sm:$0xff] }
 0x469   :  { %12677 = vmatprep.subr.bf16.mxu0 %v13975_v56  ;;  %v13984_v56 = vld [vmem:[#allocation16 + $0x200] sm:$0xff]  }
 0x46a   :  { %12920 = vmatpush3.bf16.msra.mxu1 %v13974_v11  ;;  %v17602_v42 = vrot.slane %v18928_v57, %v16600_v7  ;;  %v17608_v11 = vld [vmem:[#allocation7] ss:$0 sm:$0xff] }
 0x46b   :  { %12921 = vmatprep.subr.bf16.mxu1 %v13977_v44 }
 0x46c   :  { %12678 = vmatpush3.bf16.msra.mxu0 %v13976_v8  ;;  %18929 = vst [vmem:[#allocation49_spill] sm:$0xff] %v17602_v42  ;;  %v5596_v14 = vcombine.high %v17602_v42, %v17602_v42 }
 0x46d   :  { %12679 = vmatprep.subr.bf16.mxu0 %v13979_v0  ;;  %v13987_v0 = vld [vmem:[#allocation16 + $0x248] sm:$0xff]  }
 0x46e   :  { %12922 = vmatpush3.bf16.msra.mxu1 %v13978_v21 }
 0x46f   :  { %12951 = vmatprep.subr.bf16.mxu1 %v13981_v28  ;;  %v13986_v28 = vld [vmem:[#allocation16 + $0x788] sm:$0xff]  }
 0x470   :  { %12680 = vmatpush3.bf16.msra.mxu0 %v13980_v50  ;;  %v13615_v6 = vpop.f32.mrb[16].mxu0  ;;  %v18930_v50 = vld [vmem:[#allocation42_spill] sm:$0xff] }
 0x471   :  { %8638 = vmatmul.mubr.bf16.vlgmr.msra.gmra.mrb[72].mxu1 %v5593_v59  ;;  %v1267_v44 = vadd.f32 %v17608_v11, %v13615_v6  ;;  %v1258_v8 = vpop.f32.mrb[17].mxu0  ;;  %12709 = vmatprep.subr.bf16.mxu0 %v13983_v41  ;;  %v13989_v59 = vld [vmem:[#allocation16 + $0x7d0] sm:$0xff]   ;;  %v13988_v41 = vld [vmem:[#allocation16 + $0x208] sm:$0xff]  }
 0x472   :  { %12952 = vmatpush3.bf16.msra.mxu1 %v13982_v33  ;;  %8717 = vmatprep.mubr.bf16.mxu1 %v5596_v14  ;;  %v1259_v21 = vadd.f32 %v17608_v11, %v1258_v8  ;;  %v13616_v43 = vpop.f32.mrb[18].mxu0  ;;  %v13991_v14 = vld [vmem:[#allocation16 + $0x250] sm:$0xff]  }
 0x473   :  { %8198 = vmatmul.mubr.bf16.vlgmr.msra.gmra.mrb[44].mxu0 %v18930_v50  ;;  %v1270_v57 = vadd.f32 %v17608_v11, %v13616_v43  ;;  %v1261_v42 = vpop.f32.mrb[19].mxu0  ;;  %12953 = vmatprep.subr.bf16.mxu1 %v13985_v40  ;;  %v1371_v32 = vmax.f32 %v1267_v44, 0.0  ;;  %v13993_v43 = vld [vmem:[#allocation16 + $0x7d8] sm:$0xff]  }
 0x474   :  { %12710 = vmatpush3.bf16.msra.mxu0 %v13984_v56  ;;  %8277 = vmatprep.mubr.bf16.mxu0 %v18931_v5  ;;  %v1262_v6 = vadd.f32 %v17608_v11, %v1261_v42  ;;  %v1369_v8 = vmax.f32 %v1259_v21, 0.0  ;;  %v13992_v56 = vld [vmem:[#allocation16 + $0x210] sm:$0xff]   ;;  %v13995_v5 = vld [vmem:[#allocation16 + $0x258] sm:$0xff]  }
 0x475   :  { %v1372_v33 = vmax.f32 %v1270_v57, 0.0  ;;  %12711 = vmatprep.subr.bf16.mxu0 %v13987_v0  ;;  %v13994_v21 = vld [vmem:[#allocation16 + $0x798] sm:$0xff]  }
 0x476   :  { %v1370_v61 = vmax.f32 %v1262_v6, 0.0  ;;  %12954 = vmatpush3.bf16.msra.mxu1 %v13986_v28 }
 0x477   :  { %v17616_v50 = vpack.c.bf16 %v1372_v33, %v1371_v32  ;;  %12955 = vmatprep.subr.bf16.mxu1 %v13989_v59  ;;  %v13997_v59 = vld [vmem:[#allocation16 + $0x7e0] sm:$0xff]   ;;  %v13996_v33 = vld [vmem:[#allocation16 + $0x218] sm:$0xff]  }
 0x478   :  { %v17618_v40 = vpack.c.bf16 %v1370_v61, %v1369_v8  ;;  %12712 = vmatpush3.bf16.msra.mxu0 %v13988_v41 }
 0x479   :  { %12713 = vmatprep.subr.bf16.mxu0 %v13991_v14  ;;  %v17623_v42 = vsel %vm1428_vm4, %v17616_v50, %v17501_v63  ;;  %v2042_v44 = vshll.u32 %v17616_v50, 16  ;;  %v2135_v0 = vrot.slane %v17616_v50, 2  ;;  %v2228_v32 = vrot.slane %v17616_v50, 4 }
 0x47a   :  { %12956 = vmatpush3.bf16.msra.mxu1 %v13990_v31  ;;  %v17631_v61 = vsel %vm1428_vm4, %v17618_v40, %v17305_v29  ;;  %v1666_v28 = vshll.u32 %v17618_v40, 16  ;;  %v1759_v57 = vrot.slane %v17618_v40, 2  ;;  %v1852_v63 = vrot.slane %v17618_v40, 4 }
 0x47b   :  { %12957 = vmatprep.subr.bf16.mxu1 %v13993_v43  ;;  %v1947_v6 = vrot.slane %v17618_v40, 6  ;;  %v17639_v41 = vsel %vm1428_vm4, %v2042_v44, %v17496_v60  ;;  %v17643_v31 = vsel %vm1428_vm4, %v2135_v0, %v17530_v13  ;;  %v1617_v29 = vrot.slane %v17618_v40, 7  ;;  %v13999_v13 = vld [vmem:[#allocation16 + $0x260] sm:$0xff]  }
 0x47c   :  { %18932 = vst [vmem:[#allocation32_spill] sm:$0xff] %v17643_v31  ;;  %12714 = vmatpush3.bf16.msra.mxu0 %v13992_v56  ;;  %v17648_v14 = vsel %vm1428_vm4, %v1666_v28, %v17284_v30  ;;  %v17652_v8 = vsel %vm1428_vm4, %v1759_v57, %v17309_v47  ;;  %v1761_v43 = vshll.u32 %v1759_v57, 16  ;;  %v17656_v60 = vsel %vm1428_vm4, %v1852_v63, %v17468_v20  ;;  %v13998_v47 = vld [vmem:[#allocation16 + $0x7a0] sm:$0xff]  }
 0x47d   :  { %12715 = vmatprep.subr.bf16.mxu0 %v13995_v5  ;;  %v1854_v44 = vshll.u32 %v1852_v63, 16  ;;  %v17660_v56 = vsel %vm1428_vm4, %v1947_v6, %v17488_v39  ;;  %v1949_v31 = vshll.u32 %v1947_v6, 16  ;;  %v17664_v30 = vsel %vm1428_vm4, %v1617_v29, %v17351_v9  ;;  %v14001_v39 = vld [vmem:[#allocation16 + $0x7e8] sm:$0xff]  }
 0x47e   :  { %12958 = vmatpush3.bf16.msra.mxu1 %v13994_v21  ;;  %v17668_v28 = vsel %vm1428_vm4, %v1761_v43, %v17288_v34  ;;  %v2137_v20 = vshll.u32 %v2135_v0, 16  ;;  %v17672_v5 = vsel %vm1428_vm4, %v2228_v32, %v17524_v19  ;;  %v1619_v57 = vshll.u32 %v1617_v29, 16  ;;  %v14000_v0 = vld [vmem:[#allocation16 + $0x220] sm:$0xff]  }
 0x47f   :  { %12959 = vmatprep.subr.bf16.mxu1 %v13997_v59  ;;  %v17676_v63 = vsel %vm1428_vm4, %v1854_v44, %v17454_v62  ;;  %v17680_v9 = vsel %vm1428_vm4, %v1949_v31, %v17476_v52  ;;  %v1712_v21 = vrot.slane %v17618_v40, 1  ;;  %v2230_v34 = vshll.u32 %v2228_v32, 16  ;;  %v14003_v52 = vld [vmem:[#allocation16 + $0x268] sm:$0xff]   ;;  %v14005_v44 = vld [vmem:[#allocation16 + $0x7f0] sm:$0xff]  }
 0x480   :  { %12716 = vmatpush3.bf16.msra.mxu0 %v13996_v33  ;;  %v17685_v19 = vsel %vm1428_vm4, %v2137_v20, %v17510_v54  ;;  %v17689_v59 = vsel %vm1428_vm4, %v1619_v57, %v17341_v48  ;;  %v2323_v62 = vrot.slane %v17616_v50, 6  ;;  %v1805_v6 = vrot.slane %v17618_v40, 3  ;;  %v14002_v48 = vld [vmem:[#allocation16 + $0x7a8] sm:$0xff]  }
 0x481   :  { %12717 = vmatprep.subr.bf16.mxu0 %v13999_v13  ;;  %v17695_v31 = vsel %vm1428_vm4, %v1712_v21, %v17361_v36  ;;  %v17699_v32 = vsel %vm1428_vm4, %v2230_v34, %v17515_v37  ;;  %v1714_v54 = vshll.u32 %v1712_v21, 16  ;;  %v1900_v29 = vrot.slane %v17618_v40, 5  ;;  %v14004_v57 = vld [vmem:[#allocation16 + $0x228] sm:$0xff]   ;;  %v14007_v34 = vld [vmem:[#allocation16 + $0x270] sm:$0xff]  }
 0x482   :  { %12960 = vmatpush3.bf16.msra.mxu1 %v13998_v47  ;;  %v17704_v33 = vsel %vm1428_vm4, %v2323_v62, %v17547_v18  ;;  %v17708_v43 = vsel %vm1428_vm4, %v1805_v6, %v17556_v55  ;;  %v2325_v13 = vshll.u32 %v2323_v62, 16  ;;  %v1807_v36 = vshll.u32 %v1805_v6, 16 }
 0x483   :  { %12961 = vmatprep.subr.bf16.mxu1 %v14001_v39  ;;  %v17712_v37 = vsel %vm1428_vm4, %v1714_v54, %v17356_v22  ;;  %v17716_v40 = vsel %vm1428_vm4, %v1900_v29, %v17560_v58  ;;  %v1902_v47 = vshll.u32 %v1900_v29, 16  ;;  %v1993_v18 = vrot.slane %v17616_v50, 7  ;;  %v14006_v29 = vld [vmem:[#allocation16 + $0x7b0] sm:$0xff]  }
 0x484   :  { %12718 = vmatpush3.bf16.msra.mxu0 %v14000_v0  ;;  %v12659_v20 = vpop.f32.mrb[48].mxu1  ;;  %v17721_v55 = vsel %vm1428_vm4, %v2325_v13, %v17534_v38  ;;  %v17725_v39 = vsel %vm1428_vm4, %v1807_v36, %v17539_v24  ;;  %v2088_v22 = vrot.slane %v17616_v50, 1  ;;  %v2181_v21 = vrot.slane %v17616_v50, 3 }
 0x485   :  { %v12660_v58 = vpop.f32.mrb[49].mxu1  ;;  %12719 = vmatprep.subr.bf16.mxu0 %v14003_v52  ;;  %v17731_v0 = vsel %vm1428_vm4, %v1902_v47, %v17543_v49  ;;  %v17735_v62 = vsel %vm1428_vm4, %v1993_v18, %v17566_v2  ;;  %v1995_v38 = vshll.u32 %v1993_v18, 16  ;;  %v2276_v6 = vrot.slane %v17616_v50, 5  ;;  %v14009_v2 = vld [vmem:[#allocation16 + $0x7f8] sm:$0xff]  }
 0x486   :  { %v17738_v24 = vadd.f32 %v12660_v58, %v12659_v20  ;;  %12962 = vmatpush3.bf16.msra.mxu1 %v14002_v48  ;;  %v12662_v54 = vpop.f32.mrb[50].mxu1  ;;  %v17742_v52 = vsel %vm1428_vm4, %v2088_v22, %v17582_v4  ;;  %v2090_v13 = vshll.u32 %v2088_v22, 16  ;;  %v17746_v49 = vsel %vm1428_vm4, %v2181_v21, %v17586_v15  ;;  %v14008_v4 = vld [vmem:[#allocation16 + $0x230] sm:$0xff]   ;;  %v14011_v15 = vld [vmem:[#allocation16 + $0x278] sm:$0xff]  }
 0x487   :  { %18934 = vst [vmem:[#allocation45_spill] sm:$0xff] %v17746_v49  ;;  %v12663_v36 = vpop.f32.mrb[51].mxu1  ;;  %12963 = vmatprep.subr.bf16.mxu1 %v14005_v44  ;;  %v17750_v50 = vsel %vm1428_vm4, %v1995_v38, %v17551_v17  ;;  %v2183_v47 = vshll.u32 %v2181_v21, 16  ;;  %v17754_v48 = vsel %vm1428_vm4, %v2276_v6, %v17590_v1  ;;  %v2278_v18 = vshll.u32 %v2276_v6, 16  ;;  %v14010_v1 = vld [vmem:[#allocation16 + $0x7b8] sm:$0xff]   ;;  %v18940_v58 = vld [vmem:[#allocation34_spill] sm:$0xff] }
 0x488   :  { %18933 = vst [vmem:[#allocation38_spill] sm:$0xff] %v17738_v24  ;;  %18935 = vst [vmem:[#allocation31_spill] sm:$0xff] %v17754_v48  ;;  %12720 = vmatpush3.bf16.msra.mxu0 %v14004_v57  ;;  %v17758_v20 = vsel %vm1428_vm4, %v2090_v13, %v17570_v12  ;;  %v18938_v57 = vcombine.low %v18926_v26, %v18927_v53  ;;  %v14013_v12 = vld [vmem:[#allocation16 + $0x8c0] sm:$0xff]   ;;  %v14012_v21 = vld [vmem:[#allocation16 + $0x238] sm:$0xff]  }
 0x489   :  { %12721 = vmatprep.subr.bf16.mxu0 %v14007_v34  ;;  %v17762_v44 = vsel %vm1428_vm4, %v2183_v47, %v17574_v51  ;;  %v17766_v17 = vsel %vm1428_vm4, %v2278_v18, %v17578_v3  ;;  %v18941_v51 = vld [vmem:[#allocation40_spill] sm:$0xff]  ;;  %v14017_v26 = vld [vmem:[#allocation16 + $0x8c8] sm:$0xff]  }
 0x48a   :  { %18936 = vst [vmem:[#allocation33_spill] sm:$0xff] %v17762_v44  ;;  %18937 = vst [vmem:[#allocation25_spill] sm:$0xff] %v17766_v17  ;;  %12964 = vmatpush3.bf16.msra.mxu1 %v14006_v29  ;;  %v17772_v22 = vrot.slane %v18938_v57, %v16600_v7  ;;  %v18942_v34 = vcombine.high %v18940_v58, %v18941_v51  ;;  %v14015_v3 = vld [vmem:[#allocation16 + $0x340] sm:$0xff]   ;;  %v14019_v36 = vld [vmem:[#allocation16 + $0x348] sm:$0xff]  }
 0x48b   :  { %12965 = vmatprep.subr.bf16.mxu1 %v14009_v2  ;;  %v14014_v6 = vld [vmem:[#allocation16 + $0x880] sm:$0xff]   ;;  %v14018_v18 = vld [vmem:[#allocation16 + $0x888] sm:$0xff]   ;;  %v14021_v57 = vld [vmem:[#allocation16 + $0x8d0] sm:$0xff]  }
 0x48c   :  { %18939 = vst [vmem:[#allocation54_spill] sm:$0xff] %v17772_v22  ;;  %12722 = vmatpush3.bf16.msra.mxu0 %v14008_v4  ;;  %v17778_v38 = vrot.slane %v18942_v34, %v16600_v7  ;;  %v5594_v54 = vcombine.high %v17772_v22, %v17772_v22  ;;  %v14016_v29 = vld [vmem:[#allocation16 + $0x300] sm:$0xff]   ;;  %v18944_v4 = vld [vmem:[#allocation26_spill] sm:$0xff] }
 0x48d   :  { %12723 = vmatprep.subr.bf16.mxu0 %v14011_v15  ;;  %v14030_v44 = vld [vmem:[#allocation16 + $0x8a0] sm:$0xff]  }
 0x48e   :  { %18943 = vst [vmem:[#allocation55_spill] sm:$0xff] %v17778_v38  ;;  %12966 = vmatpush3.bf16.msra.mxu1 %v14010_v1  ;;  %v5663_v53 = vcombine.high %v17778_v38, %v17778_v38 }
 0x48f   :  { %12995 = vmatprep.subr.bf16.mxu1 %v14013_v12  ;;  %v18945_v12 = vld [vmem:[#allocation48_spill] sm:$0xff] }
 0x490   :  { %12724 = vmatpush3.bf16.msra.mxu0 %v14012_v21 }
 0x491   :  { %8718 = vmatmul.mubr.bf16.vlgmr.msra.gmra.mrb[76].mxu1 %v5594_v54  ;;  %v13619_v13 = vpop.f32.mrb[20].mxu0  ;;  %12753 = vmatprep.subr.bf16.mxu0 %v14015_v3  ;;  %v14020_v3 = vld [vmem:[#allocation16 + $0x308] sm:$0xff]   ;;  %v14023_v54 = vld [vmem:[#allocation16 + $0x350] sm:$0xff]  }
 0x492   :  { %12996 = vmatpush3.bf16.msra.mxu1 %v14014_v6  ;;  %8797 = vmatprep.mubr.bf16.mxu1 %v5663_v53  ;;  %v1283_v2 = vadd.f32 %v17608_v11, %v13619_v13  ;;  %v1274_v47 = vpop.f32.mrb[21].mxu0 }
 0x493   :  { %8278 = vmatmul.mubr.bf16.vlgmr.msra.gmra.mrb[48].mxu0 %v18944_v4  ;;  %v1275_v15 = vadd.f32 %v17608_v11, %v1274_v47  ;;  %v13620_v1 = vpop.f32.mrb[22].mxu0  ;;  %12997 = vmatprep.subr.bf16.mxu1 %v14017_v26  ;;  %v14022_v4 = vld [vmem:[#allocation16 + $0x890] sm:$0xff]   ;;  %v14025_v26 = vld [vmem:[#allocation16 + $0x8d8] sm:$0xff]  }
 0x494   :  { %12754 = vmatpush3.bf16.msra.mxu0 %v14016_v29  ;;  %8357 = vmatprep.mubr.bf16.mxu0 %v18945_v12  ;;  %v1286_v21 = vadd.f32 %v17608_v11, %v13620_v1  ;;  %v1277_v34 = vpop.f32.mrb[23].mxu0  ;;  %v1375_v53 = vmax.f32 %v1283_v2, 0.0  ;;  %v14024_v29 = vld [vmem:[#allocation16 + $0x310] sm:$0xff]   ;;  %v14027_v1 = vld [vmem:[#allocation16 + $0x358] sm:$0xff]  }
 0x495   :  { %v1278_v6 = vadd.f32 %v17608_v11, %v1277_v34  ;;  %12755 = vmatprep.subr.bf16.mxu0 %v14019_v36  ;;  %v1373_v38 = vmax.f32 %v1275_v15, 0.0  ;;  %v14026_v36 = vld [vmem:[#allocation16 + $0x898] sm:$0xff]  }
 0x496   :  { %v1376_v13 = vmax.f32 %v1286_v21, 0.0  ;;  %12998 = vmatpush3.bf16.msra.mxu1 %v14018_v18  ;;  %v14029_v21 = vld [vmem:[#allocation16 + $0x8e0] sm:$0xff]  }
 0x497   :  { %v1374_v47 = vmax.f32 %v1278_v6, 0.0  ;;  %12999 = vmatprep.subr.bf16.mxu1 %v14021_v57 }
 0x498   :  { %v17790_v22 = vpack.c.bf16 %v1376_v13, %v1375_v53  ;;  %12756 = vmatpush3.bf16.msra.mxu0 %v14020_v3 }
 0x499   :  { %v17792_v12 = vpack.c.bf16 %v1374_v47, %v1373_v38  ;;  %12757 = vmatprep.subr.bf16.mxu0 %v14023_v54  ;;  %v14028_v54 = vld [vmem:[#allocation16 + $0x318] sm:$0xff]  }
 0x49a   :  { %13000 = vmatpush3.bf16.msra.mxu1 %v14022_v4  ;;  %v1857_v2 = vrot.slane %v17790_v22, 7  ;;  %v1952_v18 = vrot.slane %v17790_v22, 1  ;;  %v2045_v15 = vrot.slane %v17790_v22, 3  ;;  %v2140_v57 = vrot.slane %v17790_v22, 5 }
 0x49b   :  { %13001 = vmatprep.subr.bf16.mxu1 %v14025_v26  ;;  %v1481_v34 = vrot.slane %v17792_v12, 7  ;;  %v1576_v38 = vrot.slane %v17792_v12, 1  ;;  %v1669_v3 = vrot.slane %v17792_v12, 3  ;;  %v1764_v6 = vrot.slane %v17792_v12, 5  ;;  %v14031_v26 = vld [vmem:[#allocation16 + $0x360] sm:$0xff]  }
 0x49c   :  { %12758 = vmatpush3.bf16.msra.mxu0 %v14024_v29  ;;  %v1882_v53 = vshrl.u32 %v1857_v2, 16  ;;  %v17804_v13 = vsel %vm1431_vm5, %v1857_v2, %v17676_v63  ;;  %v1976_v4 = vshrl.u32 %v1952_v18, 16  ;;  %v1430_v47 = vrot.slane %v17792_v12, 6 }
 0x49d   :  { %12759 = vmatprep.subr.bf16.mxu0 %v14027_v1  ;;  %v1506_v24 = vshrl.u32 %v1481_v34, 16  ;;  %v17809_v49 = vsel %vm1431_vm5, %v1481_v34, %v17480_v45  ;;  %v1600_v48 = vshrl.u32 %v1576_v38, 16  ;;  %v17813_v29 = vsel %vm1431_vm5, %v1576_v38, %v17484_v27  ;;  %v14033_v45 = vld [vmem:[#allocation16 + $0x8e8] sm:$0xff]  }
 0x49e   :  { %13002 = vmatpush3.bf16.msra.mxu1 %v14026_v36  ;;  %v1694_v17 = vshrl.u32 %v1669_v3, 16  ;;  %v17817_v63 = vsel %vm1431_vm5, %v1669_v3, %v17648_v14  ;;  %v1788_v2 = vshrl.u32 %v1764_v6, 16  ;;  %v17821_v1 = vsel %vm1431_vm5, %v1764_v6, %v17668_v28  ;;  %v14032_v28 = vld [vmem:[#allocation16 + $0x320] sm:$0xff]   ;;  %v14037_v3 = vld [vmem:[#allocation16 + $0x8f0] sm:$0xff]   ;;  %v14036_v6 = vld [vmem:[#allocation16 + $0x328] sm:$0xff]  }
 0x49f   :  { %13003 = vmatprep.subr.bf16.mxu1 %v14029_v21  ;;  %v17825_v34 = vsel %vm1431_vm5, %v1506_v24, %v17460_v16  ;;  %v17829_v27 = vsel %vm1431_vm5, %v1600_v48, %v17464_v35  ;;  %v17833_v36 = vsel %vm1431_vm5, %v1882_v53, %v17656_v60  ;;  %v17837_v14 = vsel %vm1431_vm5, %v1976_v4, %v17660_v56  ;;  %v14035_v60 = vld [vmem:[#allocation16 + $0x368] sm:$0xff]  }
 0x4a0   :  { %12760 = vmatpush3.bf16.msra.mxu0 %v14028_v54  ;;  %v17841_v21 = vsel %vm1431_vm5, %v1694_v17, %v17631_v61  ;;  %v17845_v16 = vsel %vm1431_vm5, %v1788_v2, %v17652_v8  ;;  %v1459_v35 = vshrl.u32 %v1430_v47, 16  ;;  %v17849_v24 = vsel %vm1431_vm5, %v1952_v18, %v17680_v9  ;;  %v14034_v8 = vld [vmem:[#allocation16 + $0x8a8] sm:$0xff]   ;;  %v18946_v54 = vld [vmem:[#allocation32_spill] sm:$0xff] }
 0x4a1   :  { %12761 = vmatprep.subr.bf16.mxu0 %v14031_v26  ;;  %v2070_v48 = vshrl.u32 %v2045_v15, 16  ;;  %v17853_v56 = vsel %vm1431_vm5, %v1430_v47, %v17505_v10  ;;  %v1553_v38 = vshrl.u32 %v17792_v12, 16  ;;  %v17858_v61 = vsel %vm1431_vm5, %v2045_v15, %v17639_v41 }
 0x4a2   :  { %13004 = vmatpush3.bf16.msra.mxu1 %v14030_v44  ;;  %v17862_v17 = vsel %vm1431_vm5, %v1459_v35, %v17472_v23  ;;  %v2164_v9 = vshrl.u32 %v2140_v57, 16  ;;  %v17867_v18 = vsel %vm1431_vm5, %v17792_v12, %v17520_v25  ;;  %v1622_v10 = vrot.slane %v17792_v12, 2 }
 0x4a3   :  { %13005 = vmatprep.subr.bf16.mxu1 %v14033_v45  ;;  %v17872_v41 = vsel %vm1431_vm5, %v2070_v48, %v17623_v42  ;;  %v17876_v44 = vsel %vm1431_vm5, %v1553_v38, %v17492_v46  ;;  %v17880_v23 = vsel %vm1431_vm5, %v2140_v57, %v17685_v19  ;;  %v1717_v15 = vrot.slane %v17792_v12, 4  ;;  %v14039_v19 = vld [vmem:[#allocation16 + $0x370] sm:$0xff]   ;;  %v14041_v38 = vld [vmem:[#allocation16 + $0x8f8] sm:$0xff]  }
 0x4a4   :  { %v12703_v25 = vpop.f32.mrb[52].mxu1  ;;  %12762 = vmatpush3.bf16.msra.mxu0 %v14032_v28  ;;  %v17885_v53 = vsel %vm1431_vm5, %v2164_v9, %v18946_v54  ;;  %v1647_v4 = vshrl.u32 %v1622_v10, 16  ;;  %v17889_v42 = vsel %vm1431_vm5, %v1622_v10, %v17689_v59  ;;  %v1810_v46 = vrot.slane %v17790_v22, 6  ;;  %v14038_v28 = vld [vmem:[#allocation16 + $0x8b0] sm:$0xff]   ;;  %v14045_v54 = vld [vmem:[#allocation16 + $0x9c0] sm:$0xff]  }
 0x4a5   :  { %v12704_v47 = vpop.f32.mrb[53].mxu1  ;;  %12763 = vmatprep.subr.bf16.mxu0 %v14035_v60  ;;  %v1741_v57 = vshrl.u32 %v1717_v15, 16  ;;  %v17894_v12 = vsel %vm1431_vm5, %v1717_v15, %v17712_v37  ;;  %v1929_v26 = vshrl.u32 %v17790_v22, 16  ;;  %v17900_v2 = vsel %vm1431_vm5, %v17790_v22, %v17731_v0  ;;  %v14040_v10 = vld [vmem:[#allocation16 + $0x330] sm:$0xff]  }
 0x4a6   :  { %v17902_v45 = vadd.f32 %v12704_v47, %v12703_v25  ;;  %v12706_v59 = vpop.f32.mrb[54].mxu1  ;;  %13006 = vmatpush3.bf16.msra.mxu1 %v14034_v8  ;;  %v17906_v35 = vsel %vm1431_vm5, %v1647_v4, %v17664_v30  ;;  %v1835_v60 = vshrl.u32 %v1810_v46, 16  ;;  %v17910_v37 = vsel %vm1431_vm5, %v1810_v46, %v17725_v39  ;;  %v18951_v46 = vld [vmem:[#allocation35_spill] sm:$0xff]  ;;  %v18952_v47 = vld [vmem:[#allocation41_spill] sm:$0xff] }
 0x4a7   :  { %v12707_v48 = vpop.f32.mrb[55].mxu1  ;;  %13007 = vmatprep.subr.bf16.mxu1 %v14037_v3  ;;  %v17914_v0 = vsel %vm1431_vm5, %v1741_v57, %v17695_v31  ;;  %v17918_v8 = vsel %vm1431_vm5, %v1929_v26, %v17716_v40  ;;  %v1998_v9 = vrot.slane %v17790_v22, 2  ;;  %v2093_v30 = vrot.slane %v17790_v22, 4  ;;  %v14043_v3 = vld [vmem:[#allocation16 + $0x378] sm:$0xff]   ;;  %v14049_v26 = vld [vmem:[#allocation16 + $0x9c8] sm:$0xff]   ;;  %v14048_v59 = vld [vmem:[#allocation16 + $0x400] sm:$0xff]  }
 0x4a8   :  { %18947 = vst [vmem:[#allocation52_spill] sm:$0xff] %v17902_v45  ;;  %12764 = vmatpush3.bf16.msra.mxu0 %v14036_v6  ;;  %v17924_v39 = vsel %vm1431_vm5, %v1835_v60, %v17708_v43  ;;  %v14042_v22 = vld [vmem:[#allocation16 + $0x8b8] sm:$0xff]   ;;  %v18949_v43 = vcombine.low %v18940_v58, %v18941_v51  ;;  %v14047_v58 = vld [vmem:[#allocation16 + $0x440] sm:$0xff]   ;;  %v14050_v60 = vld [vmem:[#allocation16 + $0x988] sm:$0xff]  }
 0x4a9   :  { %12765 = vmatprep.subr.bf16.mxu0 %v14039_v19  ;;  %v2023_v15 = vshrl.u32 %v1998_v9, 16  ;;  %v17928_v31 = vsel %vm1431_vm5, %v1998_v9, %v17750_v50  ;;  %v2117_v25 = vshrl.u32 %v2093_v30, 16  ;;  %v17932_v40 = vsel %vm1431_vm5, %v2093_v30, %v17758_v20  ;;  %v14044_v20 = vld [vmem:[#allocation16 + $0x338] sm:$0xff]   ;;  %v14046_v51 = vld [vmem:[#allocation16 + $0x980] sm:$0xff]   ;;  %v14052_v30 = vld [vmem:[#allocation16 + $0x408] sm:$0xff]  }
 0x4aa   :  { %18948 = vst [vmem:[#allocation53_spill] sm:$0xff] %v17932_v40  ;;  %13008 = vmatpush3.bf16.msra.mxu1 %v14038_v28  ;;  %v17938_v6 = vrot.slane %v18949_v43, %v16600_v7  ;;  %v18953_v19 = vcombine.high %v18951_v46, %v18952_v47  ;;  %v14051_v28 = vld [vmem:[#allocation16 + $0x448] sm:$0xff]   ;;  %v18956_v9 = vld [vmem:[#allocation28_spill] sm:$0xff] }
 0x4ab   :  { %13009 = vmatprep.subr.bf16.mxu1 %v14041_v38  ;;  %v17942_v4 = vsel %vm1431_vm5, %v2023_v15, %v17735_v62  ;;  %v17946_v50 = vsel %vm1431_vm5, %v2117_v25, %v17742_v52  ;;  %v18955_v48 = vld [vmem:[#allocation29_spill] sm:$0xff]  ;;  %v14053_v38 = vld [vmem:[#allocation16 + $0x9d0] sm:$0xff]   ;;  %v14057_v43 = vld [vmem:[#allocation16 + $0x9d8] sm:$0xff]  }
 0x4ac   :  { %18950 = vst [vmem:[#allocation39_spill] sm:$0xff] %v17938_v6  ;;  %12766 = vmatpush3.bf16.msra.mxu0 %v14040_v10  ;;  %v17952_v57 = vrot.slane %v18953_v19, %v16600_v7  ;;  %v5661_v62 = vcombine.high %v17938_v6, %v17938_v6  ;;  %v14055_v10 = vld [vmem:[#allocation16 + $0x450] sm:$0xff]  }
 0x4ad   :  { %12767 = vmatprep.subr.bf16.mxu0 %v14043_v3  ;;  %v14054_v15 = vld [vmem:[#allocation16 + $0x990] sm:$0xff]  }
 0x4ae   :  { %18954 = vst [vmem:[#allocation47_spill] sm:$0xff] %v17952_v57  ;;  %13010 = vmatpush3.bf16.msra.mxu1 %v14042_v22  ;;  %v5664_v52 = vcombine.high %v17952_v57, %v17952_v57  ;;  %v14056_v19 = vld [vmem:[#allocation16 + $0x410] sm:$0xff]   ;;  %v14066_v57 = vld [vmem:[#allocation16 + $0x9a8] sm:$0xff]  }
 0x4af   :  { %13039 = vmatprep.subr.bf16.mxu1 %v14045_v54 }
 0x4b0   :  { %12768 = vmatpush3.bf16.msra.mxu0 %v14044_v20 }
 0x4b1   :  { %8798 = vmatmul.mubr.bf16.vlgmr.msra.gmra.mrb[80].mxu1 %v5661_v62  ;;  %12797 = vmatprep.subr.bf16.mxu0 %v14047_v58  ;;  %v14059_v62 = vld [vmem:[#allocation16 + $0x458] sm:$0xff]  }
 0x4b2   :  { %13040 = vmatpush3.bf16.msra.mxu1 %v14046_v51  ;;  %8877 = vmatprep.mubr.bf16.mxu1 %v5664_v52  ;;  %v14058_v52 = vld [vmem:[#allocation16 + $0x998] sm:$0xff]  }
 0x4b3   :  { %8358 = vmatmul.mubr.bf16.vlgmr.msra.gmra.mrb[52].mxu0 %v18955_v48  ;;  %13041 = vmatprep.subr.bf16.mxu1 %v14049_v26 }
 0x4b4   :  { %12798 = vmatpush3.bf16.msra.mxu0 %v14048_v59  ;;  %8437 = vmatprep.mubr.bf16.mxu0 %v18956_v9  ;;  %v14060_v9 = vld [vmem:[#allocation16 + $0x418] sm:$0xff]  }
 0x4b5   :  { %12799 = vmatprep.subr.bf16.mxu0 %v14051_v28 }
 0x4b6   :  { %13042 = vmatpush3.bf16.msra.mxu1 %v14050_v60  ;;  %v13623_v3 = vpop.f32.mrb[24].mxu0  ;;  %v14061_v60 = vld [vmem:[#allocation16 + $0x9e0] sm:$0xff]  }
 0x4b7   :  { %v1299_v25 = vadd.f32 %v17608_v11, %v13623_v3  ;;  %v1290_v22 = vpop.f32.mrb[25].mxu0  ;;  %13043 = vmatprep.subr.bf16.mxu1 %v14053_v38  ;;  %v14063_v3 = vld [vmem:[#allocation16 + $0x460] sm:$0xff]  }
 0x4b8   :  { %12800 = vmatpush3.bf16.msra.mxu0 %v14052_v30  ;;  %v1291_v54 = vadd.f32 %v17608_v11, %v1290_v22  ;;  %v13624_v20 = vpop.f32.mrb[26].mxu0 }
 0x4b9   :  { %v1302_v58 = vadd.f32 %v17608_v11, %v13624_v20  ;;  %v1293_v51 = vpop.f32.mrb[27].mxu0  ;;  %12801 = vmatprep.subr.bf16.mxu0 %v14055_v10  ;;  %v1379_v59 = vmax.f32 %v1299_v25, 0.0  ;;  %v14062_v10 = vld [vmem:[#allocation16 + $0x9a0] sm:$0xff]  }
 0x4ba   :  { %13044 = vmatpush3.bf16.msra.mxu1 %v14054_v15  ;;  %v1294_v26 = vadd.f32 %v17608_v11, %v1293_v51  ;;  %v1377_v48 = vmax.f32 %v1291_v54, 0.0  ;;  %v18957_v15 = vcombine.low %v18951_v46, %v18952_v47  ;;  %v18960_v54 = vld [vmem:[#allocation43_spill] sm:$0xff]  ;;  %v14064_v46 = vld [vmem:[#allocation16 + $0x420] sm:$0xff]  }
 0x4bb   :  { %v1380_v28 = vmax.f32 %v1302_v58, 0.0  ;;  %13045 = vmatprep.subr.bf16.mxu1 %v14057_v43  ;;  %v18959_v43 = vld [vmem:[#allocation36_spill] sm:$0xff]  ;;  %v14065_v58 = vld [vmem:[#allocation16 + $0x9e8] sm:$0xff]  }
 0x4bc   :  { %v1378_v38 = vmax.f32 %v1294_v26, 0.0  ;;  %12802 = vmatpush3.bf16.msra.mxu0 %v14056_v19  ;;  %v17972_v25 = vrot.slane %v18957_v15, %v16600_v7  ;;  %v18961_v20 = vcombine.high %v18959_v43, %v18960_v54 }
 0x4bd   :  { %v17964_v30 = vpack.c.bf16 %v1380_v28, %v1379_v59  ;;  %12803 = vmatprep.subr.bf16.mxu0 %v14059_v62 }
 0x4be   :  { %v17966_v22 = vpack.c.bf16 %v1378_v38, %v1377_v48  ;;  %13046 = vmatpush3.bf16.msra.mxu1 %v14058_v52  ;;  %18958 = vst [vmem:[#allocation42_spill] sm:$0xff] %v17972_v25  ;;  %v17978_v19 = vrot.slane %v18961_v20, %v16600_v7 }
 0x4bf   :  { %13047 = vmatprep.subr.bf16.mxu1 %v14061_v60  ;;  %v1671_v51 = vrot.slane %v17964_v30, 7  ;;  %v1766_v62 = vrot.slane %v17964_v30, 1  ;;  %v1859_v26 = vrot.slane %v17964_v30, 3  ;;  %v1954_v52 = vrot.slane %v17964_v30, 5  ;;  %v14067_v60 = vld [vmem:[#allocation16 + $0x468] sm:$0xff]  }
 0x4c0   :  { %18962 = vst [vmem:[#allocation46_spill] sm:$0xff] %v17978_v19  ;;  %12804 = vmatpush3.bf16.msra.mxu0 %v14060_v9  ;;  %v1483_v47 = vrot.slane %v17966_v22, 3  ;;  %v1578_v59 = vrot.slane %v17966_v22, 5  ;;  %v1433_v28 = vrot.slane %v17966_v22, 2  ;;  %v1530_v48 = vrot.slane %v17966_v22, 4 }
 0x4c1   :  { %12805 = vmatprep.subr.bf16.mxu0 %v14063_v3  ;;  %v17990_v38 = vsel %vm1437_vm6, %v1671_v51, %v17841_v21  ;;  %v1673_v15 = vshll.u32 %v1671_v51, 16  ;;  %v17994_v20 = vsel %vm1437_vm6, %v1766_v62, %v17845_v16  ;;  %v1768_v9 = vshll.u32 %v1766_v62, 16  ;;  %v14069_v21 = vld [vmem:[#allocation16 + $0x9f0] sm:$0xff]  }
 0x4c2   :  { %13048 = vmatpush3.bf16.msra.mxu1 %v14062_v10  ;;  %v17998_v6 = vsel %vm1437_vm6, %v1483_v47, %v17825_v34  ;;  %v1485_v45 = vshll.u32 %v1483_v47, 16  ;;  %v18002_v3 = vsel %vm1437_vm6, %v1578_v59, %v17829_v27  ;;  %v1580_v40 = vshll.u32 %v1578_v59, 16  ;;  %v14068_v27 = vld [vmem:[#allocation16 + $0x428] sm:$0xff]   ;;  %v14070_v59 = vld [vmem:[#allocation16 + $0x9b0] sm:$0xff]  }
 0x4c3   :  { %13049 = vmatprep.subr.bf16.mxu1 %v14065_v58  ;;  %v18006_v51 = vsel %vm1437_vm6, %v1673_v15, %v17817_v63  ;;  %v18010_v16 = vsel %vm1437_vm6, %v1768_v9, %v17821_v1  ;;  %v18014_v34 = vsel %vm1437_vm6, %v1859_v26, %v17833_v36  ;;  %v1861_v10 = vshll.u32 %v1859_v26, 16 }
 0x4c4   :  { %v12747_v62 = vpop.f32.mrb[56].mxu1  ;;  %12806 = vmatpush3.bf16.msra.mxu0 %v14064_v46  ;;  %v18018_v58 = vsel %vm1437_vm6, %v1485_v45, %v17809_v49  ;;  %v18022_v63 = vsel %vm1437_vm6, %v1580_v40, %v17813_v29  ;;  %v18026_v1 = vsel %vm1437_vm6, %v1954_v52, %v17837_v14  ;;  %v18030_v36 = vsel %vm1437_vm6, %v1433_v28, %v17862_v17  ;;  %v14071_v46 = vld [vmem:[#allocation16 + $0x470] sm:$0xff]  }
 0x4c5   :  { %v12748_v26 = vpop.f32.mrb[57].mxu1  ;;  %12807 = vmatprep.subr.bf16.mxu0 %v14067_v60  ;;  %v18034_v47 = vsel %vm1437_vm6, %v1861_v10, %v17804_v13  ;;  %v1956_v49 = vshll.u32 %v1954_v52, 16  ;;  %v1435_v45 = vshll.u32 %v1433_v28, 16  ;;  %v18038_v29 = vsel %vm1437_vm6, %v1530_v48, %v17876_v44  ;;  %v14073_v13 = vld [vmem:[#allocation16 + $0x9f8] sm:$0xff]  }
 0x4c6   :  { %v18040_v40 = vadd.f32 %v12748_v26, %v12747_v62  ;;  %v12750_v14 = vpop.f32.mrb[58].mxu1  ;;  %13050 = vmatpush3.bf16.msra.mxu1 %v14066_v57  ;;  %v1532_v17 = vshll.u32 %v1530_v48, 16  ;;  %v1624_v15 = vrot.slane %v17964_v30, 6  ;;  %v2233_v60 = vrot.slane %v17966_v22, 7  ;;  %v14072_v48 = vld [vmem:[#allocation16 + $0x430] sm:$0xff]   ;;  %v14075_v62 = vld [vmem:[#allocation16 + $0x478] sm:$0xff]  }
 0x4c7   :  { %v12751_v9 = vpop.f32.mrb[59].mxu1  ;;  %13051 = vmatprep.subr.bf16.mxu1 %v14069_v21  ;;  %v18046_v52 = vsel %vm1437_vm6, %v1956_v49, %v17849_v24  ;;  %v18050_v44 = vsel %vm1437_vm6, %v1435_v45, %v17853_v56  ;;  %v18055_v57 = vsel %vm1437_vm6, %v17964_v30, %v17914_v0  ;;  %v2328_v28 = vrot.slane %v17966_v22, 1  ;;  %v14077_v14 = vld [vmem:[#allocation16 + $0xac0] sm:$0xff]  }
 0x4c8   :  { %18963 = vst [vmem:[#allocation34_spill] sm:$0xff] %v18040_v40  ;;  %12808 = vmatpush3.bf16.msra.mxu0 %v14068_v27  ;;  %v18060_v21 = vsel %vm1437_vm6, %v1532_v17, %v17867_v18  ;;  %v18064_v24 = vsel %vm1437_vm6, %v1624_v15, %v17906_v35  ;;  %v2258_v10 = vshrl.u32 %v2233_v60, 16  ;;  %v1626_v56 = vshll.u32 %v1624_v15, 16  ;;  %v14074_v18 = vld [vmem:[#allocation16 + $0x9b8] sm:$0xff]   ;;  %v14079_v9 = vld [vmem:[#allocation16 + $0x540] sm:$0xff]  }
 0x4c9   :  { %12809 = vmatprep.subr.bf16.mxu0 %v14071_v46  ;;  %v18068_v0 = vsel %vm1431_vm5, %v2233_v60, %v17699_v32  ;;  %v2352_v26 = vshrl.u32 %v2328_v28, 16  ;;  %v1720_v27 = vshll.u32 %v17964_v30, 16  ;;  %v1812_v49 = vrot.slane %v17964_v30, 2 }
 0x4ca   :  { %13052 = vmatpush3.bf16.msra.mxu1 %v14070_v59  ;;  %v18074_v45 = vsel %vm1431_vm5, %v2258_v10, %v17672_v5  ;;  %v18078_v35 = vsel %vm1437_vm6, %v1626_v56, %v17889_v42  ;;  %v18082_v46 = vsel %vm1431_vm5, %v2328_v28, %v17721_v55  ;;  %v1906_v32 = vrot.slane %v17964_v30, 4  ;;  %v14076_v55 = vld [vmem:[#allocation16 + $0x438] sm:$0xff]   ;;  %v14078_v28 = vld [vmem:[#allocation16 + $0xa80] sm:$0xff]  }
 0x4cb   :  { %13053 = vmatprep.subr.bf16.mxu1 %v14073_v13  ;;  %v18087_v59 = vsel %vm1431_vm5, %v2352_v26, %v17704_v33  ;;  %v18091_v5 = vsel %vm1437_vm6, %v1720_v27, %v17894_v12  ;;  %v18095_v42 = vsel %vm1437_vm6, %v1812_v49, %v17924_v39  ;;  %v1814_v17 = vshll.u32 %v1812_v49, 16  ;;  %v18966_v39 = vld [vmem:[#allocation25_spill] sm:$0xff] }
 0x4cc   :  { %18964 = vst [vmem:[#allocation40_spill] sm:$0xff] %v18095_v42  ;;  %12810 = vmatpush3.bf16.msra.mxu0 %v14072_v48  ;;  %v18099_v30 = vsel %vm1437_vm6, %v1906_v32, %v17918_v8  ;;  %v1908_v15 = vshll.u32 %v1906_v32, 16  ;;  %v2186_v60 = vrot.slane %v17966_v22, 6  ;;  %v2305_v33 = vshrl.u32 %v17966_v22, 16  ;;  %v18968_v10 = vld [vmem:[#allocation33_spill] sm:$0xff] }
 0x4cd   :  { %18965 = vst [vmem:[#allocation26_spill] sm:$0xff] %v18099_v30  ;;  %12811 = vmatprep.subr.bf16.mxu0 %v14075_v62  ;;  %v18105_v12 = vsel %vm1437_vm6, %v1814_v17, %v17910_v37  ;;  %v18110_v13 = vsel %vm1431_vm5, %v17966_v22, %v18966_v39  ;;  %v18969_v62 = vld [vmem:[#allocation31_spill] sm:$0xff]  ;;  %v5662_v26 = vcombine.high %v17972_v25, %v17972_v25  ;;  %v14081_v22 = vld [vmem:[#allocation16 + $0xac8] sm:$0xff]  }
 0x4ce   :  { %13054 = vmatpush3.bf16.msra.mxu1 %v14074_v18  ;;  %v18114_v8 = vsel %vm1437_vm6, %v1908_v15, %v17900_v2  ;;  %v2211_v48 = vshrl.u32 %v2186_v60, 16  ;;  %v18118_v56 = vsel %vm1431_vm5, %v2186_v60, %v18968_v10  ;;  %v18122_v37 = vsel %vm1431_vm5, %v2305_v33, %v18969_v62  ;;  %v14080_v2 = vld [vmem:[#allocation16 + $0x500] sm:$0xff]   ;;  %v14083_v32 = vld [vmem:[#allocation16 + $0x548] sm:$0xff]   ;;  %v14087_v33 = vld [vmem:[#allocation16 + $0x550] sm:$0xff]  }
 0x4cf   :  { %18967 = vst [vmem:[#allocation48_spill] sm:$0xff] %v18114_v8  ;;  %13083 = vmatprep.subr.bf16.mxu1 %v14077_v14  ;;  %v5731_v27 = vcombine.high %v17978_v19, %v17978_v19  ;;  %v18970_v49 = vld [vmem:[#allocation45_spill] sm:$0xff]  ;;  %v18971_v15 = vld [vmem:[#allocation30_spill] sm:$0xff]  ;;  %v14089_v10 = vld [vmem:[#allocation16 + $0xad8] sm:$0xff]  }
 0x4d0   :  { %12812 = vmatpush3.bf16.msra.mxu0 %v14076_v55  ;;  %v18130_v18 = vsel %vm1431_vm5, %v2211_v48, %v18970_v49  ;;  %v14082_v17 = vld [vmem:[#allocation16 + $0xa88] sm:$0xff]   ;;  %v14085_v14 = vld [vmem:[#allocation16 + $0xad0] sm:$0xff]   ;;  %v18972_v55 = vld [vmem:[#allocation56_spill] sm:$0xff] }
 0x4d1   :  { %8878 = vmatmul.mubr.bf16.vlgmr.msra.gmra.mrb[84].mxu1 %v5662_v26  ;;  %12841 = vmatprep.subr.bf16.mxu0 %v14079_v9  ;;  %v14084_v60 = vld [vmem:[#allocation16 + $0x508] sm:$0xff]   ;;  %v14086_v39 = vld [vmem:[#allocation16 + $0xa90] sm:$0xff]  }
 0x4d2   :  { %13084 = vmatpush3.bf16.msra.mxu1 %v14078_v28  ;;  %8957 = vmatprep.mubr.bf16.mxu1 %v5731_v27  ;;  %v14088_v62 = vld [vmem:[#allocation16 + $0x510] sm:$0xff]   ;;  %v14091_v27 = vld [vmem:[#allocation16 + $0x558] sm:$0xff]   ;;  %v14097_v25 = vld [vmem:[#allocation16 + $0xae8] sm:$0xff]  }
 0x4d3   :  { %8438 = vmatmul.mubr.bf16.vlgmr.msra.gmra.mrb[56].mxu0 %v18971_v15  ;;  %13085 = vmatprep.subr.bf16.mxu1 %v14081_v22  ;;  %v14093_v15 = vld [vmem:[#allocation16 + $0xae0] sm:$0xff]  }
 0x4d4   :  { %12842 = vmatpush3.bf16.msra.mxu0 %v14080_v2  ;;  %8517 = vmatprep.mubr.bf16.mxu0 %v18972_v55 }
 0x4d5   :  { %12843 = vmatprep.subr.bf16.mxu0 %v14083_v32  ;;  %v14090_v32 = vld [vmem:[#allocation16 + $0xa98] sm:$0xff]  }
 0x4d6   :  { %13086 = vmatpush3.bf16.msra.mxu1 %v14082_v17 }
 0x4d7   :  { %v13627_v48 = vpop.f32.mrb[28].mxu0  ;;  %13087 = vmatprep.subr.bf16.mxu1 %v14085_v14 }
 0x4d8   :  { %12844 = vmatpush3.bf16.msra.mxu0 %v14084_v60  ;;  %v1315_v9 = vadd.f32 %v17608_v11, %v13627_v48  ;;  %v1306_v28 = vpop.f32.mrb[29].mxu0  ;;  %v14092_v60 = vld [vmem:[#allocation16 + $0x518] sm:$0xff]  }
 0x4d9   :  { %v1307_v26 = vadd.f32 %v17608_v11, %v1306_v28  ;;  %v13628_v22 = vpop.f32.mrb[30].mxu0  ;;  %12845 = vmatprep.subr.bf16.mxu0 %v14087_v33  ;;  %v14095_v28 = vld [vmem:[#allocation16 + $0x560] sm:$0xff]  }
 0x4da   :  { %13088 = vmatpush3.bf16.msra.mxu1 %v14086_v39  ;;  %v1318_v2 = vadd.f32 %v17608_v11, %v13628_v22  ;;  %v1309_v49 = vpop.f32.mrb[31].mxu0  ;;  %v1383_v14 = vmax.f32 %v1315_v9, 0.0  ;;  %v14094_v39 = vld [vmem:[#allocation16 + $0xaa0] sm:$0xff]  }
 0x4db   :  { %v1310_v17 = vadd.f32 %v17608_v11, %v1309_v49  ;;  %13089 = vmatprep.subr.bf16.mxu1 %v14089_v10  ;;  %v1381_v48 = vmax.f32 %v1307_v26, 0.0  ;;  %v18973_v11 = vcombine.low %v18959_v43, %v18960_v54  ;;  %v18974_v9 = vld [vmem:[#allocation37_spill] sm:$0xff] }
 0x4dc   :  { %v1384_v55 = vmax.f32 %v1318_v2, 0.0  ;;  %12846 = vmatpush3.bf16.msra.mxu0 %v14088_v62  ;;  %v18975_v62 = vld [vmem:[#allocation44_spill] sm:$0xff]  ;;  %v14099_v54 = vld [vmem:[#allocation16 + $0x568] sm:$0xff]  }
 0x4dd   :  { %v1382_v19 = vmax.f32 %v1310_v17, 0.0  ;;  %12847 = vmatprep.subr.bf16.mxu0 %v14091_v27  ;;  %v18146_v10 = vrot.slane %v18973_v11, %v16600_v7  ;;  %v18976_v26 = vcombine.high %v18974_v9, %v18975_v62  ;;  %v14096_v2 = vld [vmem:[#allocation16 + $0x520] sm:$0xff]  }
 0x4de   :  { %v18138_v33 = vpack.c.bf16 %v1384_v55, %v1383_v14  ;;  %13090 = vmatpush3.bf16.msra.mxu1 %v14090_v32 }
 0x4df   :  { %v18140_v22 = vpack.c.bf16 %v1382_v19, %v1381_v48  ;;  %13091 = vmatprep.subr.bf16.mxu1 %v14093_v15  ;;  %v18152_v27 = vrot.slane %v18976_v26, %v16600_v7  ;;  %v14101_v26 = vld [vmem:[#allocation16 + $0xaf0] sm:$0xff]  }
 0x4e0   :  { %12848 = vmatpush3.bf16.msra.mxu0 %v14092_v60  ;;  %v1488_v49 = vrot.slane %v18138_v33, 6  ;;  %v1605_v19 = vshrl.u32 %v18138_v33, 16  ;;  %v18159_v32 = vsel %vm1440_vm7, %v18138_v33, %v18022_v63  ;;  %v1676_v43 = vrot.slane %v18138_v33, 2  ;;  %v14098_v60 = vld [vmem:[#allocation16 + $0xaa8] sm:$0xff]  }
 0x4e1   :  { %18977 = vst [vmem:[#allocation32_spill] sm:$0xff] %v18152_v27  ;;  %12849 = vmatprep.subr.bf16.mxu0 %v14095_v28  ;;  %v1771_v17 = vrot.slane %v18138_v33, 4  ;;  %v1439_v15 = vrot.slane %v18138_v33, 5  ;;  %v2047_v14 = vrot.slane %v18140_v22, 7  ;;  %v1535_v55 = vrot.slane %v18138_v33, 7 }
 0x4e2   :  { %13092 = vmatpush3.bf16.msra.mxu1 %v14094_v39  ;;  %v1511_v48 = vshrl.u32 %v1488_v49, 16  ;;  %v18168_v11 = vsel %vm1440_vm7, %v1488_v49, %v18018_v58  ;;  %v18172_v63 = vsel %vm1440_vm7, %v1605_v19, %v18002_v3  ;;  %v1699_v28 = vshrl.u32 %v1676_v43, 16  ;;  %v14100_v58 = vld [vmem:[#allocation16 + $0x528] sm:$0xff]  }
 0x4e3   :  { %13093 = vmatprep.subr.bf16.mxu1 %v14097_v25  ;;  %v18176_v40 = vsel %vm1440_vm7, %v1676_v43, %v18006_v51  ;;  %v1793_v30 = vshrl.u32 %v1771_v17, 16  ;;  %v18180_v39 = vsel %vm1440_vm7, %v1771_v17, %v18010_v16  ;;  %v1464_v42 = vshrl.u32 %v1439_v15, 16 }
 0x4e4   :  { %v12791_v8 = vpop.f32.mrb[60].mxu1  ;;  %12850 = vmatpush3.bf16.msra.mxu0 %v14096_v2  ;;  %v18184_v3 = vsel %vm1440_vm7, %v1511_v48, %v17998_v6  ;;  %v18188_v25 = vsel %vm1440_vm7, %v1699_v28, %v17990_v38  ;;  %v18192_v51 = vsel %vm1437_vm6, %v2047_v14, %v17872_v41  ;;  %v18196_v16 = vsel %vm1440_vm7, %v1439_v15, %v18050_v44  ;;  %v14103_v2 = vld [vmem:[#allocation16 + $0x570] sm:$0xff]   ;;  %v14105_v15 = vld [vmem:[#allocation16 + $0xaf8] sm:$0xff]  }
 0x4e5   :  { %v12792_v49 = vpop.f32.mrb[61].mxu1  ;;  %12851 = vmatprep.subr.bf16.mxu0 %v14099_v54  ;;  %v18200_v19 = vsel %vm1440_vm7, %v1793_v30, %v17994_v20  ;;  %v18204_v6 = vsel %vm1440_vm7, %v1464_v42, %v18030_v36  ;;  %v1558_v38 = vshrl.u32 %v1535_v55, 16  ;;  %v2049_v43 = vshll.u32 %v2047_v14, 16  ;;  %v14102_v48 = vld [vmem:[#allocation16 + $0xab0] sm:$0xff]  }
 0x4e6   :  { %v18206_v17 = vadd.f32 %v12792_v49, %v12791_v8  ;;  %v12794_v41 = vpop.f32.mrb[62].mxu1  ;;  %13094 = vmatpush3.bf16.msra.mxu1 %v14098_v60  ;;  %v2142_v44 = vrot.slane %v18140_v22, 1  ;;  %v18211_v54 = vsel %vm1440_vm7, %v1535_v55, %v18060_v21  ;;  %v1629_v20 = vrot.slane %v18138_v33, 1  ;;  %v14104_v21 = vld [vmem:[#allocation16 + $0x530] sm:$0xff]  }
 0x4e7   :  { %v12795_v30 = vpop.f32.mrb[63].mxu1  ;;  %13095 = vmatprep.subr.bf16.mxu1 %v14101_v26  ;;  %v18216_v36 = vsel %vm1440_vm7, %v1558_v38, %v18038_v29  ;;  %v18220_v42 = vsel %vm1437_vm6, %v2049_v43, %v17858_v61  ;;  %v2235_v8 = vrot.slane %v18140_v22, 3  ;;  %v1723_v14 = vrot.slane %v18138_v33, 3  ;;  %v14107_v26 = vld [vmem:[#allocation16 + $0x578] sm:$0xff]   ;;  %v14109_v43 = vld [vmem:[#allocation16 + $0xbc0] sm:$0xff]  }
 0x4e8   :  { %12852 = vmatpush3.bf16.msra.mxu0 %v14100_v58  ;;  %v18226_v55 = vsel %vm1437_vm6, %v2142_v44, %v17885_v53  ;;  %v1652_v60 = vshrl.u32 %v1629_v20, 16  ;;  %v2144_v28 = vshll.u32 %v2142_v44, 16  ;;  %v18230_v29 = vsel %vm1440_vm7, %v1629_v20, %v18078_v35  ;;  %v14106_v38 = vld [vmem:[#allocation16 + $0xab8] sm:$0xff]   ;;  %v14111_v30 = vld [vmem:[#allocation16 + $0x640] sm:$0xff]  }
 0x4e9   :  { %12853 = vmatprep.subr.bf16.mxu0 %v14103_v2  ;;  %v18234_v61 = vsel %vm1437_vm6, %v2235_v8, %v18074_v45  ;;  %v1746_v49 = vshrl.u32 %v1723_v14, 16  ;;  %v2237_v33 = vshll.u32 %v2235_v8, 16  ;;  %v2330_v58 = vrot.slane %v18140_v22, 5 }
 0x4ea   :  { %13096 = vmatpush3.bf16.msra.mxu1 %v14102_v48  ;;  %v18239_v53 = vsel %vm1440_vm7, %v1652_v60, %v18064_v24  ;;  %v18243_v35 = vsel %vm1437_vm6, %v2144_v28, %v17880_v23  ;;  %v18247_v2 = vsel %vm1440_vm7, %v1723_v14, %v18091_v5  ;;  %v2000_v45 = vrot.slane %v18140_v22, 6  ;;  %v14108_v5 = vld [vmem:[#allocation16 + $0x538] sm:$0xff]   ;;  %v14110_v14 = vld [vmem:[#allocation16 + $0xb80] sm:$0xff]  }
 0x4eb   :  { %13097 = vmatprep.subr.bf16.mxu1 %v14105_v15  ;;  %v18252_v41 = vsel %vm1440_vm7, %v1746_v49, %v18055_v57  ;;  %v18256_v24 = vsel %vm1437_vm6, %v2237_v33, %v18068_v0  ;;  %v18260_v23 = vsel %vm1437_vm6, %v2330_v58, %v18087_v59  ;;  %v2332_v48 = vshll.u32 %v2330_v58, 16  ;;  %v14112_v33 = vld [vmem:[#allocation16 + $0x600] sm:$0xff]   ;;  %v14115_v58 = vld [vmem:[#allocation16 + $0x648] sm:$0xff]  }
 0x4ec   :  { %12854 = vmatpush3.bf16.msra.mxu0 %v14104_v21  ;;  %v18264_v44 = vsel %vm1437_vm6, %v2000_v45, %v17942_v4  ;;  %v2002_v20 = vshll.u32 %v2000_v45, 16  ;;  %v18269_v57 = vsel %vm1437_vm6, %v18140_v22, %v17946_v50  ;;  %v2096_v0 = vshll.u32 %v18140_v22, 16  ;;  %v18978_v21 = vld [vmem:[#allocation53_spill] sm:$0xff]  ;;  %v18979_v45 = vld [vmem:[#allocation50_spill] sm:$0xff] }
 0x4ed   :  { %12855 = vmatprep.subr.bf16.mxu0 %v14107_v26  ;;  %v18274_v59 = vsel %vm1437_vm6, %v2332_v48, %v18082_v46  ;;  %v2188_v15 = vrot.slane %v18140_v22, 2  ;;  %v2282_v8 = vrot.slane %v18140_v22, 4  ;;  %v5729_v4 = vcombine.high %v18146_v10, %v18146_v10  ;;  %v14113_v46 = vld [vmem:[#allocation16 + $0xbc8] sm:$0xff]   ;;  %v18980_v48 = vld [vmem:[#allocation27_spill] sm:$0xff] }
 0x4ee   :  { %13098 = vmatpush3.bf16.msra.mxu1 %v14106_v38  ;;  %v18282_v50 = vsel %vm1437_vm6, %v2002_v20, %v17928_v31  ;;  %v18286_v60 = vsel %vm1437_vm6, %v2096_v0, %v18978_v21  ;;  %v5732_v31 = vcombine.high %v18152_v27, %v18152_v27  ;;  %v14119_v20 = vld [vmem:[#allocation16 + $0x650] sm:$0xff]   ;;  %v14121_v0 = vld [vmem:[#allocation16 + $0xbd8] sm:$0xff]   ;;  %v14132_v27 = vld [vmem:[#allocation16 + $0x628] sm:$0xff]  }
 0x4ef   :  { %13127 = vmatprep.subr.bf16.mxu1 %v14109_v43  ;;  %v18290_v28 = vsel %vm1437_vm6, %v2188_v15, %v18130_v18  ;;  %v2190_v22 = vshll.u32 %v2188_v15, 16  ;;  %v18294_v26 = vsel %vm1437_vm6, %v2282_v8, %v18122_v37  ;;  %v2284_v49 = vshll.u32 %v2282_v8, 16  ;;  %v14114_v37 = vld [vmem:[#allocation16 + $0xb88] sm:$0xff]   ;;  %v14117_v43 = vld [vmem:[#allocation16 + $0xbd0] sm:$0xff]   ;;  %v14122_v15 = vld [vmem:[#allocation16 + $0xb98] sm:$0xff]  }
 0x4f0   :  { %12856 = vmatpush3.bf16.msra.mxu0 %v14108_v5  ;;  %v14116_v5 = vld [vmem:[#allocation16 + $0x608] sm:$0xff]   ;;  %v14125_v8 = vld [vmem:[#allocation16 + $0xbe0] sm:$0xff]   ;;  %v18308_v21 = vld [vmem:[#allocation7] ss:$0 sm:$0xff] }
 0x4f1   :  { %8958 = vmatmul.mubr.bf16.vlgmr.msra.gmra.mrb[88].mxu1 %v5729_v4  ;;  %12885 = vmatprep.subr.bf16.mxu0 %v14111_v30  ;;  %v18300_v38 = vsel %vm1437_vm6, %v2190_v22, %v18118_v56  ;;  %v18304_v18 = vsel %vm1437_vm6, %v2284_v49, %v18110_v13  ;;  %v14118_v56 = vld [vmem:[#allocation16 + $0xb90] sm:$0xff]   ;;  %v14123_v30 = vld [vmem:[#allocation16 + $0x658] sm:$0xff]   ;;  %v14127_v49 = vld [vmem:[#allocation16 + $0x660] sm:$0xff]  }
 0x4f2   :  { %13128 = vmatpush3.bf16.msra.mxu1 %v14110_v14  ;;  %9037 = vmatprep.mubr.bf16.mxu1 %v5732_v31  ;;  %v14120_v13 = vld [vmem:[#allocation16 + $0x610] sm:$0xff]   ;;  %v14124_v14 = vld [vmem:[#allocation16 + $0x618] sm:$0xff]  }
 0x4f3   :  { %8518 = vmatmul.mubr.bf16.vlgmr.msra.gmra.mrb[60].mxu0 %v18979_v45  ;;  %13129 = vmatprep.subr.bf16.mxu1 %v14113_v46 }
 0x4f4   :  { %12886 = vmatpush3.bf16.msra.mxu0 %v14112_v33  ;;  %8597 = vmatprep.mubr.bf16.mxu0 %v18980_v48 }
 0x4f5   :  { %12887 = vmatprep.subr.bf16.mxu0 %v14115_v58  ;;  %v14126_v58 = vld [vmem:[#allocation16 + $0xba0] sm:$0xff]  }
 0x4f6   :  { %13130 = vmatpush3.bf16.msra.mxu1 %v14114_v37 }
 0x4f7   :  { %13131 = vmatprep.subr.bf16.mxu1 %v14117_v43  ;;  %v14129_v43 = vld [vmem:[#allocation16 + $0xbe8] sm:$0xff]  }
 0x4f8   :  { %12888 = vmatpush3.bf16.msra.mxu0 %v14116_v5  ;;  %v14128_v5 = vld [vmem:[#allocation16 + $0x620] sm:$0xff]  }
 0x4f9   :  { %12889 = vmatprep.subr.bf16.mxu0 %v14119_v20  ;;  %v18981_v20 = vcombine.low %v18974_v9, %v18975_v62  ;;  %v14135_v62 = vld [vmem:[#allocation16 + $0x670] sm:$0xff]  }
 0x4fa   :  { %13132 = vmatpush3.bf16.msra.mxu1 %v14118_v56 }
 0x4fb   :  { %13133 = vmatprep.subr.bf16.mxu1 %v14121_v0  ;;  %v18318_v56 = vrot.slane %v18981_v20, %v16600_v7 }
 0x4fc   :  { %12890 = vmatpush3.bf16.msra.mxu0 %v14120_v13  ;;  %v13631_v4 = vpop.f32.mrb[32].mxu0 }
 0x4fd   :  { %v1331_v46 = vadd.f32 %v18308_v21, %v13631_v4  ;;  %v1322_v22 = vpop.f32.mrb[33].mxu0  ;;  %12891 = vmatprep.subr.bf16.mxu0 %v14123_v30  ;;  %v14131_v30 = vld [vmem:[#allocation16 + $0x668] sm:$0xff]   ;;  %v5730_v7 = vcombine.high %v18318_v56, %v18318_v56 }
 0x4fe   :  { %13134 = vmatpush3.bf16.msra.mxu1 %v14122_v15  ;;  %v1323_v31 = vadd.f32 %v18308_v21, %v1322_v22  ;;  %v13632_v33 = vpop.f32.mrb[34].mxu0  ;;  %v14130_v22 = vld [vmem:[#allocation16 + $0xba8] sm:$0xff]  }
 0x4ff   :  { %v1334_v37 = vadd.f32 %v18308_v21, %v13632_v33  ;;  %v1325_v45 = vpop.f32.mrb[35].mxu0  ;;  %13135 = vmatprep.subr.bf16.mxu1 %v14125_v8  ;;  %v1387_v0 = vmax.f32 %v1331_v46, 0.0 }
 0x500   :  { %12892 = vmatpush3.bf16.msra.mxu0 %v14124_v14  ;;  %v1326_v48 = vadd.f32 %v18308_v21, %v1325_v45  ;;  %v1385_v15 = vmax.f32 %v1323_v31, 0.0  ;;  %v14133_v14 = vld [vmem:[#allocation16 + $0xbf0] sm:$0xff]  }
 0x501   :  { %v1388_v13 = vmax.f32 %v1334_v37, 0.0  ;;  %12893 = vmatprep.subr.bf16.mxu0 %v14127_v49 }
 0x502   :  { %v1386_v4 = vmax.f32 %v1326_v48, 0.0  ;;  %13136 = vmatpush3.bf16.msra.mxu1 %v14126_v58  ;;  %v14134_v48 = vld [vmem:[#allocation16 + $0xbb0] sm:$0xff]  }
 0x503   :  { %v18320_v8 = vpack.c.bf16 %v1388_v13, %v1387_v0  ;;  %13137 = vmatprep.subr.bf16.mxu1 %v14129_v43 }
 0x504   :  { %v18322_v33 = vpack.c.bf16 %v1386_v4, %v1385_v15  ;;  %v12835_v45 = vpop.f32.mrb[64].mxu1  ;;  %12894 = vmatpush3.bf16.msra.mxu0 %v14128_v5 }
 0x505   :  { %v12836_v9 = vpop.f32.mrb[65].mxu1  ;;  %12895 = vmatprep.subr.bf16.mxu0 %v14131_v30  ;;  %v1490_v46 = vrot.slane %v18320_v8, 2  ;;  %v1584_v49 = vrot.slane %v18320_v8, 4  ;;  %v1442_v31 = vrot.slane %v18320_v8, 1  ;;  %v1537_v58 = vrot.slane %v18320_v8, 3  ;;  %v14137_v30 = vld [vmem:[#allocation16 + $0xbf8] sm:$0xff]  }
 0x506   :  { %v18330_v37 = vadd.f32 %v12836_v9, %v12835_v45  ;;  %v12838_v43 = vpop.f32.mrb[66].mxu1  ;;  %13138 = vmatpush3.bf16.msra.mxu1 %v14130_v22  ;;  %v1864_v5 = vrot.slane %v18322_v33, 6  ;;  %v1981_v20 = vshrl.u32 %v18322_v33, 16  ;;  %v18337_v0 = vsel %vm1440_vm7, %v18322_v33, %v18046_v52  ;;  %v14136_v9 = vld [vmem:[#allocation16 + $0x630] sm:$0xff]  }
 0x507   :  { %v12839_v13 = vpop.f32.mrb[67].mxu1  ;;  %13139 = vmatprep.subr.bf16.mxu1 %v14133_v14  ;;  %v18341_v15 = vsel %vm1446_vm8, %v1490_v46, %v18184_v3  ;;  %v1492_v4 = vshll.u32 %v1490_v46, 16  ;;  %v18345_v22 = vsel %vm1446_vm8, %v1584_v49, %v18172_v63  ;;  %v1586_v45 = vshll.u32 %v1584_v49, 16  ;;  %v14139_v46 = vld [vmem:[#allocation16 + $0x678] sm:$0xff]  }
 0x508   :  { %12896 = vmatpush3.bf16.msra.mxu0 %v14132_v27  ;;  %v1887_v43 = vshrl.u32 %v1864_v5, 16  ;;  %v18349_v52 = vsel %vm1440_vm7, %v1864_v5, %v18034_v47  ;;  %v18353_v14 = vsel %vm1440_vm7, %v1981_v20, %v18026_v1  ;;  %v18357_v3 = vsel %vm1446_vm8, %v1442_v31, %v18204_v6  ;;  %v14138_v1 = vld [vmem:[#allocation16 + $0xbb8] sm:$0xff]   ;;  %v14141_v20 = vld [vmem:[#allocation15 + $0xc0] sm:$0xff]  }
 0x509   :  { %12897 = vmatprep.subr.bf16.mxu0 %v14135_v62  ;;  %v18361_v63 = vsel %vm1446_vm8, %v1492_v4, %v18168_v11  ;;  %v18365_v27 = vsel %vm1446_vm8, %v1586_v45, %v18159_v32  ;;  %v2052_v47 = vrot.slane %v18322_v33, 2  ;;  %v1444_v49 = vshll.u32 %v1442_v31, 16 }
 0x50a   :  { %13140 = vmatpush3.bf16.msra.mxu1 %v14134_v48  ;;  %v18370_v5 = vsel %vm1440_vm7, %v1887_v43, %v18014_v34  ;;  %v18374_v6 = vsel %vm1446_vm8, %v1537_v58, %v18216_v36  ;;  %v2147_v11 = vrot.slane %v18322_v33, 4  ;;  %v1539_v62 = vshll.u32 %v1537_v58, 16  ;;  %v14140_v48 = vld [vmem:[#allocation16 + $0x638] sm:$0xff]   ;;  %v14142_v43 = vld [vmem:[#allocation15 + $0x80] sm:$0xff]  }
 0x50b   :  { %18982 = vst [vmem:[#allocation35_spill] sm:$0xff] %v18374_v6  ;;  %13141 = vmatprep.subr.bf16.mxu1 %v14137_v30  ;;  %v2075_v32 = vshrl.u32 %v2052_v47, 16  ;;  %v18379_v13 = vsel %vm1446_vm8, %v1444_v49, %v18196_v16  ;;  %v18383_v31 = vsel %vm1440_vm7, %v2052_v47, %v18220_v42  ;;  %v2240_v34 = vrot.slane %v18320_v8, 6  ;;  %v14143_v30 = vld [vmem:[#allocation16 + $0x740] sm:$0xff]   ;;  %v14145_v47 = vld [vmem:[#allocation15 + $0xc8] sm:$0xff]  }
 0x50c   :  { %12898 = vmatpush3.bf16.msra.mxu0 %v14136_v9  ;;  %v2169_v36 = vshrl.u32 %v2147_v11, 16  ;;  %v18388_v4 = vsel %vm1446_vm8, %v1539_v62, %v18211_v54  ;;  %v18392_v58 = vsel %vm1440_vm7, %v2147_v11, %v18243_v35  ;;  %v2357_v16 = vshrl.u32 %v18320_v8, 16  ;;  %v14144_v11 = vld [vmem:[#allocation16 + $0x700] sm:$0xff]  }
 0x50d   :  { %18983 = vst [vmem:[#allocation41_spill] sm:$0xff] %v18388_v4  ;;  %12899 = vmatprep.subr.bf16.mxu0 %v14139_v46  ;;  %v18397_v42 = vsel %vm1440_vm7, %v2075_v32, %v18192_v51  ;;  %v2263_v45 = vshrl.u32 %v2240_v34, 16  ;;  %v18401_v9 = vsel %vm1440_vm7, %v2240_v34, %v18256_v24  ;;  %v1817_v54 = vrot.slane %v18322_v33, 5 }
 0x50e   :  { %13142 = vmatpush3.bf16.msra.mxu1 %v14138_v1  ;;  %v18406_v35 = vsel %vm1440_vm7, %v2169_v36, %v18226_v55  ;;  %v18410_v46 = vsel %vm1440_vm7, %v2357_v16, %v18260_v23  ;;  %v18415_v51 = vsel %vm1440_vm7, %v18320_v8, %v18274_v59  ;;  %v1911_v24 = vrot.slane %v18322_v33, 7  ;;  %v18984_v59 = vld [vmem:[#allocation48_spill] sm:$0xff] }
 0x50f   :  { %13171 = vmatprep.subr.bf16.mxu1 %v14141_v20  ;;  %v18420_v49 = vsel %vm1440_vm7, %v2263_v45, %v18234_v61  ;;  %v1840_v1 = vshrl.u32 %v1817_v54, 16  ;;  %v18424_v55 = vsel %vm1440_vm7, %v1817_v54, %v18105_v12  ;;  %v2005_v23 = vrot.slane %v18322_v33, 1  ;;  %v14147_v12 = vld [vmem:[#allocation16 + $0x748] sm:$0xff]   ;;  %v18985_v61 = vld [vmem:[#allocation40_spill] sm:$0xff] }
 0x510   :  { %12900 = vmatpush3.bf16.msra.mxu0 %v14140_v48  ;;  %v1934_v62 = vshrl.u32 %v1911_v24, 16  ;;  %v18429_v32 = vsel %vm1440_vm7, %v1911_v24, %v18984_v59  ;;  %v2099_v20 = vrot.slane %v18322_v33, 3  ;;  %v2193_v34 = vrot.slane %v18320_v8, 5  ;;  %v14146_v33 = vld [vmem:[#allocation15 + $0x88] sm:$0xff]   ;;  %v18987_v59 = vld [vmem:[#allocation51_spill] sm:$0xff] }
 0x511   :  { %9038 = vmatmul.mubr.bf16.vlgmr.msra.gmra.mrb[92].mxu1 %v5730_v7  ;;  %12929 = vmatprep.subr.bf16.mxu0 %v14143_v30  ;;  %v18438_v36 = vsel %vm1440_vm7, %v1840_v1, %v18985_v61  ;;  %v2028_v48 = vshrl.u32 %v2005_v23, 16  ;;  %v18442_v16 = vsel %vm1440_vm7, %v2005_v23, %v18282_v50  ;;  %v2287_v45 = vrot.slane %v18320_v8, 7  ;;  %v18986_v54 = vld [vmem:[#allocation26_spill] sm:$0xff]  ;;  %v14155_v61 = vld [vmem:[#allocation16 + $0x758] sm:$0xff]  }
 0x512   :  { %13172 = vmatpush3.bf16.msra.mxu1 %v14142_v43  ;;  %11037 = vmatprep.mubr.bf16.mxu1 %v18341_v15  ;;  %v18448_v7 = vsel %vm1440_vm7, %v1934_v62, %v18986_v54  ;;  %v2122_v30 = vshrl.u32 %v2099_v20, 16  ;;  %v18452_v24 = vsel %vm1440_vm7, %v2099_v20, %v18286_v60  ;;  %v2216_v1 = vshrl.u32 %v2193_v34, 16  ;;  %v14149_v50 = vld [vmem:[#allocation15 + $0xd0] sm:$0xff]   ;;  %v18988_v60 = vld [vmem:[#allocation49_spill] sm:$0xff] }
 0x513   :  { %8598 = vmatmul.mubr.bf16.vlgmr.msra.gmra.mrb[64].mxu0 %v18987_v59  ;;  %13173 = vmatprep.subr.bf16.mxu1 %v14145_v47  ;;  %v18457_v8 = vsel %vm1440_vm7, %v2028_v48, %v18264_v44  ;;  %v18461_v15 = vsel %vm1440_vm7, %v2193_v34, %v18300_v38  ;;  %v2310_v43 = vshrl.u32 %v2287_v45, 16  ;;  %v18465_v23 = vsel %vm1440_vm7, %v2287_v45, %v18304_v18  ;;  %v14148_v62 = vld [vmem:[#allocation16 + $0x708] sm:$0xff]   ;;  %v14151_v38 = vld [vmem:[#allocation16 + $0x750] sm:$0xff]   ;;  %v14157_v48 = vld [vmem:[#allocation15 + $0xe0] sm:$0xff]  }
 0x514   :  { %12930 = vmatpush3.bf16.msra.mxu0 %v14144_v11  ;;  %8677 = vmatprep.mubr.bf16.mxu0 %v18988_v60  ;;  %v18470_v47 = vsel %vm1440_vm7, %v2122_v30, %v18269_v57  ;;  %v18474_v44 = vsel %vm1440_vm7, %v2216_v1, %v18290_v28  ;;  %v14150_v18 = vld [vmem:[#allocation15 + $0x90] sm:$0xff]   ;;  %v14153_v11 = vld [vmem:[#allocation15 + $0xd8] sm:$0xff]   ;;  %v14161_v30 = vld [vmem:[#allocation15 + $0xe8] sm:$0xff]  }
 0x515   :  { %12931 = vmatprep.subr.bf16.mxu0 %v14147_v12  ;;  %v18478_v20 = vsel %vm1440_vm7, %v2310_v43, %v18294_v26  ;;  %v14152_v34 = vld [vmem:[#allocation16 + $0x710] sm:$0xff]   ;;  %v14154_v57 = vld [vmem:[#allocation15 + $0x98] sm:$0xff]   ;;  %v14159_v12 = vld [vmem:[#allocation16 + $0x760] sm:$0xff]  }
 0x516   :  { %13174 = vmatpush3.bf16.msra.mxu1 %v14146_v33  ;;  %v14156_v28 = vld [vmem:[#allocation16 + $0x718] sm:$0xff]   ;;  %v14158_v26 = vld [vmem:[#allocation15 + $0xa0] sm:$0xff]  }
 0x517   :  { %13175 = vmatprep.subr.bf16.mxu1 %v14149_v50  ;;  %v14160_v50 = vld [vmem:[#allocation16 + $0x720] sm:$0xff]  }
 0x518   :  { %12932 = vmatpush3.bf16.msra.mxu0 %v14148_v62  ;;  %v14163_v62 = vld [vmem:[#allocation16 + $0x768] sm:$0xff]  }
 0x519   :  { %12933 = vmatprep.subr.bf16.mxu0 %v14151_v38 }
 0x51a   :  { %13176 = vmatpush3.bf16.msra.mxu1 %v14150_v18  ;;  %v14162_v18 = vld [vmem:[#allocation15 + $0xa8] sm:$0xff]  }
 0x51b   :  { %13177 = vmatprep.subr.bf16.mxu1 %v14153_v11 }
 0x51c   :  { %12934 = vmatpush3.bf16.msra.mxu0 %v14152_v34 }
 0x51d   :  { %12935 = vmatprep.subr.bf16.mxu0 %v14155_v61  ;;  %v14165_v61 = vld [vmem:[#allocation15 + $0xf0] sm:$0xff]  }
 0x51e   :  { %13178 = vmatpush3.bf16.msra.mxu1 %v14154_v57  ;;  %v13635_v45 = vpop.f32.mrb[36].mxu0 }
 0x51f   :  { %v1347_v33 = vadd.f32 %v18308_v21, %v13635_v45  ;;  %v1338_v54 = vpop.f32.mrb[37].mxu0  ;;  %13179 = vmatprep.subr.bf16.mxu1 %v14157_v48 }
 0x520   :  { %v1339_v1 = vadd.f32 %v18308_v21, %v1338_v54  ;;  %12936 = vmatpush3.bf16.msra.mxu0 %v14156_v28  ;;  %v13636_v59 = vpop.f32.mrb[38].mxu0  ;;  %v14164_v28 = vld [vmem:[#allocation16 + $0x728] sm:$0xff]  }
 0x521   :  { %v1350_v43 = vadd.f32 %v18308_v21, %v13636_v59  ;;  %v1341_v60 = vpop.f32.mrb[39].mxu0  ;;  %12937 = vmatprep.subr.bf16.mxu0 %v14159_v12  ;;  %v1391_v11 = vmax.f32 %v1347_v33, 0.0  ;;  %v14167_v59 = vld [vmem:[#allocation16 + $0x770] sm:$0xff]  }
 0x522   :  { %v1342_v38 = vadd.f32 %v18308_v21, %v1341_v60  ;;  %13180 = vmatpush3.bf16.msra.mxu1 %v14158_v26  ;;  %v1389_v57 = vmax.f32 %v1339_v1, 0.0  ;;  %v14166_v33 = vld [vmem:[#allocation15 + $0xb0] sm:$0xff]   ;;  %v14169_v1 = vld [vmem:[#allocation15 + $0xf8] sm:$0xff]  }
 0x523   :  { %v1392_v34 = vmax.f32 %v1350_v43, 0.0  ;;  %13181 = vmatprep.subr.bf16.mxu1 %v14161_v30 }
 0x524   :  { %v1390_v48 = vmax.f32 %v1342_v38, 0.0  ;;  %v12879_v45 = vpop.f32.mrb[68].mxu1  ;;  %12938 = vmatpush3.bf16.msra.mxu0 %v14160_v50 }
 0x525   :  { %v18484_v54 = vpack.c.bf16 %v1392_v34, %v1391_v11  ;;  %v12880_v4 = vpop.f32.mrb[69].mxu1  ;;  %12939 = vmatprep.subr.bf16.mxu0 %v14163_v62  ;;  %v14168_v11 = vld [vmem:[#allocation16 + $0x730] sm:$0xff]  }
 0x526   :  { %v18486_v12 = vpack.c.bf16 %v1390_v48, %v1389_v57  ;;  %v18488_v6 = vadd.f32 %v12880_v4, %v12879_v45  ;;  %v12882_v21 = vpop.f32.mrb[70].mxu1  ;;  %13182 = vmatpush3.bf16.msra.mxu1 %v14162_v18  ;;  %v12637_v26 = vpop.f32.mrb[40].mxu0 }
 0x527   :  { %v12883_v30 = vpop.f32.mrb[71].mxu1  ;;  %v12638_v43 = vpop.f32.mrb[41].mxu0  ;;  %13183 = vmatprep.subr.bf16.mxu1 %v14165_v61  ;;  %v2054_v50 = vrot.slane %v18484_v54, 6  ;;  %v18494_v60 = vsel %vm1446_vm8, %v18484_v54, %v18406_v35  ;;  %v2150_v62 = vshll.u32 %v18484_v54, 16  ;;  %v2242_v4 = vrot.slane %v18484_v54, 2  ;;  %v14171_v35 = vld [vmem:[#allocation16 + $0x778] sm:$0xff]  }
 0x528   :  { %18989 = vst [vmem:[#allocation29_spill] sm:$0xff] %v18494_v60  ;;  %v12639_v38 = vadd.f32 %v12638_v43, %v12637_v26  ;;  %12940 = vmatpush3.bf16.msra.mxu0 %v14164_v28  ;;  %v12640_v18 = vpop.f32.mrb[42].mxu0  ;;  %v1678_v34 = vrot.slane %v18486_v12, 6  ;;  %v18502_v61 = vsel %vm1446_vm8, %v18486_v12, %v18200_v19  ;;  %v1774_v57 = vshll.u32 %v18486_v12, 16  ;;  %v18990_v30 = vld [vmem:[#allocation38_spill] sm:$0xff]  ;;  %v14170_v19 = vld [vmem:[#allocation15 + $0xb8] sm:$0xff]  }
 0x529   :  { %v12641_v48 = vpop.f32.mrb[43].mxu0  ;;  %12941 = vmatprep.subr.bf16.mxu0 %v14167_v59  ;;  %v1866_v45 = vrot.slane %v18486_v12, 2  ;;  %v1960_v21 = vrot.slane %v18486_v12, 4  ;;  %v18509_v28 = vsel %vm1446_vm8, %v2054_v50, %v18397_v42  ;;  %v2056_v26 = vshll.u32 %v2054_v50, 16  ;;  %v14173_v60 = vld [vmem:[#allocation15 + $0x1c0] sm:$0xff]  }
 0x52a   :  { %v18512_v43 = vadd.f32 %v18990_v30, %v12639_v38  ;;  %13184 = vmatpush3.bf16.msra.mxu1 %v14166_v33  ;;  %v18516_v18 = vsel %vm1446_vm8, %v1678_v34, %v18188_v25  ;;  %v1680_v59 = vshll.u32 %v1678_v34, 16  ;;  %v18520_v48 = vsel %vm1446_vm8, %v1774_v57, %v18180_v39  ;;  %v14172_v25 = vld [vmem:[#allocation16 + $0x738] sm:$0xff]  }
 0x52b   :  { %13185 = vmatprep.subr.bf16.mxu1 %v14169_v1  ;;  %v18524_v42 = vsel %vm1446_vm8, %v1866_v45, %v18370_v5  ;;  %v1868_v50 = vshll.u32 %v1866_v45, 16  ;;  %v18528_v33 = vsel %vm1446_vm8, %v1960_v21, %v18353_v14  ;;  %v1962_v38 = vshll.u32 %v1960_v21, 16  ;;  %v14175_v14 = vld [vmem:[#allocation16 + $0x840] sm:$0xff]   ;;  %v14177_v21 = vld [vmem:[#allocation15 + $0x1c8] sm:$0xff]  }
 0x52c   :  { %12942 = vmatpush3.bf16.msra.mxu0 %v14168_v11  ;;  %v18532_v34 = vsel %vm1446_vm8, %v1680_v59, %v18176_v40  ;;  %v18536_v39 = vsel %vm1446_vm8, %v2056_v26, %v18383_v31  ;;  %v1631_v1 = vrot.slane %v18486_v12, 5  ;;  %v18541_v5 = vsel %vm1446_vm8, %v2150_v62, %v18392_v58  ;;  %v14174_v45 = vld [vmem:[#allocation15 + $0x180] sm:$0xff]   ;;  %v14179_v59 = vld [vmem:[#allocation16 + $0x848] sm:$0xff]  }
 0x52d   :  { %12943 = vmatprep.subr.bf16.mxu0 %v14171_v35  ;;  %v18545_v11 = vsel %vm1446_vm8, %v1868_v50, %v18349_v52  ;;  %v18549_v40 = vsel %vm1446_vm8, %v1962_v38, %v18337_v0  ;;  %v18553_v31 = vsel %vm1446_vm8, %v2242_v4, %v18420_v49  ;;  %v1725_v57 = vrot.slane %v18486_v12, 7 }
 0x52e   :  { %13186 = vmatpush3.bf16.msra.mxu1 %v14170_v19  ;;  %v18558_v58 = vsel %vm1446_vm8, %v1631_v1, %v18239_v53  ;;  %v1633_v62 = vshll.u32 %v1631_v1, 16  ;;  %v2244_v35 = vshll.u32 %v2242_v4, 16  ;;  %v2336_v52 = vrot.slane %v18484_v54, 4  ;;  %v14176_v19 = vld [vmem:[#allocation16 + $0x800] sm:$0xff]   ;;  %v14181_v1 = vld [vmem:[#allocation15 + $0x1d0] sm:$0xff]  }
 0x52f   :  { %13215 = vmatprep.subr.bf16.mxu1 %v14173_v60  ;;  %v18563_v0 = vsel %vm1446_vm8, %v1725_v57, %v18252_v41  ;;  %v1727_v49 = vshll.u32 %v1725_v57, 16  ;;  %v1819_v26 = vrot.slane %v18486_v12, 1  ;;  %v1913_v30 = vrot.slane %v18486_v12, 3  ;;  %v14180_v57 = vld [vmem:[#allocation16 + $0x808] sm:$0xff]  }
 0x530   :  { %12944 = vmatpush3.bf16.msra.mxu0 %v14172_v25  ;;  %v18569_v53 = vsel %vm1446_vm8, %v1633_v62, %v18230_v29  ;;  %v18573_v4 = vsel %vm1446_vm8, %v2244_v35, %v18401_v9  ;;  %v18577_v60 = vsel %vm1446_vm8, %v2336_v52, %v18410_v46  ;;  %v2338_v41 = vshll.u32 %v2336_v52, 16  ;;  %v14178_v46 = vld [vmem:[#allocation15 + $0x188] sm:$0xff]   ;;  %v14183_v52 = vld [vmem:[#allocation16 + $0x850] sm:$0xff]  }
 0x531   :  { %11038 = vmatmul.mubr.bf16.vlgmr.msra.gmra.mrb[96].mxu1 %v18361_v63  ;;  %12973 = vmatprep.subr.bf16.mxu0 %v14175_v14  ;;  %v18582_v12 = vsel %vm1446_vm8, %v1727_v49, %v18247_v2  ;;  %v18586_v29 = vsel %vm1446_vm8, %v1819_v26, %v18438_v36  ;;  %v1821_v50 = vshll.u32 %v1819_v26, 16  ;;  %v18590_v9 = vsel %vm1446_vm8, %v1913_v30, %v18448_v7  ;;  %v18991_v36 = vld [vmem:[#allocation54_spill] sm:$0xff] }
 0x532   :  { %13216 = vmatpush3.bf16.msra.mxu1 %v14174_v45  ;;  %11117 = vmatprep.mubr.bf16.mxu1 %v18345_v22  ;;  %v18595_v63 = vsel %vm1446_vm8, %v2338_v41, %v18415_v51  ;;  %v1915_v38 = vshll.u32 %v1913_v30, 16  ;;  %v2007_v2 = vrot.slane %v18484_v54, 5  ;;  %v2101_v25 = vrot.slane %v18484_v54, 7  ;;  %v18992_v51 = vld [vmem:[#allocation55_spill] sm:$0xff] }
 0x533   :  { %8678 = vmatmul.mubr.bf16.vlgmr.msra.gmra.mrb[68].mxu0 %v18991_v36  ;;  %13217 = vmatprep.subr.bf16.mxu1 %v14177_v21  ;;  %v18602_v7 = vsel %vm1446_vm8, %v1821_v50, %v18424_v55  ;;  %v2195_v22 = vrot.slane %v18484_v54, 1  ;;  %v2289_v14 = vrot.slane %v18484_v54, 3  ;;  %v14185_v30 = vld [vmem:[#allocation15 + $0x1d8] sm:$0xff]   ;;  %v14189_v50 = vld [vmem:[#allocation15 + $0x1e0] sm:$0xff]   ;;  %v14197_v36 = vld [vmem:[#allocation15 + $0x1f0] sm:$0xff]  }
 0x534   :  { %12974 = vmatpush3.bf16.msra.mxu0 %v14176_v19  ;;  %8757 = vmatprep.mubr.bf16.mxu0 %v18992_v51  ;;  %v18609_v45 = vsel %vm1446_vm8, %v1915_v38, %v18429_v32  ;;  %v18613_v62 = vsel %vm1446_vm8, %v2007_v2, %v18457_v8  ;;  %v2009_v35 = vshll.u32 %v2007_v2, 16  ;;  %v18617_v55 = vsel %vm1446_vm8, %v2101_v25, %v18470_v47  ;;  %v14182_v8 = vld [vmem:[#allocation15 + $0x190] sm:$0xff]   ;;  %v14190_v38 = vld [vmem:[#allocation15 + $0x1a0] sm:$0xff]  }
 0x535   :  { %12975 = vmatprep.subr.bf16.mxu0 %v14179_v59  ;;  %v2103_v54 = vshll.u32 %v2101_v25, 16  ;;  %v18621_v21 = vsel %vm1446_vm8, %v2195_v22, %v18474_v44  ;;  %v2197_v49 = vshll.u32 %v2195_v22, 16  ;;  %v18625_v32 = vsel %vm1446_vm8, %v2289_v14, %v18478_v20  ;;  %v14184_v20 = vld [vmem:[#allocation16 + $0x810] sm:$0xff]   ;;  %v14186_v59 = vld [vmem:[#allocation15 + $0x198] sm:$0xff]   ;;  %v14192_v2 = vld [vmem:[#allocation16 + $0x820] sm:$0xff]  }
 0x536   :  { %13218 = vmatpush3.bf16.msra.mxu1 %v14178_v46  ;;  %v18629_v26 = vsel %vm1446_vm8, %v2009_v35, %v18442_v16  ;;  %v2291_v47 = vshll.u32 %v2289_v14, 16  ;;  %v14187_v16 = vld [vmem:[#allocation16 + $0x858] sm:$0xff]   ;;  %v14195_v25 = vld [vmem:[#allocation16 + $0x868] sm:$0xff]   ;;  %v14199_v51 = vld [vmem:[#allocation16 + $0x870] sm:$0xff]  }
 0x537   :  { %13219 = vmatprep.subr.bf16.mxu1 %v14181_v1  ;;  %v18633_v19 = vsel %vm1446_vm8, %v2103_v54, %v18452_v24  ;;  %v18637_v44 = vsel %vm1446_vm8, %v2197_v49, %v18461_v15  ;;  %v14188_v46 = vld [vmem:[#allocation16 + $0x818] sm:$0xff]   ;;  %v14191_v24 = vld [vmem:[#allocation16 + $0x860] sm:$0xff]   ;;  %v14193_v15 = vld [vmem:[#allocation15 + $0x1e8] sm:$0xff]  }
 0x538   :  { %12976 = vmatpush3.bf16.msra.mxu0 %v14180_v57  ;;  %v18641_v41 = vsel %vm1446_vm8, %v2291_v47, %v18465_v23  ;;  %v14194_v23 = vld [vmem:[#allocation15 + $0x1a8] sm:$0xff]   ;;  %v14198_v54 = vld [vmem:[#allocation15 + $0x1b0] sm:$0xff]   ;;  %v14201_v47 = vld [vmem:[#allocation15 + $0x1f8] sm:$0xff]  }
 0x539   :  { %12977 = vmatprep.subr.bf16.mxu0 %v14183_v52  ;;  %v14196_v22 = vld [vmem:[#allocation16 + $0x828] sm:$0xff]  }
 0x53a   :  { %13220 = vmatpush3.bf16.msra.mxu1 %v14182_v8 }
 0x53b   :  { %13221 = vmatprep.subr.bf16.mxu1 %v14185_v30 }
 0x53c   :  { %12978 = vmatpush3.bf16.msra.mxu0 %v14184_v20 }
 0x53d   :  { %12979 = vmatprep.subr.bf16.mxu0 %v14187_v16  ;;  %v14200_v16 = vld [vmem:[#allocation16 + $0x830] sm:$0xff]  }
 0x53e   :  { %13222 = vmatpush3.bf16.msra.mxu1 %v14186_v59 }
 0x53f   :  { %13223 = vmatprep.subr.bf16.mxu1 %v14189_v50  ;;  %v14203_v50 = vld [vmem:[#allocation16 + $0x878] sm:$0xff]  }
 0x540   :  { %12980 = vmatpush3.bf16.msra.mxu0 %v14188_v46 }
 0x541   :  { %12981 = vmatprep.subr.bf16.mxu0 %v14191_v24  ;;  %v14202_v24 = vld [vmem:[#allocation15 + $0x1b8] sm:$0xff]  }
 0x542   :  { %13224 = vmatpush3.bf16.msra.mxu1 %v14190_v38  ;;  %v14205_v38 = vld [vmem:[#allocation15 + $0x2c0] sm:$0xff]  }
 0x543   :  { %13225 = vmatprep.subr.bf16.mxu1 %v14193_v15  ;;  %v14204_v15 = vld [vmem:[#allocation16 + $0x838] sm:$0xff]  }
 0x544   :  { %v12923_v1 = vpop.f32.mrb[72].mxu1  ;;  %12982 = vmatpush3.bf16.msra.mxu0 %v14192_v2  ;;  %v18993_v2 = vld [vmem:[#allocation52_spill] sm:$0xff] }
 0x545   :  { %v12924_v14 = vpop.f32.mrb[73].mxu1  ;;  %12983 = vmatprep.subr.bf16.mxu0 %v14195_v25 }
 0x546   :  { %v18643_v57 = vadd.f32 %v12924_v14, %v12923_v1  ;;  %v12681_v35 = vpop.f32.mrb[44].mxu0  ;;  %v12926_v52 = vpop.f32.mrb[74].mxu1  ;;  %13226 = vmatpush3.bf16.msra.mxu1 %v14194_v23  ;;  %v14207_v23 = vld [vmem:[#allocation16 + $0x940] sm:$0xff]   ;;  %v14209_v1 = vld [vmem:[#allocation15 + $0x2c8] sm:$0xff]  }
 0x547   :  { %v12682_v49 = vpop.f32.mrb[45].mxu0  ;;  %v12927_v8 = vpop.f32.mrb[75].mxu1  ;;  %13227 = vmatprep.subr.bf16.mxu1 %v14197_v36  ;;  %v14206_v36 = vld [vmem:[#allocation15 + $0x280] sm:$0xff]   ;;  %v14210_v14 = vld [vmem:[#allocation15 + $0x288] sm:$0xff]   ;;  %v18995_v52 = vld [vmem:[#allocation47_spill] sm:$0xff] }
 0x548   :  { %v12683_v30 = vadd.f32 %v12682_v49, %v12681_v35  ;;  %v12684_v20 = vpop.f32.mrb[46].mxu0  ;;  %12984 = vmatpush3.bf16.msra.mxu0 %v14196_v22  ;;  %v14208_v22 = vld [vmem:[#allocation16 + $0x900] sm:$0xff]   ;;  %v14213_v35 = vld [vmem:[#allocation15 + $0x2d0] sm:$0xff]  }
 0x549   :  { %v12685_v59 = vpop.f32.mrb[47].mxu0  ;;  %12985 = vmatprep.subr.bf16.mxu0 %v14199_v51  ;;  %v18994_v51 = vld [vmem:[#allocation39_spill] sm:$0xff]  ;;  %v14221_v20 = vld [vmem:[#allocation15 + $0x2e0] sm:$0xff]  }
 0x54a   :  { %v8200_v46 = vadd.f32 %v12683_v30, %v18512_v43  ;;  %13228 = vmatpush3.bf16.msra.mxu1 %v14198_v54  ;;  %v14211_v43 = vld [vmem:[#allocation16 + $0x948] sm:$0xff]   ;;  %v14215_v49 = vld [vmem:[#allocation16 + $0x950] sm:$0xff]   ;;  %v14219_v30 = vld [vmem:[#allocation16 + $0x958] sm:$0xff]  }
 0x54b   :  { %13229 = vmatprep.subr.bf16.mxu1 %v14201_v47  ;;  %v14212_v54 = vld [vmem:[#allocation16 + $0x908] sm:$0xff]   ;;  %v14214_v8 = vld [vmem:[#allocation15 + $0x290] sm:$0xff]   ;;  %v14223_v59 = vld [vmem:[#allocation16 + $0x960] sm:$0xff]  }
 0x54c   :  { %12986 = vmatpush3.bf16.msra.mxu0 %v14200_v16  ;;  %v18647_v25 = vadd.f32 %v18993_v2, %v8200_v46  ;;  %v14216_v47 = vld [vmem:[#allocation16 + $0x910] sm:$0xff]   ;;  %v14220_v16 = vld [vmem:[#allocation16 + $0x918] sm:$0xff]   ;;  %v14225_v46 = vld [vmem:[#allocation15 + $0x2e8] sm:$0xff]  }
 0x54d   :  { %12987 = vmatprep.subr.bf16.mxu0 %v14203_v50  ;;  %v14222_v50 = vld [vmem:[#allocation15 + $0x2a0] sm:$0xff]   ;;  %v14229_v2 = vld [vmem:[#allocation15 + $0x2f0] sm:$0xff]  }
 0x54e   :  { %13230 = vmatpush3.bf16.msra.mxu1 %v14202_v24  ;;  %v14224_v24 = vld [vmem:[#allocation16 + $0x920] sm:$0xff]  }
 0x54f   :  { %13259 = vmatprep.subr.bf16.mxu1 %v14205_v38  ;;  %v14227_v38 = vld [vmem:[#allocation16 + $0x968] sm:$0xff]  }
 0x550   :  { %12988 = vmatpush3.bf16.msra.mxu0 %v14204_v15  ;;  %v14226_v15 = vld [vmem:[#allocation15 + $0x2a8] sm:$0xff]  }
 0x551   :  { %11118 = vmatmul.mubr.bf16.vlgmr.msra.gmra.mrb[100].mxu1 %v18365_v27  ;;  %13017 = vmatprep.subr.bf16.mxu0 %v14207_v23  ;;  %v14217_v27 = vld [vmem:[#allocation15 + $0x2d8] sm:$0xff]  }
 0x552   :  { %13260 = vmatpush3.bf16.msra.mxu1 %v14206_v36  ;;  %11197 = vmatprep.mubr.bf16.mxu1 %v18516_v18  ;;  %v14218_v18 = vld [vmem:[#allocation15 + $0x298] sm:$0xff]   ;;  %v14228_v36 = vld [vmem:[#allocation16 + $0x928] sm:$0xff]  }
 0x553   :  { %8758 = vmatmul.mubr.bf16.vlgmr.msra.gmra.mrb[72].mxu0 %v18994_v51  ;;  %13261 = vmatprep.subr.bf16.mxu1 %v14209_v1 }
 0x554   :  { %13018 = vmatpush3.bf16.msra.mxu0 %v14208_v22  ;;  %8837 = vmatprep.mubr.bf16.mxu0 %v18995_v52  ;;  %v14231_v22 = vld [vmem:[#allocation16 + $0x970] sm:$0xff]  }
 0x555   :  { %13019 = vmatprep.subr.bf16.mxu0 %v14211_v43 }
 0x556   :  { %13262 = vmatpush3.bf16.msra.mxu1 %v14210_v14 }
 0x557   :  { %13263 = vmatprep.subr.bf16.mxu1 %v14213_v35  ;;  %v14230_v35 = vld [vmem:[#allocation15 + $0x2b0] sm:$0xff]  }
 0x558   :  { %13020 = vmatpush3.bf16.msra.mxu0 %v14212_v54 }
 0x559   :  { %13021 = vmatprep.subr.bf16.mxu0 %v14215_v49  ;;  %v14233_v49 = vld [vmem:[#allocation15 + $0x2f8] sm:$0xff]  }
 0x55a   :  { %13264 = vmatpush3.bf16.msra.mxu1 %v14214_v8 }
 0x55b   :  { %13265 = vmatprep.subr.bf16.mxu1 %v14217_v27 }
 0x55c   :  { %13022 = vmatpush3.bf16.msra.mxu0 %v14216_v47  ;;  %v14232_v47 = vld [vmem:[#allocation16 + $0x930] sm:$0xff]  }
 0x55d   :  { %13023 = vmatprep.subr.bf16.mxu0 %v14219_v30 }
 0x55e   :  { %13266 = vmatpush3.bf16.msra.mxu1 %v14218_v18  ;;  %v14235_v18 = vld [vmem:[#allocation16 + $0x978] sm:$0xff]  }
 0x55f   :  { %13267 = vmatprep.subr.bf16.mxu1 %v14221_v20 }
 0x560   :  { %13024 = vmatpush3.bf16.msra.mxu0 %v14220_v16  ;;  %v14234_v16 = vld [vmem:[#allocation15 + $0x2b8] sm:$0xff]  }
 0x561   :  { %13025 = vmatprep.subr.bf16.mxu0 %v14223_v59  ;;  %v14237_v59 = vld [vmem:[#allocation15 + $0x3c0] sm:$0xff]  }
 0x562   :  { %13268 = vmatpush3.bf16.msra.mxu1 %v14222_v50  ;;  %v14236_v50 = vld [vmem:[#allocation16 + $0x938] sm:$0xff]  }
 0x563   :  { %13269 = vmatprep.subr.bf16.mxu1 %v14225_v46  ;;  %v18996_v46 = vld [vmem:[#allocation34_spill] sm:$0xff] }
 0x564   :  { %v12967_v23 = vpop.f32.mrb[76].mxu1  ;;  %13026 = vmatpush3.bf16.msra.mxu0 %v14224_v24 }
 0x565   :  { %v12968_v1 = vpop.f32.mrb[77].mxu1  ;;  %13027 = vmatprep.subr.bf16.mxu0 %v14227_v38  ;;  %v14239_v38 = vld [vmem:[#allocation16 + $0xa40] sm:$0xff]  }
 0x566   :  { %v18653_v43 = vadd.f32 %v12968_v1, %v12967_v23  ;;  %v12725_v14 = vpop.f32.mrb[48].mxu0  ;;  %v12970_v51 = vpop.f32.mrb[78].mxu1  ;;  %13270 = vmatpush3.bf16.msra.mxu1 %v14226_v15  ;;  %v14238_v15 = vld [vmem:[#allocation15 + $0x380] sm:$0xff]   ;;  %v18997_v1 = vld [vmem:[#allocation42_spill] sm:$0xff] }
 0x567   :  { %v12726_v52 = vpop.f32.mrb[49].mxu0  ;;  %v12971_v54 = vpop.f32.mrb[79].mxu1  ;;  %13271 = vmatprep.subr.bf16.mxu1 %v14229_v2  ;;  %v14241_v2 = vld [vmem:[#allocation15 + $0x3c8] sm:$0xff]   ;;  %v14240_v23 = vld [vmem:[#allocation16 + $0xa00] sm:$0xff]  }
 0x568   :  { %v12727_v8 = vadd.f32 %v12726_v52, %v12725_v14  ;;  %v12728_v27 = vpop.f32.mrb[50].mxu0  ;;  %13028 = vmatpush3.bf16.msra.mxu0 %v14228_v36  ;;  %v14242_v36 = vld [vmem:[#allocation15 + $0x388] sm:$0xff]   ;;  %v14246_v52 = vld [vmem:[#allocation15 + $0x390] sm:$0xff]  }
 0x569   :  { %v12729_v30 = vpop.f32.mrb[51].mxu0  ;;  %13029 = vmatprep.subr.bf16.mxu0 %v14231_v22  ;;  %v14245_v22 = vld [vmem:[#allocation15 + $0x3d0] sm:$0xff]   ;;  %v14244_v51 = vld [vmem:[#allocation16 + $0xa08] sm:$0xff]   ;;  %v14252_v27 = vld [vmem:[#allocation16 + $0xa18] sm:$0xff]  }
 0x56a   :  { %v8280_v20 = vadd.f32 %v12727_v8, %v18647_v25  ;;  %13272 = vmatpush3.bf16.msra.mxu1 %v14230_v35  ;;  %v14243_v25 = vld [vmem:[#allocation16 + $0xa48] sm:$0xff]   ;;  %v14247_v35 = vld [vmem:[#allocation16 + $0xa50] sm:$0xff]   ;;  %v14253_v8 = vld [vmem:[#allocation15 + $0x3e0] sm:$0xff]  }
 0x56b   :  { %13273 = vmatprep.subr.bf16.mxu1 %v14233_v49  ;;  %v18998_v14 = vld [vmem:[#allocation46_spill] sm:$0xff]  ;;  %v14251_v49 = vld [vmem:[#allocation16 + $0xa58] sm:$0xff]   ;;  %v14254_v30 = vld [vmem:[#allocation15 + $0x3a0] sm:$0xff]  }
 0x56c   :  { %13030 = vmatpush3.bf16.msra.mxu0 %v14232_v47  ;;  %v18657_v24 = vadd.f32 %v18996_v46, %v8280_v20  ;;  %v14248_v54 = vld [vmem:[#allocation16 + $0xa10] sm:$0xff]   ;;  %v14255_v47 = vld [vmem:[#allocation16 + $0xa60] sm:$0xff]  }
 0x56d   :  { %13031 = vmatprep.subr.bf16.mxu0 %v14235_v18  ;;  %v14257_v18 = vld [vmem:[#allocation15 + $0x3e8] sm:$0xff]   ;;  %v14256_v20 = vld [vmem:[#allocation16 + $0xa20] sm:$0xff]  }
 0x56e   :  { %13274 = vmatpush3.bf16.msra.mxu1 %v14234_v16  ;;  %v14259_v16 = vld [vmem:[#allocation16 + $0xa68] sm:$0xff]  }
 0x56f   :  { %13303 = vmatprep.subr.bf16.mxu1 %v14237_v59  ;;  %v14258_v59 = vld [vmem:[#allocation15 + $0x3a8] sm:$0xff]  }
 0x570   :  { %13032 = vmatpush3.bf16.msra.mxu0 %v14236_v50  ;;  %v14261_v50 = vld [vmem:[#allocation15 + $0x3f0] sm:$0xff]  }
 0x571   :  { %11198 = vmatmul.mubr.bf16.vlgmr.msra.gmra.mrb[104].mxu1 %v18532_v34  ;;  %13061 = vmatprep.subr.bf16.mxu0 %v14239_v38  ;;  %v14249_v34 = vld [vmem:[#allocation15 + $0x3d8] sm:$0xff]   ;;  %v14260_v38 = vld [vmem:[#allocation16 + $0xa28] sm:$0xff]  }
 0x572   :  { %13304 = vmatpush3.bf16.msra.mxu1 %v14238_v15  ;;  %11277 = vmatprep.mubr.bf16.mxu1 %v18502_v61  ;;  %v14250_v61 = vld [vmem:[#allocation15 + $0x398] sm:$0xff]  }
 0x573   :  { %8838 = vmatmul.mubr.bf16.vlgmr.msra.gmra.mrb[76].mxu0 %v18997_v1  ;;  %13305 = vmatprep.subr.bf16.mxu1 %v14241_v2  ;;  %v14263_v2 = vld [vmem:[#allocation16 + $0xa70] sm:$0xff]  }
 0x574   :  { %13062 = vmatpush3.bf16.msra.mxu0 %v14240_v23  ;;  %8917 = vmatprep.mubr.bf16.mxu0 %v18998_v14  ;;  %v14262_v1 = vld [vmem:[#allocation15 + $0x3b0] sm:$0xff]  }
 0x575   :  { %13063 = vmatprep.subr.bf16.mxu0 %v14243_v25 }
 0x576   :  { %13306 = vmatpush3.bf16.msra.mxu1 %v14242_v36 }
 0x577   :  { %13307 = vmatprep.subr.bf16.mxu1 %v14245_v22 }
 0x578   :  { %13064 = vmatpush3.bf16.msra.mxu0 %v14244_v51  ;;  %v14265_v51 = vld [vmem:[#allocation15 + $0x3f8] sm:$0xff]  }
 0x579   :  { %13065 = vmatprep.subr.bf16.mxu0 %v14247_v35 }
 0x57a   :  { %13308 = vmatpush3.bf16.msra.mxu1 %v14246_v52 }
 0x57b   :  { %13309 = vmatprep.subr.bf16.mxu1 %v14249_v34  ;;  %v14264_v34 = vld [vmem:[#allocation16 + $0xa30] sm:$0xff]  }
 0x57c   :  { %13066 = vmatpush3.bf16.msra.mxu0 %v14248_v54 }
 0x57d   :  { %13067 = vmatprep.subr.bf16.mxu0 %v14251_v49  ;;  %v14267_v49 = vld [vmem:[#allocation16 + $0xa78] sm:$0xff]  }
 0x57e   :  { %13310 = vmatpush3.bf16.msra.mxu1 %v14250_v61 }
 0x57f   :  { %13311 = vmatprep.subr.bf16.mxu1 %v14253_v8  ;;  %v14266_v8 = vld [vmem:[#allocation15 + $0x3b8] sm:$0xff]  }
 0x580   :  { %13068 = vmatpush3.bf16.msra.mxu0 %v14252_v27  ;;  %v14269_v27 = vld [vmem:[#allocation15 + $0x4c0] sm:$0xff]  }
 0x581   :  { %13069 = vmatprep.subr.bf16.mxu0 %v14255_v47  ;;  %v14268_v47 = vld [vmem:[#allocation16 + $0xa38] sm:$0xff]  }
 0x582   :  { %13312 = vmatpush3.bf16.msra.mxu1 %v14254_v30 }
 0x583   :  { %13313 = vmatprep.subr.bf16.mxu1 %v14257_v18  ;;  %v14271_v18 = vld [vmem:[#allocation16 + $0xb40] sm:$0xff]  }
 0x584   :  { %v13011_v46 = vpop.f32.mrb[80].mxu1  ;;  %13070 = vmatpush3.bf16.msra.mxu0 %v14256_v20  ;;  %v14270_v20 = vld [vmem:[#allocation15 + $0x480] sm:$0xff]  }
 0x585   :  { %v13012_v15 = vpop.f32.mrb[81].mxu1  ;;  %13071 = vmatprep.subr.bf16.mxu0 %v14259_v16  ;;  %v14273_v16 = vld [vmem:[#allocation15 + $0x4c8] sm:$0xff]  }
 0x586   :  { %v18663_v23 = vadd.f32 %v13012_v15, %v13011_v46  ;;  %v12769_v25 = vpop.f32.mrb[52].mxu0  ;;  %v13014_v36 = vpop.f32.mrb[82].mxu1  ;;  %13314 = vmatpush3.bf16.msra.mxu1 %v14258_v59  ;;  %v14272_v59 = vld [vmem:[#allocation16 + $0xb00] sm:$0xff]   ;;  %v14279_v15 = vld [vmem:[#allocation16 + $0xb50] sm:$0xff]  }
 0x587   :  { %v12770_v22 = vpop.f32.mrb[53].mxu0  ;;  %v13015_v14 = vpop.f32.mrb[83].mxu1  ;;  %13315 = vmatprep.subr.bf16.mxu1 %v14261_v50  ;;  %v14274_v50 = vld [vmem:[#allocation15 + $0x488] sm:$0xff]   ;;  %v18999_v46 = vld [vmem:[#allocation32_spill] sm:$0xff] }
 0x588   :  { %v12771_v35 = vadd.f32 %v12770_v22, %v12769_v25  ;;  %v12772_v52 = vpop.f32.mrb[54].mxu0  ;;  %13072 = vmatpush3.bf16.msra.mxu0 %v14260_v38  ;;  %v14276_v38 = vld [vmem:[#allocation16 + $0xb08] sm:$0xff]   ;;  %v14280_v25 = vld [vmem:[#allocation16 + $0xb10] sm:$0xff]   ;;  %v14283_v36 = vld [vmem:[#allocation16 + $0xb58] sm:$0xff]  }
 0x589   :  { %v12773_v54 = vpop.f32.mrb[55].mxu0  ;;  %13073 = vmatprep.subr.bf16.mxu0 %v14263_v2  ;;  %v14278_v2 = vld [vmem:[#allocation15 + $0x490] sm:$0xff]   ;;  %v14287_v22 = vld [vmem:[#allocation16 + $0xb60] sm:$0xff]   ;;  %v14291_v52 = vld [vmem:[#allocation16 + $0xb68] sm:$0xff]  }
 0x58a   :  { %v8360_v61 = vadd.f32 %v12771_v35, %v18657_v24  ;;  %13316 = vmatpush3.bf16.msra.mxu1 %v14262_v1  ;;  %v14275_v24 = vld [vmem:[#allocation16 + $0xb48] sm:$0xff]   ;;  %v14284_v1 = vld [vmem:[#allocation16 + $0xb18] sm:$0xff]   ;;  %v14286_v14 = vld [vmem:[#allocation15 + $0x4a0] sm:$0xff]  }
 0x58b   :  { %13317 = vmatprep.subr.bf16.mxu1 %v14265_v51  ;;  %v14289_v51 = vld [vmem:[#allocation15 + $0x4e8] sm:$0xff]   ;;  %v14288_v35 = vld [vmem:[#allocation16 + $0xb20] sm:$0xff]   ;;  %v14293_v54 = vld [vmem:[#allocation15 + $0x4f0] sm:$0xff]  }
 0x58c   :  { %13074 = vmatpush3.bf16.msra.mxu0 %v14264_v34  ;;  %v18667_v30 = vadd.f32 %v18206_v17, %v8360_v61  ;;  %v14277_v17 = vld [vmem:[#allocation15 + $0x4d0] sm:$0xff]   ;;  %v14290_v34 = vld [vmem:[#allocation15 + $0x4a8] sm:$0xff]  }
 0x58d   :  { %13075 = vmatprep.subr.bf16.mxu0 %v14267_v49  ;;  %v14292_v61 = vld [vmem:[#allocation16 + $0xb28] sm:$0xff]  }
 0x58e   :  { %13318 = vmatpush3.bf16.msra.mxu1 %v14266_v8 }
 0x58f   :  { %13347 = vmatprep.subr.bf16.mxu1 %v14269_v27  ;;  %v14295_v27 = vld [vmem:[#allocation16 + $0xb70] sm:$0xff]  }
 0x590   :  { %13076 = vmatpush3.bf16.msra.mxu0 %v14268_v47 }
 0x591   :  { %11278 = vmatmul.mubr.bf16.vlgmr.msra.gmra.mrb[108].mxu1 %v18520_v48  ;;  %13105 = vmatprep.subr.bf16.mxu0 %v14271_v18  ;;  %v14281_v48 = vld [vmem:[#allocation15 + $0x4d8] sm:$0xff]  }
 0x592   :  { %13348 = vmatpush3.bf16.msra.mxu1 %v14270_v20  ;;  %11357 = vmatprep.mubr.bf16.mxu1 %v18524_v42  ;;  %v14282_v42 = vld [vmem:[#allocation15 + $0x498] sm:$0xff]  }
 0x593   :  { %8918 = vmatmul.mubr.bf16.vlgmr.msra.gmra.mrb[80].mxu0 %v18146_v10  ;;  %13349 = vmatprep.subr.bf16.mxu1 %v14273_v16  ;;  %v14285_v10 = vld [vmem:[#allocation15 + $0x4e0] sm:$0xff]   ;;  %v14294_v16 = vld [vmem:[#allocation15 + $0x4b0] sm:$0xff]  }
 0x594   :  { %13106 = vmatpush3.bf16.msra.mxu0 %v14272_v59  ;;  %8997 = vmatprep.mubr.bf16.mxu0 %v18999_v46 }
 0x595   :  { %13107 = vmatprep.subr.bf16.mxu0 %v14275_v24 }
 0x596   :  { %13350 = vmatpush3.bf16.msra.mxu1 %v14274_v50  ;;  %v14297_v50 = vld [vmem:[#allocation15 + $0x4f8] sm:$0xff]  }
 0x597   :  { %13351 = vmatprep.subr.bf16.mxu1 %v14277_v17 }
 0x598   :  { %13108 = vmatpush3.bf16.msra.mxu0 %v14276_v38  ;;  %v14296_v38 = vld [vmem:[#allocation16 + $0xb30] sm:$0xff]  }
 0x599   :  { %13109 = vmatprep.subr.bf16.mxu0 %v14279_v15 }
 0x59a   :  { %13352 = vmatpush3.bf16.msra.mxu1 %v14278_v2  ;;  %v14299_v2 = vld [vmem:[#allocation16 + $0xb78] sm:$0xff]  }
 0x59b   :  { %13353 = vmatprep.subr.bf16.mxu1 %v14281_v48 }
 0x59c   :  { %13110 = vmatpush3.bf16.msra.mxu0 %v14280_v25  ;;  %v14298_v25 = vld [vmem:[#allocation15 + $0x4b8] sm:$0xff]  }
 0x59d   :  { %13111 = vmatprep.subr.bf16.mxu0 %v14283_v36  ;;  %v14301_v36 = vld [vmem:[#allocation15 + $0x5c0] sm:$0xff]  }
 0x59e   :  { %13354 = vmatpush3.bf16.msra.mxu1 %v14282_v42  ;;  %v14300_v42 = vld [vmem:[#allocation16 + $0xb38] sm:$0xff]  }
 0x59f   :  { %13355 = vmatprep.subr.bf16.mxu1 %v14285_v10 }
 0x5a0   :  { %13112 = vmatpush3.bf16.msra.mxu0 %v14284_v1  ;;  %v14303_v1 = vld [vmem:[#allocation15 + $0x40] sm:$0xff]  }
 0x5a1   :  { %13113 = vmatprep.subr.bf16.mxu0 %v14287_v22  ;;  %v14302_v22 = vld [vmem:[#allocation15 + $0x580] sm:$0xff]  }
 0x5a2   :  { %13356 = vmatpush3.bf16.msra.mxu1 %v14286_v14  ;;  %v14305_v14 = vld [vmem:[#allocation15 + $0x5c8] sm:$0xff]  }
 0x5a3   :  { %13357 = vmatprep.subr.bf16.mxu1 %v14289_v51  ;;  %v14304_v51 = vld [vmem:[#allocation15] sm:$0xff]  }
 0x5a4   :  { %v13055_v49 = vpop.f32.mrb[84].mxu1  ;;  %13114 = vmatpush3.bf16.msra.mxu0 %v14288_v35  ;;  %v14306_v35 = vld [vmem:[#allocation15 + $0x588] sm:$0xff]  }
 0x5a5   :  { %v13056_v8 = vpop.f32.mrb[85].mxu1  ;;  %13115 = vmatprep.subr.bf16.mxu0 %v14291_v52  ;;  %v14308_v52 = vld [vmem:[#allocation15 + $0x8] sm:$0xff]  }
 0x5a6   :  { %v18673_v47 = vadd.f32 %v13056_v8, %v13055_v49  ;;  %v12813_v18 = vpop.f32.mrb[56].mxu0  ;;  %v13058_v20 = vpop.f32.mrb[86].mxu1  ;;  %13358 = vmatpush3.bf16.msra.mxu1 %v14290_v34  ;;  %v14311_v34 = vld [vmem:[#allocation15 + $0x50] sm:$0xff]   ;;  %v14316_v8 = vld [vmem:[#allocation15 + $0x18] sm:$0xff]  }
 0x5a7   :  { %v12814_v59 = vpop.f32.mrb[57].mxu0  ;;  %v13059_v24 = vpop.f32.mrb[87].mxu1  ;;  %13359 = vmatprep.subr.bf16.mxu1 %v14293_v54  ;;  %v14310_v54 = vld [vmem:[#allocation15 + $0x590] sm:$0xff]   ;;  %v14320_v20 = vld [vmem:[#allocation15 + $0x20] sm:$0xff]  }
 0x5a8   :  { %v12815_v17 = vadd.f32 %v12814_v59, %v12813_v18  ;;  %v12816_v46 = vpop.f32.mrb[58].mxu0  ;;  %13116 = vmatpush3.bf16.msra.mxu0 %v14292_v61  ;;  %v14312_v49 = vld [vmem:[#allocation15 + $0x10] sm:$0xff]   ;;  %v14315_v61 = vld [vmem:[#allocation15 + $0x58] sm:$0xff]   ;;  %v14321_v18 = vld [vmem:[#allocation15 + $0x5e8] sm:$0xff]  }
 0x5a9   :  { %v12817_v15 = vpop.f32.mrb[59].mxu0  ;;  %13117 = vmatprep.subr.bf16.mxu0 %v14295_v27  ;;  %v14319_v27 = vld [vmem:[#allocation15 + $0x60] sm:$0xff]   ;;  %v14322_v59 = vld [vmem:[#allocation15 + $0x5a8] sm:$0xff]   ;;  %v14325_v24 = vld [vmem:[#allocation15 + $0x5f0] sm:$0xff]  }
 0x5aa   :  { %v8440_v48 = vadd.f32 %v12815_v17, %v18667_v30  ;;  %13360 = vmatpush3.bf16.msra.mxu1 %v14294_v16  ;;  %v14307_v30 = vld [vmem:[#allocation15 + $0x48] sm:$0xff]  }
 0x5ab   :  { %13361 = vmatprep.subr.bf16.mxu1 %v14297_v50  ;;  %v14323_v16 = vld [vmem:[#allocation15 + $0x68] sm:$0xff]  }
 0x5ac   :  { %13118 = vmatpush3.bf16.msra.mxu0 %v14296_v38  ;;  %v18677_v10 = vadd.f32 %v18330_v37, %v8440_v48  ;;  %v14309_v37 = vld [vmem:[#allocation15 + $0x5d0] sm:$0xff]   ;;  %v14324_v17 = vld [vmem:[#allocation15 + $0x28] sm:$0xff]  }
 0x5ad   :  { %13119 = vmatprep.subr.bf16.mxu0 %v14299_v2  ;;  %v14327_v38 = vld [vmem:[#allocation15 + $0x70] sm:$0xff]  }
 0x5ae   :  { %13362 = vmatpush3.bf16.msra.mxu1 %v14298_v25  ;;  %v14326_v25 = vld [vmem:[#allocation15 + $0x5b0] sm:$0xff]  }
 0x5af   :  { %13391 = vmatprep.subr.bf16.mxu1 %v14301_v36 }
 0x5b0   :  { %13120 = vmatpush3.bf16.msra.mxu0 %v14300_v42 }
 0x5b1   :  { %11358 = vmatmul.mubr.bf16.vlgmr.msra.gmra.mrb[112].mxu1 %v18545_v11  ;;  %13149 = vmatprep.subr.bf16.mxu0 %v14303_v1  ;;  %v14313_v11 = vld [vmem:[#allocation15 + $0x5d8] sm:$0xff]  }
 0x5b2   :  { %13392 = vmatpush3.bf16.msra.mxu1 %v14302_v22  ;;  %11437 = vmatprep.mubr.bf16.mxu1 %v18528_v33  ;;  %v14314_v33 = vld [vmem:[#allocation15 + $0x598] sm:$0xff]  }
 0x5b3   :  { %8998 = vmatmul.mubr.bf16.vlgmr.msra.gmra.mrb[84].mxu0 %v18318_v56  ;;  %13393 = vmatprep.subr.bf16.mxu1 %v14305_v14  ;;  %v14317_v56 = vld [vmem:[#allocation15 + $0x5e0] sm:$0xff]   ;;  %v14329_v1 = vld [vmem:[#allocation15 + $0x5f8] sm:$0xff]  }
 0x5b4   :  { %13150 = vmatpush3.bf16.msra.mxu0 %v14304_v51  ;;  %10997 = vmatprep.mubr.bf16.mxu0 %v18357_v3  ;;  %v14318_v3 = vld [vmem:[#allocation15 + $0x5a0] sm:$0xff]   ;;  %v14328_v51 = vld [vmem:[#allocation15 + $0x30] sm:$0xff]  }
 0x5b5   :  { %13151 = vmatprep.subr.bf16.mxu0 %v14307_v30 }
 0x5b6   :  { %13394 = vmatpush3.bf16.msra.mxu1 %v14306_v35  ;;  %v14331_v35 = vld [vmem:[#allocation15 + $0x78] sm:$0xff]  }
 0x5b7   :  { %13395 = vmatprep.subr.bf16.mxu1 %v14309_v37 }
 0x5b8   :  { %13152 = vmatpush3.bf16.msra.mxu0 %v14308_v52  ;;  %v14330_v52 = vld [vmem:[#allocation15 + $0x5b8] sm:$0xff]  }
 0x5b9   :  { %13153 = vmatprep.subr.bf16.mxu0 %v14311_v34  ;;  %v14333_v34 = vld [vmem:[#allocation15 + $0x6c0] sm:$0xff]  }
 0x5ba   :  { %13396 = vmatpush3.bf16.msra.mxu1 %v14310_v54  ;;  %v14332_v54 = vld [vmem:[#allocation15 + $0x38] sm:$0xff]  }
 0x5bb   :  { %13397 = vmatprep.subr.bf16.mxu1 %v14313_v11 }
 0x5bc   :  { %13154 = vmatpush3.bf16.msra.mxu0 %v14312_v49  ;;  %v14335_v49 = vld [vmem:[#allocation15 + $0x140] sm:$0xff]  }
 0x5bd   :  { %13155 = vmatprep.subr.bf16.mxu0 %v14315_v61  ;;  %v14334_v61 = vld [vmem:[#allocation15 + $0x680] sm:$0xff]  }
 0x5be   :  { %13398 = vmatpush3.bf16.msra.mxu1 %v14314_v33  ;;  %v14337_v33 = vld [vmem:[#allocation15 + $0x6c8] sm:$0xff]  }
 0x5bf   :  { %13399 = vmatprep.subr.bf16.mxu1 %v14317_v56  ;;  %v14336_v56 = vld [vmem:[#allocation15 + $0x100] sm:$0xff]  }
 0x5c0   :  { %13156 = vmatpush3.bf16.msra.mxu0 %v14316_v8  ;;  %v14338_v8 = vld [vmem:[#allocation15 + $0x688] sm:$0xff]  }
 0x5c1   :  { %13157 = vmatprep.subr.bf16.mxu0 %v14319_v27  ;;  %v19000_v27 = vld [vmem:[#allocation35_spill] sm:$0xff] }
 0x5c2   :  { %13400 = vmatpush3.bf16.msra.mxu1 %v14318_v3  ;;  %v14340_v3 = vld [vmem:[#allocation15 + $0x108] sm:$0xff]  }
 0x5c3   :  { %13401 = vmatprep.subr.bf16.mxu1 %v14321_v18  ;;  %v14343_v18 = vld [vmem:[#allocation15 + $0x150] sm:$0xff]  }
 0x5c4   :  { %v13099_v50 = vpop.f32.mrb[88].mxu1  ;;  %13158 = vmatpush3.bf16.msra.mxu0 %v14320_v20  ;;  %v14342_v20 = vld [vmem:[#allocation15 + $0x690] sm:$0xff]  }
 0x5c5   :  { %v13100_v46 = vpop.f32.mrb[89].mxu1  ;;  %13159 = vmatprep.subr.bf16.mxu0 %v14323_v16  ;;  %v14344_v16 = vld [vmem:[#allocation15 + $0x110] sm:$0xff]  }
 0x5c6   :  { %v18683_v15 = vadd.f32 %v13100_v46, %v13099_v50  ;;  %v12857_v2 = vpop.f32.mrb[60].mxu0  ;;  %v13102_v48 = vpop.f32.mrb[90].mxu1  ;;  %13402 = vmatpush3.bf16.msra.mxu1 %v14322_v59  ;;  %v14347_v59 = vld [vmem:[#allocation15 + $0x158] sm:$0xff]   ;;  %v14351_v50 = vld [vmem:[#allocation15 + $0x160] sm:$0xff]   ;;  %v14353_v46 = vld [vmem:[#allocation15 + $0x6e8] sm:$0xff]  }
 0x5c7   :  { %v12858_v36 = vpop.f32.mrb[61].mxu0  ;;  %v13103_v42 = vpop.f32.mrb[91].mxu1  ;;  %13403 = vmatprep.subr.bf16.mxu1 %v14325_v24  ;;  %v14348_v24 = vld [vmem:[#allocation15 + $0x118] sm:$0xff]   ;;  %v14354_v48 = vld [vmem:[#allocation15 + $0x6a8] sm:$0xff]  }
 0x5c8   :  { %v12859_v22 = vadd.f32 %v12858_v36, %v12857_v2  ;;  %v12860_v14 = vpop.f32.mrb[62].mxu0  ;;  %13160 = vmatpush3.bf16.msra.mxu0 %v14324_v17  ;;  %v14350_v17 = vld [vmem:[#allocation15 + $0x6a0] sm:$0xff]   ;;  %v14355_v2 = vld [vmem:[#allocation15 + $0x168] sm:$0xff]  }
 0x5c9   :  { %v12861_v30 = vpop.f32.mrb[63].mxu0  ;;  %13161 = vmatprep.subr.bf16.mxu0 %v14327_v38  ;;  %v14352_v38 = vld [vmem:[#allocation15 + $0x120] sm:$0xff]   ;;  %v14356_v42 = vld [vmem:[#allocation15 + $0x128] sm:$0xff]  }
 0x5ca   :  { %v8520_v37 = vadd.f32 %v12859_v22, %v18677_v10  ;;  %13404 = vmatpush3.bf16.msra.mxu1 %v14326_v25  ;;  %v14339_v10 = vld [vmem:[#allocation15 + $0x148] sm:$0xff]   ;;  %v14357_v25 = vld [vmem:[#allocation15 + $0x6f0] sm:$0xff]  }
 0x5cb   :  { %13405 = vmatprep.subr.bf16.mxu1 %v14329_v1  ;;  %v14359_v22 = vld [vmem:[#allocation15 + $0x170] sm:$0xff]  }
 0x5cc   :  { %13162 = vmatpush3.bf16.msra.mxu0 %v14328_v51  ;;  %v18687_v11 = vadd.f32 %v18488_v6, %v8520_v37  ;;  %v14341_v6 = vld [vmem:[#allocation15 + $0x6d0] sm:$0xff]  }
 0x5cd   :  { %13163 = vmatprep.subr.bf16.mxu0 %v14331_v35  ;;  %v14358_v35 = vld [vmem:[#allocation15 + $0x6b0] sm:$0xff]  }
 0x5ce   :  { %13406 = vmatpush3.bf16.msra.mxu1 %v14330_v52 }
 0x5cf   :  { %13435 = vmatprep.subr.bf16.mxu1 %v14333_v34  ;;  %v14361_v34 = vld [vmem:[#allocation15 + $0x6f8] sm:$0xff]  }
 0x5d0   :  { %13164 = vmatpush3.bf16.msra.mxu0 %v14332_v54 }
 0x5d1   :  { %11438 = vmatmul.mubr.bf16.vlgmr.msra.gmra.mrb[116].mxu1 %v18549_v40  ;;  %13193 = vmatprep.subr.bf16.mxu0 %v14335_v49  ;;  %v14345_v40 = vld [vmem:[#allocation15 + $0x6d8] sm:$0xff]  }
 0x5d2   :  { %13436 = vmatpush3.bf16.msra.mxu1 %v14334_v61  ;;  %11517 = vmatprep.mubr.bf16.mxu1 %v18509_v28  ;;  %v14346_v28 = vld [vmem:[#allocation15 + $0x698] sm:$0xff]   ;;  %v14360_v61 = vld [vmem:[#allocation15 + $0x130] sm:$0xff]  }
 0x5d3   :  { %10998 = vmatmul.mubr.bf16.vlgmr.msra.gmra.mrb[88].mxu0 %v18379_v13  ;;  %13437 = vmatprep.subr.bf16.mxu1 %v14337_v33  ;;  %v14349_v13 = vld [vmem:[#allocation15 + $0x6e0] sm:$0xff]  }
 0x5d4   :  { %13194 = vmatpush3.bf16.msra.mxu0 %v14336_v56  ;;  %11077 = vmatprep.mubr.bf16.mxu0 %v19000_v27  ;;  %v14363_v56 = vld [vmem:[#allocation15 + $0x178] sm:$0xff]  }
 0x5d5   :  { %13195 = vmatprep.subr.bf16.mxu0 %v14339_v10  ;;  %v14364_v27 = vld [vmem:[#allocation15 + $0x138] sm:$0xff]  }
 0x5d6   :  { %13438 = vmatpush3.bf16.msra.mxu1 %v14338_v8  ;;  %v14362_v8 = vld [vmem:[#allocation15 + $0x6b8] sm:$0xff]  }
 0x5d7   :  { %13439 = vmatprep.subr.bf16.mxu1 %v14341_v6  ;;  %v14365_v6 = vld [vmem:[#allocation15 + $0x7c0] sm:$0xff]  }
 0x5d8   :  { %13196 = vmatpush3.bf16.msra.mxu0 %v14340_v3 }
 0x5d9   :  { %13197 = vmatprep.subr.bf16.mxu0 %v14343_v18  ;;  %v14367_v18 = vld [vmem:[#allocation15 + $0x240] sm:$0xff]  }
 0x5da   :  { %13440 = vmatpush3.bf16.msra.mxu1 %v14342_v20  ;;  %v14366_v20 = vld [vmem:[#allocation15 + $0x780] sm:$0xff]  }
 0x5db   :  { %13441 = vmatprep.subr.bf16.mxu1 %v14345_v40  ;;  %v14369_v40 = vld [vmem:[#allocation15 + $0x7c8] sm:$0xff]  }
 0x5dc   :  { %13198 = vmatpush3.bf16.msra.mxu0 %v14344_v16  ;;  %v14368_v16 = vld [vmem:[#allocation15 + $0x200] sm:$0xff]  }
 0x5dd   :  { %13199 = vmatprep.subr.bf16.mxu0 %v14347_v59  ;;  %v19001_v59 = vld [vmem:[#allocation29_spill] sm:$0xff] }
 0x5de   :  { %13442 = vmatpush3.bf16.msra.mxu1 %v14346_v28  ;;  %v14370_v28 = vld [vmem:[#allocation15 + $0x788] sm:$0xff]  }
 0x5df   :  { %13443 = vmatprep.subr.bf16.mxu1 %v14349_v13  ;;  %v19002_v13 = vld [vmem:[#allocation41_spill] sm:$0xff] }
 0x5e0   :  { %13200 = vmatpush3.bf16.msra.mxu0 %v14348_v24  ;;  %v14372_v24 = vld [vmem:[#allocation15 + $0x208] sm:$0xff]  }
 0x5e1   :  { %13201 = vmatprep.subr.bf16.mxu0 %v14351_v50  ;;  %v14375_v50 = vld [vmem:[#allocation15 + $0x250] sm:$0xff]  }
 0x5e2   :  { %13444 = vmatpush3.bf16.msra.mxu1 %v14350_v17  ;;  %v14374_v17 = vld [vmem:[#allocation15 + $0x790] sm:$0xff]  }
 0x5e3   :  { %13445 = vmatprep.subr.bf16.mxu1 %v14353_v46  ;;  %v14376_v46 = vld [vmem:[#allocation15 + $0x210] sm:$0xff]  }
 0x5e4   :  { %v13143_v36 = vpop.f32.mrb[92].mxu1  ;;  %13202 = vmatpush3.bf16.msra.mxu0 %v14352_v38  ;;  %v14379_v38 = vld [vmem:[#allocation15 + $0x258] sm:$0xff]  }
 0x5e5   :  { %v13144_v1 = vpop.f32.mrb[93].mxu1  ;;  %13203 = vmatprep.subr.bf16.mxu0 %v14355_v2  ;;  %v14378_v2 = vld [vmem:[#allocation15 + $0x798] sm:$0xff]  }
 0x5e6   :  { %v18693_v14 = vadd.f32 %v13144_v1, %v13143_v36  ;;  %v12901_v51 = vpop.f32.mrb[64].mxu0  ;;  %v13146_v30 = vpop.f32.mrb[94].mxu1  ;;  %13446 = vmatpush3.bf16.msra.mxu1 %v14354_v48  ;;  %v14381_v48 = vld [vmem:[#allocation15 + $0x7e0] sm:$0xff]  }
 0x5e7   :  { %v12902_v37 = vpop.f32.mrb[65].mxu0  ;;  %v13147_v52 = vpop.f32.mrb[95].mxu1  ;;  %13447 = vmatprep.subr.bf16.mxu1 %v14357_v25  ;;  %v14380_v25 = vld [vmem:[#allocation15 + $0x218] sm:$0xff]   ;;  %v14383_v36 = vld [vmem:[#allocation15 + $0x260] sm:$0xff]   ;;  %v14389_v30 = vld [vmem:[#allocation15 + $0x7f0] sm:$0xff]  }
 0x5e8   :  { %v12903_v54 = vadd.f32 %v12902_v37, %v12901_v51  ;;  %v12904_v49 = vpop.f32.mrb[66].mxu0  ;;  %13204 = vmatpush3.bf16.msra.mxu0 %v14356_v42  ;;  %v14385_v42 = vld [vmem:[#allocation15 + $0x7e8] sm:$0xff]   ;;  %v14384_v1 = vld [vmem:[#allocation15 + $0x220] sm:$0xff]  }
 0x5e9   :  { %v12905_v33 = vpop.f32.mrb[67].mxu0  ;;  %13205 = vmatprep.subr.bf16.mxu0 %v14359_v22  ;;  %v14387_v22 = vld [vmem:[#allocation15 + $0x268] sm:$0xff]  }
 0x5ea   :  { %v8600_v10 = vadd.f32 %v12903_v54, %v18687_v11  ;;  %13448 = vmatpush3.bf16.msra.mxu1 %v14358_v35  ;;  %v14371_v11 = vld [vmem:[#allocation15 + $0x248] sm:$0xff]   ;;  %v14390_v33 = vld [vmem:[#allocation15 + $0x7b0] sm:$0xff]  }
 0x5eb   :  { %13449 = vmatprep.subr.bf16.mxu1 %v14361_v34  ;;  %v14386_v51 = vld [vmem:[#allocation15 + $0x7a8] sm:$0xff]   ;;  %v14391_v34 = vld [vmem:[#allocation15 + $0x270] sm:$0xff]  }
 0x5ec   :  { %13206 = vmatpush3.bf16.msra.mxu0 %v14360_v61  ;;  %v18697_v3 = vadd.f32 %v18643_v57, %v8600_v10  ;;  %v14373_v57 = vld [vmem:[#allocation15 + $0x7d0] sm:$0xff]   ;;  %v14388_v37 = vld [vmem:[#allocation15 + $0x228] sm:$0xff]  }
 0x5ed   :  { %13207 = vmatprep.subr.bf16.mxu0 %v14363_v56 }
 0x5ee   :  { %13450 = vmatpush3.bf16.msra.mxu1 %v14362_v8  ;;  %v14393_v8 = vld [vmem:[#allocation15 + $0x7f8] sm:$0xff]  }
 0x5ef   :  { %13479 = vmatprep.subr.bf16.mxu1 %v14365_v6 }
 0x5f0   :  { %13208 = vmatpush3.bf16.msra.mxu0 %v14364_v27 }
 0x5f1   :  { %11518 = vmatmul.mubr.bf16.vlgmr.msra.gmra.mrb[120].mxu1 %v18536_v39  ;;  %13237 = vmatprep.subr.bf16.mxu0 %v14367_v18  ;;  %v14377_v39 = vld [vmem:[#allocation15 + $0x7d8] sm:$0xff]   ;;  %v14392_v18 = vld [vmem:[#allocation15 + $0x230] sm:$0xff]  }
 0x5f2   :  { %13480 = vmatpush3.bf16.msra.mxu1 %v14366_v20  ;;  %11597 = vmatprep.mubr.bf16.mxu1 %v19001_v59  ;;  %v14397_v59 = vld [vmem:[#allocation15 + $0x8c0] sm:$0xff]  }
 0x5f3   :  { %11078 = vmatmul.mubr.bf16.vlgmr.msra.gmra.mrb[92].mxu0 %v19002_v13  ;;  %13481 = vmatprep.subr.bf16.mxu1 %v14369_v40  ;;  %v14395_v40 = vld [vmem:[#allocation15 + $0x278] sm:$0xff]  }
 0x5f4   :  { %13238 = vmatpush3.bf16.msra.mxu0 %v14368_v16  ;;  %11157 = vmatprep.mubr.bf16.mxu0 %v18558_v58  ;;  %v14382_v58 = vld [vmem:[#allocation15 + $0x7a0] sm:$0xff]  }
 0x5f5   :  { %13239 = vmatprep.subr.bf16.mxu0 %v14371_v11  ;;  %v14394_v11 = vld [vmem:[#allocation15 + $0x7b8] sm:$0xff]  }
 0x5f6   :  { %13482 = vmatpush3.bf16.msra.mxu1 %v14370_v28  ;;  %v14396_v28 = vld [vmem:[#allocation15 + $0x238] sm:$0xff]  }
 0x5f7   :  { %13483 = vmatprep.subr.bf16.mxu1 %v14373_v57  ;;  %v14399_v57 = vld [vmem:[#allocation15 + $0x340] sm:$0xff]  }
 0x5f8   :  { %13240 = vmatpush3.bf16.msra.mxu0 %v14372_v24  ;;  %v14398_v24 = vld [vmem:[#allocation15 + $0x880] sm:$0xff]  }
 0x5f9   :  { %13241 = vmatprep.subr.bf16.mxu0 %v14375_v50  ;;  %v14401_v50 = vld [vmem:[#allocation15 + $0x8c8] sm:$0xff]  }
 0x5fa   :  { %13484 = vmatpush3.bf16.msra.mxu1 %v14374_v17  ;;  %v14400_v17 = vld [vmem:[#allocation15 + $0x300] sm:$0xff]  }
 0x5fb   :  { %13485 = vmatprep.subr.bf16.mxu1 %v14377_v39  ;;  %v14402_v39 = vld [vmem:[#allocation15 + $0x888] sm:$0xff]  }
 0x5fc   :  { %13242 = vmatpush3.bf16.msra.mxu0 %v14376_v46  ;;  %v14404_v46 = vld [vmem:[#allocation15 + $0x308] sm:$0xff]  }
 0x5fd   :  { %13243 = vmatprep.subr.bf16.mxu0 %v14379_v38  ;;  %v14407_v38 = vld [vmem:[#allocation15 + $0x350] sm:$0xff]  }
 0x5fe   :  { %13486 = vmatpush3.bf16.msra.mxu1 %v14378_v2  ;;  %v14406_v2 = vld [vmem:[#allocation15 + $0x890] sm:$0xff]  }
 0x5ff   :  { %13487 = vmatprep.subr.bf16.mxu1 %v14381_v48  ;;  %v14408_v48 = vld [vmem:[#allocation15 + $0x310] sm:$0xff]  }
 0x600   :  { %13244 = vmatpush3.bf16.msra.mxu0 %v14380_v25  ;;  %v14411_v25 = vld [vmem:[#allocation15 + $0x358] sm:$0xff]  }
 0x601   :  { %13245 = vmatprep.subr.bf16.mxu0 %v14383_v36  ;;  %v14412_v36 = vld [vmem:[#allocation15 + $0x318] sm:$0xff]  }
 0x602   :  { %13488 = vmatpush3.bf16.msra.mxu1 %v14382_v58  ;;  %v14415_v58 = vld [vmem:[#allocation15 + $0x360] sm:$0xff]  }
 0x603   :  { %13489 = vmatprep.subr.bf16.mxu1 %v14385_v42  ;;  %v14417_v42 = vld [vmem:[#allocation15 + $0x8e8] sm:$0xff]  }
 0x604   :  { %v13187_v35 = vpop.f32.mrb[96].mxu1  ;;  %13246 = vmatpush3.bf16.msra.mxu0 %v14384_v1  ;;  %v14416_v1 = vld [vmem:[#allocation15 + $0x320] sm:$0xff]  }
 0x605   :  { %v13188_v52 = vpop.f32.mrb[97].mxu1  ;;  %13247 = vmatprep.subr.bf16.mxu0 %v14387_v22  ;;  %v14419_v22 = vld [vmem:[#allocation15 + $0x368] sm:$0xff]  }
 0x606   :  { %v18703_v54 = vadd.f32 %v13188_v52, %v13187_v35  ;;  %v12945_v49 = vpop.f32.mrb[68].mxu0  ;;  %v13190_v61 = vpop.f32.mrb[98].mxu1  ;;  %13490 = vmatpush3.bf16.msra.mxu1 %v14386_v51  ;;  %v14418_v51 = vld [vmem:[#allocation15 + $0x8a8] sm:$0xff]  }
 0x607   :  { %v12946_v56 = vpop.f32.mrb[69].mxu0  ;;  %v13191_v10 = vpop.f32.mrb[99].mxu1  ;;  %13491 = vmatprep.subr.bf16.mxu1 %v14389_v30  ;;  %v14421_v30 = vld [vmem:[#allocation15 + $0x8f0] sm:$0xff]  }
 0x608   :  { %v12947_v6 = vadd.f32 %v12946_v56, %v12945_v49  ;;  %v12948_v27 = vpop.f32.mrb[70].mxu0  ;;  %13248 = vmatpush3.bf16.msra.mxu0 %v14388_v37  ;;  %v14420_v37 = vld [vmem:[#allocation15 + $0x328] sm:$0xff]   ;;  %v14422_v56 = vld [vmem:[#allocation15 + $0x8b0] sm:$0xff]  }
 0x609   :  { %v12949_v20 = vpop.f32.mrb[71].mxu0  ;;  %13249 = vmatprep.subr.bf16.mxu0 %v14391_v34  ;;  %v14423_v34 = vld [vmem:[#allocation15 + $0x370] sm:$0xff]  }
 0x60a   :  { %v8680_v16 = vadd.f32 %v12947_v6, %v18697_v3  ;;  %13492 = vmatpush3.bf16.msra.mxu1 %v14390_v33  ;;  %v14403_v3 = vld [vmem:[#allocation15 + $0x348] sm:$0xff]   ;;  %v14425_v6 = vld [vmem:[#allocation15 + $0x8f8] sm:$0xff]   ;;  %v14424_v20 = vld [vmem:[#allocation15 + $0x330] sm:$0xff]  }
 0x60b   :  { %13493 = vmatprep.subr.bf16.mxu1 %v14393_v8 }
 0x60c   :  { %13250 = vmatpush3.bf16.msra.mxu0 %v14392_v18  ;;  %v18707_v13 = vadd.f32 %v18653_v43, %v8680_v16  ;;  %v14405_v43 = vld [vmem:[#allocation15 + $0x8d0] sm:$0xff]   ;;  %v14427_v16 = vld [vmem:[#allocation15 + $0x378] sm:$0xff]  }
 0x60d   :  { %13251 = vmatprep.subr.bf16.mxu0 %v14395_v40 }
 0x60e   :  { %13494 = vmatpush3.bf16.msra.mxu1 %v14394_v11 }
 0x60f   :  { %13523 = vmatprep.subr.bf16.mxu1 %v14397_v59  ;;  %v14426_v59 = vld [vmem:[#allocation15 + $0x8b8] sm:$0xff]  }
 0x610   :  { %13252 = vmatpush3.bf16.msra.mxu0 %v14396_v28  ;;  %v14429_v28 = vld [vmem:[#allocation15 + $0x9c0] sm:$0xff]  }
 0x611   :  { %11598 = vmatmul.mubr.bf16.vlgmr.msra.gmra.mrb[124].mxu1 %v18541_v5  ;;  %13281 = vmatprep.subr.bf16.mxu0 %v14399_v57  ;;  %v14409_v5 = vld [vmem:[#allocation15 + $0x8d8] sm:$0xff]  }
 0x612   :  { %13524 = vmatpush3.bf16.msra.mxu1 %v14398_v24  ;;  %11677 = vmatprep.mubr.bf16.mxu1 %v18553_v31  ;;  %v14410_v31 = vld [vmem:[#allocation15 + $0x898] sm:$0xff]  }
 0x613   :  { %11158 = vmatmul.mubr.bf16.vlgmr.msra.gmra.mrb[96].mxu0 %v18569_v53  ;;  %13525 = vmatprep.subr.bf16.mxu1 %v14401_v50  ;;  %v14413_v53 = vld [vmem:[#allocation15 + $0x8e0] sm:$0xff]   ;;  %v14428_v57 = vld [vmem:[#allocation15 + $0x338] sm:$0xff]  }
 0x614   :  { %13282 = vmatpush3.bf16.msra.mxu0 %v14400_v17  ;;  %11237 = vmatprep.mubr.bf16.mxu0 %v18563_v0  ;;  %v14414_v0 = vld [vmem:[#allocation15 + $0x8a0] sm:$0xff]  }
 0x615   :  { %13283 = vmatprep.subr.bf16.mxu0 %v14403_v3  ;;  %v14431_v50 = vld [vmem:[#allocation15 + $0x440] sm:$0xff]   ;;  %v14433_v3 = vld [vmem:[#allocation15 + $0x9c8] sm:$0xff]  }
 0x616   :  { %13526 = vmatpush3.bf16.msra.mxu1 %v14402_v39  ;;  %v14430_v17 = vld [vmem:[#allocation15 + $0x980] sm:$0xff]  }
 0x617   :  { %13527 = vmatprep.subr.bf16.mxu1 %v14405_v43  ;;  %v14432_v39 = vld [vmem:[#allocation15 + $0x400] sm:$0xff]   ;;  %v14434_v43 = vld [vmem:[#allocation15 + $0x988] sm:$0xff]  }
 0x618   :  { %13284 = vmatpush3.bf16.msra.mxu0 %v14404_v46  ;;  %v14436_v46 = vld [vmem:[#allocation15 + $0x408] sm:$0xff]  }
 0x619   :  { %13285 = vmatprep.subr.bf16.mxu0 %v14407_v38  ;;  %v14439_v38 = vld [vmem:[#allocation15 + $0x450] sm:$0xff]  }
 0x61a   :  { %13528 = vmatpush3.bf16.msra.mxu1 %v14406_v2  ;;  %v14438_v2 = vld [vmem:[#allocation15 + $0x990] sm:$0xff]  }
 0x61b   :  { %13529 = vmatprep.subr.bf16.mxu1 %v14409_v5  ;;  %v14440_v5 = vld [vmem:[#allocation15 + $0x410] sm:$0xff]  }
 0x61c   :  { %13286 = vmatpush3.bf16.msra.mxu0 %v14408_v48  ;;  %v14443_v48 = vld [vmem:[#allocation15 + $0x458] sm:$0xff]  }
 0x61d   :  { %13287 = vmatprep.subr.bf16.mxu0 %v14411_v25  ;;  %v14444_v25 = vld [vmem:[#allocation15 + $0x418] sm:$0xff]  }
 0x61e   :  { %13530 = vmatpush3.bf16.msra.mxu1 %v14410_v31  ;;  %v14447_v31 = vld [vmem:[#allocation15 + $0x460] sm:$0xff]  }
 0x61f   :  { %13531 = vmatprep.subr.bf16.mxu1 %v14413_v53  ;;  %v14449_v53 = vld [vmem:[#allocation15 + $0x9e8] sm:$0xff]  }
 0x620   :  { %13288 = vmatpush3.bf16.msra.mxu0 %v14412_v36  ;;  %v14448_v36 = vld [vmem:[#allocation15 + $0x420] sm:$0xff]  }
 0x621   :  { %13289 = vmatprep.subr.bf16.mxu0 %v14415_v58  ;;  %v14451_v58 = vld [vmem:[#allocation15 + $0x468] sm:$0xff]  }
 0x622   :  { %13532 = vmatpush3.bf16.msra.mxu1 %v14414_v0  ;;  %v14450_v0 = vld [vmem:[#allocation15 + $0x9a8] sm:$0xff]  }
 0x623   :  { %13533 = vmatprep.subr.bf16.mxu1 %v14417_v42  ;;  %v14453_v42 = vld [vmem:[#allocation15 + $0x9f0] sm:$0xff]  }
 0x624   :  { %v13231_v35 = vpop.f32.mrb[100].mxu1  ;;  %13290 = vmatpush3.bf16.msra.mxu0 %v14416_v1 }
 0x625   :  { %v13232_v52 = vpop.f32.mrb[101].mxu1  ;;  %13291 = vmatprep.subr.bf16.mxu0 %v14419_v22  ;;  %v14452_v22 = vld [vmem:[#allocation15 + $0x428] sm:$0xff]  }
 0x626   :  { %v18713_v49 = vadd.f32 %v13232_v52, %v13231_v35  ;;  %v12989_v61 = vpop.f32.mrb[72].mxu0  ;;  %v13234_v33 = vpop.f32.mrb[102].mxu1  ;;  %13534 = vmatpush3.bf16.msra.mxu1 %v14418_v51 }
 0x627   :  { %v12990_v10 = vpop.f32.mrb[73].mxu0  ;;  %v13235_v8 = vpop.f32.mrb[103].mxu1  ;;  %13535 = vmatprep.subr.bf16.mxu1 %v14421_v30  ;;  %v14455_v30 = vld [vmem:[#allocation15 + $0x470] sm:$0xff]  }
 0x628   :  { %v12991_v27 = vadd.f32 %v12990_v10, %v12989_v61  ;;  %v12992_v18 = vpop.f32.mrb[74].mxu0  ;;  %13292 = vmatpush3.bf16.msra.mxu0 %v14420_v37 }
 0x629   :  { %v12993_v40 = vpop.f32.mrb[75].mxu0  ;;  %13293 = vmatprep.subr.bf16.mxu0 %v14423_v34  ;;  %v14454_v34 = vld [vmem:[#allocation15 + $0x9b0] sm:$0xff]   ;;  %v14459_v18 = vld [vmem:[#allocation15 + $0x478] sm:$0xff]  }
 0x62a   :  { %v8760_v11 = vadd.f32 %v12991_v27, %v18707_v13  ;;  %13536 = vmatpush3.bf16.msra.mxu1 %v14422_v56  ;;  %v14435_v13 = vld [vmem:[#allocation15 + $0x448] sm:$0xff]   ;;  %v14457_v56 = vld [vmem:[#allocation15 + $0x9f8] sm:$0xff]  }
 0x62b   :  { %13537 = vmatprep.subr.bf16.mxu1 %v14425_v6  ;;  %v14456_v6 = vld [vmem:[#allocation15 + $0x430] sm:$0xff]   ;;  %v14458_v40 = vld [vmem:[#allocation15 + $0x9b8] sm:$0xff]  }
 0x62c   :  { %13294 = vmatpush3.bf16.msra.mxu0 %v14424_v20  ;;  %v18717_v24 = vadd.f32 %v18663_v23, %v8760_v11  ;;  %v14437_v23 = vld [vmem:[#allocation15 + $0x9d0] sm:$0xff]  }
 0x62d   :  { %13295 = vmatprep.subr.bf16.mxu0 %v14427_v16  ;;  %v14460_v16 = vld [vmem:[#allocation15 + $0x438] sm:$0xff]  }
 0x62e   :  { %13538 = vmatpush3.bf16.msra.mxu1 %v14426_v59  ;;  %v14461_v59 = vld [vmem:[#allocation15 + $0x540] sm:$0xff]  }
 0x62f   :  { %13567 = vmatprep.subr.bf16.mxu1 %v14429_v28  ;;  %v14462_v28 = vld [vmem:[#allocation15 + $0x500] sm:$0xff]  }
 0x630   :  { %13296 = vmatpush3.bf16.msra.mxu0 %v14428_v57  ;;  %v14463_v57 = vld [vmem:[#allocation15 + $0x548] sm:$0xff]  }
 0x631   :  { %11678 = vmatmul.mubr.bf16.vlgmr.msra.gmra.mrb[128].mxu1 %v18573_v4  ;;  %13325 = vmatprep.subr.bf16.mxu0 %v14431_v50  ;;  %v14441_v4 = vld [vmem:[#allocation15 + $0x9d8] sm:$0xff]   ;;  %v14465_v50 = vld [vmem:[#allocation15 + $0x550] sm:$0xff]  }
 0x632   :  { %13568 = vmatpush3.bf16.msra.mxu1 %v14430_v17  ;;  %11757 = vmatprep.mubr.bf16.mxu1 %v18577_v60  ;;  %v14442_v60 = vld [vmem:[#allocation15 + $0x998] sm:$0xff]   ;;  %v14466_v17 = vld [vmem:[#allocation15 + $0x510] sm:$0xff]  }
 0x633   :  { %11238 = vmatmul.mubr.bf16.vlgmr.msra.gmra.mrb[100].mxu0 %v18582_v12  ;;  %13569 = vmatprep.subr.bf16.mxu1 %v14433_v3  ;;  %v14445_v12 = vld [vmem:[#allocation15 + $0x9e0] sm:$0xff]   ;;  %v14468_v3 = vld [vmem:[#allocation15 + $0x518] sm:$0xff]  }
 0x634   :  { %13326 = vmatpush3.bf16.msra.mxu0 %v14432_v39  ;;  %11317 = vmatprep.mubr.bf16.mxu0 %v18586_v29  ;;  %v14446_v29 = vld [vmem:[#allocation15 + $0x9a0] sm:$0xff]  }
 0x635   :  { %13327 = vmatprep.subr.bf16.mxu0 %v14435_v13  ;;  %v14469_v39 = vld [vmem:[#allocation15 + $0x560] sm:$0xff]   ;;  %v14471_v13 = vld [vmem:[#allocation15 + $0x568] sm:$0xff]  }
 0x636   :  { %13570 = vmatpush3.bf16.msra.mxu1 %v14434_v43 }
 0x637   :  { %13571 = vmatprep.subr.bf16.mxu1 %v14437_v23 }
 0x638   :  { %13328 = vmatpush3.bf16.msra.mxu0 %v14436_v46 }
 0x639   :  { %13329 = vmatprep.subr.bf16.mxu0 %v14439_v38 }
 0x63a   :  { %13572 = vmatpush3.bf16.msra.mxu1 %v14438_v2 }
 0x63b   :  { %13573 = vmatprep.subr.bf16.mxu1 %v14441_v4 }
 0x63c   :  { %13330 = vmatpush3.bf16.msra.mxu0 %v14440_v5 }
 0x63d   :  { %13331 = vmatprep.subr.bf16.mxu0 %v14443_v48 }
 0x63e   :  { %13574 = vmatpush3.bf16.msra.mxu1 %v14442_v60 }
 0x63f   :  { %13575 = vmatprep.subr.bf16.mxu1 %v14445_v12  ;;  %v14474_v12 = vld [vmem:[#allocation15 + $0x530] sm:$0xff]  }
 0x640   :  { %13332 = vmatpush3.bf16.msra.mxu0 %v14444_v25 }
 0x641   :  { %13333 = vmatprep.subr.bf16.mxu0 %v14447_v31  ;;  %v14475_v31 = vld [vmem:[#allocation15 + $0x578] sm:$0xff]  }
 0x642   :  { %13576 = vmatpush3.bf16.msra.mxu1 %v14446_v29 }
 0x643   :  { %13577 = vmatprep.subr.bf16.mxu1 %v14449_v53  ;;  %v14476_v53 = vld [vmem:[#allocation15 + $0x538] sm:$0xff]  }
 0x644   :  { %v13275_v1 = vpop.f32.mrb[104].mxu1  ;;  %13334 = vmatpush3.bf16.msra.mxu0 %v14448_v36 }
 0x645   :  { %v13276_v51 = vpop.f32.mrb[105].mxu1  ;;  %13335 = vmatprep.subr.bf16.mxu0 %v14451_v58  ;;  %v14477_v58 = vld [vmem:[#allocation15 + $0x640] sm:$0xff]  }
 0x646   :  { %v18723_v35 = vadd.f32 %v13276_v51, %v13275_v1  ;;  %v13033_v37 = vpop.f32.mrb[76].mxu0  ;;  %v13278_v52 = vpop.f32.mrb[106].mxu1  ;;  %13578 = vmatpush3.bf16.msra.mxu1 %v14450_v0  ;;  %v14478_v0 = vld [vmem:[#allocation15 + $0x600] sm:$0xff]   ;;  %v14480_v1 = vld [vmem:[#allocation15 + $0x608] sm:$0xff]   ;;  %v14482_v51 = vld [vmem:[#allocation15 + $0x610] sm:$0xff]  }
 0x647   :  { %v13034_v61 = vpop.f32.mrb[77].mxu0  ;;  %v13279_v33 = vpop.f32.mrb[107].mxu1  ;;  %13579 = vmatprep.subr.bf16.mxu1 %v14453_v42  ;;  %v14479_v42 = vld [vmem:[#allocation15 + $0x648] sm:$0xff]   ;;  %v14486_v52 = vld [vmem:[#allocation15 + $0x620] sm:$0xff]  }
 0x648   :  { %v13035_v10 = vadd.f32 %v13034_v61, %v13033_v37  ;;  %v13036_v8 = vpop.f32.mrb[78].mxu0  ;;  %13336 = vmatpush3.bf16.msra.mxu0 %v14452_v22  ;;  %v14481_v22 = vld [vmem:[#allocation15 + $0x650] sm:$0xff]   ;;  %v14485_v37 = vld [vmem:[#allocation15 + $0x660] sm:$0xff]  }
 0x649   :  { %v13037_v27 = vpop.f32.mrb[79].mxu0  ;;  %13337 = vmatprep.subr.bf16.mxu0 %v14455_v30  ;;  %v14483_v30 = vld [vmem:[#allocation15 + $0x658] sm:$0xff]  }
 0x64a   :  { %v8840_v20 = vadd.f32 %v13035_v10, %v18717_v24  ;;  %13580 = vmatpush3.bf16.msra.mxu1 %v14454_v34  ;;  %v14464_v24 = vld [vmem:[#allocation15 + $0x508] sm:$0xff]  }
 0x64b   :  { %13581 = vmatprep.subr.bf16.mxu1 %v14457_v56  ;;  %v14487_v34 = vld [vmem:[#allocation15 + $0x668] sm:$0xff]  }
 0x64c   :  { %13338 = vmatpush3.bf16.msra.mxu0 %v14456_v6  ;;  %v8880_v11 = vadd.f32 %v18673_v47, %v8840_v20  ;;  %v14467_v47 = vld [vmem:[#allocation15 + $0x558] sm:$0xff]  }
 0x64d   :  { %13339 = vmatprep.subr.bf16.mxu0 %v14459_v18 }
 0x64e   :  { %13582 = vmatpush3.bf16.msra.mxu1 %v14458_v40  ;;  %v14490_v40 = vld [vmem:[#allocation15 + $0x630] sm:$0xff]  }
 0x650   :  { %13340 = vmatpush3.bf16.msra.mxu0 %v14460_v16 }
 0x651   :  { %11758 = vmatmul.mubr.bf16.vlgmr.msra.gmra.mrb[132].mxu1 %v18595_v63  ;;  %13369 = vmatprep.subr.bf16.mxu0 %v14461_v59  ;;  %v14470_v63 = vld [vmem:[#allocation15 + $0x520] sm:$0xff]  }
 0x653   :  { %11318 = vmatmul.mubr.bf16.vlgmr.msra.gmra.mrb[104].mxu0 %v18602_v7  ;;  %v14472_v7 = vld [vmem:[#allocation15 + $0x528] sm:$0xff]  }
 0x654   :  { %13370 = vmatpush3.bf16.msra.mxu0 %v14462_v28  ;;  %11397 = vmatprep.mubr.bf16.mxu0 %v18590_v9  ;;  %v14473_v9 = vld [vmem:[#allocation15 + $0x570] sm:$0xff]   ;;  %v14492_v28 = vld [vmem:[#allocation15 + $0x638] sm:$0xff]  }
 0x655   :  { %13371 = vmatprep.subr.bf16.mxu0 %v14463_v57 }
 0x658   :  { %13372 = vmatpush3.bf16.msra.mxu0 %v14464_v24  ;;  %v14493_v24 = vld [vmem:[#allocation15 + $0x740] sm:$0xff]  }
 0x659   :  { %13373 = vmatprep.subr.bf16.mxu0 %v14465_v50  ;;  %v14494_v50 = vld [vmem:[#allocation15 + $0x700] sm:$0xff]  }
 0x65c   :  { %13374 = vmatpush3.bf16.msra.mxu0 %v14466_v17  ;;  %v14495_v17 = vld [vmem:[#allocation15 + $0x748] sm:$0xff]  }
 0x65d   :  { %13375 = vmatprep.subr.bf16.mxu0 %v14467_v47  ;;  %v14496_v47 = vld [vmem:[#allocation15 + $0x708] sm:$0xff]  }
 0x660   :  { %13376 = vmatpush3.bf16.msra.mxu0 %v14468_v3  ;;  %v14497_v3 = vld [vmem:[#allocation15 + $0x750] sm:$0xff]  }
 0x661   :  { %13377 = vmatprep.subr.bf16.mxu0 %v14469_v39  ;;  %v14498_v39 = vld [vmem:[#allocation15 + $0x710] sm:$0xff]  }
 0x664   :  { %v13319_v43 = vpop.f32.mrb[108].mxu1  ;;  %13378 = vmatpush3.bf16.msra.mxu0 %v14470_v63  ;;  %v14499_v63 = vld [vmem:[#allocation15 + $0x758] sm:$0xff]  }
 0x665   :  { %v13320_v23 = vpop.f32.mrb[109].mxu1  ;;  %13379 = vmatprep.subr.bf16.mxu0 %v14471_v13  ;;  %v14501_v13 = vld [vmem:[#allocation15 + $0x760] sm:$0xff]  }
 0x666   :  { %v18730_v46 = vadd.f32 %v13320_v23, %v13319_v43  ;;  %v13077_v38 = vpop.f32.mrb[80].mxu0  ;;  %v13322_v2 = vpop.f32.mrb[110].mxu1  ;;  %v14502_v43 = vld [vmem:[#allocation15 + $0x720] sm:$0xff]  }
 0x667   :  { %v13078_v4 = vpop.f32.mrb[81].mxu0  ;;  %v13323_v5 = vpop.f32.mrb[111].mxu1 }
 0x668   :  { %v13079_v48 = vadd.f32 %v13078_v4, %v13077_v38  ;;  %v13080_v60 = vpop.f32.mrb[82].mxu0  ;;  %13380 = vmatpush3.bf16.msra.mxu0 %v14472_v7  ;;  %v14503_v7 = vld [vmem:[#allocation15 + $0x768] sm:$0xff]  }
 0x669   :  { %v13081_v25 = vpop.f32.mrb[83].mxu0  ;;  %13381 = vmatprep.subr.bf16.mxu0 %v14473_v9 }
 0x66a   :  { %v8920_v29 = vadd.f32 %v13079_v48, %v8880_v11  ;;  %v14491_v11 = vld [vmem:[#allocation15 + $0x678] sm:$0xff]   ;;  %v14506_v25 = vld [vmem:[#allocation15 + $0x730] sm:$0xff]  }
 0x66c   :  { %13382 = vmatpush3.bf16.msra.mxu0 %v14474_v12  ;;  %v8960_v36 = vadd.f32 %v18683_v15, %v8920_v29  ;;  %v14484_v15 = vld [vmem:[#allocation15 + $0x618] sm:$0xff]  }
 0x66d   :  { %13383 = vmatprep.subr.bf16.mxu0 %v14475_v31  ;;  %v14507_v29 = vld [vmem:[#allocation15 + $0x778] sm:$0xff]  }
 0x670   :  { %13384 = vmatpush3.bf16.msra.mxu0 %v14476_v53 }
 0x671   :  { %13413 = vmatprep.subr.bf16.mxu0 %v14477_v58 }
 0x673   :  { %11398 = vmatmul.mubr.bf16.vlgmr.msra.gmra.mrb[108].mxu0 %v18609_v45  ;;  %v14488_v45 = vld [vmem:[#allocation15 + $0x628] sm:$0xff]  }
 0x674   :  { %13414 = vmatpush3.bf16.msra.mxu0 %v14478_v0  ;;  %11477 = vmatprep.mubr.bf16.mxu0 %v18613_v62  ;;  %v14489_v62 = vld [vmem:[#allocation15 + $0x670] sm:$0xff]   ;;  %v14509_v0 = vld [vmem:[#allocation15 + $0x840] sm:$0xff]  }
 0x675   :  { %13415 = vmatprep.subr.bf16.mxu0 %v14479_v42  ;;  %v14510_v42 = vld [vmem:[#allocation15 + $0x800] sm:$0xff]  }
 0x678   :  { %13416 = vmatpush3.bf16.msra.mxu0 %v14480_v1  ;;  %v14511_v1 = vld [vmem:[#allocation15 + $0x848] sm:$0xff]  }
 0x679   :  { %13417 = vmatprep.subr.bf16.mxu0 %v14481_v22  ;;  %v14512_v22 = vld [vmem:[#allocation15 + $0x808] sm:$0xff]  }
 0x67c   :  { %13418 = vmatpush3.bf16.msra.mxu0 %v14482_v51  ;;  %v14513_v51 = vld [vmem:[#allocation15 + $0x850] sm:$0xff]  }
 0x67d   :  { %13419 = vmatprep.subr.bf16.mxu0 %v14483_v30  ;;  %v14514_v30 = vld [vmem:[#allocation15 + $0x810] sm:$0xff]  }
 0x680   :  { %13420 = vmatpush3.bf16.msra.mxu0 %v14484_v15  ;;  %v14515_v15 = vld [vmem:[#allocation15 + $0x858] sm:$0xff]  }
 0x681   :  { %13421 = vmatprep.subr.bf16.mxu0 %v14485_v37  ;;  %v14517_v37 = vld [vmem:[#allocation15 + $0x860] sm:$0xff]  }
 0x684   :  { %v13363_v61 = vpop.f32.mrb[112].mxu1  ;;  %13422 = vmatpush3.bf16.msra.mxu0 %v14486_v52  ;;  %v14518_v52 = vld [vmem:[#allocation15 + $0x820] sm:$0xff]  }
 0x685   :  { %v13364_v33 = vpop.f32.mrb[113].mxu1  ;;  %13423 = vmatprep.subr.bf16.mxu0 %v14487_v34  ;;  %v14519_v34 = vld [vmem:[#allocation15 + $0x868] sm:$0xff]  }
 0x686   :  { %v18735_v56 = vadd.f32 %v13364_v33, %v13363_v61  ;;  %v13121_v10 = vpop.f32.mrb[84].mxu0  ;;  %v13366_v8 = vpop.f32.mrb[114].mxu1 }
 0x687   :  { %v13122_v6 = vpop.f32.mrb[85].mxu0  ;;  %v13367_v27 = vpop.f32.mrb[115].mxu1 }
 0x688   :  { %v13123_v18 = vadd.f32 %v13122_v6, %v13121_v10  ;;  %v13124_v20 = vpop.f32.mrb[86].mxu0  ;;  %13424 = vmatpush3.bf16.msra.mxu0 %v14488_v45 }
 0x689   :  { %v13125_v16 = vpop.f32.mrb[87].mxu0  ;;  %13425 = vmatprep.subr.bf16.mxu0 %v14489_v62  ;;  %v14522_v20 = vld [vmem:[#allocation15 + $0x830] sm:$0xff]  }
 0x68a   :  { %v9000_v59 = vadd.f32 %v13123_v18, %v8960_v36  ;;  %v14508_v36 = vld [vmem:[#allocation15 + $0x738] sm:$0xff]  }
 0x68b   :  { %v14523_v16 = vld [vmem:[#allocation15 + $0x878] sm:$0xff]  }
 0x68c   :  { %13426 = vmatpush3.bf16.msra.mxu0 %v14490_v40  ;;  %v9040_v57 = vadd.f32 %v18693_v14, %v9000_v59  ;;  %v14500_v14 = vld [vmem:[#allocation15 + $0x718] sm:$0xff]  }
 0x68d   :  { %13427 = vmatprep.subr.bf16.mxu0 %v14491_v11  ;;  %v14524_v59 = vld [vmem:[#allocation15 + $0x838] sm:$0xff]  }
 0x690   :  { %13428 = vmatpush3.bf16.msra.mxu0 %v14492_v28 }
 0x691   :  { %13457 = vmatprep.subr.bf16.mxu0 %v14493_v24  ;;  %v14526_v24 = vld [vmem:[#allocation15 + $0x900] sm:$0xff]  }
 0x693   :  { %11478 = vmatmul.mubr.bf16.vlgmr.msra.gmra.mrb[112].mxu0 %v18629_v26  ;;  %v14504_v26 = vld [vmem:[#allocation15 + $0x728] sm:$0xff]  }
 0x694   :  { %13458 = vmatpush3.bf16.msra.mxu0 %v14494_v50  ;;  %11557 = vmatprep.mubr.bf16.mxu0 %v18617_v55  ;;  %v14505_v55 = vld [vmem:[#allocation15 + $0x770] sm:$0xff]   ;;  %v14527_v50 = vld [vmem:[#allocation15 + $0x948] sm:$0xff]  }
 0x695   :  { %13459 = vmatprep.subr.bf16.mxu0 %v14495_v17  ;;  %v14528_v17 = vld [vmem:[#allocation15 + $0x908] sm:$0xff]  }
 0x698   :  { %13460 = vmatpush3.bf16.msra.mxu0 %v14496_v47  ;;  %v14529_v47 = vld [vmem:[#allocation15 + $0x950] sm:$0xff]  }
 0x699   :  { %13461 = vmatprep.subr.bf16.mxu0 %v14497_v3  ;;  %v14530_v3 = vld [vmem:[#allocation15 + $0x910] sm:$0xff]  }
 0x69c   :  { %13462 = vmatpush3.bf16.msra.mxu0 %v14498_v39  ;;  %v14531_v39 = vld [vmem:[#allocation15 + $0x958] sm:$0xff]  }
 0x69d   :  { %13463 = vmatprep.subr.bf16.mxu0 %v14499_v63  ;;  %v14533_v63 = vld [vmem:[#allocation15 + $0x960] sm:$0xff]  }
 0x6a0   :  { %13464 = vmatpush3.bf16.msra.mxu0 %v14500_v14  ;;  %v14534_v14 = vld [vmem:[#allocation15 + $0x920] sm:$0xff]  }
 0x6a1   :  { %13465 = vmatprep.subr.bf16.mxu0 %v14501_v13  ;;  %v14535_v13 = vld [vmem:[#allocation15 + $0x968] sm:$0xff]  }
 0x6a4   :  { %v13407_v23 = vpop.f32.mrb[116].mxu1  ;;  %13466 = vmatpush3.bf16.msra.mxu0 %v14502_v43 }
 0x6a5   :  { %v13408_v9 = vpop.f32.mrb[117].mxu1  ;;  %13467 = vmatprep.subr.bf16.mxu0 %v14503_v7 }
 0x6a6   :  { %v18740_v38 = vadd.f32 %v13408_v9, %v13407_v23  ;;  %v13165_v2 = vpop.f32.mrb[88].mxu0  ;;  %v13410_v4 = vpop.f32.mrb[118].mxu1 }
 0x6a7   :  { %v13166_v5 = vpop.f32.mrb[89].mxu0  ;;  %v13411_v48 = vpop.f32.mrb[119].mxu1 }
 0x6a8   :  { %v13167_v60 = vadd.f32 %v13166_v5, %v13165_v2  ;;  %v13168_v12 = vpop.f32.mrb[90].mxu0  ;;  %13468 = vmatpush3.bf16.msra.mxu0 %v14504_v26  ;;  %v14538_v48 = vld [vmem:[#allocation15 + $0x930] sm:$0xff]  }
 0x6a9   :  { %v13169_v31 = vpop.f32.mrb[91].mxu0  ;;  %13469 = vmatprep.subr.bf16.mxu0 %v14505_v55  ;;  %v14539_v12 = vld [vmem:[#allocation15 + $0x978] sm:$0xff]  }
 0x6aa   :  { %v11000_v53 = vadd.f32 %v13167_v60, %v9040_v57  ;;  %v14525_v57 = vld [vmem:[#allocation15 + $0x940] sm:$0xff]   ;;  %v14540_v31 = vld [vmem:[#allocation15 + $0x938] sm:$0xff]  }
 0x6ac   :  { %13470 = vmatpush3.bf16.msra.mxu0 %v14506_v25  ;;  %v11040_v58 = vadd.f32 %v18703_v54, %v11000_v53  ;;  %v14516_v54 = vld [vmem:[#allocation15 + $0x818] sm:$0xff]  }
 0x6ad   :  { %13471 = vmatprep.subr.bf16.mxu0 %v14507_v29 }
 0x6b0   :  { %13472 = vmatpush3.bf16.msra.mxu0 %v14508_v36 }
 0x6b1   :  { %13501 = vmatprep.subr.bf16.mxu0 %v14509_v0 }
 0x6b3   :  { %11558 = vmatmul.mubr.bf16.vlgmr.msra.gmra.mrb[116].mxu0 %v18633_v19  ;;  %v14520_v19 = vld [vmem:[#allocation15 + $0x828] sm:$0xff]  }
 0x6b4   :  { %13502 = vmatpush3.bf16.msra.mxu0 %v14510_v42  ;;  %11637 = vmatprep.mubr.bf16.mxu0 %v18621_v21  ;;  %v14521_v21 = vld [vmem:[#allocation15 + $0x870] sm:$0xff]  }
 0x6b5   :  { %13503 = vmatprep.subr.bf16.mxu0 %v14511_v1 }
 0x6b8   :  { %13504 = vmatpush3.bf16.msra.mxu0 %v14512_v22 }
 0x6b9   :  { %13505 = vmatprep.subr.bf16.mxu0 %v14513_v51 }
 0x6bc   :  { %13506 = vmatpush3.bf16.msra.mxu0 %v14514_v30 }
 0x6bd   :  { %13507 = vmatprep.subr.bf16.mxu0 %v14515_v15 }
 0x6c0   :  { %13508 = vmatpush3.bf16.msra.mxu0 %v14516_v54 }
 0x6c1   :  { %13509 = vmatprep.subr.bf16.mxu0 %v14517_v37 }
 0x6c4   :  { %v13451_v61 = vpop.f32.mrb[120].mxu1  ;;  %13510 = vmatpush3.bf16.msra.mxu0 %v14518_v52 }
 0x6c5   :  { %v13452_v45 = vpop.f32.mrb[121].mxu1  ;;  %13511 = vmatprep.subr.bf16.mxu0 %v14519_v34 }
 0x6c6   :  { %v18745_v33 = vadd.f32 %v13452_v45, %v13451_v61  ;;  %v13209_v62 = vpop.f32.mrb[92].mxu0  ;;  %v13454_v10 = vpop.f32.mrb[122].mxu1 }
 0x6c7   :  { %v13210_v8 = vpop.f32.mrb[93].mxu0  ;;  %v13455_v6 = vpop.f32.mrb[123].mxu1 }
 0x6c8   :  { %v13211_v27 = vadd.f32 %v13210_v8, %v13209_v62  ;;  %v13212_v18 = vpop.f32.mrb[94].mxu0  ;;  %13512 = vmatpush3.bf16.msra.mxu0 %v14520_v19 }
 0x6c9   :  { %v13213_v40 = vpop.f32.mrb[95].mxu0  ;;  %13513 = vmatprep.subr.bf16.mxu0 %v14521_v21 }
 0x6ca   :  { %v11080_v11 = vadd.f32 %v13211_v27, %v11040_v58 }
 0x6cc   :  { %13514 = vmatpush3.bf16.msra.mxu0 %v14522_v20  ;;  %v11120_v28 = vadd.f32 %v18713_v49, %v11080_v11  ;;  %v14532_v49 = vld [vmem:[#allocation15 + $0x918] sm:$0xff]  }
 0x6cd   :  { %13515 = vmatprep.subr.bf16.mxu0 %v14523_v16 }
 0x6d0   :  { %13516 = vmatpush3.bf16.msra.mxu0 %v14524_v59 }
 0x6d1   :  { %13545 = vmatprep.subr.bf16.mxu0 %v14525_v57 }
 0x6d3   :  { %11638 = vmatmul.mubr.bf16.vlgmr.msra.gmra.mrb[120].mxu0 %v18637_v44  ;;  %v14536_v44 = vld [vmem:[#allocation15 + $0x928] sm:$0xff]  }
 0x6d4   :  { %13546 = vmatpush3.bf16.msra.mxu0 %v14526_v24  ;;  %11717 = vmatprep.mubr.bf16.mxu0 %v18625_v32  ;;  %v14537_v32 = vld [vmem:[#allocation15 + $0x970] sm:$0xff]  }
 0x6d5   :  { %13547 = vmatprep.subr.bf16.mxu0 %v14527_v50 }
 0x6d8   :  { %13548 = vmatpush3.bf16.msra.mxu0 %v14528_v17 }
 0x6d9   :  { %13549 = vmatprep.subr.bf16.mxu0 %v14529_v47 }
 0x6dc   :  { %13550 = vmatpush3.bf16.msra.mxu0 %v14530_v3 }
 0x6dd   :  { %13551 = vmatprep.subr.bf16.mxu0 %v14531_v39 }
 0x6e0   :  { %13552 = vmatpush3.bf16.msra.mxu0 %v14532_v49 }
 0x6e1   :  { %13553 = vmatprep.subr.bf16.mxu0 %v14533_v63 }
 0x6e4   :  { %v13495_v43 = vpop.f32.mrb[124].mxu1  ;;  %13554 = vmatpush3.bf16.msra.mxu0 %v14534_v14 }
 0x6e5   :  { %v13496_v7 = vpop.f32.mrb[125].mxu1  ;;  %13555 = vmatprep.subr.bf16.mxu0 %v14535_v13 }
 0x6e6   :  { %v18750_v23 = vadd.f32 %v13496_v7, %v13495_v43  ;;  %v13253_v26 = vpop.f32.mrb[96].mxu0  ;;  %v13498_v9 = vpop.f32.mrb[126].mxu1 }
 0x6e7   :  { %v13254_v55 = vpop.f32.mrb[97].mxu0  ;;  %v13499_v2 = vpop.f32.mrb[127].mxu1 }
 0x6e8   :  { %v13255_v4 = vadd.f32 %v13254_v55, %v13253_v26  ;;  %v13256_v5 = vpop.f32.mrb[98].mxu0  ;;  %13556 = vmatpush3.bf16.msra.mxu0 %v14536_v44 }
 0x6e9   :  { %v13257_v60 = vpop.f32.mrb[99].mxu0  ;;  %13557 = vmatprep.subr.bf16.mxu0 %v14537_v32 }
 0x6ea   :  { %v11160_v25 = vadd.f32 %v13255_v4, %v11120_v28  ;;  %v12568_v60 = vld [vmem:[#allocation18] ss:$0 sm:$0xff] }
 0x6ec   :  { %13558 = vmatpush3.bf16.msra.mxu0 %v14538_v48  ;;  %v11200_v29 = vadd.f32 %v18723_v35, %v11160_v25 }
 0x6ed   :  { %13559 = vmatprep.subr.bf16.mxu0 %v14539_v12 }
 0x6f0   :  { %13560 = vmatpush3.bf16.msra.mxu0 %v14540_v31 }
 0x6f3   :  { %11718 = vmatmul.mubr.bf16.vlgmr.msra.gmra.mrb[124].mxu0 %v18641_v41 }
 0x704   :  { %v13539_v53 = vpop.f32.mrb[128].mxu1 }
 0x705   :  { %v13540_v36 = vpop.f32.mrb[129].mxu1 }
 0x706   :  { %v13541_v58 = vadd.f32 %v13540_v36, %v13539_v53  ;;  %v13297_v0 = vpop.f32.mrb[100].mxu0  ;;  %v13542_v42 = vpop.f32.mrb[130].mxu1 }
 0x707   :  { %v13298_v1 = vpop.f32.mrb[101].mxu0  ;;  %v13543_v22 = vpop.f32.mrb[131].mxu1 }
 0x708   :  { %v13299_v51 = vadd.f32 %v13298_v1, %v13297_v0  ;;  %v13300_v30 = vpop.f32.mrb[102].mxu0 }
 0x709   :  { %v13301_v15 = vpop.f32.mrb[103].mxu0 }
 0x70a   :  { %v11240_v54 = vadd.f32 %v13299_v51, %v11200_v29 }
 0x70c   :  { %v11280_v37 = vadd.f32 %v18730_v46, %v11240_v54 }
 0x724   :  { %v13583_v52 = vpop.f32.mrb[132].mxu1 }
 0x725   :  { %v13584_v34 = vpop.f32.mrb[133].mxu1 }
 0x726   :  { %v13585_v35 = vadd.f32 %v13584_v34, %v13583_v52  ;;  %v13341_v61 = vpop.f32.mrb[104].mxu0  ;;  %v13586_v19 = vpop.f32.mrb[134].mxu1 }
 0x727   :  { %v13342_v45 = vpop.f32.mrb[105].mxu0  ;;  %v13587_v41 = vpop.f32.mrb[135].mxu1 }
 0x728   :  { %v13343_v21 = vadd.f32 %v13342_v45, %v13341_v61  ;;  %v13344_v62 = vpop.f32.mrb[106].mxu0 }
 0x729   :  { %v13345_v10 = vpop.f32.mrb[107].mxu0 }
 0x72a   :  { %v11320_v8 = vadd.f32 %v13343_v21, %v11280_v37 }
 0x72c   :  { %v11360_v6 = vadd.f32 %v18735_v56, %v11320_v8 }
 0x746   :  { %v13385_v27 = vpop.f32.mrb[108].mxu0 }
 0x747   :  { %v13386_v18 = vpop.f32.mrb[109].mxu0 }
 0x748   :  { %v13387_v20 = vadd.f32 %v13386_v18, %v13385_v27  ;;  %v13388_v40 = vpop.f32.mrb[110].mxu0 }
 0x749   :  { %v13389_v16 = vpop.f32.mrb[111].mxu0 }
 0x74a   :  { %v11400_v11 = vadd.f32 %v13387_v20, %v11360_v6 }
 0x74c   :  { %v11440_v46 = vadd.f32 %v18740_v38, %v11400_v11 }
 0x766   :  { %v13429_v59 = vpop.f32.mrb[112].mxu0 }
 0x767   :  { %v13430_v28 = vpop.f32.mrb[113].mxu0 }
 0x768   :  { %v13431_v57 = vadd.f32 %v13430_v28, %v13429_v59  ;;  %v13432_v24 = vpop.f32.mrb[114].mxu0 }
 0x769   :  { %v13433_v50 = vpop.f32.mrb[115].mxu0 }
 0x76a   :  { %v11480_v17 = vadd.f32 %v13431_v57, %v11440_v46 }
 0x76c   :  { %v11520_v47 = vadd.f32 %v18745_v33, %v11480_v17 }
 0x786   :  { %v13473_v3 = vpop.f32.mrb[116].mxu0 }
 0x787   :  { %v13474_v39 = vpop.f32.mrb[117].mxu0 }
 0x788   :  { %v13475_v49 = vadd.f32 %v13474_v39, %v13473_v3  ;;  %v13476_v56 = vpop.f32.mrb[118].mxu0 }
 0x789   :  { %v13477_v63 = vpop.f32.mrb[119].mxu0 }
 0x78a   :  { %v11560_v14 = vadd.f32 %v13475_v49, %v11520_v47 }
 0x78c   :  { %v11600_v13 = vadd.f32 %v18750_v23, %v11560_v14 }
 0x7a6   :  { %v13517_v43 = vpop.f32.mrb[120].mxu0 }
 0x7a7   :  { %v13518_v44 = vpop.f32.mrb[121].mxu0 }
 0x7a8   :  { %v13519_v7 = vadd.f32 %v13518_v44, %v13517_v43  ;;  %v13520_v38 = vpop.f32.mrb[122].mxu0 }
 0x7a9   :  { %v13521_v32 = vpop.f32.mrb[123].mxu0 }
 0x7aa   :  { %v11640_v26 = vadd.f32 %v13519_v7, %v11600_v13 }
 0x7ac   :  { %v11680_v9 = vadd.f32 %v13541_v58, %v11640_v26 }
 0x7c6   :  { %v13561_v55 = vpop.f32.mrb[124].mxu0 }
 0x7c7   :  { %v13562_v2 = vpop.f32.mrb[125].mxu0 }
 0x7c8   :  { %v13563_v4 = vadd.f32 %v13562_v2, %v13561_v55  ;;  %v13564_v5 = vpop.f32.mrb[126].mxu0 }
 0x7c9   :  { %v13565_v33 = vpop.f32.mrb[127].mxu0 }
 0x7ca   :  { %v11720_v48 = vadd.f32 %v13563_v4, %v11680_v9 }
 0x7cc   :  { %v11760_v12 = vadd.f32 %v13585_v35, %v11720_v48 }
 0x7ce   :  { %v11772_v25 = vadd.f32 %v12568_v60, %v11760_v12 }
 0x7d0   :  { %11773 = vst [vmem:[%s18775_s13] sm:$0xff] %v11772_v25 }
 0x7d1   :  { %11778 = vsyncpa [#allocation3], 1 }
 0x7d2   :  { %11779 = vsyncpa [#allocation5], 1 }
 0x7d3   :  { %11780 = vsyncpa [#allocation8], 1 }
 0x7d4   :  { %11781 = vsyncpa [#allocation11], 1 }
 0x7d5   :  { %11782 = vsyncpa [#allocation14], 1 }
 0x7d6   :  { %11783 = vsyncpa [#allocation17], 1 }

</bundles_post_ra>
